<compile_context>
chip_gen: v7x
topology: tpu7x:2x2x1
jax: 0.10.0
libtpu: 0.0.40
codegen_flags: <defaults>
</compile_context>

<pallas_src>
import jax
import jax.numpy as jnp
from jax.experimental import pallas as pl
from jax.experimental.pallas import tpu as pltpu

N_HIDDEN = 80    # TCN(..., n_hidden=80) default used by Discriminator
N_BLOCKS = 7


def _block_static_config(i):
    """(kernel_size, dilation) for TCN block i — mirrors the PyTorch TCN loop."""
    kernel_size = 1 if i == 0 else 2
    dilation = 1 if i <= 1 else 2 ** (i - 1)
    return kernel_size, dilation


# -----------------------------------------------------------------------------
# Fused TemporalBlock kernel:
#   out = PReLU(conv2(PReLU(conv1(x)))) + (x | downsample(x))
# One grid step per batch element; everything for one sample stays in VMEM.
# -----------------------------------------------------------------------------
def _make_temporal_block_kernel(k, d, left, S, has_downsample):
    def kernel(*refs):
        it = iter(refs)
        x_ref = next(it)
        w1_refs = [next(it) for _ in range(k)]
        b1_ref, a1_ref = next(it), next(it)
        w2_refs = [next(it) for _ in range(k)]
        b2_ref, a2_ref = next(it), next(it)
        if has_downsample:
            wd_ref, bd_ref = next(it), next(it)
        o_ref = next(it)
        if k > 1:
            pad1_ref, pad2_ref = next(it), next(it)
        else:
            pad1_ref = pad2_ref = None

        x = x_ref[...]                                    # (C_in, S)

        def dilated_conv(v, w_refs, b_ref, pad_ref):
            # Conv1d(..., padding='same', dilation=d): torch pads
            # left = d*(k-1)//2 zeros on the left, the rest on the right.
            if k == 1:
                acc = jnp.dot(w_refs[0][...], v,
                              preferred_element_type=jnp.float32)
            else:
                # Zero-padded copy of v lives only in VMEM scratch; the k taps
                # are plain static lane slices of it (nothing hits HBM).
                pad_ref[...] = jnp.zeros_like(pad_ref)
                pad_ref[:, left:left + S] = v
                acc = jnp.dot(w_refs[0][...], pad_ref[:, 0:S],
                              preferred_element_type=jnp.float32)
                for j in range(1, k):
                    acc = acc + jnp.dot(w_refs[j][...],
                                        pad_ref[:, j * d:j * d + S],
                                        preferred_element_type=jnp.float32)
            return acc + b_ref[...]                       # (C_out, 1) broadcast

        def prelu(v, a_ref):
            return jnp.where(v > 0.0, v, a_ref[...] * v)  # (1, 1) broadcast

        h = prelu(dilated_conv(x, w1_refs, b1_ref, pad1_ref), a1_ref)
        out = prelu(dilated_conv(h, w2_refs, b2_ref, pad2_ref), a2_ref)

        if has_downsample:
            res = jnp.dot(wd_ref[...], x,
                          preferred_element_type=jnp.float32) + bd_ref[...]
        else:
            res = x
        o_ref[...] = (out + res).astype(o_ref.dtype)

    return kernel


def temporal_block(x, blk, *, kernel_size, dilation):
    """x: (N, C_in, S) -> (N, C_out, S), one fused Pallas kernel per block."""
    N, C_in, S = x.shape
    k, d = kernel_size, dilation
    total_pad = d * (k - 1)
    left = total_pad // 2                                  # torch 'same' rule

    w1, b1, a1 = blk["w1"], blk["b1"], blk["a1"]
    w2, b2, a2 = blk["w2"], blk["b2"], blk["a2"]
    wd, bd = blk["wd"], blk["bd"]
    has_downsample = wd is not None
    C_h, C_out = w1.shape[0], w2.shape[0]

    # Wrapper-side parameter plumbing only (no compute): split (C_out, C_in, k)
    # conv weights into k 2D tap matrices, biases -> (C, 1), PReLU slope -> (1, 1).
    w1_taps = [w1[:, :, j] for j in range(k)]
    w2_taps = [w2[:, :, j] for j in range(k)]
    inputs = ([x] + w1_taps + [b1.reshape(C_h, 1), a1.reshape(1, 1)]
              + w2_taps + [b2.reshape(C_out, 1), a2.reshape(1, 1)])
    if has_downsample:
        inputs += [wd[:, :, 0], bd.reshape(C_out, 1)]

    # Activation blocks: last two dims equal the full (C, S) extents, so the
    # (8,128) divisibility rule does not apply.  Parameters are whole-array blocks.
    in_specs = [pl.BlockSpec((None, C_in, S), lambda n: (n, 0, 0))]
    for arr in inputs[1:]:
        in_specs.append(pl.BlockSpec(arr.shape, lambda n: (0, 0)))

    scratch_shapes = []
    if k > 1:
        scratch_shapes = [pltpu.VMEM((C_in, S + total_pad), jnp.float32),
                          pltpu.VMEM((C_h, S + total_pad), jnp.float32)]

    return pl.pallas_call(
        _make_temporal_block_kernel(k, d, left, S, has_downsample),
        grid=(N,),
        in_specs=in_specs,
        out_specs=pl.BlockSpec((None, C_out, S), lambda n: (n, 0, 0)),
        out_shape=jax.ShapeDtypeStruct((N, C_out, S), x.dtype),
        scratch_shapes=scratch_shapes,
        compiler_params=pltpu.CompilerParams(
            dimension_semantics=("parallel",)),
    )(*inputs)


# -----------------------------------------------------------------------------
# Final 1x1 conv of the TCN: (N, C, S) -> (N, C_out, S)
# -----------------------------------------------------------------------------
def _pointwise_conv_kernel(x_ref, w_ref, b_ref, o_ref):
    o_ref[...] = (jnp.dot(w_ref[...], x_ref[...],
                          preferred_element_type=jnp.float32)
                  + b_ref[...]).astype(o_ref.dtype)


def pointwise_conv(x, w, b):
    N, C, S = x.shape
    w2 = w[:, :, 0]
    C_out = w2.shape[0]
    return pl.pallas_call(
        _pointwise_conv_kernel,
        grid=(N,),
        in_specs=[pl.BlockSpec((None, C, S), lambda n: (n, 0, 0)),
                  pl.BlockSpec((C_out, C), lambda n: (0, 0)),
                  pl.BlockSpec((C_out, 1), lambda n: (0, 0))],
        out_specs=pl.BlockSpec((None, C_out, S), lambda n: (n, 0, 0)),
        out_shape=jax.ShapeDtypeStruct((N, C_out, S), x.dtype),
        compiler_params=pltpu.CompilerParams(
            dimension_semantics=("parallel",)),
    )(x, w2, b.reshape(C_out, 1))


# -----------------------------------------------------------------------------
# Flatten -> Linear -> Sigmoid head: (N, F) -> (N, 1)
# -----------------------------------------------------------------------------
def _fc_sigmoid_kernel(x_ref, w_ref, b_ref, o_ref):
    logits = jnp.dot(x_ref[...], w_ref[...],
                     preferred_element_type=jnp.float32) + b_ref[...]
    o_ref[...] = (1.0 / (1.0 + jnp.exp(-logits))).astype(o_ref.dtype)


def fc_sigmoid(flat, w, b):
    N, F = flat.shape
    return pl.pallas_call(
        _fc_sigmoid_kernel,
        grid=(1,),
        in_specs=[pl.BlockSpec((N, F), lambda i: (0, 0)),
                  pl.BlockSpec((F, 1), lambda i: (0, 0)),
                  pl.BlockSpec((1, 1), lambda i: (0, 0))],
        out_specs=pl.BlockSpec((N, 1), lambda i: (0, 0)),
        out_shape=jax.ShapeDtypeStruct((N, 1), flat.dtype),
    )(flat, w.reshape(1, F).T, b.reshape(1, 1))


# -----------------------------------------------------------------------------
# Full Discriminator forward.  Transposes / reshapes between kernels are
# wrapper-side layout plumbing only.
# -----------------------------------------------------------------------------
@jax.jit
def discriminator_forward(params, x):
    """x: (N, seq_len, input_size) -> (prob (N, 1), tcn_out (N, seq_len, output_size))."""
    y = jnp.transpose(x, (0, 2, 1))                        # (N, C_in, S)
    for i, blk in enumerate(params["blocks"]):
        k, d = _block_static_config(i)
        y = temporal_block(y, blk, kernel_size=k, dilation=d)
    z = pointwise_conv(y, params["conv_w"], params["conv_b"])
    tcn_out = jnp.transpose(z, (0, 2, 1))                  # (N, S, output_size)
    flat = tcn_out.reshape(tcn_out.shape[0], -1)           # (N, S*output_size)
    prob = fc_sigmoid(flat, params["fc_w"], params["fc_b"])
    return prob, tcn_out


# -----------------------------------------------------------------------------
# Deterministic parameter construction (forward semantics do not depend on the
# exact init; scales chosen so the self-check is numerically meaningful).
# -----------------------------------------------------------------------------
def init_discriminator_params(key, input_size, output_size, seq_len,
                              n_hidden=N_HIDDEN):
    def normal(k, shape, scale):
        return scale * jax.random.normal(k, shape, jnp.float32)

    keys = jax.random.split(key, 6 * N_BLOCKS + 4)
    blocks = []
    for i in range(N_BLOCKS):
        c_in = input_size if i == 0 else n_hidden
        k_size, _ = _block_static_config(i)
        k0, k1, k2, k3, k4, k5 = keys[6 * i:6 * i + 6]
        blk = {
            "w1": normal(k0, (n_hidden, c_in, k_size), 0.05),
            "b1": normal(k1, (n_hidden,), 0.05),
            "a1": jnp.full((1,), 0.25, jnp.float32),       # PReLU default init
            "w2": normal(k2, (n_hidden, n_hidden, k_size), 0.05),
            "b2": normal(k3, (n_hidden,), 0.05),
            "a2": jnp.full((1,), 0.25, jnp.float32),
            "wd": None,
            "bd": None,
        }
        if c_in != n_hidden:                               # 1x1 downsample conv
            blk["wd"] = normal(k4, (n_hidden, c_in, 1), 0.05)
            blk["bd"] = normal(k5, (n_hidden,), 0.05)
        blocks.append(blk)

    kc0, kc1, kf0, kf1 = keys[6 * N_BLOCKS:]
    return {
        "blocks": blocks,
        "conv_w": normal(kc0, (output_size, n_hidden, 1), 0.05),
        "conv_b": normal(kc1, (output_size,), 0.05),
        "fc_w": normal(kf0, (1, output_size * seq_len), 0.5),
        "fc_b": normal(kf1, (1,), 0.5),
    }


# -----------------------------------------------------------------------------
# Pure-JAX reference (same math, no Pallas) for the self-check.
# -----------------------------------------------------------------------------
def _ref_conv1d_same(x, w, b, dilation):
    """torch Conv1d(..., padding='same') reference; x: (N, C_in, S)."""
    N, C_in, S = x.shape
    C_out, _, k = w.shape
    total = dilation * (k - 1)
    left = total // 2
    xp = jnp.pad(x, ((0, 0), (0, 0), (left, total - left)))
    out = jnp.zeros((N, C_out, S), jnp.float32)
    for j in range(k):
        tap = xp[:, :, j * dilation:j * dilation + S]
        out = out + jnp.einsum("oc,ncs->nos", w[:, :, j], tap,
                               precision=jax.lax.Precision.HIGHEST)
    return out + b[None, :, None]


def _ref_prelu(v, a):
    return jnp.where(v > 0.0, v, a * v)


def reference_forward(params, x):
    y = jnp.transpose(x, (0, 2, 1))
    for i, blk in enumerate(params["blocks"]):
        _, d = _block_static_config(i)
        h = _ref_prelu(_ref_conv1d_same(y, blk["w1"], blk["b1"], d), blk["a1"])
        o = _ref_prelu(_ref_conv1d_same(h, blk["w2"], blk["b2"], d), blk["a2"])
        res = y if blk["wd"] is None else _ref_conv1d_same(y, blk["wd"], blk["bd"], 1)
        y = o + res
    z = _ref_conv1d_same(y, params["conv_w"], params["conv_b"], 1)
    tcn_out = jnp.transpose(z, (0, 2, 1))
    flat = tcn_out.reshape(tcn_out.shape[0], -1)
    logits = flat @ params["fc_w"].T + params["fc_b"]
    return jax.nn.sigmoid(logits), tcn_out


def _rel_err(a, b):
    return float(jnp.linalg.norm(a - b) / (jnp.linalg.norm(b) + 1e-12))


if __name__ == "__main__":
    N, seq_len, input_size, output_size = 2, 16, 4, 4

    key = jax.random.PRNGKey(0)
    kp, kx = jax.random.split(key)
    params = init_discriminator_params(kp, input_size, output_size, seq_len)
    x = jax.random.normal(kx, (N, seq_len, input_size), jnp.float32)

    prob, tcn_out = discriminator_forward(params, x)
    prob = jax.block_until_ready(prob)

    ref_prob, ref_tcn = reference_forward(params, x)

    assert prob.shape == (N, 1), prob.shape
    assert tcn_out.shape == (N, seq_len, output_size), tcn_out.shape
    assert _rel_err(tcn_out, ref_tcn) < 3e-2, _rel_err(tcn_out, ref_tcn)
    assert _rel_err(prob, ref_prob) < 3e-2, _rel_err(prob, ref_prob)
    print("KERNEL_OK")
</pallas_src>

<mosaic_0001>
module attributes {stable_mosaic.version = 11 : i64} {
  func.func @kernel(%arg0: i32, %arg1: memref<1x4x16xf32, #tpu.memory_space<vmem>>, %arg2: memref<80x4xf32, #tpu.memory_space<vmem>>, %arg3: memref<80x1xf32, #tpu.memory_space<vmem>>, %arg4: memref<1x1xf32, #tpu.memory_space<vmem>>, %arg5: memref<80x80xf32, #tpu.memory_space<vmem>>, %arg6: memref<80x1xf32, #tpu.memory_space<vmem>>, %arg7: memref<1x1xf32, #tpu.memory_space<vmem>>, %arg8: memref<80x4xf32, #tpu.memory_space<vmem>>, %arg9: memref<80x1xf32, #tpu.memory_space<vmem>>, %arg10: memref<1x80x16xf32, #tpu.memory_space<vmem>>) attributes {dimension_semantics = [#tpu.dimension_semantics<parallel>], iteration_bounds = array<i64: 2>, scalar_prefetch = 0 : i64, scratch_operands = 0 : i64, tpu.core_type = #tpu.core_type<tc>, window_params = [{transform_indices = @transform_0, window_bounds = array<i64: 1, 4, 16>}, {pipeline_mode = #tpu.pipeline_mode<synchronous>, transform_indices = @transform_1, window_bounds = array<i64: 80, 4>}, {pipeline_mode = #tpu.pipeline_mode<synchronous>, transform_indices = @transform_2, window_bounds = array<i64: 80, 1>}, {pipeline_mode = #tpu.pipeline_mode<synchronous>, transform_indices = @transform_3, window_bounds = array<i64: 1, 1>}, {pipeline_mode = #tpu.pipeline_mode<synchronous>, transform_indices = @transform_4, window_bounds = array<i64: 80, 80>}, {pipeline_mode = #tpu.pipeline_mode<synchronous>, transform_indices = @transform_5, window_bounds = array<i64: 80, 1>}, {pipeline_mode = #tpu.pipeline_mode<synchronous>, transform_indices = @transform_6, window_bounds = array<i64: 1, 1>}, {pipeline_mode = #tpu.pipeline_mode<synchronous>, transform_indices = @transform_7, window_bounds = array<i64: 80, 4>}, {pipeline_mode = #tpu.pipeline_mode<synchronous>, transform_indices = @transform_8, window_bounds = array<i64: 80, 1>}, {transform_indices = @transform_9, window_bounds = array<i64: 1, 80, 16>}]} {
    %c0 = arith.constant 0 : index
    %c0_0 = arith.constant 0 : index
    %c0_1 = arith.constant 0 : index
    %0 = vector.load %arg1[%c0, %c0_0, %c0_1] : memref<1x4x16xf32, #tpu.memory_space<vmem>>, vector<1x4x16xf32>
    %1 = vector.shape_cast %0 : vector<1x4x16xf32> to vector<4x16xf32>
    %c0_2 = arith.constant 0 : index
    %c0_3 = arith.constant 0 : index
    %2 = vector.load %arg2[%c0_2, %c0_3] : memref<80x4xf32, #tpu.memory_space<vmem>>, vector<80x4xf32>
    %cst = arith.constant dense<0.000000e+00> : vector<80x16xf32>
    %3 = tpu.matmul %2, %1, %cst {dimension_numbers = #tpu.dot_dimension_numbers<[1], [0], [0], [1], [0, 0, 1, 1], [], []>} : vector<80x4xf32>, vector<4x16xf32>, vector<80x16xf32> -> vector<80x16xf32>
    %c0_4 = arith.constant 0 : index
    %c0_5 = arith.constant 0 : index
    %4 = vector.load %arg3[%c0_4, %c0_5] : memref<80x1xf32, #tpu.memory_space<vmem>>, vector<80x1xf32>
    %5 = vector.broadcast %4 : vector<80x1xf32> to vector<80x16xf32>
    %6 = arith.addf %3, %5 : vector<80x16xf32>
    %cst_6 = arith.constant 0.000000e+00 : f32
    %7 = vector.broadcast %cst_6 : f32 to vector<80x16xf32>
    %8 = arith.cmpf ogt, %6, %7 : vector<80x16xf32>
    %c0_7 = arith.constant 0 : index
    %c0_8 = arith.constant 0 : index
    %9 = vector.load %arg4[%c0_7, %c0_8] : memref<1x1xf32, #tpu.memory_space<vmem>>, vector<1x1xf32>
    %10 = vector.broadcast %9 : vector<1x1xf32> to vector<80x16xf32>
    %11 = arith.mulf %10, %6 : vector<80x16xf32>
    %12 = arith.select %8, %6, %11 : vector<80x16xi1>, vector<80x16xf32>
    %c0_9 = arith.constant 0 : index
    %c0_10 = arith.constant 0 : index
    %13 = vector.load %arg5[%c0_9, %c0_10] : memref<80x80xf32, #tpu.memory_space<vmem>>, vector<80x80xf32>
    %cst_11 = arith.constant dense<0.000000e+00> : vector<80x16xf32>
    %14 = tpu.matmul %13, %12, %cst_11 {dimension_numbers = #tpu.dot_dimension_numbers<[1], [0], [0], [1], [0, 0, 1, 1], [], []>} : vector<80x80xf32>, vector<80x16xf32>, vector<80x16xf32> -> vector<80x16xf32>
    %c0_12 = arith.constant 0 : index
    %c0_13 = arith.constant 0 : index
    %15 = vector.load %arg6[%c0_12, %c0_13] : memref<80x1xf32, #tpu.memory_space<vmem>>, vector<80x1xf32>
    %16 = vector.broadcast %15 : vector<80x1xf32> to vector<80x16xf32>
    %17 = arith.addf %14, %16 : vector<80x16xf32>
    %cst_14 = arith.constant 0.000000e+00 : f32
    %18 = vector.broadcast %cst_14 : f32 to vector<80x16xf32>
    %19 = arith.cmpf ogt, %17, %18 : vector<80x16xf32>
    %c0_15 = arith.constant 0 : index
    %c0_16 = arith.constant 0 : index
    %20 = vector.load %arg7[%c0_15, %c0_16] : memref<1x1xf32, #tpu.memory_space<vmem>>, vector<1x1xf32>
    %21 = vector.broadcast %20 : vector<1x1xf32> to vector<80x16xf32>
    %22 = arith.mulf %21, %17 : vector<80x16xf32>
    %23 = arith.select %19, %17, %22 : vector<80x16xi1>, vector<80x16xf32>
    %c0_17 = arith.constant 0 : index
    %c0_18 = arith.constant 0 : index
    %24 = vector.load %arg8[%c0_17, %c0_18] : memref<80x4xf32, #tpu.memory_space<vmem>>, vector<80x4xf32>
    %cst_19 = arith.constant dense<0.000000e+00> : vector<80x16xf32>
    %25 = tpu.matmul %24, %1, %cst_19 {dimension_numbers = #tpu.dot_dimension_numbers<[1], [0], [0], [1], [0, 0, 1, 1], [], []>} : vector<80x4xf32>, vector<4x16xf32>, vector<80x16xf32> -> vector<80x16xf32>
    %c0_20 = arith.constant 0 : index
    %c0_21 = arith.constant 0 : index
    %26 = vector.load %arg9[%c0_20, %c0_21] : memref<80x1xf32, #tpu.memory_space<vmem>>, vector<80x1xf32>
    %27 = vector.broadcast %26 : vector<80x1xf32> to vector<80x16xf32>
    %28 = arith.addf %25, %27 : vector<80x16xf32>
    %29 = arith.addf %23, %28 : vector<80x16xf32>
    %c0_22 = arith.constant 0 : index
    %c0_23 = arith.constant 0 : index
    %c0_24 = arith.constant 0 : index
    %30 = vector.load %arg10[%c0_22, %c0_23, %c0_24] : memref<1x80x16xf32, #tpu.memory_space<vmem>>, vector<1x80x16xf32>
    %31 = vector.shape_cast %30 : vector<1x80x16xf32> to vector<80x16xf32>
    %32 = vector.shape_cast %29 : vector<80x16xf32> to vector<1x80x16xf32>
    tpu.vector_store %arg10[%c0_22, %c0_23, %c0_24], %32 {strides = array<i32>} : memref<1x80x16xf32, #tpu.memory_space<vmem>>, vector<1x80x16xf32>,
    return
  }
  func.func @transform_0(%arg0: i32) -> (i32, i32, i32) {
    %c0_i32 = arith.constant 0 : i32
    %c0_i32_0 = arith.constant 0 : i32
    %c0_i32_1 = arith.constant 0 : i32
    return %arg0, %c0_i32, %c0_i32_0 : i32, i32, i32
  }
  func.func @transform_1(%arg0: i32) -> (i32, i32) {
    %c0_i32 = arith.constant 0 : i32
    %c0_i32_0 = arith.constant 0 : i32
    %c0_i32_1 = arith.constant 0 : i32
    return %c0_i32, %c0_i32_0 : i32, i32
  }
  func.func @transform_2(%arg0: i32) -> (i32, i32) {
    %c0_i32 = arith.constant 0 : i32
    %c0_i32_0 = arith.constant 0 : i32
    %c0_i32_1 = arith.constant 0 : i32
    return %c0_i32, %c0_i32_0 : i32, i32
  }
  func.func @transform_3(%arg0: i32) -> (i32, i32) {
    %c0_i32 = arith.constant 0 : i32
    %c0_i32_0 = arith.constant 0 : i32
    %c0_i32_1 = arith.constant 0 : i32
    return %c0_i32, %c0_i32_0 : i32, i32
  }
  func.func @transform_4(%arg0: i32) -> (i32, i32) {
    %c0_i32 = arith.constant 0 : i32
    %c0_i32_0 = arith.constant 0 : i32
    %c0_i32_1 = arith.constant 0 : i32
    return %c0_i32, %c0_i32_0 : i32, i32
  }
  func.func @transform_5(%arg0: i32) -> (i32, i32) {
    %c0_i32 = arith.constant 0 : i32
    %c0_i32_0 = arith.constant 0 : i32
    %c0_i32_1 = arith.constant 0 : i32
    return %c0_i32, %c0_i32_0 : i32, i32
  }
  func.func @transform_6(%arg0: i32) -> (i32, i32) {
    %c0_i32 = arith.constant 0 : i32
    %c0_i32_0 = arith.constant 0 : i32
    %c0_i32_1 = arith.constant 0 : i32
    return %c0_i32, %c0_i32_0 : i32, i32
  }
  func.func @transform_7(%arg0: i32) -> (i32, i32) {
    %c0_i32 = arith.constant 0 : i32
    %c0_i32_0 = arith.constant 0 : i32
    %c0_i32_1 = arith.constant 0 : i32
    return %c0_i32, %c0_i32_0 : i32, i32
  }
  func.func @transform_8(%arg0: i32) -> (i32, i32) {
    %c0_i32 = arith.constant 0 : i32
    %c0_i32_0 = arith.constant 0 : i32
    %c0_i32_1 = arith.constant 0 : i32
    return %c0_i32, %c0_i32_0 : i32, i32
  }
  func.func @transform_9(%arg0: i32) -> (i32, i32, i32) {
    %c0_i32 = arith.constant 0 : i32
    %c0_i32_0 = arith.constant 0 : i32
    %c0_i32_1 = arith.constant 0 : i32
    return %arg0, %c0_i32, %c0_i32_0 : i32, i32, i32
  }
}

module attributes {stable_mosaic.version = 11 : i64} {
  func.func @kernel(%arg0: i32, %arg1: memref<1x80x16xf32, #tpu.memory_space<vmem>>, %arg2: memref<80x80xf32, #tpu.memory_space<vmem>>, %arg3: memref<80x80xf32, #tpu.memory_space<vmem>>, %arg4: memref<80x1xf32, #tpu.memory_space<vmem>>, %arg5: memref<1x1xf32, #tpu.memory_space<vmem>>, %arg6: memref<80x80xf32, #tpu.memory_space<vmem>>, %arg7: memref<80x80xf32, #tpu.memory_space<vmem>>, %arg8: memref<80x1xf32, #tpu.memory_space<vmem>>, %arg9: memref<1x1xf32, #tpu.memory_space<vmem>>, %arg10: memref<1x80x16xf32, #tpu.memory_space<vmem>>, %arg11: memref<80x17xf32, #tpu.memory_space<vmem>>, %arg12: memref<80x17xf32, #tpu.memory_space<vmem>>) attributes {dimension_semantics = [#tpu.dimension_semantics<parallel>], iteration_bounds = array<i64: 2>, scalar_prefetch = 0 : i64, scratch_operands = 2 : i64, tpu.core_type = #tpu.core_type<tc>, window_params = [{transform_indices = @transform_0, window_bounds = array<i64: 1, 80, 16>}, {pipeline_mode = #tpu.pipeline_mode<synchronous>, transform_indices = @transform_1, window_bounds = array<i64: 80, 80>}, {pipeline_mode = #tpu.pipeline_mode<synchronous>, transform_indices = @transform_2, window_bounds = array<i64: 80, 80>}, {pipeline_mode = #tpu.pipeline_mode<synchronous>, transform_indices = @transform_3, window_bounds = array<i64: 80, 1>}, {pipeline_mode = #tpu.pipeline_mode<synchronous>, transform_indices = @transform_4, window_bounds = array<i64: 1, 1>}, {pipeline_mode = #tpu.pipeline_mode<synchronous>, transform_indices = @transform_5, window_bounds = array<i64: 80, 80>}, {pipeline_mode = #tpu.pipeline_mode<synchronous>, transform_indices = @transform_6, window_bounds = array<i64: 80, 80>}, {pipeline_mode = #tpu.pipeline_mode<synchronous>, transform_indices = @transform_7, window_bounds = array<i64: 80, 1>}, {pipeline_mode = #tpu.pipeline_mode<synchronous>, transform_indices = @transform_8, window_bounds = array<i64: 1, 1>}, {transform_indices = @transform_9, window_bounds = array<i64: 1, 80, 16>}]} {
    %c0 = arith.constant 0 : index
    %c0_0 = arith.constant 0 : index
    %c0_1 = arith.constant 0 : index
    %0 = vector.load %arg1[%c0, %c0_0, %c0_1] : memref<1x80x16xf32, #tpu.memory_space<vmem>>, vector<1x80x16xf32>
    %1 = vector.shape_cast %0 : vector<1x80x16xf32> to vector<80x16xf32>
    %cst = arith.constant 0.000000e+00 : f32
    %2 = vector.broadcast %cst : f32 to vector<80x17xf32>
    %c0_2 = arith.constant 0 : index
    %c0_3 = arith.constant 0 : index
    %3 = vector.load %arg11[%c0_2, %c0_3] : memref<80x17xf32, #tpu.memory_space<vmem>>, vector<80x17xf32>
    tpu.vector_store %arg11[%c0_2, %c0_3], %2 {strides = array<i32>} : memref<80x17xf32, #tpu.memory_space<vmem>>, vector<80x17xf32>,
    %c0_4 = arith.constant 0 : index
    %c0_5 = arith.constant 0 : index
    %4 = vector.load %arg11[%c0_4, %c0_5] : memref<80x17xf32, #tpu.memory_space<vmem>>, vector<80x16xf32>
    tpu.vector_store %arg11[%c0_4, %c0_5], %1 {strides = array<i32>} : memref<80x17xf32, #tpu.memory_space<vmem>>, vector<80x16xf32>,
    %c0_6 = arith.constant 0 : index
    %c0_7 = arith.constant 0 : index
    %5 = vector.load %arg2[%c0_6, %c0_7] : memref<80x80xf32, #tpu.memory_space<vmem>>, vector<80x80xf32>
    %c0_8 = arith.constant 0 : index
    %c0_9 = arith.constant 0 : index
    %6 = vector.load %arg11[%c0_8, %c0_9] : memref<80x17xf32, #tpu.memory_space<vmem>>, vector<80x16xf32>
    %cst_10 = arith.constant dense<0.000000e+00> : vector<80x16xf32>
    %7 = tpu.matmul %5, %6, %cst_10 {dimension_numbers = #tpu.dot_dimension_numbers<[1], [0], [0], [1], [0, 0, 1, 1], [], []>} : vector<80x80xf32>, vector<80x16xf32>, vector<80x16xf32> -> vector<80x16xf32>
    %c0_11 = arith.constant 0 : index
    %c0_12 = arith.constant 0 : index
    %8 = vector.load %arg3[%c0_11, %c0_12] : memref<80x80xf32, #tpu.memory_space<vmem>>, vector<80x80xf32>
    %c0_13 = arith.constant 0 : index
    %c1 = arith.constant 1 : index
    %9 = vector.load %arg11[%c0_13, %c1] : memref<80x17xf32, #tpu.memory_space<vmem>>, vector<80x16xf32>
    %cst_14 = arith.constant dense<0.000000e+00> : vector<80x16xf32>
    %10 = tpu.matmul %8, %9, %cst_14 {dimension_numbers = #tpu.dot_dimension_numbers<[1], [0], [0], [1], [0, 0, 1, 1], [], []>} : vector<80x80xf32>, vector<80x16xf32>, vector<80x16xf32> -> vector<80x16xf32>
    %11 = arith.addf %7, %10 : vector<80x16xf32>
    %c0_15 = arith.constant 0 : index
    %c0_16 = arith.constant 0 : index
    %12 = vector.load %arg4[%c0_15, %c0_16] : memref<80x1xf32, #tpu.memory_space<vmem>>, vector<80x1xf32>
    %13 = vector.broadcast %12 : vector<80x1xf32> to vector<80x16xf32>
    %14 = arith.addf %11, %13 : vector<80x16xf32>
    %cst_17 = arith.constant 0.000000e+00 : f32
    %15 = vector.broadcast %cst_17 : f32 to vector<80x16xf32>
    %16 = arith.cmpf ogt, %14, %15 : vector<80x16xf32>
    %c0_18 = arith.constant 0 : index
    %c0_19 = arith.constant 0 : index
    %17 = vector.load %arg5[%c0_18, %c0_19] : memref<1x1xf32, #tpu.memory_space<vmem>>, vector<1x1xf32>
    %18 = vector.broadcast %17 : vector<1x1xf32> to vector<80x16xf32>
    %19 = arith.mulf %18, %14 : vector<80x16xf32>
    %20 = arith.select %16, %14, %19 : vector<80x16xi1>, vector<80x16xf32>
    %cst_20 = arith.constant 0.000000e+00 : f32
    %21 = vector.broadcast %cst_20 : f32 to vector<80x17xf32>
    %c0_21 = arith.constant 0 : index
    %c0_22 = arith.constant 0 : index
    %22 = vector.load %arg12[%c0_21, %c0_22] : memref<80x17xf32, #tpu.memory_space<vmem>>, vector<80x17xf32>
    tpu.vector_store %arg12[%c0_21, %c0_22], %21 {strides = array<i32>} : memref<80x17xf32, #tpu.memory_space<vmem>>, vector<80x17xf32>,
    %c0_23 = arith.constant 0 : index
    %c0_24 = arith.constant 0 : index
    %23 = vector.load %arg12[%c0_23, %c0_24] : memref<80x17xf32, #tpu.memory_space<vmem>>, vector<80x16xf32>
    tpu.vector_store %arg12[%c0_23, %c0_24], %20 {strides = array<i32>} : memref<80x17xf32, #tpu.memory_space<vmem>>, vector<80x16xf32>,
    %c0_25 = arith.constant 0 : index
    %c0_26 = arith.constant 0 : index
    %24 = vector.load %arg6[%c0_25, %c0_26] : memref<80x80xf32, #tpu.memory_space<vmem>>, vector<80x80xf32>
    %c0_27 = arith.constant 0 : index
    %c0_28 = arith.constant 0 : index
    %25 = vector.load %arg12[%c0_27, %c0_28] : memref<80x17xf32, #tpu.memory_space<vmem>>, vector<80x16xf32>
    %cst_29 = arith.constant dense<0.000000e+00> : vector<80x16xf32>
    %26 = tpu.matmul %24, %25, %cst_29 {dimension_numbers = #tpu.dot_dimension_numbers<[1], [0], [0], [1], [0, 0, 1, 1], [], []>} : vector<80x80xf32>, vector<80x16xf32>, vector<80x16xf32> -> vector<80x16xf32>
    %c0_30 = arith.constant 0 : index
    %c0_31 = arith.constant 0 : index
    %27 = vector.load %arg7[%c0_30, %c0_31] : memref<80x80xf32, #tpu.memory_space<vmem>>, vector<80x80xf32>
    %c0_32 = arith.constant 0 : index
    %c1_33 = arith.constant 1 : index
    %28 = vector.load %arg12[%c0_32, %c1_33] : memref<80x17xf32, #tpu.memory_space<vmem>>, vector<80x16xf32>
    %cst_34 = arith.constant dense<0.000000e+00> : vector<80x16xf32>
    %29 = tpu.matmul %27, %28, %cst_34 {dimension_numbers = #tpu.dot_dimension_numbers<[1], [0], [0], [1], [0, 0, 1, 1], [], []>} : vector<80x80xf32>, vector<80x16xf32>, vector<80x16xf32> -> vector<80x16xf32>
    %30 = arith.addf %26, %29 : vector<80x16xf32>
    %c0_35 = arith.constant 0 : index
    %c0_36 = arith.constant 0 : index
    %31 = vector.load %arg8[%c0_35, %c0_36] : memref<80x1xf32, #tpu.memory_space<vmem>>, vector<80x1xf32>
    %32 = vector.broadcast %31 : vector<80x1xf32> to vector<80x16xf32>
    %33 = arith.addf %30, %32 : vector<80x16xf32>
    %cst_37 = arith.constant 0.000000e+00 : f32
    %34 = vector.broadcast %cst_37 : f32 to vector<80x16xf32>
    %35 = arith.cmpf ogt, %33, %34 : vector<80x16xf32>
    %c0_38 = arith.constant 0 : index
    %c0_39 = arith.constant 0 : index
    %36 = vector.load %arg9[%c0_38, %c0_39] : memref<1x1xf32, #tpu.memory_space<vmem>>, vector<1x1xf32>
    %37 = vector.broadcast %36 : vector<1x1xf32> to vector<80x16xf32>
    %38 = arith.mulf %37, %33 : vector<80x16xf32>
    %39 = arith.select %35, %33, %38 : vector<80x16xi1>, vector<80x16xf32>
    %40 = arith.addf %39, %1 : vector<80x16xf32>
    %c0_40 = arith.constant 0 : index
    %c0_41 = arith.constant 0 : index
    %c0_42 = arith.constant 0 : index
    %41 = vector.load %arg10[%c0_40, %c0_41, %c0_42] : memref<1x80x16xf32, #tpu.memory_space<vmem>>, vector<1x80x16xf32>
    %42 = vector.shape_cast %41 : vector<1x80x16xf32> to vector<80x16xf32>
    %43 = vector.shape_cast %40 : vector<80x16xf32> to vector<1x80x16xf32>
    tpu.vector_store %arg10[%c0_40, %c0_41, %c0_42], %43 {strides = array<i32>} : memref<1x80x16xf32, #tpu.memory_space<vmem>>, vector<1x80x16xf32>,
    return
  }
  func.func @transform_0(%arg0: i32) -> (i32, i32, i32) {
    %c0_i32 = arith.constant 0 : i32
    %c0_i32_0 = arith.constant 0 : i32
    %c0_i32_1 = arith.constant 0 : i32
    return %arg0, %c0_i32, %c0_i32_0 : i32, i32, i32
  }
  func.func @transform_1(%arg0: i32) -> (i32, i32) {
    %c0_i32 = arith.constant 0 : i32
    %c0_i32_0 = arith.constant 0 : i32
    %c0_i32_1 = arith.constant 0 : i32
    return %c0_i32, %c0_i32_0 : i32, i32
  }
  func.func @transform_2(%arg0: i32) -> (i32, i32) {
    %c0_i32 = arith.constant 0 : i32
    %c0_i32_0 = arith.constant 0 : i32
    %c0_i32_1 = arith.constant 0 : i32
    return %c0_i32, %c0_i32_0 : i32, i32
  }
  func.func @transform_3(%arg0: i32) -> (i32, i32) {
    %c0_i32 = arith.constant 0 : i32
    %c0_i32_0 = arith.constant 0 : i32
    %c0_i32_1 = arith.constant 0 : i32
    return %c0_i32, %c0_i32_0 : i32, i32
  }
  func.func @transform_4(%arg0: i32) -> (i32, i32) {
    %c0_i32 = arith.constant 0 : i32
    %c0_i32_0 = arith.constant 0 : i32
    %c0_i32_1 = arith.constant 0 : i32
    return %c0_i32, %c0_i32_0 : i32, i32
  }
  func.func @transform_5(%arg0: i32) -> (i32, i32) {
    %c0_i32 = arith.constant 0 : i32
    %c0_i32_0 = arith.constant 0 : i32
    %c0_i32_1 = arith.constant 0 : i32
    return %c0_i32, %c0_i32_0 : i32, i32
  }
  func.func @transform_6(%arg0: i32) -> (i32, i32) {
    %c0_i32 = arith.constant 0 : i32
    %c0_i32_0 = arith.constant 0 : i32
    %c0_i32_1 = arith.constant 0 : i32
    return %c0_i32, %c0_i32_0 : i32, i32
  }
  func.func @transform_7(%arg0: i32) -> (i32, i32) {
    %c0_i32 = arith.constant 0 : i32
    %c0_i32_0 = arith.constant 0 : i32
    %c0_i32_1 = arith.constant 0 : i32
    return %c0_i32, %c0_i32_0 : i32, i32
  }
  func.func @transform_8(%arg0: i32) -> (i32, i32) {
    %c0_i32 = arith.constant 0 : i32
    %c0_i32_0 = arith.constant 0 : i32
    %c0_i32_1 = arith.constant 0 : i32
    return %c0_i32, %c0_i32_0 : i32, i32
  }
  func.func @transform_9(%arg0: i32) -> (i32, i32, i32) {
    %c0_i32 = arith.constant 0 : i32
    %c0_i32_0 = arith.constant 0 : i32
    %c0_i32_1 = arith.constant 0 : i32
    return %arg0, %c0_i32, %c0_i32_0 : i32, i32, i32
  }
}

module attributes {stable_mosaic.version = 11 : i64} {
  func.func @kernel(%arg0: i32, %arg1: memref<1x80x16xf32, #tpu.memory_space<vmem>>, %arg2: memref<80x80xf32, #tpu.memory_space<vmem>>, %arg3: memref<80x80xf32, #tpu.memory_space<vmem>>, %arg4: memref<80x1xf32, #tpu.memory_space<vmem>>, %arg5: memref<1x1xf32, #tpu.memory_space<vmem>>, %arg6: memref<80x80xf32, #tpu.memory_space<vmem>>, %arg7: memref<80x80xf32, #tpu.memory_space<vmem>>, %arg8: memref<80x1xf32, #tpu.memory_space<vmem>>, %arg9: memref<1x1xf32, #tpu.memory_space<vmem>>, %arg10: memref<1x80x16xf32, #tpu.memory_space<vmem>>, %arg11: memref<80x20xf32, #tpu.memory_space<vmem>>, %arg12: memref<80x20xf32, #tpu.memory_space<vmem>>) attributes {dimension_semantics = [#tpu.dimension_semantics<parallel>], iteration_bounds = array<i64: 2>, scalar_prefetch = 0 : i64, scratch_operands = 2 : i64, tpu.core_type = #tpu.core_type<tc>, window_params = [{transform_indices = @transform_0, window_bounds = array<i64: 1, 80, 16>}, {pipeline_mode = #tpu.pipeline_mode<synchronous>, transform_indices = @transform_1, window_bounds = array<i64: 80, 80>}, {pipeline_mode = #tpu.pipeline_mode<synchronous>, transform_indices = @transform_2, window_bounds = array<i64: 80, 80>}, {pipeline_mode = #tpu.pipeline_mode<synchronous>, transform_indices = @transform_3, window_bounds = array<i64: 80, 1>}, {pipeline_mode = #tpu.pipeline_mode<synchronous>, transform_indices = @transform_4, window_bounds = array<i64: 1, 1>}, {pipeline_mode = #tpu.pipeline_mode<synchronous>, transform_indices = @transform_5, window_bounds = array<i64: 80, 80>}, {pipeline_mode = #tpu.pipeline_mode<synchronous>, transform_indices = @transform_6, window_bounds = array<i64: 80, 80>}, {pipeline_mode = #tpu.pipeline_mode<synchronous>, transform_indices = @transform_7, window_bounds = array<i64: 80, 1>}, {pipeline_mode = #tpu.pipeline_mode<synchronous>, transform_indices = @transform_8, window_bounds = array<i64: 1, 1>}, {transform_indices = @transform_9, window_bounds = array<i64: 1, 80, 16>}]} {
    %c0 = arith.constant 0 : index
    %c0_0 = arith.constant 0 : index
    %c0_1 = arith.constant 0 : index
    %0 = vector.load %arg1[%c0, %c0_0, %c0_1] : memref<1x80x16xf32, #tpu.memory_space<vmem>>, vector<1x80x16xf32>
    %1 = vector.shape_cast %0 : vector<1x80x16xf32> to vector<80x16xf32>
    %cst = arith.constant 0.000000e+00 : f32
    %2 = vector.broadcast %cst : f32 to vector<80x20xf32>
    %c0_2 = arith.constant 0 : index
    %c0_3 = arith.constant 0 : index
    %3 = vector.load %arg11[%c0_2, %c0_3] : memref<80x20xf32, #tpu.memory_space<vmem>>, vector<80x20xf32>
    tpu.vector_store %arg11[%c0_2, %c0_3], %2 {strides = array<i32>} : memref<80x20xf32, #tpu.memory_space<vmem>>, vector<80x20xf32>,
    %c0_4 = arith.constant 0 : index
    %c2 = arith.constant 2 : index
    %4 = vector.load %arg11[%c0_4, %c2] : memref<80x20xf32, #tpu.memory_space<vmem>>, vector<80x16xf32>
    tpu.vector_store %arg11[%c0_4, %c2], %1 {strides = array<i32>} : memref<80x20xf32, #tpu.memory_space<vmem>>, vector<80x16xf32>,
    %c0_5 = arith.constant 0 : index
    %c0_6 = arith.constant 0 : index
    %5 = vector.load %arg2[%c0_5, %c0_6] : memref<80x80xf32, #tpu.memory_space<vmem>>, vector<80x80xf32>
    %c0_7 = arith.constant 0 : index
    %c0_8 = arith.constant 0 : index
    %6 = vector.load %arg11[%c0_7, %c0_8] : memref<80x20xf32, #tpu.memory_space<vmem>>, vector<80x16xf32>
    %cst_9 = arith.constant dense<0.000000e+00> : vector<80x16xf32>
    %7 = tpu.matmul %5, %6, %cst_9 {dimension_numbers = #tpu.dot_dimension_numbers<[1], [0], [0], [1], [0, 0, 1, 1], [], []>} : vector<80x80xf32>, vector<80x16xf32>, vector<80x16xf32> -> vector<80x16xf32>
    %c0_10 = arith.constant 0 : index
    %c0_11 = arith.constant 0 : index
    %8 = vector.load %arg3[%c0_10, %c0_11] : memref<80x80xf32, #tpu.memory_space<vmem>>, vector<80x80xf32>
    %c0_12 = arith.constant 0 : index
    %c4 = arith.constant 4 : index
    %9 = vector.load %arg11[%c0_12, %c4] : memref<80x20xf32, #tpu.memory_space<vmem>>, vector<80x16xf32>
    %cst_13 = arith.constant dense<0.000000e+00> : vector<80x16xf32>
    %10 = tpu.matmul %8, %9, %cst_13 {dimension_numbers = #tpu.dot_dimension_numbers<[1], [0], [0], [1], [0, 0, 1, 1], [], []>} : vector<80x80xf32>, vector<80x16xf32>, vector<80x16xf32> -> vector<80x16xf32>
    %11 = arith.addf %7, %10 : vector<80x16xf32>
    %c0_14 = arith.constant 0 : index
    %c0_15 = arith.constant 0 : index
    %12 = vector.load %arg4[%c0_14, %c0_15] : memref<80x1xf32, #tpu.memory_space<vmem>>, vector<80x1xf32>
    %13 = vector.broadcast %12 : vector<80x1xf32> to vector<80x16xf32>
    %14 = arith.addf %11, %13 : vector<80x16xf32>
    %cst_16 = arith.constant 0.000000e+00 : f32
    %15 = vector.broadcast %cst_16 : f32 to vector<80x16xf32>
    %16 = arith.cmpf ogt, %14, %15 : vector<80x16xf32>
    %c0_17 = arith.constant 0 : index
    %c0_18 = arith.constant 0 : index
    %17 = vector.load %arg5[%c0_17, %c0_18] : memref<1x1xf32, #tpu.memory_space<vmem>>, vector<1x1xf32>
    %18 = vector.broadcast %17 : vector<1x1xf32> to vector<80x16xf32>
    %19 = arith.mulf %18, %14 : vector<80x16xf32>
    %20 = arith.select %16, %14, %19 : vector<80x16xi1>, vector<80x16xf32>
    %cst_19 = arith.constant 0.000000e+00 : f32
    %21 = vector.broadcast %cst_19 : f32 to vector<80x20xf32>
    %c0_20 = arith.constant 0 : index
    %c0_21 = arith.constant 0 : index
    %22 = vector.load %arg12[%c0_20, %c0_21] : memref<80x20xf32, #tpu.memory_space<vmem>>, vector<80x20xf32>
    tpu.vector_store %arg12[%c0_20, %c0_21], %21 {strides = array<i32>} : memref<80x20xf32, #tpu.memory_space<vmem>>, vector<80x20xf32>,
    %c0_22 = arith.constant 0 : index
    %c2_23 = arith.constant 2 : index
    %23 = vector.load %arg12[%c0_22, %c2_23] : memref<80x20xf32, #tpu.memory_space<vmem>>, vector<80x16xf32>
    tpu.vector_store %arg12[%c0_22, %c2_23], %20 {strides = array<i32>} : memref<80x20xf32, #tpu.memory_space<vmem>>, vector<80x16xf32>,
    %c0_24 = arith.constant 0 : index
    %c0_25 = arith.constant 0 : index
    %24 = vector.load %arg6[%c0_24, %c0_25] : memref<80x80xf32, #tpu.memory_space<vmem>>, vector<80x80xf32>
    %c0_26 = arith.constant 0 : index
    %c0_27 = arith.constant 0 : index
    %25 = vector.load %arg12[%c0_26, %c0_27] : memref<80x20xf32, #tpu.memory_space<vmem>>, vector<80x16xf32>
    %cst_28 = arith.constant dense<0.000000e+00> : vector<80x16xf32>
    %26 = tpu.matmul %24, %25, %cst_28 {dimension_numbers = #tpu.dot_dimension_numbers<[1], [0], [0], [1], [0, 0, 1, 1], [], []>} : vector<80x80xf32>, vector<80x16xf32>, vector<80x16xf32> -> vector<80x16xf32>
    %c0_29 = arith.constant 0 : index
    %c0_30 = arith.constant 0 : index
    %27 = vector.load %arg7[%c0_29, %c0_30] : memref<80x80xf32, #tpu.memory_space<vmem>>, vector<80x80xf32>
    %c0_31 = arith.constant 0 : index
    %c4_32 = arith.constant 4 : index
    %28 = vector.load %arg12[%c0_31, %c4_32] : memref<80x20xf32, #tpu.memory_space<vmem>>, vector<80x16xf32>
    %cst_33 = arith.constant dense<0.000000e+00> : vector<80x16xf32>
    %29 = tpu.matmul %27, %28, %cst_33 {dimension_numbers = #tpu.dot_dimension_numbers<[1], [0], [0], [1], [0, 0, 1, 1], [], []>} : vector<80x80xf32>, vector<80x16xf32>, vector<80x16xf32> -> vector<80x16xf32>
    %30 = arith.addf %26, %29 : vector<80x16xf32>
    %c0_34 = arith.constant 0 : index
    %c0_35 = arith.constant 0 : index
    %31 = vector.load %arg8[%c0_34, %c0_35] : memref<80x1xf32, #tpu.memory_space<vmem>>, vector<80x1xf32>
    %32 = vector.broadcast %31 : vector<80x1xf32> to vector<80x16xf32>
    %33 = arith.addf %30, %32 : vector<80x16xf32>
    %cst_36 = arith.constant 0.000000e+00 : f32
    %34 = vector.broadcast %cst_36 : f32 to vector<80x16xf32>
    %35 = arith.cmpf ogt, %33, %34 : vector<80x16xf32>
    %c0_37 = arith.constant 0 : index
    %c0_38 = arith.constant 0 : index
    %36 = vector.load %arg9[%c0_37, %c0_38] : memref<1x1xf32, #tpu.memory_space<vmem>>, vector<1x1xf32>
    %37 = vector.broadcast %36 : vector<1x1xf32> to vector<80x16xf32>
    %38 = arith.mulf %37, %33 : vector<80x16xf32>
    %39 = arith.select %35, %33, %38 : vector<80x16xi1>, vector<80x16xf32>
    %40 = arith.addf %39, %1 : vector<80x16xf32>
    %c0_39 = arith.constant 0 : index
    %c0_40 = arith.constant 0 : index
    %c0_41 = arith.constant 0 : index
    %41 = vector.load %arg10[%c0_39, %c0_40, %c0_41] : memref<1x80x16xf32, #tpu.memory_space<vmem>>, vector<1x80x16xf32>
    %42 = vector.shape_cast %41 : vector<1x80x16xf32> to vector<80x16xf32>
    %43 = vector.shape_cast %40 : vector<80x16xf32> to vector<1x80x16xf32>
    tpu.vector_store %arg10[%c0_39, %c0_40, %c0_41], %43 {strides = array<i32>} : memref<1x80x16xf32, #tpu.memory_space<vmem>>, vector<1x80x16xf32>,
    return
  }
  func.func @transform_0(%arg0: i32) -> (i32, i32, i32) {
    %c0_i32 = arith.constant 0 : i32
    %c0_i32_0 = arith.constant 0 : i32
    %c0_i32_1 = arith.constant 0 : i32
    return %arg0, %c0_i32, %c0_i32_0 : i32, i32, i32
  }
  func.func @transform_1(%arg0: i32) -> (i32, i32) {
    %c0_i32 = arith.constant 0 : i32
    %c0_i32_0 = arith.constant 0 : i32
    %c0_i32_1 = arith.constant 0 : i32
    return %c0_i32, %c0_i32_0 : i32, i32
  }
  func.func @transform_2(%arg0: i32) -> (i32, i32) {
    %c0_i32 = arith.constant 0 : i32
    %c0_i32_0 = arith.constant 0 : i32
    %c0_i32_1 = arith.constant 0 : i32
    return %c0_i32, %c0_i32_0 : i32, i32
  }
  func.func @transform_3(%arg0: i32) -> (i32, i32) {
    %c0_i32 = arith.constant 0 : i32
    %c0_i32_0 = arith.constant 0 : i32
    %c0_i32_1 = arith.constant 0 : i32
    return %c0_i32, %c0_i32_0 : i32, i32
  }
  func.func @transform_4(%arg0: i32) -> (i32, i32) {
    %c0_i32 = arith.constant 0 : i32
    %c0_i32_0 = arith.constant 0 : i32
    %c0_i32_1 = arith.constant 0 : i32
    return %c0_i32, %c0_i32_0 : i32, i32
  }
  func.func @transform_5(%arg0: i32) -> (i32, i32) {
    %c0_i32 = arith.constant 0 : i32
    %c0_i32_0 = arith.constant 0 : i32
    %c0_i32_1 = arith.constant 0 : i32
    return %c0_i32, %c0_i32_0 : i32, i32
  }
  func.func @transform_6(%arg0: i32) -> (i32, i32) {
    %c0_i32 = arith.constant 0 : i32
    %c0_i32_0 = arith.constant 0 : i32
    %c0_i32_1 = arith.constant 0 : i32
    return %c0_i32, %c0_i32_0 : i32, i32
  }
  func.func @transform_7(%arg0: i32) -> (i32, i32) {
    %c0_i32 = arith.constant 0 : i32
    %c0_i32_0 = arith.constant 0 : i32
    %c0_i32_1 = arith.constant 0 : i32
    return %c0_i32, %c0_i32_0 : i32, i32
  }
  func.func @transform_8(%arg0: i32) -> (i32, i32) {
    %c0_i32 = arith.constant 0 : i32
    %c0_i32_0 = arith.constant 0 : i32
    %c0_i32_1 = arith.constant 0 : i32
    return %c0_i32, %c0_i32_0 : i32, i32
  }
  func.func @transform_9(%arg0: i32) -> (i32, i32, i32) {
    %c0_i32 = arith.constant 0 : i32
    %c0_i32_0 = arith.constant 0 : i32
    %c0_i32_1 = arith.constant 0 : i32
    return %arg0, %c0_i32, %c0_i32_0 : i32, i32, i32
  }
}

module attributes {stable_mosaic.version = 11 : i64} {
  func.func @kernel(%arg0: i32, %arg1: memref<1x80x16xf32, #tpu.memory_space<vmem>>, %arg2: memref<80x80xf32, #tpu.memory_space<vmem>>, %arg3: memref<80x80xf32, #tpu.memory_space<vmem>>, %arg4: memref<80x1xf32, #tpu.memory_space<vmem>>, %arg5: memref<1x1xf32, #tpu.memory_space<vmem>>, %arg6: memref<80x80xf32, #tpu.memory_space<vmem>>, %arg7: memref<80x80xf32, #tpu.memory_space<vmem>>, %arg8: memref<80x1xf32, #tpu.memory_space<vmem>>, %arg9: memref<1x1xf32, #tpu.memory_space<vmem>>, %arg10: memref<1x80x16xf32, #tpu.memory_space<vmem>>, %arg11: memref<80x18xf32, #tpu.memory_space<vmem>>, %arg12: memref<80x18xf32, #tpu.memory_space<vmem>>) attributes {dimension_semantics = [#tpu.dimension_semantics<parallel>], iteration_bounds = array<i64: 2>, scalar_prefetch = 0 : i64, scratch_operands = 2 : i64, tpu.core_type = #tpu.core_type<tc>, window_params = [{transform_indices = @transform_0, window_bounds = array<i64: 1, 80, 16>}, {pipeline_mode = #tpu.pipeline_mode<synchronous>, transform_indices = @transform_1, window_bounds = array<i64: 80, 80>}, {pipeline_mode = #tpu.pipeline_mode<synchronous>, transform_indices = @transform_2, window_bounds = array<i64: 80, 80>}, {pipeline_mode = #tpu.pipeline_mode<synchronous>, transform_indices = @transform_3, window_bounds = array<i64: 80, 1>}, {pipeline_mode = #tpu.pipeline_mode<synchronous>, transform_indices = @transform_4, window_bounds = array<i64: 1, 1>}, {pipeline_mode = #tpu.pipeline_mode<synchronous>, transform_indices = @transform_5, window_bounds = array<i64: 80, 80>}, {pipeline_mode = #tpu.pipeline_mode<synchronous>, transform_indices = @transform_6, window_bounds = array<i64: 80, 80>}, {pipeline_mode = #tpu.pipeline_mode<synchronous>, transform_indices = @transform_7, window_bounds = array<i64: 80, 1>}, {pipeline_mode = #tpu.pipeline_mode<synchronous>, transform_indices = @transform_8, window_bounds = array<i64: 1, 1>}, {transform_indices = @transform_9, window_bounds = array<i64: 1, 80, 16>}]} {
    %c0 = arith.constant 0 : index
    %c0_0 = arith.constant 0 : index
    %c0_1 = arith.constant 0 : index
    %0 = vector.load %arg1[%c0, %c0_0, %c0_1] : memref<1x80x16xf32, #tpu.memory_space<vmem>>, vector<1x80x16xf32>
    %1 = vector.shape_cast %0 : vector<1x80x16xf32> to vector<80x16xf32>
    %cst = arith.constant 0.000000e+00 : f32
    %2 = vector.broadcast %cst : f32 to vector<80x18xf32>
    %c0_2 = arith.constant 0 : index
    %c0_3 = arith.constant 0 : index
    %3 = vector.load %arg11[%c0_2, %c0_3] : memref<80x18xf32, #tpu.memory_space<vmem>>, vector<80x18xf32>
    tpu.vector_store %arg11[%c0_2, %c0_3], %2 {strides = array<i32>} : memref<80x18xf32, #tpu.memory_space<vmem>>, vector<80x18xf32>,
    %c0_4 = arith.constant 0 : index
    %c1 = arith.constant 1 : index
    %4 = vector.load %arg11[%c0_4, %c1] : memref<80x18xf32, #tpu.memory_space<vmem>>, vector<80x16xf32>
    tpu.vector_store %arg11[%c0_4, %c1], %1 {strides = array<i32>} : memref<80x18xf32, #tpu.memory_space<vmem>>, vector<80x16xf32>,
    %c0_5 = arith.constant 0 : index
    %c0_6 = arith.constant 0 : index
    %5 = vector.load %arg2[%c0_5, %c0_6] : memref<80x80xf32, #tpu.memory_space<vmem>>, vector<80x80xf32>
    %c0_7 = arith.constant 0 : index
    %c0_8 = arith.constant 0 : index
    %6 = vector.load %arg11[%c0_7, %c0_8] : memref<80x18xf32, #tpu.memory_space<vmem>>, vector<80x16xf32>
    %cst_9 = arith.constant dense<0.000000e+00> : vector<80x16xf32>
    %7 = tpu.matmul %5, %6, %cst_9 {dimension_numbers = #tpu.dot_dimension_numbers<[1], [0], [0], [1], [0, 0, 1, 1], [], []>} : vector<80x80xf32>, vector<80x16xf32>, vector<80x16xf32> -> vector<80x16xf32>
    %c0_10 = arith.constant 0 : index
    %c0_11 = arith.constant 0 : index
    %8 = vector.load %arg3[%c0_10, %c0_11] : memref<80x80xf32, #tpu.memory_space<vmem>>, vector<80x80xf32>
    %c0_12 = arith.constant 0 : index
    %c2 = arith.constant 2 : index
    %9 = vector.load %arg11[%c0_12, %c2] : memref<80x18xf32, #tpu.memory_space<vmem>>, vector<80x16xf32>
    %cst_13 = arith.constant dense<0.000000e+00> : vector<80x16xf32>
    %10 = tpu.matmul %8, %9, %cst_13 {dimension_numbers = #tpu.dot_dimension_numbers<[1], [0], [0], [1], [0, 0, 1, 1], [], []>} : vector<80x80xf32>, vector<80x16xf32>, vector<80x16xf32> -> vector<80x16xf32>
    %11 = arith.addf %7, %10 : vector<80x16xf32>
    %c0_14 = arith.constant 0 : index
    %c0_15 = arith.constant 0 : index
    %12 = vector.load %arg4[%c0_14, %c0_15] : memref<80x1xf32, #tpu.memory_space<vmem>>, vector<80x1xf32>
    %13 = vector.broadcast %12 : vector<80x1xf32> to vector<80x16xf32>
    %14 = arith.addf %11, %13 : vector<80x16xf32>
    %cst_16 = arith.constant 0.000000e+00 : f32
    %15 = vector.broadcast %cst_16 : f32 to vector<80x16xf32>
    %16 = arith.cmpf ogt, %14, %15 : vector<80x16xf32>
    %c0_17 = arith.constant 0 : index
    %c0_18 = arith.constant 0 : index
    %17 = vector.load %arg5[%c0_17, %c0_18] : memref<1x1xf32, #tpu.memory_space<vmem>>, vector<1x1xf32>
    %18 = vector.broadcast %17 : vector<1x1xf32> to vector<80x16xf32>
    %19 = arith.mulf %18, %14 : vector<80x16xf32>
    %20 = arith.select %16, %14, %19 : vector<80x16xi1>, vector<80x16xf32>
    %cst_19 = arith.constant 0.000000e+00 : f32
    %21 = vector.broadcast %cst_19 : f32 to vector<80x18xf32>
    %c0_20 = arith.constant 0 : index
    %c0_21 = arith.constant 0 : index
    %22 = vector.load %arg12[%c0_20, %c0_21] : memref<80x18xf32, #tpu.memory_space<vmem>>, vector<80x18xf32>
    tpu.vector_store %arg12[%c0_20, %c0_21], %21 {strides = array<i32>} : memref<80x18xf32, #tpu.memory_space<vmem>>, vector<80x18xf32>,
    %c0_22 = arith.constant 0 : index
    %c1_23 = arith.constant 1 : index
    %23 = vector.load %arg12[%c0_22, %c1_23] : memref<80x18xf32, #tpu.memory_space<vmem>>, vector<80x16xf32>
    tpu.vector_store %arg12[%c0_22, %c1_23], %20 {strides = array<i32>} : memref<80x18xf32, #tpu.memory_space<vmem>>, vector<80x16xf32>,
    %c0_24 = arith.constant 0 : index
    %c0_25 = arith.constant 0 : index
    %24 = vector.load %arg6[%c0_24, %c0_25] : memref<80x80xf32, #tpu.memory_space<vmem>>, vector<80x80xf32>
    %c0_26 = arith.constant 0 : index
    %c0_27 = arith.constant 0 : index
    %25 = vector.load %arg12[%c0_26, %c0_27] : memref<80x18xf32, #tpu.memory_space<vmem>>, vector<80x16xf32>
    %cst_28 = arith.constant dense<0.000000e+00> : vector<80x16xf32>
    %26 = tpu.matmul %24, %25, %cst_28 {dimension_numbers = #tpu.dot_dimension_numbers<[1], [0], [0], [1], [0, 0, 1, 1], [], []>} : vector<80x80xf32>, vector<80x16xf32>, vector<80x16xf32> -> vector<80x16xf32>
    %c0_29 = arith.constant 0 : index
    %c0_30 = arith.constant 0 : index
    %27 = vector.load %arg7[%c0_29, %c0_30] : memref<80x80xf32, #tpu.memory_space<vmem>>, vector<80x80xf32>
    %c0_31 = arith.constant 0 : index
    %c2_32 = arith.constant 2 : index
    %28 = vector.load %arg12[%c0_31, %c2_32] : memref<80x18xf32, #tpu.memory_space<vmem>>, vector<80x16xf32>
    %cst_33 = arith.constant dense<0.000000e+00> : vector<80x16xf32>
    %29 = tpu.matmul %27, %28, %cst_33 {dimension_numbers = #tpu.dot_dimension_numbers<[1], [0], [0], [1], [0, 0, 1, 1], [], []>} : vector<80x80xf32>, vector<80x16xf32>, vector<80x16xf32> -> vector<80x16xf32>
    %30 = arith.addf %26, %29 : vector<80x16xf32>
    %c0_34 = arith.constant 0 : index
    %c0_35 = arith.constant 0 : index
    %31 = vector.load %arg8[%c0_34, %c0_35] : memref<80x1xf32, #tpu.memory_space<vmem>>, vector<80x1xf32>
    %32 = vector.broadcast %31 : vector<80x1xf32> to vector<80x16xf32>
    %33 = arith.addf %30, %32 : vector<80x16xf32>
    %cst_36 = arith.constant 0.000000e+00 : f32
    %34 = vector.broadcast %cst_36 : f32 to vector<80x16xf32>
    %35 = arith.cmpf ogt, %33, %34 : vector<80x16xf32>
    %c0_37 = arith.constant 0 : index
    %c0_38 = arith.constant 0 : index
    %36 = vector.load %arg9[%c0_37, %c0_38] : memref<1x1xf32, #tpu.memory_space<vmem>>, vector<1x1xf32>
    %37 = vector.broadcast %36 : vector<1x1xf32> to vector<80x16xf32>
    %38 = arith.mulf %37, %33 : vector<80x16xf32>
    %39 = arith.select %35, %33, %38 : vector<80x16xi1>, vector<80x16xf32>
    %40 = arith.addf %39, %1 : vector<80x16xf32>
    %c0_39 = arith.constant 0 : index
    %c0_40 = arith.constant 0 : index
    %c0_41 = arith.constant 0 : index
    %41 = vector.load %arg10[%c0_39, %c0_40, %c0_41] : memref<1x80x16xf32, #tpu.memory_space<vmem>>, vector<1x80x16xf32>
    %42 = vector.shape_cast %41 : vector<1x80x16xf32> to vector<80x16xf32>
    %43 = vector.shape_cast %40 : vector<80x16xf32> to vector<1x80x16xf32>
    tpu.vector_store %arg10[%c0_39, %c0_40, %c0_41], %43 {strides = array<i32>} : memref<1x80x16xf32, #tpu.memory_space<vmem>>, vector<1x80x16xf32>,
    return
  }
  func.func @transform_0(%arg0: i32) -> (i32, i32, i32) {
    %c0_i32 = arith.constant 0 : i32
    %c0_i32_0 = arith.constant 0 : i32
    %c0_i32_1 = arith.constant 0 : i32
    return %arg0, %c0_i32, %c0_i32_0 : i32, i32, i32
  }
  func.func @transform_1(%arg0: i32) -> (i32, i32) {
    %c0_i32 = arith.constant 0 : i32
    %c0_i32_0 = arith.constant 0 : i32
    %c0_i32_1 = arith.constant 0 : i32
    return %c0_i32, %c0_i32_0 : i32, i32
  }
  func.func @transform_2(%arg0: i32) -> (i32, i32) {
    %c0_i32 = arith.constant 0 : i32
    %c0_i32_0 = arith.constant 0 : i32
    %c0_i32_1 = arith.constant 0 : i32
    return %c0_i32, %c0_i32_0 : i32, i32
  }
  func.func @transform_3(%arg0: i32) -> (i32, i32) {
    %c0_i32 = arith.constant 0 : i32
    %c0_i32_0 = arith.constant 0 : i32
    %c0_i32_1 = arith.constant 0 : i32
    return %c0_i32, %c0_i32_0 : i32, i32
  }
  func.func @transform_4(%arg0: i32) -> (i32, i32) {
    %c0_i32 = arith.constant 0 : i32
    %c0_i32_0 = arith.constant 0 : i32
    %c0_i32_1 = arith.constant 0 : i32
    return %c0_i32, %c0_i32_0 : i32, i32
  }
  func.func @transform_5(%arg0: i32) -> (i32, i32) {
    %c0_i32 = arith.constant 0 : i32
    %c0_i32_0 = arith.constant 0 : i32
    %c0_i32_1 = arith.constant 0 : i32
    return %c0_i32, %c0_i32_0 : i32, i32
  }
  func.func @transform_6(%arg0: i32) -> (i32, i32) {
    %c0_i32 = arith.constant 0 : i32
    %c0_i32_0 = arith.constant 0 : i32
    %c0_i32_1 = arith.constant 0 : i32
    return %c0_i32, %c0_i32_0 : i32, i32
  }
  func.func @transform_7(%arg0: i32) -> (i32, i32) {
    %c0_i32 = arith.constant 0 : i32
    %c0_i32_0 = arith.constant 0 : i32
    %c0_i32_1 = arith.constant 0 : i32
    return %c0_i32, %c0_i32_0 : i32, i32
  }
  func.func @transform_8(%arg0: i32) -> (i32, i32) {
    %c0_i32 = arith.constant 0 : i32
    %c0_i32_0 = arith.constant 0 : i32
    %c0_i32_1 = arith.constant 0 : i32
    return %c0_i32, %c0_i32_0 : i32, i32
  }
  func.func @transform_9(%arg0: i32) -> (i32, i32, i32) {
    %c0_i32 = arith.constant 0 : i32
    %c0_i32_0 = arith.constant 0 : i32
    %c0_i32_1 = arith.constant 0 : i32
    return %arg0, %c0_i32, %c0_i32_0 : i32, i32, i32
  }
}

module attributes {stable_mosaic.version = 11 : i64} {
  func.func @kernel(%arg0: i32, %arg1: memref<1x80x16xf32, #tpu.memory_space<vmem>>, %arg2: memref<80x80xf32, #tpu.memory_space<vmem>>, %arg3: memref<80x80xf32, #tpu.memory_space<vmem>>, %arg4: memref<80x1xf32, #tpu.memory_space<vmem>>, %arg5: memref<1x1xf32, #tpu.memory_space<vmem>>, %arg6: memref<80x80xf32, #tpu.memory_space<vmem>>, %arg7: memref<80x80xf32, #tpu.memory_space<vmem>>, %arg8: memref<80x1xf32, #tpu.memory_space<vmem>>, %arg9: memref<1x1xf32, #tpu.memory_space<vmem>>, %arg10: memref<1x80x16xf32, #tpu.memory_space<vmem>>, %arg11: memref<80x24xf32, #tpu.memory_space<vmem>>, %arg12: memref<80x24xf32, #tpu.memory_space<vmem>>) attributes {dimension_semantics = [#tpu.dimension_semantics<parallel>], iteration_bounds = array<i64: 2>, scalar_prefetch = 0 : i64, scratch_operands = 2 : i64, tpu.core_type = #tpu.core_type<tc>, window_params = [{transform_indices = @transform_0, window_bounds = array<i64: 1, 80, 16>}, {pipeline_mode = #tpu.pipeline_mode<synchronous>, transform_indices = @transform_1, window_bounds = array<i64: 80, 80>}, {pipeline_mode = #tpu.pipeline_mode<synchronous>, transform_indices = @transform_2, window_bounds = array<i64: 80, 80>}, {pipeline_mode = #tpu.pipeline_mode<synchronous>, transform_indices = @transform_3, window_bounds = array<i64: 80, 1>}, {pipeline_mode = #tpu.pipeline_mode<synchronous>, transform_indices = @transform_4, window_bounds = array<i64: 1, 1>}, {pipeline_mode = #tpu.pipeline_mode<synchronous>, transform_indices = @transform_5, window_bounds = array<i64: 80, 80>}, {pipeline_mode = #tpu.pipeline_mode<synchronous>, transform_indices = @transform_6, window_bounds = array<i64: 80, 80>}, {pipeline_mode = #tpu.pipeline_mode<synchronous>, transform_indices = @transform_7, window_bounds = array<i64: 80, 1>}, {pipeline_mode = #tpu.pipeline_mode<synchronous>, transform_indices = @transform_8, window_bounds = array<i64: 1, 1>}, {transform_indices = @transform_9, window_bounds = array<i64: 1, 80, 16>}]} {
    %c0 = arith.constant 0 : index
    %c0_0 = arith.constant 0 : index
    %c0_1 = arith.constant 0 : index
    %0 = vector.load %arg1[%c0, %c0_0, %c0_1] : memref<1x80x16xf32, #tpu.memory_space<vmem>>, vector<1x80x16xf32>
    %1 = vector.shape_cast %0 : vector<1x80x16xf32> to vector<80x16xf32>
    %cst = arith.constant 0.000000e+00 : f32
    %2 = vector.broadcast %cst : f32 to vector<80x24xf32>
    %c0_2 = arith.constant 0 : index
    %c0_3 = arith.constant 0 : index
    %3 = vector.load %arg11[%c0_2, %c0_3] : memref<80x24xf32, #tpu.memory_space<vmem>>, vector<80x24xf32>
    tpu.vector_store %arg11[%c0_2, %c0_3], %2 {strides = array<i32>} : memref<80x24xf32, #tpu.memory_space<vmem>>, vector<80x24xf32>,
    %c0_4 = arith.constant 0 : index
    %c4 = arith.constant 4 : index
    %4 = vector.load %arg11[%c0_4, %c4] : memref<80x24xf32, #tpu.memory_space<vmem>>, vector<80x16xf32>
    tpu.vector_store %arg11[%c0_4, %c4], %1 {strides = array<i32>} : memref<80x24xf32, #tpu.memory_space<vmem>>, vector<80x16xf32>,
    %c0_5 = arith.constant 0 : index
    %c0_6 = arith.constant 0 : index
    %5 = vector.load %arg2[%c0_5, %c0_6] : memref<80x80xf32, #tpu.memory_space<vmem>>, vector<80x80xf32>
    %c0_7 = arith.constant 0 : index
    %c0_8 = arith.constant 0 : index
    %6 = vector.load %arg11[%c0_7, %c0_8] : memref<80x24xf32, #tpu.memory_space<vmem>>, vector<80x16xf32>
    %cst_9 = arith.constant dense<0.000000e+00> : vector<80x16xf32>
    %7 = tpu.matmul %5, %6, %cst_9 {dimension_numbers = #tpu.dot_dimension_numbers<[1], [0], [0], [1], [0, 0, 1, 1], [], []>} : vector<80x80xf32>, vector<80x16xf32>, vector<80x16xf32> -> vector<80x16xf32>
    %c0_10 = arith.constant 0 : index
    %c0_11 = arith.constant 0 : index
    %8 = vector.load %arg3[%c0_10, %c0_11] : memref<80x80xf32, #tpu.memory_space<vmem>>, vector<80x80xf32>
    %c0_12 = arith.constant 0 : index
    %c8 = arith.constant 8 : index
    %9 = vector.load %arg11[%c0_12, %c8] : memref<80x24xf32, #tpu.memory_space<vmem>>, vector<80x16xf32>
    %cst_13 = arith.constant dense<0.000000e+00> : vector<80x16xf32>
    %10 = tpu.matmul %8, %9, %cst_13 {dimension_numbers = #tpu.dot_dimension_numbers<[1], [0], [0], [1], [0, 0, 1, 1], [], []>} : vector<80x80xf32>, vector<80x16xf32>, vector<80x16xf32> -> vector<80x16xf32>
    %11 = arith.addf %7, %10 : vector<80x16xf32>
    %c0_14 = arith.constant 0 : index
    %c0_15 = arith.constant 0 : index
    %12 = vector.load %arg4[%c0_14, %c0_15] : memref<80x1xf32, #tpu.memory_space<vmem>>, vector<80x1xf32>
    %13 = vector.broadcast %12 : vector<80x1xf32> to vector<80x16xf32>
    %14 = arith.addf %11, %13 : vector<80x16xf32>
    %cst_16 = arith.constant 0.000000e+00 : f32
    %15 = vector.broadcast %cst_16 : f32 to vector<80x16xf32>
    %16 = arith.cmpf ogt, %14, %15 : vector<80x16xf32>
    %c0_17 = arith.constant 0 : index
    %c0_18 = arith.constant 0 : index
    %17 = vector.load %arg5[%c0_17, %c0_18] : memref<1x1xf32, #tpu.memory_space<vmem>>, vector<1x1xf32>
    %18 = vector.broadcast %17 : vector<1x1xf32> to vector<80x16xf32>
    %19 = arith.mulf %18, %14 : vector<80x16xf32>
    %20 = arith.select %16, %14, %19 : vector<80x16xi1>, vector<80x16xf32>
    %cst_19 = arith.constant 0.000000e+00 : f32
    %21 = vector.broadcast %cst_19 : f32 to vector<80x24xf32>
    %c0_20 = arith.constant 0 : index
    %c0_21 = arith.constant 0 : index
    %22 = vector.load %arg12[%c0_20, %c0_21] : memref<80x24xf32, #tpu.memory_space<vmem>>, vector<80x24xf32>
    tpu.vector_store %arg12[%c0_20, %c0_21], %21 {strides = array<i32>} : memref<80x24xf32, #tpu.memory_space<vmem>>, vector<80x24xf32>,
    %c0_22 = arith.constant 0 : index
    %c4_23 = arith.constant 4 : index
    %23 = vector.load %arg12[%c0_22, %c4_23] : memref<80x24xf32, #tpu.memory_space<vmem>>, vector<80x16xf32>
    tpu.vector_store %arg12[%c0_22, %c4_23], %20 {strides = array<i32>} : memref<80x24xf32, #tpu.memory_space<vmem>>, vector<80x16xf32>,
    %c0_24 = arith.constant 0 : index
    %c0_25 = arith.constant 0 : index
    %24 = vector.load %arg6[%c0_24, %c0_25] : memref<80x80xf32, #tpu.memory_space<vmem>>, vector<80x80xf32>
    %c0_26 = arith.constant 0 : index
    %c0_27 = arith.constant 0 : index
    %25 = vector.load %arg12[%c0_26, %c0_27] : memref<80x24xf32, #tpu.memory_space<vmem>>, vector<80x16xf32>
    %cst_28 = arith.constant dense<0.000000e+00> : vector<80x16xf32>
    %26 = tpu.matmul %24, %25, %cst_28 {dimension_numbers = #tpu.dot_dimension_numbers<[1], [0], [0], [1], [0, 0, 1, 1], [], []>} : vector<80x80xf32>, vector<80x16xf32>, vector<80x16xf32> -> vector<80x16xf32>
    %c0_29 = arith.constant 0 : index
    %c0_30 = arith.constant 0 : index
    %27 = vector.load %arg7[%c0_29, %c0_30] : memref<80x80xf32, #tpu.memory_space<vmem>>, vector<80x80xf32>
    %c0_31 = arith.constant 0 : index
    %c8_32 = arith.constant 8 : index
    %28 = vector.load %arg12[%c0_31, %c8_32] : memref<80x24xf32, #tpu.memory_space<vmem>>, vector<80x16xf32>
    %cst_33 = arith.constant dense<0.000000e+00> : vector<80x16xf32>
    %29 = tpu.matmul %27, %28, %cst_33 {dimension_numbers = #tpu.dot_dimension_numbers<[1], [0], [0], [1], [0, 0, 1, 1], [], []>} : vector<80x80xf32>, vector<80x16xf32>, vector<80x16xf32> -> vector<80x16xf32>
    %30 = arith.addf %26, %29 : vector<80x16xf32>
    %c0_34 = arith.constant 0 : index
    %c0_35 = arith.constant 0 : index
    %31 = vector.load %arg8[%c0_34, %c0_35] : memref<80x1xf32, #tpu.memory_space<vmem>>, vector<80x1xf32>
    %32 = vector.broadcast %31 : vector<80x1xf32> to vector<80x16xf32>
    %33 = arith.addf %30, %32 : vector<80x16xf32>
    %cst_36 = arith.constant 0.000000e+00 : f32
    %34 = vector.broadcast %cst_36 : f32 to vector<80x16xf32>
    %35 = arith.cmpf ogt, %33, %34 : vector<80x16xf32>
    %c0_37 = arith.constant 0 : index
    %c0_38 = arith.constant 0 : index
    %36 = vector.load %arg9[%c0_37, %c0_38] : memref<1x1xf32, #tpu.memory_space<vmem>>, vector<1x1xf32>
    %37 = vector.broadcast %36 : vector<1x1xf32> to vector<80x16xf32>
    %38 = arith.mulf %37, %33 : vector<80x16xf32>
    %39 = arith.select %35, %33, %38 : vector<80x16xi1>, vector<80x16xf32>
    %40 = arith.addf %39, %1 : vector<80x16xf32>
    %c0_39 = arith.constant 0 : index
    %c0_40 = arith.constant 0 : index
    %c0_41 = arith.constant 0 : index
    %41 = vector.load %arg10[%c0_39, %c0_40, %c0_41] : memref<1x80x16xf32, #tpu.memory_space<vmem>>, vector<1x80x16xf32>
    %42 = vector.shape_cast %41 : vector<1x80x16xf32> to vector<80x16xf32>
    %43 = vector.shape_cast %40 : vector<80x16xf32> to vector<1x80x16xf32>
    tpu.vector_store %arg10[%c0_39, %c0_40, %c0_41], %43 {strides = array<i32>} : memref<1x80x16xf32, #tpu.memory_space<vmem>>, vector<1x80x16xf32>,
    return
  }
  func.func @transform_0(%arg0: i32) -> (i32, i32, i32) {
    %c0_i32 = arith.constant 0 : i32
    %c0_i32_0 = arith.constant 0 : i32
    %c0_i32_1 = arith.constant 0 : i32
    return %arg0, %c0_i32, %c0_i32_0 : i32, i32, i32
  }
  func.func @transform_1(%arg0: i32) -> (i32, i32) {
    %c0_i32 = arith.constant 0 : i32
    %c0_i32_0 = arith.constant 0 : i32
    %c0_i32_1 = arith.constant 0 : i32
    return %c0_i32, %c0_i32_0 : i32, i32
  }
  func.func @transform_2(%arg0: i32) -> (i32, i32) {
    %c0_i32 = arith.constant 0 : i32
    %c0_i32_0 = arith.constant 0 : i32
    %c0_i32_1 = arith.constant 0 : i32
    return %c0_i32, %c0_i32_0 : i32, i32
  }
  func.func @transform_3(%arg0: i32) -> (i32, i32) {
    %c0_i32 = arith.constant 0 : i32
    %c0_i32_0 = arith.constant 0 : i32
    %c0_i32_1 = arith.constant 0 : i32
    return %c0_i32, %c0_i32_0 : i32, i32
  }
  func.func @transform_4(%arg0: i32) -> (i32, i32) {
    %c0_i32 = arith.constant 0 : i32
    %c0_i32_0 = arith.constant 0 : i32
    %c0_i32_1 = arith.constant 0 : i32
    return %c0_i32, %c0_i32_0 : i32, i32
  }
  func.func @transform_5(%arg0: i32) -> (i32, i32) {
    %c0_i32 = arith.constant 0 : i32
    %c0_i32_0 = arith.constant 0 : i32
    %c0_i32_1 = arith.constant 0 : i32
    return %c0_i32, %c0_i32_0 : i32, i32
  }
  func.func @transform_6(%arg0: i32) -> (i32, i32) {
    %c0_i32 = arith.constant 0 : i32
    %c0_i32_0 = arith.constant 0 : i32
    %c0_i32_1 = arith.constant 0 : i32
    return %c0_i32, %c0_i32_0 : i32, i32
  }
  func.func @transform_7(%arg0: i32) -> (i32, i32) {
    %c0_i32 = arith.constant 0 : i32
    %c0_i32_0 = arith.constant 0 : i32
    %c0_i32_1 = arith.constant 0 : i32
    return %c0_i32, %c0_i32_0 : i32, i32
  }
  func.func @transform_8(%arg0: i32) -> (i32, i32) {
    %c0_i32 = arith.constant 0 : i32
    %c0_i32_0 = arith.constant 0 : i32
    %c0_i32_1 = arith.constant 0 : i32
    return %c0_i32, %c0_i32_0 : i32, i32
  }
  func.func @transform_9(%arg0: i32) -> (i32, i32, i32) {
    %c0_i32 = arith.constant 0 : i32
    %c0_i32_0 = arith.constant 0 : i32
    %c0_i32_1 = arith.constant 0 : i32
    return %arg0, %c0_i32, %c0_i32_0 : i32, i32, i32
  }
}

module attributes {stable_mosaic.version = 11 : i64} {
  func.func @kernel(%arg0: i32, %arg1: memref<1x80x16xf32, #tpu.memory_space<vmem>>, %arg2: memref<80x80xf32, #tpu.memory_space<vmem>>, %arg3: memref<80x80xf32, #tpu.memory_space<vmem>>, %arg4: memref<80x1xf32, #tpu.memory_space<vmem>>, %arg5: memref<1x1xf32, #tpu.memory_space<vmem>>, %arg6: memref<80x80xf32, #tpu.memory_space<vmem>>, %arg7: memref<80x80xf32, #tpu.memory_space<vmem>>, %arg8: memref<80x1xf32, #tpu.memory_space<vmem>>, %arg9: memref<1x1xf32, #tpu.memory_space<vmem>>, %arg10: memref<1x80x16xf32, #tpu.memory_space<vmem>>, %arg11: memref<80x48xf32, #tpu.memory_space<vmem>>, %arg12: memref<80x48xf32, #tpu.memory_space<vmem>>) attributes {dimension_semantics = [#tpu.dimension_semantics<parallel>], iteration_bounds = array<i64: 2>, scalar_prefetch = 0 : i64, scratch_operands = 2 : i64, tpu.core_type = #tpu.core_type<tc>, window_params = [{transform_indices = @transform_0, window_bounds = array<i64: 1, 80, 16>}, {pipeline_mode = #tpu.pipeline_mode<synchronous>, transform_indices = @transform_1, window_bounds = array<i64: 80, 80>}, {pipeline_mode = #tpu.pipeline_mode<synchronous>, transform_indices = @transform_2, window_bounds = array<i64: 80, 80>}, {pipeline_mode = #tpu.pipeline_mode<synchronous>, transform_indices = @transform_3, window_bounds = array<i64: 80, 1>}, {pipeline_mode = #tpu.pipeline_mode<synchronous>, transform_indices = @transform_4, window_bounds = array<i64: 1, 1>}, {pipeline_mode = #tpu.pipeline_mode<synchronous>, transform_indices = @transform_5, window_bounds = array<i64: 80, 80>}, {pipeline_mode = #tpu.pipeline_mode<synchronous>, transform_indices = @transform_6, window_bounds = array<i64: 80, 80>}, {pipeline_mode = #tpu.pipeline_mode<synchronous>, transform_indices = @transform_7, window_bounds = array<i64: 80, 1>}, {pipeline_mode = #tpu.pipeline_mode<synchronous>, transform_indices = @transform_8, window_bounds = array<i64: 1, 1>}, {transform_indices = @transform_9, window_bounds = array<i64: 1, 80, 16>}]} {
    %c0 = arith.constant 0 : index
    %c0_0 = arith.constant 0 : index
    %c0_1 = arith.constant 0 : index
    %0 = vector.load %arg1[%c0, %c0_0, %c0_1] : memref<1x80x16xf32, #tpu.memory_space<vmem>>, vector<1x80x16xf32>
    %1 = vector.shape_cast %0 : vector<1x80x16xf32> to vector<80x16xf32>
    %cst = arith.constant 0.000000e+00 : f32
    %2 = vector.broadcast %cst : f32 to vector<80x48xf32>
    %c0_2 = arith.constant 0 : index
    %c0_3 = arith.constant 0 : index
    %3 = vector.load %arg11[%c0_2, %c0_3] : memref<80x48xf32, #tpu.memory_space<vmem>>, vector<80x48xf32>
    tpu.vector_store %arg11[%c0_2, %c0_3], %2 {strides = array<i32>} : memref<80x48xf32, #tpu.memory_space<vmem>>, vector<80x48xf32>,
    %c0_4 = arith.constant 0 : index
    %c16 = arith.constant 16 : index
    %4 = vector.load %arg11[%c0_4, %c16] : memref<80x48xf32, #tpu.memory_space<vmem>>, vector<80x16xf32>
    tpu.vector_store %arg11[%c0_4, %c16], %1 {strides = array<i32>} : memref<80x48xf32, #tpu.memory_space<vmem>>, vector<80x16xf32>,
    %c0_5 = arith.constant 0 : index
    %c0_6 = arith.constant 0 : index
    %5 = vector.load %arg2[%c0_5, %c0_6] : memref<80x80xf32, #tpu.memory_space<vmem>>, vector<80x80xf32>
    %c0_7 = arith.constant 0 : index
    %c0_8 = arith.constant 0 : index
    %6 = vector.load %arg11[%c0_7, %c0_8] : memref<80x48xf32, #tpu.memory_space<vmem>>, vector<80x16xf32>
    %cst_9 = arith.constant dense<0.000000e+00> : vector<80x16xf32>
    %7 = tpu.matmul %5, %6, %cst_9 {dimension_numbers = #tpu.dot_dimension_numbers<[1], [0], [0], [1], [0, 0, 1, 1], [], []>} : vector<80x80xf32>, vector<80x16xf32>, vector<80x16xf32> -> vector<80x16xf32>
    %c0_10 = arith.constant 0 : index
    %c0_11 = arith.constant 0 : index
    %8 = vector.load %arg3[%c0_10, %c0_11] : memref<80x80xf32, #tpu.memory_space<vmem>>, vector<80x80xf32>
    %c0_12 = arith.constant 0 : index
    %c32 = arith.constant 32 : index
    %9 = vector.load %arg11[%c0_12, %c32] : memref<80x48xf32, #tpu.memory_space<vmem>>, vector<80x16xf32>
    %cst_13 = arith.constant dense<0.000000e+00> : vector<80x16xf32>
    %10 = tpu.matmul %8, %9, %cst_13 {dimension_numbers = #tpu.dot_dimension_numbers<[1], [0], [0], [1], [0, 0, 1, 1], [], []>} : vector<80x80xf32>, vector<80x16xf32>, vector<80x16xf32> -> vector<80x16xf32>
    %11 = arith.addf %7, %10 : vector<80x16xf32>
    %c0_14 = arith.constant 0 : index
    %c0_15 = arith.constant 0 : index
    %12 = vector.load %arg4[%c0_14, %c0_15] : memref<80x1xf32, #tpu.memory_space<vmem>>, vector<80x1xf32>
    %13 = vector.broadcast %12 : vector<80x1xf32> to vector<80x16xf32>
    %14 = arith.addf %11, %13 : vector<80x16xf32>
    %cst_16 = arith.constant 0.000000e+00 : f32
    %15 = vector.broadcast %cst_16 : f32 to vector<80x16xf32>
    %16 = arith.cmpf ogt, %14, %15 : vector<80x16xf32>
    %c0_17 = arith.constant 0 : index
    %c0_18 = arith.constant 0 : index
    %17 = vector.load %arg5[%c0_17, %c0_18] : memref<1x1xf32, #tpu.memory_space<vmem>>, vector<1x1xf32>
    %18 = vector.broadcast %17 : vector<1x1xf32> to vector<80x16xf32>
    %19 = arith.mulf %18, %14 : vector<80x16xf32>
    %20 = arith.select %16, %14, %19 : vector<80x16xi1>, vector<80x16xf32>
    %cst_19 = arith.constant 0.000000e+00 : f32
    %21 = vector.broadcast %cst_19 : f32 to vector<80x48xf32>
    %c0_20 = arith.constant 0 : index
    %c0_21 = arith.constant 0 : index
    %22 = vector.load %arg12[%c0_20, %c0_21] : memref<80x48xf32, #tpu.memory_space<vmem>>, vector<80x48xf32>
    tpu.vector_store %arg12[%c0_20, %c0_21], %21 {strides = array<i32>} : memref<80x48xf32, #tpu.memory_space<vmem>>, vector<80x48xf32>,
    %c0_22 = arith.constant 0 : index
    %c16_23 = arith.constant 16 : index
    %23 = vector.load %arg12[%c0_22, %c16_23] : memref<80x48xf32, #tpu.memory_space<vmem>>, vector<80x16xf32>
    tpu.vector_store %arg12[%c0_22, %c16_23], %20 {strides = array<i32>} : memref<80x48xf32, #tpu.memory_space<vmem>>, vector<80x16xf32>,
    %c0_24 = arith.constant 0 : index
    %c0_25 = arith.constant 0 : index
    %24 = vector.load %arg6[%c0_24, %c0_25] : memref<80x80xf32, #tpu.memory_space<vmem>>, vector<80x80xf32>
    %c0_26 = arith.constant 0 : index
    %c0_27 = arith.constant 0 : index
    %25 = vector.load %arg12[%c0_26, %c0_27] : memref<80x48xf32, #tpu.memory_space<vmem>>, vector<80x16xf32>
    %cst_28 = arith.constant dense<0.000000e+00> : vector<80x16xf32>
    %26 = tpu.matmul %24, %25, %cst_28 {dimension_numbers = #tpu.dot_dimension_numbers<[1], [0], [0], [1], [0, 0, 1, 1], [], []>} : vector<80x80xf32>, vector<80x16xf32>, vector<80x16xf32> -> vector<80x16xf32>
    %c0_29 = arith.constant 0 : index
    %c0_30 = arith.constant 0 : index
    %27 = vector.load %arg7[%c0_29, %c0_30] : memref<80x80xf32, #tpu.memory_space<vmem>>, vector<80x80xf32>
    %c0_31 = arith.constant 0 : index
    %c32_32 = arith.constant 32 : index
    %28 = vector.load %arg12[%c0_31, %c32_32] : memref<80x48xf32, #tpu.memory_space<vmem>>, vector<80x16xf32>
    %cst_33 = arith.constant dense<0.000000e+00> : vector<80x16xf32>
    %29 = tpu.matmul %27, %28, %cst_33 {dimension_numbers = #tpu.dot_dimension_numbers<[1], [0], [0], [1], [0, 0, 1, 1], [], []>} : vector<80x80xf32>, vector<80x16xf32>, vector<80x16xf32> -> vector<80x16xf32>
    %30 = arith.addf %26, %29 : vector<80x16xf32>
    %c0_34 = arith.constant 0 : index
    %c0_35 = arith.constant 0 : index
    %31 = vector.load %arg8[%c0_34, %c0_35] : memref<80x1xf32, #tpu.memory_space<vmem>>, vector<80x1xf32>
    %32 = vector.broadcast %31 : vector<80x1xf32> to vector<80x16xf32>
    %33 = arith.addf %30, %32 : vector<80x16xf32>
    %cst_36 = arith.constant 0.000000e+00 : f32
    %34 = vector.broadcast %cst_36 : f32 to vector<80x16xf32>
    %35 = arith.cmpf ogt, %33, %34 : vector<80x16xf32>
    %c0_37 = arith.constant 0 : index
    %c0_38 = arith.constant 0 : index
    %36 = vector.load %arg9[%c0_37, %c0_38] : memref<1x1xf32, #tpu.memory_space<vmem>>, vector<1x1xf32>
    %37 = vector.broadcast %36 : vector<1x1xf32> to vector<80x16xf32>
    %38 = arith.mulf %37, %33 : vector<80x16xf32>
    %39 = arith.select %35, %33, %38 : vector<80x16xi1>, vector<80x16xf32>
    %40 = arith.addf %39, %1 : vector<80x16xf32>
    %c0_39 = arith.constant 0 : index
    %c0_40 = arith.constant 0 : index
    %c0_41 = arith.constant 0 : index
    %41 = vector.load %arg10[%c0_39, %c0_40, %c0_41] : memref<1x80x16xf32, #tpu.memory_space<vmem>>, vector<1x80x16xf32>
    %42 = vector.shape_cast %41 : vector<1x80x16xf32> to vector<80x16xf32>
    %43 = vector.shape_cast %40 : vector<80x16xf32> to vector<1x80x16xf32>
    tpu.vector_store %arg10[%c0_39, %c0_40, %c0_41], %43 {strides = array<i32>} : memref<1x80x16xf32, #tpu.memory_space<vmem>>, vector<1x80x16xf32>,
    return
  }
  func.func @transform_0(%arg0: i32) -> (i32, i32, i32) {
    %c0_i32 = arith.constant 0 : i32
    %c0_i32_0 = arith.constant 0 : i32
    %c0_i32_1 = arith.constant 0 : i32
    return %arg0, %c0_i32, %c0_i32_0 : i32, i32, i32
  }
  func.func @transform_1(%arg0: i32) -> (i32, i32) {
    %c0_i32 = arith.constant 0 : i32
    %c0_i32_0 = arith.constant 0 : i32
    %c0_i32_1 = arith.constant 0 : i32
    return %c0_i32, %c0_i32_0 : i32, i32
  }
  func.func @transform_2(%arg0: i32) -> (i32, i32) {
    %c0_i32 = arith.constant 0 : i32
    %c0_i32_0 = arith.constant 0 : i32
    %c0_i32_1 = arith.constant 0 : i32
    return %c0_i32, %c0_i32_0 : i32, i32
  }
  func.func @transform_3(%arg0: i32) -> (i32, i32) {
    %c0_i32 = arith.constant 0 : i32
    %c0_i32_0 = arith.constant 0 : i32
    %c0_i32_1 = arith.constant 0 : i32
    return %c0_i32, %c0_i32_0 : i32, i32
  }
  func.func @transform_4(%arg0: i32) -> (i32, i32) {
    %c0_i32 = arith.constant 0 : i32
    %c0_i32_0 = arith.constant 0 : i32
    %c0_i32_1 = arith.constant 0 : i32
    return %c0_i32, %c0_i32_0 : i32, i32
  }
  func.func @transform_5(%arg0: i32) -> (i32, i32) {
    %c0_i32 = arith.constant 0 : i32
    %c0_i32_0 = arith.constant 0 : i32
    %c0_i32_1 = arith.constant 0 : i32
    return %c0_i32, %c0_i32_0 : i32, i32
  }
  func.func @transform_6(%arg0: i32) -> (i32, i32) {
    %c0_i32 = arith.constant 0 : i32
    %c0_i32_0 = arith.constant 0 : i32
    %c0_i32_1 = arith.constant 0 : i32
    return %c0_i32, %c0_i32_0 : i32, i32
  }
  func.func @transform_7(%arg0: i32) -> (i32, i32) {
    %c0_i32 = arith.constant 0 : i32
    %c0_i32_0 = arith.constant 0 : i32
    %c0_i32_1 = arith.constant 0 : i32
    return %c0_i32, %c0_i32_0 : i32, i32
  }
  func.func @transform_8(%arg0: i32) -> (i32, i32) {
    %c0_i32 = arith.constant 0 : i32
    %c0_i32_0 = arith.constant 0 : i32
    %c0_i32_1 = arith.constant 0 : i32
    return %c0_i32, %c0_i32_0 : i32, i32
  }
  func.func @transform_9(%arg0: i32) -> (i32, i32, i32) {
    %c0_i32 = arith.constant 0 : i32
    %c0_i32_0 = arith.constant 0 : i32
    %c0_i32_1 = arith.constant 0 : i32
    return %arg0, %c0_i32, %c0_i32_0 : i32, i32, i32
  }
}

module attributes {stable_mosaic.version = 11 : i64} {
  func.func @_pointwise_conv_kernel(%arg0: i32, %arg1: memref<1x80x16xf32, #tpu.memory_space<vmem>>, %arg2: memref<4x80xf32, #tpu.memory_space<vmem>>, %arg3: memref<4x1xf32, #tpu.memory_space<vmem>>, %arg4: memref<1x4x16xf32, #tpu.memory_space<vmem>>) attributes {dimension_semantics = [#tpu.dimension_semantics<parallel>], iteration_bounds = array<i64: 2>, scalar_prefetch = 0 : i64, scratch_operands = 0 : i64, tpu.core_type = #tpu.core_type<tc>, window_params = [{transform_indices = @transform_0, window_bounds = array<i64: 1, 80, 16>}, {pipeline_mode = #tpu.pipeline_mode<synchronous>, transform_indices = @transform_1, window_bounds = array<i64: 4, 80>}, {pipeline_mode = #tpu.pipeline_mode<synchronous>, transform_indices = @transform_2, window_bounds = array<i64: 4, 1>}, {transform_indices = @transform_3, window_bounds = array<i64: 1, 4, 16>}]} {
    %c0 = arith.constant 0 : index
    %c0_0 = arith.constant 0 : index
    %0 = vector.load %arg2[%c0, %c0_0] : memref<4x80xf32, #tpu.memory_space<vmem>>, vector<4x80xf32>
    %c0_1 = arith.constant 0 : index
    %c0_2 = arith.constant 0 : index
    %c0_3 = arith.constant 0 : index
    %1 = vector.load %arg1[%c0_1, %c0_2, %c0_3] : memref<1x80x16xf32, #tpu.memory_space<vmem>>, vector<1x80x16xf32>
    %2 = vector.shape_cast %1 : vector<1x80x16xf32> to vector<80x16xf32>
    %cst = arith.constant dense<0.000000e+00> : vector<4x16xf32>
    %3 = tpu.matmul %0, %2, %cst {dimension_numbers = #tpu.dot_dimension_numbers<[1], [0], [0], [1], [0, 0, 1, 1], [], []>} : vector<4x80xf32>, vector<80x16xf32>, vector<4x16xf32> -> vector<4x16xf32>
    %c0_4 = arith.constant 0 : index
    %c0_5 = arith.constant 0 : index
    %4 = vector.load %arg3[%c0_4, %c0_5] : memref<4x1xf32, #tpu.memory_space<vmem>>, vector<4x1xf32>
    %5 = vector.broadcast %4 : vector<4x1xf32> to vector<4x16xf32>
    %6 = arith.addf %3, %5 : vector<4x16xf32>
    %c0_6 = arith.constant 0 : index
    %c0_7 = arith.constant 0 : index
    %c0_8 = arith.constant 0 : index
    %7 = vector.load %arg4[%c0_6, %c0_7, %c0_8] : memref<1x4x16xf32, #tpu.memory_space<vmem>>, vector<1x4x16xf32>
    %8 = vector.shape_cast %7 : vector<1x4x16xf32> to vector<4x16xf32>
    %9 = vector.shape_cast %6 : vector<4x16xf32> to vector<1x4x16xf32>
    tpu.vector_store %arg4[%c0_6, %c0_7, %c0_8], %9 {strides = array<i32>} : memref<1x4x16xf32, #tpu.memory_space<vmem>>, vector<1x4x16xf32>,
    return
  }
  func.func @transform_0(%arg0: i32) -> (i32, i32, i32) {
    %c0_i32 = arith.constant 0 : i32
    %c0_i32_0 = arith.constant 0 : i32
    %c0_i32_1 = arith.constant 0 : i32
    return %arg0, %c0_i32, %c0_i32_0 : i32, i32, i32
  }
  func.func @transform_1(%arg0: i32) -> (i32, i32) {
    %c0_i32 = arith.constant 0 : i32
    %c0_i32_0 = arith.constant 0 : i32
    %c0_i32_1 = arith.constant 0 : i32
    return %c0_i32, %c0_i32_0 : i32, i32
  }
  func.func @transform_2(%arg0: i32) -> (i32, i32) {
    %c0_i32 = arith.constant 0 : i32
    %c0_i32_0 = arith.constant 0 : i32
    %c0_i32_1 = arith.constant 0 : i32
    return %c0_i32, %c0_i32_0 : i32, i32
  }
  func.func @transform_3(%arg0: i32) -> (i32, i32, i32) {
    %c0_i32 = arith.constant 0 : i32
    %c0_i32_0 = arith.constant 0 : i32
    %c0_i32_1 = arith.constant 0 : i32
    return %arg0, %c0_i32, %c0_i32_0 : i32, i32, i32
  }
}

module attributes {stable_mosaic.version = 11 : i64} {
  func.func @kernel(%arg0: i32, %arg1: memref<1x80x16xf32, #tpu.memory_space<vmem>>, %arg2: memref<80x80xf32, #tpu.memory_space<vmem>>, %arg3: memref<80x80xf32, #tpu.memory_space<vmem>>, %arg4: memref<80x1xf32, #tpu.memory_space<vmem>>, %arg5: memref<1x1xf32, #tpu.memory_space<vmem>>, %arg6: memref<80x80xf32, #tpu.memory_space<vmem>>, %arg7: memref<80x80xf32, #tpu.memory_space<vmem>>, %arg8: memref<80x1xf32, #tpu.memory_space<vmem>>, %arg9: memref<1x1xf32, #tpu.memory_space<vmem>>, %arg10: memref<1x80x16xf32, #tpu.memory_space<vmem>>, %arg11: memref<80x32xf32, #tpu.memory_space<vmem>>, %arg12: memref<80x32xf32, #tpu.memory_space<vmem>>) attributes {dimension_semantics = [#tpu.dimension_semantics<parallel>], iteration_bounds = array<i64: 2>, scalar_prefetch = 0 : i64, scratch_operands = 2 : i64, tpu.core_type = #tpu.core_type<tc>, window_params = [{transform_indices = @transform_0, window_bounds = array<i64: 1, 80, 16>}, {pipeline_mode = #tpu.pipeline_mode<synchronous>, transform_indices = @transform_1, window_bounds = array<i64: 80, 80>}, {pipeline_mode = #tpu.pipeline_mode<synchronous>, transform_indices = @transform_2, window_bounds = array<i64: 80, 80>}, {pipeline_mode = #tpu.pipeline_mode<synchronous>, transform_indices = @transform_3, window_bounds = array<i64: 80, 1>}, {pipeline_mode = #tpu.pipeline_mode<synchronous>, transform_indices = @transform_4, window_bounds = array<i64: 1, 1>}, {pipeline_mode = #tpu.pipeline_mode<synchronous>, transform_indices = @transform_5, window_bounds = array<i64: 80, 80>}, {pipeline_mode = #tpu.pipeline_mode<synchronous>, transform_indices = @transform_6, window_bounds = array<i64: 80, 80>}, {pipeline_mode = #tpu.pipeline_mode<synchronous>, transform_indices = @transform_7, window_bounds = array<i64: 80, 1>}, {pipeline_mode = #tpu.pipeline_mode<synchronous>, transform_indices = @transform_8, window_bounds = array<i64: 1, 1>}, {transform_indices = @transform_9, window_bounds = array<i64: 1, 80, 16>}]} {
    %c0 = arith.constant 0 : index
    %c0_0 = arith.constant 0 : index
    %c0_1 = arith.constant 0 : index
    %0 = vector.load %arg1[%c0, %c0_0, %c0_1] : memref<1x80x16xf32, #tpu.memory_space<vmem>>, vector<1x80x16xf32>
    %1 = vector.shape_cast %0 : vector<1x80x16xf32> to vector<80x16xf32>
    %cst = arith.constant 0.000000e+00 : f32
    %2 = vector.broadcast %cst : f32 to vector<80x32xf32>
    %c0_2 = arith.constant 0 : index
    %c0_3 = arith.constant 0 : index
    %3 = vector.load %arg11[%c0_2, %c0_3] : memref<80x32xf32, #tpu.memory_space<vmem>>, vector<80x32xf32>
    tpu.vector_store %arg11[%c0_2, %c0_3], %2 {strides = array<i32>} : memref<80x32xf32, #tpu.memory_space<vmem>>, vector<80x32xf32>,
    %c0_4 = arith.constant 0 : index
    %c8 = arith.constant 8 : index
    %4 = vector.load %arg11[%c0_4, %c8] : memref<80x32xf32, #tpu.memory_space<vmem>>, vector<80x16xf32>
    tpu.vector_store %arg11[%c0_4, %c8], %1 {strides = array<i32>} : memref<80x32xf32, #tpu.memory_space<vmem>>, vector<80x16xf32>,
    %c0_5 = arith.constant 0 : index
    %c0_6 = arith.constant 0 : index
    %5 = vector.load %arg2[%c0_5, %c0_6] : memref<80x80xf32, #tpu.memory_space<vmem>>, vector<80x80xf32>
    %c0_7 = arith.constant 0 : index
    %c0_8 = arith.constant 0 : index
    %6 = vector.load %arg11[%c0_7, %c0_8] : memref<80x32xf32, #tpu.memory_space<vmem>>, vector<80x16xf32>
    %cst_9 = arith.constant dense<0.000000e+00> : vector<80x16xf32>
    %7 = tpu.matmul %5, %6, %cst_9 {dimension_numbers = #tpu.dot_dimension_numbers<[1], [0], [0], [1], [0, 0, 1, 1], [], []>} : vector<80x80xf32>, vector<80x16xf32>, vector<80x16xf32> -> vector<80x16xf32>
    %c0_10 = arith.constant 0 : index
    %c0_11 = arith.constant 0 : index
    %8 = vector.load %arg3[%c0_10, %c0_11] : memref<80x80xf32, #tpu.memory_space<vmem>>, vector<80x80xf32>
    %c0_12 = arith.constant 0 : index
    %c16 = arith.constant 16 : index
    %9 = vector.load %arg11[%c0_12, %c16] : memref<80x32xf32, #tpu.memory_space<vmem>>, vector<80x16xf32>
    %cst_13 = arith.constant dense<0.000000e+00> : vector<80x16xf32>
    %10 = tpu.matmul %8, %9, %cst_13 {dimension_numbers = #tpu.dot_dimension_numbers<[1], [0], [0], [1], [0, 0, 1, 1], [], []>} : vector<80x80xf32>, vector<80x16xf32>, vector<80x16xf32> -> vector<80x16xf32>
    %11 = arith.addf %7, %10 : vector<80x16xf32>
    %c0_14 = arith.constant 0 : index
    %c0_15 = arith.constant 0 : index
    %12 = vector.load %arg4[%c0_14, %c0_15] : memref<80x1xf32, #tpu.memory_space<vmem>>, vector<80x1xf32>
    %13 = vector.broadcast %12 : vector<80x1xf32> to vector<80x16xf32>
    %14 = arith.addf %11, %13 : vector<80x16xf32>
    %cst_16 = arith.constant 0.000000e+00 : f32
    %15 = vector.broadcast %cst_16 : f32 to vector<80x16xf32>
    %16 = arith.cmpf ogt, %14, %15 : vector<80x16xf32>
    %c0_17 = arith.constant 0 : index
    %c0_18 = arith.constant 0 : index
    %17 = vector.load %arg5[%c0_17, %c0_18] : memref<1x1xf32, #tpu.memory_space<vmem>>, vector<1x1xf32>
    %18 = vector.broadcast %17 : vector<1x1xf32> to vector<80x16xf32>
    %19 = arith.mulf %18, %14 : vector<80x16xf32>
    %20 = arith.select %16, %14, %19 : vector<80x16xi1>, vector<80x16xf32>
    %cst_19 = arith.constant 0.000000e+00 : f32
    %21 = vector.broadcast %cst_19 : f32 to vector<80x32xf32>
    %c0_20 = arith.constant 0 : index
    %c0_21 = arith.constant 0 : index
    %22 = vector.load %arg12[%c0_20, %c0_21] : memref<80x32xf32, #tpu.memory_space<vmem>>, vector<80x32xf32>
    tpu.vector_store %arg12[%c0_20, %c0_21], %21 {strides = array<i32>} : memref<80x32xf32, #tpu.memory_space<vmem>>, vector<80x32xf32>,
    %c0_22 = arith.constant 0 : index
    %c8_23 = arith.constant 8 : index
    %23 = vector.load %arg12[%c0_22, %c8_23] : memref<80x32xf32, #tpu.memory_space<vmem>>, vector<80x16xf32>
    tpu.vector_store %arg12[%c0_22, %c8_23], %20 {strides = array<i32>} : memref<80x32xf32, #tpu.memory_space<vmem>>, vector<80x16xf32>,
    %c0_24 = arith.constant 0 : index
    %c0_25 = arith.constant 0 : index
    %24 = vector.load %arg6[%c0_24, %c0_25] : memref<80x80xf32, #tpu.memory_space<vmem>>, vector<80x80xf32>
    %c0_26 = arith.constant 0 : index
    %c0_27 = arith.constant 0 : index
    %25 = vector.load %arg12[%c0_26, %c0_27] : memref<80x32xf32, #tpu.memory_space<vmem>>, vector<80x16xf32>
    %cst_28 = arith.constant dense<0.000000e+00> : vector<80x16xf32>
    %26 = tpu.matmul %24, %25, %cst_28 {dimension_numbers = #tpu.dot_dimension_numbers<[1], [0], [0], [1], [0, 0, 1, 1], [], []>} : vector<80x80xf32>, vector<80x16xf32>, vector<80x16xf32> -> vector<80x16xf32>
    %c0_29 = arith.constant 0 : index
    %c0_30 = arith.constant 0 : index
    %27 = vector.load %arg7[%c0_29, %c0_30] : memref<80x80xf32, #tpu.memory_space<vmem>>, vector<80x80xf32>
    %c0_31 = arith.constant 0 : index
    %c16_32 = arith.constant 16 : index
    %28 = vector.load %arg12[%c0_31, %c16_32] : memref<80x32xf32, #tpu.memory_space<vmem>>, vector<80x16xf32>
    %cst_33 = arith.constant dense<0.000000e+00> : vector<80x16xf32>
    %29 = tpu.matmul %27, %28, %cst_33 {dimension_numbers = #tpu.dot_dimension_numbers<[1], [0], [0], [1], [0, 0, 1, 1], [], []>} : vector<80x80xf32>, vector<80x16xf32>, vector<80x16xf32> -> vector<80x16xf32>
    %30 = arith.addf %26, %29 : vector<80x16xf32>
    %c0_34 = arith.constant 0 : index
    %c0_35 = arith.constant 0 : index
    %31 = vector.load %arg8[%c0_34, %c0_35] : memref<80x1xf32, #tpu.memory_space<vmem>>, vector<80x1xf32>
    %32 = vector.broadcast %31 : vector<80x1xf32> to vector<80x16xf32>
    %33 = arith.addf %30, %32 : vector<80x16xf32>
    %cst_36 = arith.constant 0.000000e+00 : f32
    %34 = vector.broadcast %cst_36 : f32 to vector<80x16xf32>
    %35 = arith.cmpf ogt, %33, %34 : vector<80x16xf32>
    %c0_37 = arith.constant 0 : index
    %c0_38 = arith.constant 0 : index
    %36 = vector.load %arg9[%c0_37, %c0_38] : memref<1x1xf32, #tpu.memory_space<vmem>>, vector<1x1xf32>
    %37 = vector.broadcast %36 : vector<1x1xf32> to vector<80x16xf32>
    %38 = arith.mulf %37, %33 : vector<80x16xf32>
    %39 = arith.select %35, %33, %38 : vector<80x16xi1>, vector<80x16xf32>
    %40 = arith.addf %39, %1 : vector<80x16xf32>
    %c0_39 = arith.constant 0 : index
    %c0_40 = arith.constant 0 : index
    %c0_41 = arith.constant 0 : index
    %41 = vector.load %arg10[%c0_39, %c0_40, %c0_41] : memref<1x80x16xf32, #tpu.memory_space<vmem>>, vector<1x80x16xf32>
    %42 = vector.shape_cast %41 : vector<1x80x16xf32> to vector<80x16xf32>
    %43 = vector.shape_cast %40 : vector<80x16xf32> to vector<1x80x16xf32>
    tpu.vector_store %arg10[%c0_39, %c0_40, %c0_41], %43 {strides = array<i32>} : memref<1x80x16xf32, #tpu.memory_space<vmem>>, vector<1x80x16xf32>,
    return
  }
  func.func @transform_0(%arg0: i32) -> (i32, i32, i32) {
    %c0_i32 = arith.constant 0 : i32
    %c0_i32_0 = arith.constant 0 : i32
    %c0_i32_1 = arith.constant 0 : i32
    return %arg0, %c0_i32, %c0_i32_0 : i32, i32, i32
  }
  func.func @transform_1(%arg0: i32) -> (i32, i32) {
    %c0_i32 = arith.constant 0 : i32
    %c0_i32_0 = arith.constant 0 : i32
    %c0_i32_1 = arith.constant 0 : i32
    return %c0_i32, %c0_i32_0 : i32, i32
  }
  func.func @transform_2(%arg0: i32) -> (i32, i32) {
    %c0_i32 = arith.constant 0 : i32
    %c0_i32_0 = arith.constant 0 : i32
    %c0_i32_1 = arith.constant 0 : i32
    return %c0_i32, %c0_i32_0 : i32, i32
  }
  func.func @transform_3(%arg0: i32) -> (i32, i32) {
    %c0_i32 = arith.constant 0 : i32
    %c0_i32_0 = arith.constant 0 : i32
    %c0_i32_1 = arith.constant 0 : i32
    return %c0_i32, %c0_i32_0 : i32, i32
  }
  func.func @transform_4(%arg0: i32) -> (i32, i32) {
    %c0_i32 = arith.constant 0 : i32
    %c0_i32_0 = arith.constant 0 : i32
    %c0_i32_1 = arith.constant 0 : i32
    return %c0_i32, %c0_i32_0 : i32, i32
  }
  func.func @transform_5(%arg0: i32) -> (i32, i32) {
    %c0_i32 = arith.constant 0 : i32
    %c0_i32_0 = arith.constant 0 : i32
    %c0_i32_1 = arith.constant 0 : i32
    return %c0_i32, %c0_i32_0 : i32, i32
  }
  func.func @transform_6(%arg0: i32) -> (i32, i32) {
    %c0_i32 = arith.constant 0 : i32
    %c0_i32_0 = arith.constant 0 : i32
    %c0_i32_1 = arith.constant 0 : i32
    return %c0_i32, %c0_i32_0 : i32, i32
  }
  func.func @transform_7(%arg0: i32) -> (i32, i32) {
    %c0_i32 = arith.constant 0 : i32
    %c0_i32_0 = arith.constant 0 : i32
    %c0_i32_1 = arith.constant 0 : i32
    return %c0_i32, %c0_i32_0 : i32, i32
  }
  func.func @transform_8(%arg0: i32) -> (i32, i32) {
    %c0_i32 = arith.constant 0 : i32
    %c0_i32_0 = arith.constant 0 : i32
    %c0_i32_1 = arith.constant 0 : i32
    return %c0_i32, %c0_i32_0 : i32, i32
  }
  func.func @transform_9(%arg0: i32) -> (i32, i32, i32) {
    %c0_i32 = arith.constant 0 : i32
    %c0_i32_0 = arith.constant 0 : i32
    %c0_i32_1 = arith.constant 0 : i32
    return %arg0, %c0_i32, %c0_i32_0 : i32, i32, i32
  }
}

module attributes {stable_mosaic.version = 11 : i64} {
  func.func @_fc_sigmoid_kernel(%arg0: i32, %arg1: memref<2x64xf32, #tpu.memory_space<vmem>>, %arg2: memref<64x1xf32, #tpu.memory_space<vmem>>, %arg3: memref<1x1xf32, #tpu.memory_space<vmem>>, %arg4: memref<2x1xf32, #tpu.memory_space<vmem>>) attributes {dimension_semantics = [#tpu.dimension_semantics<arbitrary>], iteration_bounds = array<i64: 1>, scalar_prefetch = 0 : i64, scratch_operands = 0 : i64, tpu.core_type = #tpu.core_type<tc>, window_params = [{pipeline_mode = #tpu.pipeline_mode<synchronous>, transform_indices = @transform_0, window_bounds = array<i64: 2, 64>}, {pipeline_mode = #tpu.pipeline_mode<synchronous>, transform_indices = @transform_1, window_bounds = array<i64: 64, 1>}, {pipeline_mode = #tpu.pipeline_mode<synchronous>, transform_indices = @transform_2, window_bounds = array<i64: 1, 1>}, {pipeline_mode = #tpu.pipeline_mode<synchronous>, transform_indices = @transform_3, window_bounds = array<i64: 2, 1>}]} {
    %c0 = arith.constant 0 : index
    %c0_0 = arith.constant 0 : index
    %0 = vector.load %arg1[%c0, %c0_0] : memref<2x64xf32, #tpu.memory_space<vmem>>, vector<2x64xf32>
    %c0_1 = arith.constant 0 : index
    %c0_2 = arith.constant 0 : index
    %1 = vector.load %arg2[%c0_1, %c0_2] : memref<64x1xf32, #tpu.memory_space<vmem>>, vector<64x1xf32>
    %cst = arith.constant dense<0.000000e+00> : vector<2x1xf32>
    %2 = tpu.matmul %0, %1, %cst {dimension_numbers = #tpu.dot_dimension_numbers<[1], [0], [0], [1], [0, 0, 1, 1], [], []>} : vector<2x64xf32>, vector<64x1xf32>, vector<2x1xf32> -> vector<2x1xf32>
    %c0_3 = arith.constant 0 : index
    %c0_4 = arith.constant 0 : index
    %3 = vector.load %arg3[%c0_3, %c0_4] : memref<1x1xf32, #tpu.memory_space<vmem>>, vector<1x1xf32>
    %4 = vector.broadcast %3 : vector<1x1xf32> to vector<2x1xf32>
    %5 = arith.addf %2, %4 : vector<2x1xf32>
    %cst_5 = arith.constant 0.000000e+00 : f32
    %6 = vector.broadcast %cst_5 : f32 to vector<2x1xf32>
    %7 = arith.subf %6, %5 : vector<2x1xf32>
    %8 = math.exp %7 : vector<2x1xf32>
    %cst_6 = arith.constant 1.000000e+00 : f32
    %9 = vector.broadcast %cst_6 : f32 to vector<2x1xf32>
    %10 = arith.addf %9, %8 : vector<2x1xf32>
    %cst_7 = arith.constant 1.000000e+00 : f32
    %11 = vector.broadcast %cst_7 : f32 to vector<2x1xf32>
    %12 = arith.divf %11, %10 : vector<2x1xf32>
    %c0_8 = arith.constant 0 : index
    %c0_9 = arith.constant 0 : index
    %13 = vector.load %arg4[%c0_8, %c0_9] : memref<2x1xf32, #tpu.memory_space<vmem>>, vector<2x1xf32>
    tpu.vector_store %arg4[%c0_8, %c0_9], %12 {strides = array<i32>} : memref<2x1xf32, #tpu.memory_space<vmem>>, vector<2x1xf32>,
    return
  }
  func.func @transform_0(%arg0: i32) -> (i32, i32) {
    %c0_i32 = arith.constant 0 : i32
    %c0_i32_0 = arith.constant 0 : i32
    %c0_i32_1 = arith.constant 0 : i32
    return %c0_i32, %c0_i32_0 : i32, i32
  }
  func.func @transform_1(%arg0: i32) -> (i32, i32) {
    %c0_i32 = arith.constant 0 : i32
    %c0_i32_0 = arith.constant 0 : i32
    %c0_i32_1 = arith.constant 0 : i32
    return %c0_i32, %c0_i32_0 : i32, i32
  }
  func.func @transform_2(%arg0: i32) -> (i32, i32) {
    %c0_i32 = arith.constant 0 : i32
    %c0_i32_0 = arith.constant 0 : i32
    %c0_i32_1 = arith.constant 0 : i32
    return %c0_i32, %c0_i32_0 : i32, i32
  }
  func.func @transform_3(%arg0: i32) -> (i32, i32) {
    %c0_i32 = arith.constant 0 : i32
    %c0_i32_0 = arith.constant 0 : i32
    %c0_i32_1 = arith.constant 0 : i32
    return %c0_i32, %c0_i32_0 : i32, i32
  }
}

</mosaic_0001>

<bundles_post_ra>
// kernel: discriminator_forward.9
= control target key start
LH: loop header
LB: loop body
LE: loop exit
PB: predicated region body
PF: predicated region fallthrough
CT: control target
= control target key end

     0   :  { %s1393_s13 = smov 0   ;;  %s1707_s0 = inlined_call_operand.vmem [shape: f32[2,4,16], index: 0, kind: input, shape index: {}]   ;;  %s1708_s1 = inlined_call_operand.vmem [shape: f32[80,4], index: 1, kind: input, shape index: {}]   ;;  %s1709_s2 = inlined_call_operand.vmem [shape: f32[80,1], index: 2, kind: input, shape index: {}]   ;;  %s1710_s3 = inlined_call_operand.<no memory space> [shape: f32[1,1], index: 3, kind: input, shape index: {}]   ;;  %s1711_s4 = inlined_call_operand.vmem [shape: f32[80,80], index: 4, kind: input, shape index: {}]   ;;  %s1712_s5 = inlined_call_operand.vmem [shape: f32[80,1], index: 5, kind: input, shape index: {}]   ;;  %s1713_s7 = inlined_call_operand.vmem [shape: f32[80,4], index: 7, kind: input, shape index: {}]   ;;  %s1714_s8 = inlined_call_operand.vmem [shape: f32[80,1], index: 8, kind: input, shape index: {}]   ;;  %s1715_s9 = inlined_call_operand.vmem [shape: f32[2,80,16], index: 9, kind: output, shape index: {}]   ;;  %s1716_s6 = inlined_call_operand.<no memory space> [shape: f32[1,1], index: 6, kind: input, shape index: {}]  }
   0x1   :  { %v14_v0 = vstv %s1710_s3  ;;  %v16_v1 = vstv %s1716_s6 }
   0x2   :  { %15 = vst [vmem:[#allocation2] sm:$0x1] %v14_v0  ;;  %17 = vst [vmem:[#allocation3] sm:$0x1] %v16_v1 }
   0x3 LB: > { %s1142_s14 = sadd.s32 4294967295, %s1334_s13   ;;  %p1146_p0 = scmp.ge.s32.totalorder %s1334_s13, 1  ;;  %s1334_s13 = sphi %s1393_s13, %s23_s13  }
   0x4   : > { %p290_p1 = scmp.lt.s32.totalorder %s1334_s13, 3 }
   0x6   : > { %p291_p2 = pnand %p1146_p0, %p290_p1 }
   0x7   : > { %p325_p3 = scmp.lt.s32.totalorder (!%p291_p2), %s1142_s14, 1  ;;  %v335_v2 = vld [vmem:[%s1708_s1] sm:$0xff] (!%p291_p2)  ;;  %vm405_vm0 = vcmask (!%p291_p2), 31744   ;;  %v1336_v3 = vmov (!%p291_p2), 0   ;;  %vm436_vm1 = vcmask (!%p291_p2), 1043456   ;;  %v336_v7 = vld [vmem:[%s1708_s1 + $0x8] sm:$0xff] (!%p291_p2) }
   0x8   : > { %294 = sbr.rel (%p291_p2) target bundleno = 498 (0x1f2), region = 56  ;;  %1229 = vmatprep.mubr.msk.f32.mxu0 (!%p291_p2), %vm405_vm0, %v335_v2  ;;  %1326 = vset.pattern.permute.xlu0 (!%p291_p2), %v1336_v3  ;;  %v345_v4 = vld [vmem:[%s1709_s2] sm:$0xff] (!%p291_p2)  ;;  %v337_v8 = vld [vmem:[%s1708_s1 + $0x10] sm:$0xff] (!%p291_p2)  ;;  %v346_v9 = vld [vmem:[%s1709_s2 + $0x8] sm:$0xff] (!%p291_p2)  ;;  %vm665_vm2 = vcmask (!%p291_p2), 654336   ;;  %vm1076_vm15 = vcmask (!%p291_p2), 130048  }
   0x9   : > { %1327 = vset.pattern.permute.xlu1 (!%p291_p2), %v1336_v3  ;;  %357 = vperm.xlu0 (!%p291_p2), %1326, %v345_v4   ;;  %v1160_v5 = vld [vmem:[#allocation2] ss:$0 sm:$0xff] (!%p291_p2)  ;;  %v347_v10 = vld [vmem:[%s1709_s2 + $0x10] sm:$0xff] (!%p291_p2)  ;;  %v338_v11 = vld [vmem:[%s1708_s1 + $0x18] sm:$0xff] (!%p291_p2) }
   0xa   : > { %572 = vperm.xlu1 (!%p291_p2), %1327, %v1160_v5   ;;  %v339_v12 = vld [vmem:[%s1708_s1 + $0x20] sm:$0xff] (!%p291_p2)  ;;  %v348_v13 = vld [vmem:[%s1709_s2 + $0x18] sm:$0xff] (!%p291_p2)  ;;  %v340_v15 = vld [vmem:[%s1708_s1 + $0x28] sm:$0xff] (!%p291_p2) }
   0xb   : > { %v349_v14 = vld [vmem:[%s1709_s2 + $0x20] sm:$0xff] (!%p291_p2)  ;;  %v341_v16 = vld [vmem:[%s1708_s1 + $0x30] sm:$0xff] (!%p291_p2)  ;;  %v350_v17 = vld [vmem:[%s1709_s2 + $0x28] sm:$0xff] (!%p291_p2) }
   0xc   : > { %v351_v18 = vld [vmem:[%s1709_s2 + $0x30] sm:$0xff] (!%p291_p2)  ;;  %v342_v19 = vld [vmem:[%s1708_s1 + $0x38] sm:$0xff] (!%p291_p2)  ;;  %v343_v20 = vld [vmem:[%s1708_s1 + $0x40] sm:$0xff] (!%p291_p2) }
   0xd   : > { %362 = vperm.xlu0 (!%p291_p2), %1326, %v346_v9   ;;  %v352_v21 = vld [vmem:[%s1709_s2 + $0x38] sm:$0xff] (!%p291_p2)  ;;  %v353_v22 = vld [vmem:[%s1709_s2 + $0x40] sm:$0xff] (!%p291_p2)  ;;  %v344_v23 = vld [vmem:[%s1708_s1 + $0x48] sm:$0xff] (!%p291_p2) }
   0xe   : > { %367 = vperm.xlu1 (!%p291_p2), %1327, %v347_v10   ;;  %v851_v24 = vld [vmem:[%s1713_s7] sm:$0xff] (!%p291_p2)  ;;  %v354_v25 = vld [vmem:[%s1709_s2 + $0x48] sm:$0xff] (!%p291_p2)  ;;  %v853_v28 = vld [vmem:[%s1713_s7 + $0x10] sm:$0xff] (!%p291_p2) }
   0xf   : > { %s1718_s14 = smov (!%p325_p3, %s1142_s14), 1  ;;  %v605_v26 = vld [vmem:[%s1712_s5] sm:$0xff]  ;;  %v852_v27 = vld [vmem:[%s1713_s7 + $0x8] sm:$0xff]  ;;  %v607_v30 = vld [vmem:[%s1712_s5 + $0x10] sm:$0xff] }
  0x10   : > { %s1147_s15 = sshll.u32 %s1718_s14, 2  ;;  %v606_v29 = vld [vmem:[%s1712_s5 + $0x8] sm:$0xff]  ;;  %v854_v31 = vld [vmem:[%s1713_s7 + $0x18] sm:$0xff]  ;;  %v855_v32 = vld [vmem:[%s1713_s7 + $0x20] sm:$0xff]  ;;  %s1316_s11 = smul.u32 80, %s1718_s14 }
  0x11   : > { %s328_s20 = scalar_lea.vmem %s1707_s0, %s1147_s15  ;;  %372 = vperm.xlu0 %1326, %v348_v13   ;;  %v608_v33 = vld [vmem:[%s1712_s5 + $0x18] sm:$0xff]  ;;  %v609_v34 = vld [vmem:[%s1712_s5 + $0x20] sm:$0xff]  ;;  %v856_v35 = vld [vmem:[%s1713_s7 + $0x28] sm:$0xff] }
  0x12   : > { %v334_v6 = vld [vmem:[%s328_s20] sm:$0xf]  ;;  %377 = vperm.xlu1 %1327, %v349_v14   ;;  %v857_v36 = vld [vmem:[%s1713_s7 + $0x30] sm:$0xff]  ;;  %v610_v37 = vld [vmem:[%s1712_s5 + $0x28] sm:$0xff]  ;;  %s1663_s6 = scalar_lea.vmem %s1715_s9, %s1316_s11 }
  0x13   : > { %1227 = vmatprep.subr.msk.mxu0 %vm436_vm1, %v334_v6  ;;  %v611_v38 = vld [vmem:[%s1712_s5 + $0x30] sm:$0xff]  ;;  %v858_v39 = vld [vmem:[%s1713_s7 + $0x38] sm:$0xff]  ;;  %v859_v40 = vld [vmem:[%s1713_s7 + $0x40] sm:$0xff] }
  0x14   : > { %1228 = vmatpush3.msk.msra.mxu0 %vm436_vm1, %v334_v6  ;;  %v612_v41 = vld [vmem:[%s1712_s5 + $0x38] sm:$0xff]  ;;  %v613_v42 = vld [vmem:[%s1712_s5 + $0x40] sm:$0xff]  ;;  %v860_v43 = vld [vmem:[%s1713_s7 + $0x48] sm:$0xff] }
  0x15   : > { %1230 = vmatmul.mubr.msk.f32.vlgmr.msra.gmra.mrb[0].mxu0 %vm405_vm0, %v336_v7  ;;  %1279 = vmatprep.subr.msk.mxu0 %vm436_vm1, %v334_v6  ;;  %v614_v44 = vld [vmem:[%s1712_s5 + $0x48] sm:$0xff]  ;;  %v1171_v45 = vld [vmem:[#allocation3] ss:$0 sm:$0xff]  ;;  %v863_v48 = vld [vmem:[%s1714_s8 + $0x10] sm:$0xff] }
  0x16   : > { %1232 = vmatprep.mubr.msk.f32.mxu0 %vm405_vm0, %v337_v8  ;;  %1280 = vmatpush3.msk.msra.mxu0 %vm436_vm1, %v334_v6  ;;  %v861_v46 = vld [vmem:[%s1714_s8] sm:$0xff]  ;;  %v862_v47 = vld [vmem:[%s1714_s8 + $0x8] sm:$0xff]  ;;  %v864_v49 = vld [vmem:[%s1714_s8 + $0x18] sm:$0xff] }
  0x17   : > { %382 = vperm.xlu0 %1326, %v350_v17   ;;  %387 = vperm.xlu1 %1327, %v351_v18   ;;  %v865_v50 = vld [vmem:[%s1714_s8 + $0x20] sm:$0xff]  ;;  %v866_v51 = vld [vmem:[%s1714_s8 + $0x28] sm:$0xff]  ;;  %v867_v52 = vld [vmem:[%s1714_s8 + $0x30] sm:$0xff] }
  0x18   : > { %v868_v53 = vld [vmem:[%s1714_s8 + $0x38] sm:$0xff]  ;;  %v869_v54 = vld [vmem:[%s1714_s8 + $0x40] sm:$0xff]  ;;  %v870_v55 = vld [vmem:[%s1714_s8 + $0x48] sm:$0xff] }
  0x19   : > { %1233 = vmatmul.mubr.msk.f32.gmra.mrb[2].mxu0 %vm405_vm0, %v338_v11  ;;  %v595_v56 = vld [vmem:[%s1711_s4] sm:$0xff] }
  0x1a   : > { %1235 = vmatprep.mubr.msk.f32.mxu0 %vm405_vm0, %v339_v12  ;;  %1264 = vmatprep.mubr.msk.f32.mxu1 %vm665_vm2, %v595_v56 }
  0x1b   : > { %392 = vperm.xlu0 %1326, %v352_v21   ;;  %397 = vperm.xlu1 %1327, %v353_v22  }
  0x1d   : > { %1236 = vmatmul.mubr.msk.f32.gmra.mrb[4].mxu0 %vm405_vm0, %v340_v15 }
  0x1e   : > { %1238 = vmatprep.mubr.msk.f32.mxu0 %vm405_vm0, %v341_v16 }
  0x1f   : > { %402 = vperm.xlu0 %1326, %v354_v25   ;;  %617 = vperm.xlu1 %1327, %v605_v26  }
  0x21   : > { %1239 = vmatmul.mubr.msk.f32.gmra.mrb[6].mxu0 %vm405_vm0, %v342_v19 }
  0x22   : > { %1241 = vmatprep.mubr.msk.f32.mxu0 %vm405_vm0, %v343_v20 }
  0x23   : > { %622 = vperm.xlu0 %1326, %v606_v29   ;;  %627 = vperm.xlu1 %1327, %v607_v30  }
  0x25   : > { %1242 = vmatmul.mubr.msk.f32.gmra.mrb[8].mxu0 %vm405_vm0, %v344_v23 }
  0x26   : > { %1281 = vmatprep.mubr.msk.f32.mxu0 %vm405_vm0, %v851_v24 }
  0x27   : > { %632 = vperm.xlu0 %1326, %v608_v33   ;;  %637 = vperm.xlu1 %1327, %v609_v34  }
  0x29   : > { %1282 = vmatmul.mubr.msk.f32.vlgmr.msra.gmra.mrb[10].mxu0 %vm405_vm0, %v852_v27 }
  0x2a   : > { %1284 = vmatprep.mubr.msk.f32.mxu0 %vm405_vm0, %v853_v28 }
  0x2b   : > { %642 = vperm.xlu0 %1326, %v610_v37   ;;  %647 = vperm.xlu1 %1327, %v611_v38  }
  0x2d   : > { %1285 = vmatmul.mubr.msk.f32.gmra.mrb[12].mxu0 %vm405_vm0, %v854_v31 }
  0x2e   : > { %1287 = vmatprep.mubr.msk.f32.mxu0 %vm405_vm0, %v855_v32 }
  0x2f   : > { %652 = vperm.xlu0 %1326, %v612_v41   ;;  %657 = vperm.xlu1 %1327, %v613_v42  }
  0x31   : > { %1288 = vmatmul.mubr.msk.f32.gmra.mrb[14].mxu0 %vm405_vm0, %v856_v35 }
  0x32   : > { %1290 = vmatprep.mubr.msk.f32.mxu0 %vm405_vm0, %v857_v36 }
  0x33   : > { %662 = vperm.xlu0 %1326, %v614_v44   ;;  %828 = vperm.xlu1 %1327, %v1171_v45  }
  0x35   : > { %1291 = vmatmul.mubr.msk.f32.gmra.mrb[16].mxu0 %vm405_vm0, %v858_v39 }
  0x36   : > { %1293 = vmatprep.mubr.msk.f32.mxu0 %vm405_vm0, %v859_v40 }
  0x37   : > { %873 = vperm.xlu0 %1326, %v861_v46   ;;  %878 = vperm.xlu1 %1327, %v862_v47  }
  0x39   : > { %1294 = vmatmul.mubr.msk.f32.gmra.mrb[18].mxu0 %vm405_vm0, %v860_v43 }
  0x3b   : > { %883 = vperm.xlu0 %1326, %v863_v48   ;;  %888 = vperm.xlu1 %1327, %v864_v49  }
  0x3f   : > { %893 = vperm.xlu0 %1326, %v865_v50   ;;  %898 = vperm.xlu1 %1327, %v866_v51  }
  0x43   : > { %903 = vperm.xlu0 %1326, %v867_v52   ;;  %908 = vperm.xlu1 %1327, %v868_v53   ;;  %v596_v53 = vld [vmem:[%s1711_s4 + $0x8] sm:$0xff] }
  0x47   : > { %913 = vperm.xlu0 %1326, %v869_v54   ;;  %918 = vperm.xlu1 %1327, %v870_v55   ;;  %v597_v54 = vld [vmem:[%s1711_s4 + $0x10] sm:$0xff] }
  0x88   : > { %v358_v57 = vpop.permute.xlu0 %357 }
  0x89   : > { %v1585_v59 = vpop.permute.xlu1 %572 }
  0x8c   : > { %v363_v58 = vpop.permute.xlu0 %362 }
  0x8d   : > { %v368_v61 = vpop.permute.xlu1 %367 }
  0x90   : > { %v373_v60 = vpop.permute.xlu0 %372 }
  0x91   : > { %v378_v6 = vpop.permute.xlu1 %377 }
  0x96   : > { %v383_v3 = vpop.permute.xlu0 %382  ;;  %v388_v22 = vpop.permute.xlu1 %387 }
  0x9a   : > { %v393_v19 = vpop.permute.xlu0 %392  ;;  %v398_v37 = vpop.permute.xlu1 %397 }
  0x9e   : > { %v403_v34 = vpop.permute.xlu0 %402 }
  0xe8   : > { %v1231_v62 = vpop.f32.mrb[0].mxu0 }
  0xe9   : > { %v512_v63 = vadd.f32 %v1231_v62, %v363_v58  ;;  %v506_v0 = vpop.f32.mrb[1].mxu0  ;;  %v599_v58 = vld [vmem:[%s1711_s4 + $0x20] sm:$0xff]  ;;  %v601_v62 = vld [vmem:[%s1711_s4 + $0x30] sm:$0xff] }
  0xea   : > { %v507_v1 = vadd.f32 %v506_v0, %v358_v57  ;;  %v598_v57 = vld [vmem:[%s1711_s4 + $0x18] sm:$0xff] }
  0xeb   : > { %v576_v2 = vmul.f32 %v1585_v59, %v512_v63  ;;  %vm556_vm3 = vcmp.gt.f32.partialorder %v512_v63, 0.0 }
  0xec   : > { %v575_v4 = vmul.f32 %v1585_v59, %v507_v1  ;;  %v1234_v5 = vpop.f32.mrb[2].mxu0  ;;  %vm555_vm4 = vcmp.gt.f32.partialorder %v507_v1, 0.0 }
  0xed   : > { %v522_v7 = vadd.f32 %v1234_v5, %v373_v60  ;;  %v516_v8 = vpop.f32.mrb[3].mxu0  ;;  %v586_v9 = vsel %vm556_vm3, %v512_v63, %v576_v2  ;;  %v603_v2 = vld [vmem:[%s1711_s4 + $0x40] sm:$0xff] }
  0xee   : > { %v517_v10 = vadd.f32 %v516_v8, %v368_v61  ;;  %v585_v11 = vsel %vm555_vm4, %v507_v1, %v575_v4  ;;  %v600_v61 = vld [vmem:[%s1711_s4 + $0x28] sm:$0xff]  ;;  %v602_v1 = vld [vmem:[%s1711_s4 + $0x38] sm:$0xff]  ;;  %v618_v4 = vpop.permute.xlu1 %617 }
  0xef   : > { %vm558_vm5 = vcmp.gt.f32.partialorder %v522_v7, 0.0  ;;  %v578_v12 = vmul.f32 %v1585_v59, %v522_v7  ;;  %v1296_v13 = vpack.c.bf16 %v586_v9, %v585_v11 }
  0xf0   : > { %vm557_vm6 = vcmp.gt.f32.partialorder %v517_v10, 0.0  ;;  %v577_v14 = vmul.f32 %v1585_v59, %v517_v10  ;;  %v1237_v15 = vpop.f32.mrb[4].mxu0 }
  0xf1   : > { %v532_v16 = vadd.f32 %v1237_v15, %v383_v3  ;;  %v526_v17 = vpop.f32.mrb[5].mxu0  ;;  %1297 = vmatprep.subr.bf16.mxu1 %v1296_v13  ;;  %v588_v18 = vsel %vm558_vm5, %v522_v7, %v578_v12  ;;  %v604_v3 = vld [vmem:[%s1711_s4 + $0x48] sm:$0xff] }
  0xf2   : > { %v527_v20 = vadd.f32 %v526_v17, %v378_v6  ;;  %1299 = vmatpush3.bf16.msra.mxu1 %v1296_v13  ;;  %v587_v21 = vsel %vm557_vm6, %v517_v10, %v577_v14  ;;  %v628_v5 = vpop.permute.xlu1 %627  ;;  %v623_v6 = vpop.permute.xlu0 %622 }
  0xf3   : > { %vm560_vm7 = vcmp.gt.f32.partialorder %v532_v16, 0.0  ;;  %v580_v23 = vmul.f32 %v1585_v59, %v532_v16  ;;  %v1300_v24 = vpack.c.bf16 %v588_v18, %v587_v21 }
  0xf4   : > { %vm559_vm8 = vcmp.gt.f32.partialorder %v527_v20, 0.0  ;;  %v579_v25 = vmul.f32 %v1585_v59, %v527_v20  ;;  %v1240_v26 = vpop.f32.mrb[6].mxu0 }
  0xf5   : > { %v542_v27 = vadd.f32 %v1240_v26, %v393_v19  ;;  %v536_v28 = vpop.f32.mrb[7].mxu0  ;;  %1301 = vmatprep.subr.bf16.mxu1 %v1300_v24  ;;  %v590_v29 = vsel %vm560_vm7, %v532_v16, %v580_v23 }
  0xf6   : > { %v537_v30 = vadd.f32 %v536_v28, %v388_v22  ;;  %1303 = vmatpush3.bf16.msra.mxu1 %v1300_v24  ;;  %v589_v31 = vsel %vm559_vm8, %v527_v20, %v579_v25  ;;  %v638_v7 = vpop.permute.xlu1 %637  ;;  %v633_v8 = vpop.permute.xlu0 %632 }
  0xf7   : > { %vm562_vm9 = vcmp.gt.f32.partialorder %v542_v27, 0.0  ;;  %v582_v32 = vmul.f32 %v1585_v59, %v542_v27  ;;  %v1304_v33 = vpack.c.bf16 %v590_v29, %v589_v31 }
  0xf8   : > { %vm561_vm10 = vcmp.gt.f32.partialorder %v537_v30, 0.0  ;;  %v581_v35 = vmul.f32 %v1585_v59, %v537_v30  ;;  %v1243_v36 = vpop.f32.mrb[8].mxu0 }
  0xf9   : > { %v552_v38 = vadd.f32 %v1243_v36, %v403_v34  ;;  %v546_v39 = vpop.f32.mrb[9].mxu0  ;;  %1305 = vmatprep.subr.bf16.mxu1 %v1304_v33  ;;  %v592_v40 = vsel %vm562_vm9, %v542_v27, %v582_v32 }
  0xfa   : > { %v547_v41 = vadd.f32 %v546_v39, %v398_v37  ;;  %1307 = vmatpush3.bf16.msra.mxu1 %v1304_v33  ;;  %v591_v42 = vsel %vm561_vm10, %v537_v30, %v581_v35  ;;  %v1649_v9 = vpop.permute.xlu1 %647  ;;  %v643_v10 = vpop.permute.xlu0 %642 }
  0xfb   : > { %vm564_vm11 = vcmp.gt.f32.partialorder %v552_v38, 0.0  ;;  %v584_v43 = vmul.f32 %v1585_v59, %v552_v38  ;;  %v1308_v44 = vpack.c.bf16 %v592_v40, %v591_v42 }
  0xfc   : > { %vm563_vm12 = vcmp.gt.f32.partialorder %v547_v41, 0.0  ;;  %v583_v45 = vmul.f32 %v1585_v59, %v547_v41  ;;  %v1283_v46 = vpop.f32.mrb[10].mxu0 }
  0xfd   : > { %1309 = vmatprep.subr.bf16.mxu1 %v1308_v44  ;;  %v1017_v47 = vpop.f32.mrb[11].mxu0  ;;  %v594_v48 = vsel %vm564_vm11, %v552_v38, %v584_v43 }
  0xfe   : > { %1311 = vmatpush3.bf16.msra.mxu1 %v1308_v44  ;;  %v593_v49 = vsel %vm563_vm12, %v547_v41, %v583_v45  ;;  %v1651_v11 = vpop.permute.xlu1 %657  ;;  %v653_v12 = vpop.permute.xlu0 %652 }
  0xff   : > { %v1312_v50 = vpack.c.bf16 %v594_v48, %v593_v49 }
 0x100   : > { %v1597_v51 = vpop.f32.mrb[12].mxu0 }
 0x101   : > { %1313 = vmatprep.subr.bf16.mxu1 %v1312_v50  ;;  %v1599_v52 = vpop.f32.mrb[13].mxu0 }
 0x102   : > { %1315 = vmatpush3.bf16.msra.mxu1 %v1312_v50  ;;  %v1653_v13 = vpop.permute.xlu1 %828  ;;  %v1655_v14 = vpop.permute.xlu0 %662 }
 0x104   : > { %v1607_v55 = vpop.f32.mrb[14].mxu0 }
 0x105   : > { %1265 = vmatmul.mubr.msk.f32.vlgmr.msra.gmra.mrb[0].mxu1 %vm665_vm2, %v596_v53  ;;  %v1610_v56 = vpop.f32.mrb[15].mxu0 }
 0x106   : > { %1267 = vmatprep.mubr.msk.f32.mxu1 %vm665_vm2, %v597_v54  ;;  %v879_v15 = vpop.permute.xlu1 %878  ;;  %v874_v16 = vpop.permute.xlu0 %873 }
 0x107   : > { %v1023_v24 = vadd.f32 %v1283_v46, %v879_v15  ;;  %v1018_v27 = vadd.f32 %v1017_v47, %v874_v16 }
 0x108   : > { %v1619_v59 = vpop.f32.mrb[16].mxu0 }
 0x109   : > { %1268 = vmatmul.mubr.msk.f32.gmra.mrb[2].mxu1 %vm665_vm2, %v598_v57  ;;  %v1622_v60 = vpop.f32.mrb[17].mxu0 }
 0x10a   : > { %1270 = vmatprep.mubr.msk.f32.mxu1 %vm665_vm2, %v599_v58  ;;  %v889_v18 = vpop.permute.xlu1 %888  ;;  %v884_v21 = vpop.permute.xlu0 %883 }
 0x10b   : > { %v1033_v38 = vadd.f32 %v1597_v51, %v889_v18  ;;  %v1028_v41 = vadd.f32 %v1599_v52, %v884_v21 }
 0x10c   : > { %v1631_v63 = vpop.f32.mrb[18].mxu0 }
 0x10d   : > { %1271 = vmatmul.mubr.msk.f32.gmra.mrb[4].mxu1 %vm665_vm2, %v600_v61  ;;  %v1634_v0 = vpop.f32.mrb[19].mxu0 }
 0x10e   : > { %1273 = vmatprep.mubr.msk.f32.mxu1 %vm665_vm2, %v601_v62  ;;  %v899_v34 = vpop.permute.xlu1 %898  ;;  %v894_v37 = vpop.permute.xlu0 %893 }
 0x10f   : > { %v1043_v50 = vadd.f32 %v1607_v55, %v899_v34  ;;  %v1038_v54 = vadd.f32 %v1610_v56, %v894_v37 }
 0x111   : > { %1274 = vmatmul.mubr.msk.f32.gmra.mrb[6].mxu1 %vm665_vm2, %v602_v1 }
 0x112   : > { %1276 = vmatprep.mubr.msk.f32.mxu1 %vm665_vm2, %v603_v2  ;;  %v909_v53 = vpop.permute.xlu1 %908  ;;  %v904_v62 = vpop.permute.xlu0 %903 }
 0x115   : > { %1277 = vmatmul.mubr.msk.f32.gmra.mrb[8].mxu1 %vm665_vm2, %v604_v3 }
 0x116   : > { %v919_v16 = vpop.permute.xlu1 %918 }
 0x1d8   : > { %v1266_v17 = vpop.f32.mrb[0].mxu1 }
 0x1d9   : > { %v768_v19 = vadd.f32 %v1266_v17, %v623_v6  ;;  %v762_v20 = vpop.f32.mrb[1].mxu1 }
 0x1da   : > { %v763_v22 = vadd.f32 %v762_v20, %v618_v4 }
 0x1db   : > { %vm812_vm13 = vcmp.gt.f32.partialorder %v768_v19, 0.0  ;;  %v832_v23 = vmul.f32 %v1653_v13, %v768_v19 }
 0x1dc   : > { %vm811_vm14 = vcmp.gt.f32.partialorder %v763_v22, 0.0  ;;  %v831_v25 = vmul.f32 %v1653_v13, %v763_v22  ;;  %v1269_v26 = vpop.f32.mrb[2].mxu1 }
 0x1dd   : > { %v842_v28 = vsel %vm812_vm13, %v768_v19, %v832_v23  ;;  %v778_v29 = vadd.f32 %v1269_v26, %v633_v8  ;;  %v772_v30 = vpop.f32.mrb[3].mxu1  ;;  %v914_v19 = vpop.permute.xlu0 %913 }
 0x1de   : > { %v1067_v31 = vadd.f32 %v1023_v24, %v842_v28  ;;  %v841_v32 = vsel %vm811_vm14, %v763_v22, %v831_v25  ;;  %v773_v33 = vadd.f32 %v772_v30, %v628_v5  ;;  %v1053_v5 = vadd.f32 %v1619_v59, %v909_v53 }
 0x1df   : > { %v1066_v35 = vadd.f32 %v1018_v27, %v841_v32  ;;  %vm814_vm0 = vcmp.gt.f32.partialorder %v778_v29, 0.0  ;;  %v834_v36 = vmul.f32 %v1653_v13, %v778_v29  ;;  %v1058_v20 = vadd.f32 %v1634_v0, %v914_v19 }
 0x1e0   : > { %1078 = vst.msk [vmem:[%s1663_s6 + $0x8] sm:$0xff] %vm1076_vm15, %v1067_v31  ;;  %vm813_vm1 = vcmp.gt.f32.partialorder %v773_v33, 0.0  ;;  %v833_v39 = vmul.f32 %v1653_v13, %v773_v33  ;;  %v1272_v40 = vpop.f32.mrb[4].mxu1 }
 0x1e1   : > { %1077 = vst.msk [vmem:[%s1663_s6] sm:$0xff] %vm1076_vm15, %v1066_v35  ;;  %v844_v42 = vsel %vm814_vm0, %v778_v29, %v834_v36  ;;  %v788_v43 = vadd.f32 %v1272_v40, %v643_v10  ;;  %v782_v44 = vpop.f32.mrb[5].mxu1 }
 0x1e2   : > { %v1069_v45 = vadd.f32 %v1033_v38, %v844_v42  ;;  %v843_v46 = vsel %vm813_vm1, %v773_v33, %v833_v39  ;;  %v783_v47 = vadd.f32 %v782_v44, %v638_v7  ;;  %v1048_v7 = vadd.f32 %v1622_v60, %v904_v62 }
 0x1e3   : > { %v1068_v48 = vadd.f32 %v1028_v41, %v843_v46  ;;  %vm816_vm2 = vcmp.gt.f32.partialorder %v788_v43, 0.0  ;;  %v836_v49 = vmul.f32 %v1653_v13, %v788_v43  ;;  %v1063_v60 = vadd.f32 %v1631_v63, %v919_v16 }
 0x1e4   : > { %1080 = vst.msk [vmem:[%s1663_s6 + $0x18] sm:$0xff] %vm1076_vm15, %v1069_v45  ;;  %vm815_vm3 = vcmp.gt.f32.partialorder %v783_v47, 0.0  ;;  %v835_v51 = vmul.f32 %v1653_v13, %v783_v47  ;;  %v1275_v52 = vpop.f32.mrb[6].mxu1 }
 0x1e5   : > { %1079 = vst.msk [vmem:[%s1663_s6 + $0x10] sm:$0xff] %vm1076_vm15, %v1068_v48  ;;  %v846_v57 = vsel %vm816_vm2, %v788_v43, %v836_v49  ;;  %v798_v58 = vadd.f32 %v1275_v52, %v653_v12  ;;  %v792_v61 = vpop.f32.mrb[7].mxu1 }
 0x1e6   : > { %v1071_v1 = vadd.f32 %v1043_v50, %v846_v57  ;;  %v845_v2 = vsel %vm815_vm3, %v783_v47, %v835_v51  ;;  %v793_v55 = vadd.f32 %v792_v61, %v1649_v9 }
 0x1e7   : > { %v1070_v3 = vadd.f32 %v1038_v54, %v845_v2  ;;  %vm818_vm4 = vcmp.gt.f32.partialorder %v798_v58, 0.0  ;;  %v838_v4 = vmul.f32 %v1653_v13, %v798_v58 }
 0x1e8   : > { %1082 = vst.msk [vmem:[%s1663_s6 + $0x28] sm:$0xff] %vm1076_vm15, %v1071_v1  ;;  %vm817_vm5 = vcmp.gt.f32.partialorder %v793_v55, 0.0  ;;  %v837_v56 = vmul.f32 %v1653_v13, %v793_v55  ;;  %v1278_v6 = vpop.f32.mrb[8].mxu1 }
 0x1e9   : > { %1081 = vst.msk [vmem:[%s1663_s6 + $0x20] sm:$0xff] %vm1076_vm15, %v1070_v3  ;;  %v848_v8 = vsel %vm818_vm4, %v798_v58, %v838_v4  ;;  %v808_v9 = vadd.f32 %v1278_v6, %v1655_v14  ;;  %v802_v10 = vpop.f32.mrb[9].mxu1 }
 0x1ea   : > { %v1073_v12 = vadd.f32 %v1053_v5, %v848_v8  ;;  %v847_v15 = vsel %vm817_vm5, %v793_v55, %v837_v56  ;;  %v803_v59 = vadd.f32 %v802_v10, %v1651_v11 }
 0x1eb   : > { %v1072_v17 = vadd.f32 %v1048_v7, %v847_v15  ;;  %vm820_vm6 = vcmp.gt.f32.partialorder %v808_v9, 0.0  ;;  %v840_v18 = vmul.f32 %v1653_v13, %v808_v9 }
 0x1ec   : > { %1084 = vst.msk [vmem:[%s1663_s6 + $0x38] sm:$0xff] %vm1076_vm15, %v1073_v12  ;;  %vm819_vm7 = vcmp.gt.f32.partialorder %v803_v59, 0.0  ;;  %v839_v14 = vmul.f32 %v1653_v13, %v803_v59 }
 0x1ed   : > { %1083 = vst.msk [vmem:[%s1663_s6 + $0x30] sm:$0xff] %vm1076_vm15, %v1072_v17  ;;  %v850_v11 = vsel %vm820_vm6, %v808_v9, %v840_v18 }
 0x1ee   : > { %v1075_v21 = vadd.f32 %v1063_v60, %v850_v11  ;;  %v849_v22 = vsel %vm819_vm7, %v803_v59, %v839_v14 }
 0x1ef   : > { %v1074_v23 = vadd.f32 %v1058_v20, %v849_v22 }
 0x1f0   : > { %1086 = vst.msk [vmem:[%s1663_s6 + $0x48] sm:$0xff] %vm1076_vm15, %v1075_v21 }
 0x1f1   : > { %1085 = vst.msk [vmem:[%s1663_s6 + $0x40] sm:$0xff] %vm1076_vm15, %v1074_v23 }
 0x1f2 PF: > { %s23_s13 = sadd.s32 1, %s1334_s13  }
 0x1f3   : > { %p20_p4 = scmp.ge.s32.totalorder %s23_s13, 4  }
 0x1f5   :  { %22 = sbr.rel (!%p20_p4) target bundleno = 3 (0x3), region = 86 }

// kernel: discriminator_forward.12
= control target key start
LH: loop header
LB: loop body
LE: loop exit
PB: predicated region body
PF: predicated region fallthrough
CT: control target
= control target key end

     0   :  { %s1990_s13 = smov 0   ;;  %s2439_s0 = inlined_call_operand.vmem [shape: f32[2,80,16], index: 0, kind: input, shape index: {}]   ;;  %s2440_s1 = inlined_call_operand.vmem [shape: f32[80,80], index: 1, kind: input, shape index: {}]   ;;  %s2441_s2 = inlined_call_operand.vmem [shape: f32[80,80], index: 2, kind: input, shape index: {}]   ;;  %s2442_s3 = inlined_call_operand.vmem [shape: f32[80,1], index: 3, kind: input, shape index: {}]   ;;  %s2443_s4 = inlined_call_operand.<no memory space> [shape: f32[1,1], index: 4, kind: input, shape index: {}]   ;;  %s2444_s5 = inlined_call_operand.vmem [shape: f32[80,80], index: 5, kind: input, shape index: {}]   ;;  %s2445_s6 = inlined_call_operand.vmem [shape: f32[80,80], index: 6, kind: input, shape index: {}]   ;;  %s2446_s7 = inlined_call_operand.vmem [shape: f32[80,1], index: 7, kind: input, shape index: {}]   ;;  %s2447_s9 = inlined_call_operand.vmem [shape: f32[2,80,16], index: 9, kind: output, shape index: {}]   ;;  %s2448_s8 = inlined_call_operand.<no memory space> [shape: f32[1,1], index: 8, kind: input, shape index: {}]  }
   0x1   :  { %v14_v0 = vstv %s2443_s4  ;;  %v16_v1 = vstv %s2448_s8 }
   0x2   :  { %15 = vst [vmem:[#allocation4] sm:$0x1] %v14_v0  ;;  %17 = vst [vmem:[#allocation5] sm:$0x1] %v16_v1 }
   0x3 LB: > { %s1486_s14 = sadd.s32 4294967295, %s1928_s13   ;;  %p1490_p0 = scmp.ge.s32.totalorder %s1928_s13, 1  ;;  %s1928_s13 = sphi %s1990_s13, %s23_s13  }
   0x4   : > { %p291_p1 = scmp.lt.s32.totalorder %s1928_s13, 3 }
   0x6   : > { %p292_p2 = pnand %p1490_p0, %p291_p1 }
   0x7   : > { %p1998_p3 = scmp.lt.s32.totalorder (!%p292_p2), %s1486_s14, 1  ;;  %vm347_vm0 = vcmask (!%p292_p2), 162816   ;;  %v1930_v2 = vmov (!%p292_p2), 0.0   ;;  %s1931_s18 = smov (!%p292_p2), 2   ;;  %vm398_vm1 = vcmask (!%p292_p2), 146448   ;;  %v429_v41 = vld [vmem:[%s2441_s2] sm:$0xff] (!%p292_p2) }
   0x8   : > { %295 = sbr.rel (%p292_p2) target bundleno = 1047 (0x417), region = 56  ;;  %350 = vst.msk [vmem:[#allocation2 + $0x10] sm:$0xff] (!%p292_p2), %vm347_vm0, %v1930_v2  ;;  %348 = vst.msk [vmem:[#allocation2] sm:$0xff] (!%p292_p2), %vm347_vm0, %v1930_v2  ;;  %s1932_s19 = smov (!%p292_p2), 124   ;;  %vm479_vm2 = vcmask (!%p292_p2), 654336   ;;  %v770_v44 = vld [vmem:[%s2442_s3] sm:$0xff] (!%p292_p2) }
   0x9   : > { %349 = vst.msk [vmem:[#allocation2 + $0x8] sm:$0xff] (!%p292_p2), %vm347_vm0, %v1930_v2  ;;  %351 = vst.msk [vmem:[#allocation2 + $0x18] sm:$0xff] (!%p292_p2), %vm347_vm0, %v1930_v2  ;;  %1637 = vmatprep.mubr.msk.f32.mxu0 (!%p292_p2), %vm479_vm2, %v429_v41  ;;  %v1933_v45 = vmov (!%p292_p2), 0   ;;  %v771_v46 = vld [vmem:[%s2442_s3 + $0x8] sm:$0xff] (!%p292_p2)  ;;  %v1513_v47 = vld [vmem:[#allocation4] ss:$0 sm:$0xff] (!%p292_p2) }
   0xa   : > { %352 = vst.msk [vmem:[#allocation2 + $0x20] sm:$0xff] (!%p292_p2), %vm347_vm0, %v1930_v2  ;;  %353 = vst.msk [vmem:[#allocation2 + $0x28] sm:$0xff] (!%p292_p2), %vm347_vm0, %v1930_v2  ;;  %1895 = vset.pattern.permute.xlu1 (!%p292_p2), %v1933_v45  ;;  %1896 = vset.pattern.permute.xlu0 (!%p292_p2), %v1933_v45  ;;  %v773_v48 = vld [vmem:[%s2442_s3 + $0x18] sm:$0xff] (!%p292_p2)  ;;  %v772_v49 = vld [vmem:[%s2442_s3 + $0x10] sm:$0xff] (!%p292_p2)  ;;  %vm1420_vm15 = vcmask (!%p292_p2), 130048  }
   0xb   : > { %354 = vst.msk [vmem:[#allocation2 + $0x30] sm:$0xff] (!%p292_p2), %vm347_vm0, %v1930_v2  ;;  %355 = vst.msk [vmem:[#allocation2 + $0x38] sm:$0xff] (!%p292_p2), %vm347_vm0, %v1930_v2  ;;  %v775_v50 = vld [vmem:[%s2442_s3 + $0x28] sm:$0xff] (!%p292_p2)  ;;  %v774_v51 = vld [vmem:[%s2442_s3 + $0x20] sm:$0xff] (!%p292_p2) }
   0xc   : > { %356 = vst.msk [vmem:[#allocation2 + $0x40] sm:$0xff] (!%p292_p2), %vm347_vm0, %v1930_v2  ;;  %357 = vst.msk [vmem:[#allocation2 + $0x48] sm:$0xff] (!%p292_p2), %vm347_vm0, %v1930_v2  ;;  %v777_v52 = vld [vmem:[%s2442_s3 + $0x38] sm:$0xff] (!%p292_p2)  ;;  %v776_v53 = vld [vmem:[%s2442_s3 + $0x30] sm:$0xff] (!%p292_p2) }
   0xd   : > { %880 = vst.msk [vmem:[#allocation3] sm:$0xff] (!%p292_p2), %vm347_vm0, %v1930_v2  ;;  %881 = vst.msk [vmem:[#allocation3 + $0x8] sm:$0xff] (!%p292_p2), %vm347_vm0, %v1930_v2  ;;  %v779_v54 = vld [vmem:[%s2442_s3 + $0x48] sm:$0xff] (!%p292_p2)  ;;  %v778_v55 = vld [vmem:[%s2442_s3 + $0x40] sm:$0xff] (!%p292_p2) }
   0xe   : > { %882 = vst.msk [vmem:[#allocation3 + $0x10] sm:$0xff] (!%p292_p2), %vm347_vm0, %v1930_v2  ;;  %883 = vst.msk [vmem:[#allocation3 + $0x18] sm:$0xff] (!%p292_p2), %vm347_vm0, %v1930_v2 }
   0xf   : > { %884 = vst.msk [vmem:[#allocation3 + $0x20] sm:$0xff] %vm347_vm0, %v1930_v2  ;;  %885 = vst.msk [vmem:[#allocation3 + $0x28] sm:$0xff] %vm347_vm0, %v1930_v2  ;;  %s2451_s14 = smov (!%p1998_p3, %s1486_s14), 1 }
  0x10   : > { %886 = vst.msk [vmem:[#allocation3 + $0x30] sm:$0xff] %vm347_vm0, %v1930_v2  ;;  %887 = vst.msk [vmem:[#allocation3 + $0x38] sm:$0xff] %vm347_vm0, %v1930_v2  ;;  %s1857_s8 = smul.u32 80, %s2451_s14 }
  0x11   : > { %888 = vst.msk [vmem:[#allocation3 + $0x40] sm:$0xff] %vm347_vm0, %v1930_v2  ;;  %889 = vst.msk [vmem:[#allocation3 + $0x48] sm:$0xff] %vm347_vm0, %v1930_v2 }
  0x12   : > { %s331_s17 = scalar_lea.vmem %s2439_s0, %s1857_s8  ;;  %s2395_s27 = scalar_lea.vmem %s2447_s9, %s1857_s8 }
  0x13   : > { %v2032_v3 = vld [vmem:[%s331_s17 + $0x10] sm:$0xff]  ;;  %v2034_v4 = vld [vmem:[%s331_s17] sm:$0xff]  ;;  %v2040_v5 = vld [vmem:[%s331_s17 + $0x18] sm:$0xff] }
  0x14   : > { %372 = vrot.lane.b32.xlu1 %v2032_v3, %s1931_s18  ;;  %368 = vrot.lane.b32.xlu0 %v2034_v4, %s1931_s18  ;;  %v2042_v6 = vld [vmem:[%s331_s17 + $0x8] sm:$0xff]  ;;  %v2050_v8 = vld [vmem:[%s331_s17 + $0x20] sm:$0xff] }
  0x15   : > { %v2048_v7 = vld [vmem:[%s331_s17 + $0x28] sm:$0xff]  ;;  %v2056_v9 = vld [vmem:[%s331_s17 + $0x38] sm:$0xff]  ;;  %v2058_v10 = vld [vmem:[%s331_s17 + $0x30] sm:$0xff] }
  0x16   : > { %v2064_v11 = vld [vmem:[%s331_s17 + $0x48] sm:$0xff]  ;;  %v2066_v12 = vld [vmem:[%s331_s17 + $0x40] sm:$0xff] }
  0x18   : > { %374 = vrot.lane.b32.xlu1 %v2040_v5, %s1931_s18  ;;  %370 = vrot.lane.b32.xlu0 %v2042_v6, %s1931_s18 }
  0x1c   : > { %378 = vrot.lane.b32.xlu1 %v2048_v7, %s1931_s18  ;;  %376 = vrot.lane.b32.xlu0 %v2050_v8, %s1931_s18 }
  0x20   : > { %382 = vrot.lane.b32.xlu1 %v2056_v9, %s1931_s18  ;;  %380 = vrot.lane.b32.xlu0 %v2058_v10, %s1931_s18 }
  0x24   : > { %386 = vrot.lane.b32.xlu1 %v2064_v11, %s1931_s18  ;;  %384 = vrot.lane.b32.xlu0 %v2066_v12, %s1931_s18 }
  0x86   : > { %v373_v13 = vpop.permute.xlu1 %372  ;;  %v369_v14 = vpop.permute.xlu0 %368 }
  0x87   : > { %401 = vst.msk [vmem:[#allocation2 + $0x10] sm:$0xff] %vm398_vm1, %v373_v13  ;;  %399 = vst.msk [vmem:[#allocation2] sm:$0xff] %vm398_vm1, %v369_v14 }
  0x8a   : > { %v375_v15 = vpop.permute.xlu1 %374  ;;  %v371_v16 = vpop.permute.xlu0 %370 }
  0x8b   : > { %402 = vst.msk [vmem:[#allocation2 + $0x18] sm:$0xff] %vm398_vm1, %v375_v15  ;;  %400 = vst.msk [vmem:[#allocation2 + $0x8] sm:$0xff] %vm398_vm1, %v371_v16 }
  0x8e   : > { %v379_v17 = vpop.permute.xlu1 %378  ;;  %v377_v18 = vpop.permute.xlu0 %376  ;;  %v421_v19 = vld [vmem:[#allocation2 + $0x10] sm:$0xff]  ;;  %v419_v21 = vld [vmem:[#allocation2] sm:$0xff] }
  0x8f   : > { %404 = vst.msk [vmem:[#allocation2 + $0x28] sm:$0xff] %vm398_vm1, %v379_v17  ;;  %403 = vst.msk [vmem:[#allocation2 + $0x20] sm:$0xff] %vm398_vm1, %v377_v18 }
  0x92   : > { %v422_v20 = vld [vmem:[#allocation2 + $0x18] sm:$0xff]  ;;  %v420_v22 = vld [vmem:[#allocation2 + $0x8] sm:$0xff]  ;;  %v383_v23 = vpop.permute.xlu1 %382  ;;  %v381_v24 = vpop.permute.xlu0 %380 }
  0x93   : > { %v1875_v25 = vpack.i.bf16 %v422_v20, %v421_v19  ;;  %v1870_v26 = vpack.i.bf16 %v420_v22, %v419_v21  ;;  %406 = vst.msk [vmem:[#allocation2 + $0x38] sm:$0xff] %vm398_vm1, %v383_v23  ;;  %405 = vst.msk [vmem:[#allocation2 + $0x30] sm:$0xff] %vm398_vm1, %v381_v24  ;;  %v2080_v27 = vpack.c.bf16 %v420_v22, %v419_v21  ;;  %v430_v22 = vld [vmem:[%s2441_s2 + $0x8] sm:$0xff]  ;;  %v431_v23 = vld [vmem:[%s2441_s2 + $0x10] sm:$0xff] }
  0x94   : > { %v2082_v28 = vpack.c.bf16 %v422_v20, %v421_v19  ;;  %v432_v24 = vld [vmem:[%s2441_s2 + $0x18] sm:$0xff] }
  0x95   : > { %1876 = vrot.lane.b32.xlu1 %v1875_v25, %s1932_s19  ;;  %1871 = vrot.lane.b32.xlu0 %v1870_v26, %s1932_s19  ;;  %v433_v25 = vld [vmem:[%s2441_s2 + $0x20] sm:$0xff]  ;;  %v434_v26 = vld [vmem:[%s2441_s2 + $0x28] sm:$0xff] }
  0x96   : > { %v387_v29 = vpop.permute.xlu1 %386  ;;  %v385_v30 = vpop.permute.xlu0 %384  ;;  %v423_v31 = vld [vmem:[#allocation2 + $0x20] sm:$0xff]  ;;  %v424_v32 = vld [vmem:[#allocation2 + $0x28] sm:$0xff] }
  0x97   : > { %408 = vst.msk [vmem:[#allocation2 + $0x48] sm:$0xff] %vm398_vm1, %v387_v29  ;;  %407 = vst.msk [vmem:[#allocation2 + $0x40] sm:$0xff] %vm398_vm1, %v385_v30  ;;  %v1880_v33 = vpack.i.bf16 %v424_v32, %v423_v31  ;;  %v2088_v34 = vpack.c.bf16 %v424_v32, %v423_v31  ;;  %v437_v29 = vld [vmem:[%s2441_s2 + $0x40] sm:$0xff]  ;;  %v438_v30 = vld [vmem:[%s2441_s2 + $0x48] sm:$0xff] }
  0x98   : > { %v409_v31 = vld [vmem:[%s2440_s1] sm:$0xff]  ;;  %v410_v32 = vld [vmem:[%s2440_s1 + $0x8] sm:$0xff] }
  0x99   : > { %1881 = vrot.lane.b32.xlu0 %v1880_v33, %s1932_s19  ;;  %v411_v33 = vld [vmem:[%s2440_s1 + $0x10] sm:$0xff] }
  0x9a   : > { %v425_v35 = vld [vmem:[#allocation2 + $0x30] sm:$0xff]  ;;  %v426_v36 = vld [vmem:[#allocation2 + $0x38] sm:$0xff] }
  0x9b   : > { %v1885_v37 = vpack.i.bf16 %v426_v36, %v425_v35  ;;  %v2091_v38 = vpack.c.bf16 %v426_v36, %v425_v35  ;;  %v413_v35 = vld [vmem:[%s2440_s1 + $0x20] sm:$0xff]  ;;  %v414_v36 = vld [vmem:[%s2440_s1 + $0x28] sm:$0xff] }
  0x9d   : > { %1886 = vrot.lane.b32.xlu1 %v1885_v37, %s1932_s19  ;;  %v415_v37 = vld [vmem:[%s2440_s1 + $0x30] sm:$0xff] }
  0x9e   : > { %v427_v39 = vld [vmem:[#allocation2 + $0x40] sm:$0xff]  ;;  %v428_v40 = vld [vmem:[#allocation2 + $0x48] sm:$0xff] }
  0x9f   : > { %v1890_v42 = vpack.i.bf16 %v428_v40, %v427_v39  ;;  %v2098_v43 = vpack.c.bf16 %v428_v40, %v427_v39  ;;  %v417_v39 = vld [vmem:[%s2440_s1 + $0x40] sm:$0xff]  ;;  %v418_v40 = vld [vmem:[%s2440_s1 + $0x48] sm:$0xff] }
  0xa1   : > { %1891 = vrot.lane.b32.xlu0 %v1890_v42, %s1932_s19  ;;  %782 = vperm.xlu1 %1895, %v770_v44  }
  0xa5   : > { %787 = vperm.xlu0 %1896, %v771_v46   ;;  %857 = vperm.xlu1 %1895, %v1513_v47  }
  0xa9   : > { %797 = vperm.xlu0 %1896, %v773_v48   ;;  %792 = vperm.xlu1 %1895, %v772_v49  }
  0xad   : > { %807 = vperm.xlu0 %1896, %v775_v50   ;;  %802 = vperm.xlu1 %1895, %v774_v51  }
  0xb1   : > { %817 = vperm.xlu0 %1896, %v777_v52   ;;  %812 = vperm.xlu1 %1895, %v776_v53  }
  0xb5   : > { %827 = vperm.xlu0 %1896, %v779_v54   ;;  %822 = vperm.xlu1 %1895, %v778_v55  }
 0x107   : > { %v1877_v56 = vpop.permute.xlu1 %1876  ;;  %v1872_v57 = vpop.permute.xlu0 %1871 }
 0x108   : > { %v1879_v58 = vunpack.i.h.bf16 %v1877_v56  ;;  %v1878_v59 = vunpack.i.l.bf16 %v1877_v56  ;;  %v1874_v60 = vunpack.i.h.bf16 %v1872_v57  ;;  %v1873_v61 = vunpack.i.l.bf16 %v1872_v57 }
 0x10a   : > { %v1757_v62 = vpack.c.bf16 %v1874_v60, %v1873_v61  ;;  %v1761_v0 = vpack.c.bf16 %v1879_v58, %v1878_v59 }
 0x10b   : > { %v1882_v63 = vpop.permute.xlu0 %1881 }
 0x10c   : > { %1758 = vmatprep.subr.bf16.mxu0 %v1757_v62  ;;  %v1884_v1 = vunpack.i.h.bf16 %v1882_v63  ;;  %v1883_v2 = vunpack.i.l.bf16 %v1882_v63 }
 0x10d   : > { %1760 = vmatpush3.bf16.msra.mxu0 %v1757_v62 }
 0x10e   : > { %1762 = vmatprep.subr.bf16.mxu0 %v1761_v0  ;;  %v1765_v13 = vpack.c.bf16 %v1884_v1, %v1883_v2 }
 0x10f   : > { %v1887_v14 = vpop.permute.xlu1 %1886 }
 0x110   : > { %v1889_v15 = vunpack.i.h.bf16 %v1887_v14  ;;  %v1888_v16 = vunpack.i.l.bf16 %v1887_v14 }
 0x111   : > { %1764 = vmatpush3.bf16.msra.mxu0 %v1761_v0 }
 0x112   : > { %v1769_v17 = vpack.c.bf16 %v1889_v15, %v1888_v16  ;;  %1766 = vmatprep.subr.bf16.mxu0 %v1765_v13 }
 0x113   : > { %v1892_v18 = vpop.permute.xlu0 %1891 }
 0x114   : > { %v1894_v19 = vunpack.i.h.bf16 %v1892_v18  ;;  %v1893_v20 = vunpack.i.l.bf16 %v1892_v18 }
 0x115   : > { %1768 = vmatpush3.bf16.msra.mxu0 %v1765_v13 }
 0x116   : > { %v1773_v21 = vpack.c.bf16 %v1894_v19, %v1893_v20  ;;  %1770 = vmatprep.subr.bf16.mxu0 %v1769_v17 }
 0x119   : > { %1772 = vmatpush3.bf16.msra.mxu0 %v1769_v17 }
 0x11a   : > { %1774 = vmatprep.subr.bf16.mxu0 %v1773_v21 }
 0x11d   : > { %1776 = vmatpush3.bf16.msra.mxu0 %v1773_v21 }
 0x11e   : > { %1778 = vmatprep.subr.bf16.mxu0 %v2080_v27 }
 0x120   : > { %1638 = vmatmul.mubr.msk.f32.vlgmr.msra.gmra.mrb[0].mxu0 %vm479_vm2, %v430_v22  ;;  %v783_v41 = vpop.permute.xlu1 %782 }
 0x121   : > { %1780 = vmatpush3.bf16.msra.mxu0 %v2080_v27  ;;  %1640 = vmatprep.mubr.msk.f32.mxu0 %vm479_vm2, %v431_v23  ;;  %v435_v27 = vld [vmem:[%s2441_s2 + $0x30] sm:$0xff] }
 0x122   : > { %1782 = vmatprep.subr.bf16.mxu0 %v2082_v28 }
 0x124   : > { %1641 = vmatmul.mubr.msk.f32.gmra.mrb[2].mxu0 %vm479_vm2, %v432_v24  ;;  %v788_v42 = vpop.permute.xlu0 %787 }
 0x125   : > { %1784 = vmatpush3.bf16.msra.mxu0 %v2082_v28  ;;  %1643 = vmatprep.mubr.msk.f32.mxu0 %vm479_vm2, %v433_v25  ;;  %v436_v28 = vld [vmem:[%s2441_s2 + $0x38] sm:$0xff] }
 0x126   : > { %1786 = vmatprep.subr.bf16.mxu0 %v2088_v34 }
 0x128   : > { %1644 = vmatmul.mubr.msk.f32.gmra.mrb[4].mxu0 %vm479_vm2, %v434_v26  ;;  %v798_v44 = vpop.permute.xlu0 %797 }
 0x129   : > { %1788 = vmatpush3.bf16.msra.mxu0 %v2088_v34  ;;  %1646 = vmatprep.mubr.msk.f32.mxu0 %vm479_vm2, %v435_v27  ;;  %v412_v34 = vld [vmem:[%s2440_s1 + $0x18] sm:$0xff] }
 0x12a   : > { %1790 = vmatprep.subr.bf16.mxu0 %v2091_v38 }
 0x12c   : > { %1647 = vmatmul.mubr.msk.f32.gmra.mrb[6].mxu0 %vm479_vm2, %v436_v28  ;;  %v808_v51 = vpop.permute.xlu0 %807 }
 0x12d   : > { %1792 = vmatpush3.bf16.msra.mxu0 %v2091_v38  ;;  %1649 = vmatprep.mubr.msk.f32.mxu0 %vm479_vm2, %v437_v29  ;;  %v416_v38 = vld [vmem:[%s2440_s1 + $0x38] sm:$0xff] }
 0x12e   : > { %1794 = vmatprep.subr.bf16.mxu0 %v2098_v43 }
 0x130   : > { %1650 = vmatmul.mubr.msk.f32.gmra.mrb[8].mxu0 %vm479_vm2, %v438_v30  ;;  %v818_v2 = vpop.permute.xlu0 %817 }
 0x131   : > { %1796 = vmatpush3.bf16.msra.mxu0 %v2098_v43  ;;  %1672 = vmatprep.mubr.msk.f32.mxu0 %vm479_vm2, %v409_v31  ;;  %v2217_v43 = vpop.permute.xlu1 %857 }
 0x134   : > { %1673 = vmatmul.mubr.msk.f32.vlgmr.msra.gmra.mrb[0].mxu0 %vm479_vm2, %v410_v32  ;;  %v828_v25 = vpop.permute.xlu0 %827 }
 0x135   : > { %1675 = vmatprep.mubr.msk.f32.mxu0 %vm479_vm2, %v411_v33  ;;  %v793_v45 = vpop.permute.xlu1 %792 }
 0x138   : > { %1676 = vmatmul.mubr.msk.f32.gmra.mrb[2].mxu0 %vm479_vm2, %v412_v34 }
 0x139   : > { %1678 = vmatprep.mubr.msk.f32.mxu0 %vm479_vm2, %v413_v35  ;;  %v803_v54 = vpop.permute.xlu1 %802 }
 0x13c   : > { %1679 = vmatmul.mubr.msk.f32.gmra.mrb[4].mxu0 %vm479_vm2, %v414_v36 }
 0x13d   : > { %1681 = vmatprep.mubr.msk.f32.mxu0 %vm479_vm2, %v415_v37  ;;  %v813_v15 = vpop.permute.xlu1 %812 }
 0x140   : > { %1682 = vmatmul.mubr.msk.f32.gmra.mrb[6].mxu0 %vm479_vm2, %v416_v38 }
 0x141   : > { %1684 = vmatprep.mubr.msk.f32.mxu0 %vm479_vm2, %v417_v39  ;;  %v823_v28 = vpop.permute.xlu1 %822 }
 0x144   : > { %1685 = vmatmul.mubr.msk.f32.gmra.mrb[8].mxu0 %vm479_vm2, %v418_v40 }
 0x207   : > { %v1674_v46 = vpop.f32.mrb[0].mxu0 }
 0x208   : > { %v831_v47 = vadd.f32 %v1674_v46, %v788_v42  ;;  %v721_v48 = vpop.f32.mrb[1].mxu0 }
 0x209   : > { %v830_v49 = vadd.f32 %v783_v41, %v721_v48 }
 0x20a   : > { %v861_v50 = vmul.f32 %v2217_v43, %v831_v47  ;;  %vm841_vm3 = vcmp.gt.f32.partialorder %v831_v47, 0.0 }
 0x20b   : > { %v860_v52 = vmul.f32 %v2217_v43, %v830_v49  ;;  %v1677_v53 = vpop.f32.mrb[2].mxu0  ;;  %vm840_vm4 = vcmp.gt.f32.partialorder %v830_v49, 0.0 }
 0x20c   : > { %v833_v55 = vadd.f32 %v1677_v53, %v798_v44  ;;  %v731_v56 = vpop.f32.mrb[3].mxu0  ;;  %v871_v57 = vsel %vm841_vm3, %v831_v47, %v861_v50 }
 0x20d   : > { %v832_v58 = vadd.f32 %v793_v45, %v731_v56  ;;  %902 = vrot.lane.b32.xlu0 %v871_v57, %s1931_s18  ;;  %v870_v59 = vsel %vm840_vm4, %v830_v49, %v860_v52 }
 0x20e   : > { %v863_v60 = vmul.f32 %v2217_v43, %v833_v55  ;;  %900 = vrot.lane.b32.xlu1 %v870_v59, %s1931_s18  ;;  %vm843_vm5 = vcmp.gt.f32.partialorder %v833_v55, 0.0 }
 0x20f   : > { %v862_v61 = vmul.f32 %v2217_v43, %v832_v58  ;;  %v1680_v62 = vpop.f32.mrb[4].mxu0  ;;  %vm842_vm6 = vcmp.gt.f32.partialorder %v832_v58, 0.0 }
 0x210   : > { %v835_v63 = vadd.f32 %v1680_v62, %v808_v51  ;;  %v741_v0 = vpop.f32.mrb[5].mxu0  ;;  %v873_v1 = vsel %vm843_vm5, %v833_v55, %v863_v60  ;;  %v960_v62 = vld [vmem:[%s2445_s6] sm:$0xff] }
 0x211   : > { %v834_v13 = vadd.f32 %v803_v54, %v741_v0  ;;  %906 = vrot.lane.b32.xlu0 %v873_v1, %s1931_s18  ;;  %v872_v14 = vsel %vm842_vm6, %v832_v58, %v862_v61  ;;  %1707 = vmatprep.mubr.msk.f32.mxu1 %vm479_vm2, %v960_v62  ;;  %v947_v62 = vld [vmem:[%s2444_s5 + $0x38] sm:$0xff] }
 0x212   : > { %v865_v16 = vmul.f32 %v2217_v43, %v835_v63  ;;  %904 = vrot.lane.b32.xlu1 %v872_v14, %s1931_s18  ;;  %vm845_vm7 = vcmp.gt.f32.partialorder %v835_v63, 0.0 }
 0x213   : > { %v864_v17 = vmul.f32 %v2217_v43, %v834_v13  ;;  %v1683_v18 = vpop.f32.mrb[6].mxu0  ;;  %vm844_vm8 = vcmp.gt.f32.partialorder %v834_v13, 0.0 }
 0x214   : > { %v837_v19 = vadd.f32 %v1683_v18, %v818_v2  ;;  %v751_v20 = vpop.f32.mrb[7].mxu0  ;;  %v875_v21 = vsel %vm845_vm7, %v835_v63, %v865_v16  ;;  %v1300_v2 = vld [vmem:[%s2446_s7] sm:$0xff]  ;;  %v1302_v16 = vld [vmem:[%s2446_s7 + $0x10] sm:$0xff] }
 0x215   : > { %v836_v22 = vadd.f32 %v813_v15, %v751_v20  ;;  %910 = vrot.lane.b32.xlu0 %v875_v21, %s1931_s18  ;;  %v874_v23 = vsel %vm844_vm8, %v834_v13, %v864_v17  ;;  %v1301_v17 = vld [vmem:[%s2446_s7 + $0x8] sm:$0xff]  ;;  %v1304_v18 = vld [vmem:[%s2446_s7 + $0x20] sm:$0xff]  ;;  %v1306_v20 = vld [vmem:[%s2446_s7 + $0x30] sm:$0xff] }
 0x216   : > { %v867_v24 = vmul.f32 %v2217_v43, %v837_v19  ;;  %908 = vrot.lane.b32.xlu1 %v874_v23, %s1931_s18  ;;  %vm847_vm9 = vcmp.gt.f32.partialorder %v837_v19, 0.0  ;;  %v1305_v21 = vld [vmem:[%s2446_s7 + $0x28] sm:$0xff]  ;;  %v1307_v23 = vld [vmem:[%s2446_s7 + $0x38] sm:$0xff] }
 0x217   : > { %v866_v26 = vmul.f32 %v2217_v43, %v836_v22  ;;  %v1686_v27 = vpop.f32.mrb[8].mxu0  ;;  %vm846_vm10 = vcmp.gt.f32.partialorder %v836_v22, 0.0 }
 0x218   : > { %v839_v29 = vadd.f32 %v1686_v27, %v828_v25  ;;  %v761_v30 = vpop.f32.mrb[9].mxu0  ;;  %v877_v31 = vsel %vm847_vm9, %v837_v19, %v867_v24  ;;  %v1303_v19 = vld [vmem:[%s2446_s7 + $0x18] sm:$0xff]  ;;  %v1534_v24 = vld [vmem:[#allocation5] ss:$0 sm:$0xff]  ;;  %v1309_v25 = vld [vmem:[%s2446_s7 + $0x48] sm:$0xff] }
 0x219   : > { %v838_v32 = vadd.f32 %v823_v28, %v761_v30  ;;  %914 = vrot.lane.b32.xlu0 %v877_v31, %s1931_s18  ;;  %v876_v33 = vsel %vm846_vm10, %v836_v22, %v866_v26  ;;  %v1308_v22 = vld [vmem:[%s2446_s7 + $0x40] sm:$0xff] }
 0x21a   : > { %v869_v34 = vmul.f32 %v2217_v43, %v839_v29  ;;  %912 = vrot.lane.b32.xlu1 %v876_v33, %s1931_s18  ;;  %vm849_vm11 = vcmp.gt.f32.partialorder %v839_v29, 0.0 }
 0x21b   : > { %v868_v35 = vmul.f32 %v2217_v43, %v838_v32  ;;  %vm848_vm12 = vcmp.gt.f32.partialorder %v838_v32, 0.0 }
 0x21c   : > { %v879_v36 = vsel %vm849_vm11, %v839_v29, %v869_v34 }
 0x21d   : > { %918 = vrot.lane.b32.xlu0 %v879_v36, %s1931_s18  ;;  %v878_v37 = vsel %vm848_vm12, %v838_v32, %v868_v35 }
 0x21e   : > { %916 = vrot.lane.b32.xlu1 %v878_v37, %s1931_s18 }
 0x27f   : > { %v903_v38 = vpop.permute.xlu0 %902 }
 0x280   : > { %931 = vst.msk [vmem:[#allocation3 + $0x8] sm:$0xff] %vm398_vm1, %v903_v38  ;;  %v901_v39 = vpop.permute.xlu1 %900 }
 0x281   : > { %930 = vst.msk [vmem:[#allocation3] sm:$0xff] %vm398_vm1, %v901_v39 }
 0x283   : > { %v907_v40 = vpop.permute.xlu0 %906 }
 0x284   : > { %933 = vst.msk [vmem:[#allocation3 + $0x18] sm:$0xff] %vm398_vm1, %v907_v40  ;;  %v905_v41 = vpop.permute.xlu1 %904 }
 0x285   : > { %932 = vst.msk [vmem:[#allocation3 + $0x10] sm:$0xff] %vm398_vm1, %v905_v41 }
 0x287   : > { %v911_v42 = vpop.permute.xlu0 %910  ;;  %v951_v43 = vld [vmem:[#allocation3 + $0x8] sm:$0xff] }
 0x288   : > { %935 = vst.msk [vmem:[#allocation3 + $0x28] sm:$0xff] %vm398_vm1, %v911_v42  ;;  %v909_v44 = vpop.permute.xlu1 %908  ;;  %v950_v45 = vld [vmem:[#allocation3] sm:$0xff] }
 0x289   : > { %934 = vst.msk [vmem:[#allocation3 + $0x20] sm:$0xff] %vm398_vm1, %v909_v44  ;;  %v1897_v46 = vpack.i.bf16 %v951_v43, %v950_v45  ;;  %v2245_v47 = vpack.c.bf16 %v951_v43, %v950_v45 }
 0x28b   : > { %v915_v48 = vpop.permute.xlu0 %914  ;;  %1898 = vrot.lane.b32.xlu1 %v1897_v46, %s1932_s19  ;;  %v953_v49 = vld [vmem:[#allocation3 + $0x18] sm:$0xff] }
 0x28c   : > { %937 = vst.msk [vmem:[#allocation3 + $0x38] sm:$0xff] %vm398_vm1, %v915_v48  ;;  %v913_v50 = vpop.permute.xlu1 %912  ;;  %v952_v51 = vld [vmem:[#allocation3 + $0x10] sm:$0xff]  ;;  %v961_v46 = vld [vmem:[%s2445_s6 + $0x8] sm:$0xff]  ;;  %v962_v48 = vld [vmem:[%s2445_s6 + $0x10] sm:$0xff] }
 0x28d   : > { %936 = vst.msk [vmem:[#allocation3 + $0x30] sm:$0xff] %vm398_vm1, %v913_v50  ;;  %v1902_v52 = vpack.i.bf16 %v953_v49, %v952_v51  ;;  %v2250_v53 = vpack.c.bf16 %v953_v49, %v952_v51  ;;  %v963_v49 = vld [vmem:[%s2445_s6 + $0x18] sm:$0xff]  ;;  %v964_v50 = vld [vmem:[%s2445_s6 + $0x20] sm:$0xff]  ;;  %v966_v51 = vld [vmem:[%s2445_s6 + $0x30] sm:$0xff] }
 0x28f   : > { %1903 = vrot.lane.b32.xlu0 %v1902_v52, %s1932_s19  ;;  %v919_v54 = vpop.permute.xlu0 %918  ;;  %v955_v55 = vld [vmem:[#allocation3 + $0x28] sm:$0xff] }
 0x290   : > { %939 = vst.msk [vmem:[#allocation3 + $0x48] sm:$0xff] %vm398_vm1, %v919_v54  ;;  %v917_v56 = vpop.permute.xlu1 %916  ;;  %v954_v57 = vld [vmem:[#allocation3 + $0x20] sm:$0xff]  ;;  %v967_v52 = vld [vmem:[%s2445_s6 + $0x38] sm:$0xff]  ;;  %v969_v54 = vld [vmem:[%s2445_s6 + $0x48] sm:$0xff] }
 0x291   : > { %938 = vst.msk [vmem:[#allocation3 + $0x40] sm:$0xff] %vm398_vm1, %v917_v56  ;;  %v1907_v58 = vpack.i.bf16 %v955_v55, %v954_v57  ;;  %v2255_v59 = vpack.c.bf16 %v955_v55, %v954_v57  ;;  %v940_v55 = vld [vmem:[%s2444_s5] sm:$0xff]  ;;  %v941_v56 = vld [vmem:[%s2444_s5 + $0x8] sm:$0xff]  ;;  %v942_v57 = vld [vmem:[%s2444_s5 + $0x10] sm:$0xff] }
 0x293   : > { %1908 = vrot.lane.b32.xlu1 %v1907_v58, %s1932_s19  ;;  %v957_v60 = vld [vmem:[#allocation3 + $0x38] sm:$0xff]  ;;  %v943_v58 = vld [vmem:[%s2444_s5 + $0x18] sm:$0xff] }
 0x294   : > { %v956_v61 = vld [vmem:[#allocation3 + $0x30] sm:$0xff] }
 0x295   : > { %v1912_v63 = vpack.i.bf16 %v957_v60, %v956_v61  ;;  %v2262_v0 = vpack.c.bf16 %v957_v60, %v956_v61  ;;  %v945_v60 = vld [vmem:[%s2444_s5 + $0x28] sm:$0xff]  ;;  %v946_v61 = vld [vmem:[%s2444_s5 + $0x30] sm:$0xff] }
 0x297   : > { %1913 = vrot.lane.b32.xlu0 %v1912_v63, %s1932_s19  ;;  %v959_v1 = vld [vmem:[#allocation3 + $0x48] sm:$0xff]  ;;  %v948_v63 = vld [vmem:[%s2444_s5 + $0x40] sm:$0xff] }
 0x298   : > { %v958_v13 = vld [vmem:[#allocation3 + $0x40] sm:$0xff] }
 0x299   : > { %v1917_v14 = vpack.i.bf16 %v959_v1, %v958_v13  ;;  %v2268_v15 = vpack.c.bf16 %v959_v1, %v958_v13 }
 0x29b   : > { %1312 = vperm.xlu0 %1896, %v1300_v2   ;;  %1918 = vrot.lane.b32.xlu1 %v1917_v14, %s1932_s19 }
 0x29f   : > { %1322 = vperm.xlu0 %1896, %v1302_v16   ;;  %1317 = vperm.xlu1 %1895, %v1301_v17  }
 0x2a3   : > { %1332 = vperm.xlu0 %1896, %v1304_v18   ;;  %1327 = vperm.xlu1 %1895, %v1303_v19  }
 0x2a7   : > { %1342 = vperm.xlu0 %1896, %v1306_v20   ;;  %1337 = vperm.xlu1 %1895, %v1305_v21  }
 0x2ab   : > { %1352 = vperm.xlu0 %1896, %v1308_v22   ;;  %1347 = vperm.xlu1 %1895, %v1307_v23  }
 0x2af   : > { %1387 = vperm.xlu0 %1896, %v1534_v24   ;;  %1357 = vperm.xlu1 %1895, %v1309_v25  }
 0x2fd   : > { %v1899_v26 = vpop.permute.xlu1 %1898 }
 0x2fe   : > { %v1901_v27 = vunpack.i.h.bf16 %v1899_v26  ;;  %v1900_v28 = vunpack.i.l.bf16 %v1899_v26 }
 0x300   : > { %v1797_v29 = vpack.c.bf16 %v1901_v27, %v1900_v28 }
 0x301   : > { %v1904_v30 = vpop.permute.xlu0 %1903 }
 0x302   : > { %v1906_v31 = vunpack.i.h.bf16 %v1904_v30  ;;  %v1905_v32 = vunpack.i.l.bf16 %v1904_v30  ;;  %1798 = vmatprep.subr.bf16.mxu1 %v1797_v29 }
 0x303   : > { %1800 = vmatpush3.bf16.msra.mxu1 %v1797_v29 }
 0x304   : > { %v1801_v33 = vpack.c.bf16 %v1906_v31, %v1905_v32 }
 0x305   : > { %v1909_v34 = vpop.permute.xlu1 %1908 }
 0x306   : > { %v1911_v35 = vunpack.i.h.bf16 %v1909_v34  ;;  %v1910_v36 = vunpack.i.l.bf16 %v1909_v34  ;;  %1802 = vmatprep.subr.bf16.mxu1 %v1801_v33 }
 0x307   : > { %1804 = vmatpush3.bf16.msra.mxu1 %v1801_v33 }
 0x308   : > { %v1805_v37 = vpack.c.bf16 %v1911_v35, %v1910_v36 }
 0x309   : > { %v1914_v38 = vpop.permute.xlu0 %1913 }
 0x30a   : > { %v1916_v39 = vunpack.i.h.bf16 %v1914_v38  ;;  %v1915_v40 = vunpack.i.l.bf16 %v1914_v38  ;;  %1806 = vmatprep.subr.bf16.mxu1 %v1805_v37 }
 0x30b   : > { %1808 = vmatpush3.bf16.msra.mxu1 %v1805_v37 }
 0x30c   : > { %v1809_v41 = vpack.c.bf16 %v1916_v39, %v1915_v40 }
 0x30d   : > { %v1919_v42 = vpop.permute.xlu1 %1918 }
 0x30e   : > { %v1921_v43 = vunpack.i.h.bf16 %v1919_v42  ;;  %v1920_v44 = vunpack.i.l.bf16 %v1919_v42  ;;  %1810 = vmatprep.subr.bf16.mxu1 %v1809_v41 }
 0x30f   : > { %1812 = vmatpush3.bf16.msra.mxu1 %v1809_v41 }
 0x310   : > { %v1813_v45 = vpack.c.bf16 %v1921_v43, %v1920_v44 }
 0x312   : > { %1814 = vmatprep.subr.bf16.mxu1 %v1813_v45 }
 0x313   : > { %1816 = vmatpush3.bf16.msra.mxu1 %v1813_v45 }
 0x314   : > { %1818 = vmatprep.subr.bf16.mxu1 %v2245_v47 }
 0x316   : > { %1708 = vmatmul.mubr.msk.f32.vlgmr.msra.gmra.mrb[0].mxu1 %vm479_vm2, %v961_v46 }
 0x317   : > { %1820 = vmatpush3.bf16.msra.mxu1 %v2245_v47  ;;  %1710 = vmatprep.mubr.msk.f32.mxu1 %vm479_vm2, %v962_v48  ;;  %v965_v47 = vld [vmem:[%s2445_s6 + $0x28] sm:$0xff] }
 0x318   : > { %1822 = vmatprep.subr.bf16.mxu1 %v2250_v53 }
 0x31a   : > { %1711 = vmatmul.mubr.msk.f32.gmra.mrb[2].mxu1 %vm479_vm2, %v963_v49  ;;  %v1313_v1 = vpop.permute.xlu0 %1312 }
 0x31b   : > { %1824 = vmatpush3.bf16.msra.mxu1 %v2250_v53  ;;  %1713 = vmatprep.mubr.msk.f32.mxu1 %vm479_vm2, %v964_v50  ;;  %v968_v53 = vld [vmem:[%s2445_s6 + $0x40] sm:$0xff] }
 0x31c   : > { %1826 = vmatprep.subr.bf16.mxu1 %v2255_v59 }
 0x31e   : > { %1714 = vmatmul.mubr.msk.f32.gmra.mrb[4].mxu1 %vm479_vm2, %v965_v47  ;;  %v1323_v2 = vpop.permute.xlu0 %1322 }
 0x31f   : > { %1828 = vmatpush3.bf16.msra.mxu1 %v2255_v59  ;;  %1716 = vmatprep.mubr.msk.f32.mxu1 %vm479_vm2, %v966_v51  ;;  %v944_v59 = vld [vmem:[%s2444_s5 + $0x20] sm:$0xff] }
 0x320   : > { %1830 = vmatprep.subr.bf16.mxu1 %v2262_v0 }
 0x322   : > { %1717 = vmatmul.mubr.msk.f32.gmra.mrb[6].mxu1 %vm479_vm2, %v967_v52  ;;  %v1333_v13 = vpop.permute.xlu0 %1332 }
 0x323   : > { %1832 = vmatpush3.bf16.msra.mxu1 %v2262_v0  ;;  %1719 = vmatprep.mubr.msk.f32.mxu1 %vm479_vm2, %v968_v53  ;;  %v949_v0 = vld [vmem:[%s2444_s5 + $0x48] sm:$0xff] }
 0x324   : > { %1834 = vmatprep.subr.bf16.mxu1 %v2268_v15 }
 0x326   : > { %1720 = vmatmul.mubr.msk.f32.gmra.mrb[8].mxu1 %vm479_vm2, %v969_v54  ;;  %v1343_v14 = vpop.permute.xlu0 %1342 }
 0x327   : > { %1836 = vmatpush3.bf16.msra.mxu1 %v2268_v15  ;;  %1742 = vmatprep.mubr.msk.f32.mxu1 %vm479_vm2, %v940_v55  ;;  %v1318_v15 = vpop.permute.xlu1 %1317 }
 0x32a   : > { %1743 = vmatmul.mubr.msk.f32.vlgmr.msra.gmra.mrb[0].mxu1 %vm479_vm2, %v941_v56  ;;  %v2384_v16 = vpop.permute.xlu0 %1352 }
 0x32b   : > { %1745 = vmatprep.mubr.msk.f32.mxu1 %vm479_vm2, %v942_v57  ;;  %v1328_v17 = vpop.permute.xlu1 %1327 }
 0x32e   : > { %1746 = vmatmul.mubr.msk.f32.gmra.mrb[2].mxu1 %vm479_vm2, %v943_v58  ;;  %v2386_v21 = vpop.permute.xlu0 %1387 }
 0x32f   : > { %1748 = vmatprep.mubr.msk.f32.mxu1 %vm479_vm2, %v944_v59  ;;  %v1338_v24 = vpop.permute.xlu1 %1337 }
 0x332   : > { %1749 = vmatmul.mubr.msk.f32.gmra.mrb[4].mxu1 %vm479_vm2, %v945_v60 }
 0x333   : > { %1751 = vmatprep.mubr.msk.f32.mxu1 %vm479_vm2, %v946_v61  ;;  %v1348_v39 = vpop.permute.xlu1 %1347 }
 0x336   : > { %1752 = vmatmul.mubr.msk.f32.gmra.mrb[6].mxu1 %vm479_vm2, %v947_v62 }
 0x337   : > { %1754 = vmatprep.mubr.msk.f32.mxu1 %vm479_vm2, %v948_v63  ;;  %v1358_v52 = vpop.permute.xlu1 %1357 }
 0x33a   : > { %1755 = vmatmul.mubr.msk.f32.gmra.mrb[8].mxu1 %vm479_vm2, %v949_v0 }
 0x3fd   : > { %v1744_v18 = vpop.f32.mrb[0].mxu1 }
 0x3fe   : > { %v1361_v19 = vadd.f32 %v1744_v18, %v1318_v15  ;;  %v1251_v20 = vpop.f32.mrb[1].mxu1 }
 0x3ff   : > { %v1360_v22 = vadd.f32 %v1313_v1, %v1251_v20 }
 0x400   : > { %vm1371_vm13 = vcmp.gt.f32.partialorder %v1361_v19, 0.0  ;;  %v1391_v23 = vmul.f32 %v2386_v21, %v1361_v19 }
 0x401   : > { %vm1370_vm14 = vcmp.gt.f32.partialorder %v1360_v22, 0.0  ;;  %v1390_v25 = vmul.f32 %v2386_v21, %v1360_v22  ;;  %v1747_v26 = vpop.f32.mrb[2].mxu1 }
 0x402   : > { %v1401_v27 = vsel %vm1371_vm13, %v1361_v19, %v1391_v23  ;;  %v1363_v28 = vadd.f32 %v1747_v26, %v1328_v17  ;;  %v1261_v29 = vpop.f32.mrb[3].mxu1 }
 0x403   : > { %v1411_v30 = vadd.f32 %v1401_v27, %v2042_v6  ;;  %v1400_v31 = vsel %vm1370_vm14, %v1360_v22, %v1390_v25  ;;  %v1362_v32 = vadd.f32 %v1323_v2, %v1261_v29 }
 0x404   : > { %v1410_v33 = vadd.f32 %v1400_v31, %v2034_v4  ;;  %vm1373_vm0 = vcmp.gt.f32.partialorder %v1363_v28, 0.0  ;;  %v1393_v34 = vmul.f32 %v2386_v21, %v1363_v28 }
 0x405   : > { %1422 = vst.msk [vmem:[%s2395_s27 + $0x8] sm:$0xff] %vm1420_vm15, %v1411_v30  ;;  %vm1372_vm1 = vcmp.gt.f32.partialorder %v1362_v32, 0.0  ;;  %v1392_v35 = vmul.f32 %v2386_v21, %v1362_v32  ;;  %v1750_v36 = vpop.f32.mrb[4].mxu1 }
 0x406   : > { %1421 = vst.msk [vmem:[%s2395_s27] sm:$0xff] %vm1420_vm15, %v1410_v33  ;;  %v1403_v37 = vsel %vm1373_vm0, %v1363_v28, %v1393_v34  ;;  %v1365_v38 = vadd.f32 %v1750_v36, %v1338_v24  ;;  %v1271_v6 = vpop.f32.mrb[5].mxu1 }
 0x407   : > { %v1413_v40 = vadd.f32 %v1403_v37, %v2040_v5  ;;  %v1402_v4 = vsel %vm1372_vm1, %v1362_v32, %v1392_v35  ;;  %v1364_v41 = vadd.f32 %v1333_v13, %v1271_v6 }
 0x408   : > { %v1412_v42 = vadd.f32 %v1402_v4, %v2032_v3  ;;  %vm1375_vm2 = vcmp.gt.f32.partialorder %v1365_v38, 0.0  ;;  %v1395_v43 = vmul.f32 %v2386_v21, %v1365_v38 }
 0x409   : > { %1424 = vst.msk [vmem:[%s2395_s27 + $0x18] sm:$0xff] %vm1420_vm15, %v1413_v40  ;;  %vm1374_vm3 = vcmp.gt.f32.partialorder %v1364_v41, 0.0  ;;  %v1394_v44 = vmul.f32 %v2386_v21, %v1364_v41  ;;  %v1753_v45 = vpop.f32.mrb[6].mxu1 }
 0x40a   : > { %1423 = vst.msk [vmem:[%s2395_s27 + $0x10] sm:$0xff] %vm1420_vm15, %v1412_v42  ;;  %v1405_v46 = vsel %vm1375_vm2, %v1365_v38, %v1395_v43  ;;  %v1367_v48 = vadd.f32 %v1753_v45, %v1348_v39  ;;  %v1281_v5 = vpop.f32.mrb[7].mxu1 }
 0x40b   : > { %v1415_v49 = vadd.f32 %v1405_v46, %v2048_v7  ;;  %v1404_v50 = vsel %vm1374_vm3, %v1364_v41, %v1394_v44  ;;  %v1366_v3 = vadd.f32 %v1343_v14, %v1281_v5 }
 0x40c   : > { %v1414_v47 = vadd.f32 %v1404_v50, %v2050_v8  ;;  %vm1377_vm4 = vcmp.gt.f32.partialorder %v1367_v48, 0.0  ;;  %v1397_v51 = vmul.f32 %v2386_v21, %v1367_v48 }
 0x40d   : > { %1426 = vst.msk [vmem:[%s2395_s27 + $0x28] sm:$0xff] %vm1420_vm15, %v1415_v49  ;;  %vm1376_vm5 = vcmp.gt.f32.partialorder %v1366_v3, 0.0  ;;  %v1396_v53 = vmul.f32 %v2386_v21, %v1366_v3  ;;  %v1756_v54 = vpop.f32.mrb[8].mxu1 }
 0x40e   : > { %1425 = vst.msk [vmem:[%s2395_s27 + $0x20] sm:$0xff] %vm1420_vm15, %v1414_v47  ;;  %v1407_v55 = vsel %vm1377_vm4, %v1367_v48, %v1397_v51  ;;  %v1369_v7 = vadd.f32 %v1756_v54, %v1358_v52  ;;  %v1291_v56 = vpop.f32.mrb[9].mxu1 }
 0x40f   : > { %v1417_v8 = vadd.f32 %v1407_v55, %v2056_v9  ;;  %v1406_v57 = vsel %vm1376_vm5, %v1366_v3, %v1396_v53  ;;  %v1368_v58 = vadd.f32 %v2384_v16, %v1291_v56 }
 0x410   : > { %v1416_v59 = vadd.f32 %v1406_v57, %v2058_v10  ;;  %vm1379_vm6 = vcmp.gt.f32.partialorder %v1369_v7, 0.0  ;;  %v1399_v60 = vmul.f32 %v2386_v21, %v1369_v7 }
 0x411   : > { %1428 = vst.msk [vmem:[%s2395_s27 + $0x38] sm:$0xff] %vm1420_vm15, %v1417_v8  ;;  %vm1378_vm7 = vcmp.gt.f32.partialorder %v1368_v58, 0.0  ;;  %v1398_v61 = vmul.f32 %v2386_v21, %v1368_v58 }
 0x412   : > { %1427 = vst.msk [vmem:[%s2395_s27 + $0x30] sm:$0xff] %vm1420_vm15, %v1416_v59  ;;  %v1409_v62 = vsel %vm1379_vm6, %v1369_v7, %v1399_v60 }
 0x413   : > { %v1419_v63 = vadd.f32 %v1409_v62, %v2064_v11  ;;  %v1408_v0 = vsel %vm1378_vm7, %v1368_v58, %v1398_v61 }
 0x414   : > { %v1418_v9 = vadd.f32 %v1408_v0, %v2066_v12 }
 0x415   : > { %1430 = vst.msk [vmem:[%s2395_s27 + $0x48] sm:$0xff] %vm1420_vm15, %v1419_v63 }
 0x416   : > { %1429 = vst.msk [vmem:[%s2395_s27 + $0x40] sm:$0xff] %vm1420_vm15, %v1418_v9 }
 0x417 PF: > { %s23_s13 = sadd.s32 1, %s1928_s13  }
 0x418   : > { %p20_p4 = scmp.ge.s32.totalorder %s23_s13, 4  }
 0x41a   :  { %22 = sbr.rel (!%p20_p4) target bundleno = 3 (0x3), region = 86 }

// kernel: discriminator_forward.10
= control target key start
LH: loop header
LB: loop body
LE: loop exit
PB: predicated region body
PF: predicated region fallthrough
CT: control target
= control target key end

     0   :  { %s1907_s13 = smov 0   ;;  %s2336_s0 = inlined_call_operand.vmem [shape: f32[2,80,16], index: 0, kind: input, shape index: {}]   ;;  %s2337_s1 = inlined_call_operand.vmem [shape: f32[80,80], index: 1, kind: input, shape index: {}]   ;;  %s2338_s2 = inlined_call_operand.vmem [shape: f32[80,80], index: 2, kind: input, shape index: {}]   ;;  %s2339_s3 = inlined_call_operand.vmem [shape: f32[80,1], index: 3, kind: input, shape index: {}]   ;;  %s2340_s4 = inlined_call_operand.<no memory space> [shape: f32[1,1], index: 4, kind: input, shape index: {}]   ;;  %s2341_s5 = inlined_call_operand.vmem [shape: f32[80,80], index: 5, kind: input, shape index: {}]   ;;  %s2342_s6 = inlined_call_operand.vmem [shape: f32[80,80], index: 6, kind: input, shape index: {}]   ;;  %s2343_s7 = inlined_call_operand.vmem [shape: f32[80,1], index: 7, kind: input, shape index: {}]   ;;  %s2344_s9 = inlined_call_operand.vmem [shape: f32[2,80,16], index: 9, kind: output, shape index: {}]   ;;  %s2345_s8 = inlined_call_operand.<no memory space> [shape: f32[1,1], index: 8, kind: input, shape index: {}]  }
   0x1   :  { %v14_v0 = vstv %s2340_s4  ;;  %v16_v1 = vstv %s2345_s8 }
   0x2   :  { %15 = vst [vmem:[#allocation4] sm:$0x1] %v14_v0  ;;  %17 = vst [vmem:[#allocation5] sm:$0x1] %v16_v1 }
   0x3 LB: > { %s1405_s14 = sadd.s32 4294967295, %s1846_s13   ;;  %p1409_p0 = scmp.ge.s32.totalorder %s1846_s13, 1  ;;  %s1846_s13 = sphi %s1907_s13, %s23_s13  }
   0x4   : > { %p291_p1 = scmp.lt.s32.totalorder %s1846_s13, 3 }
   0x6   : > { %p292_p2 = pnand %p1409_p0, %p291_p1 }
   0x7   : > { %p1915_p3 = scmp.lt.s32.totalorder (!%p292_p2), %s1405_s14, 1  ;;  %vm347_vm0 = vcmask (!%p292_p2), 138240   ;;  %v1848_v2 = vmov (!%p292_p2), 0.0   ;;  %vm358_vm1 = vcmask (!%p292_p2), 130048   ;;  %s1849_s18 = smov (!%p292_p2), 127   ;;  %v389_v30 = vld [vmem:[%s2338_s2] sm:$0xff] (!%p292_p2) }
   0x8   : > { %295 = sbr.rel (%p292_p2) target bundleno = 813 (0x32d), region = 56  ;;  %348 = vst.msk [vmem:[#allocation2] sm:$0xff] (!%p292_p2), %vm347_vm0, %v1848_v2  ;;  %349 = vst.msk [vmem:[#allocation2 + $0x8] sm:$0xff] (!%p292_p2), %vm347_vm0, %v1848_v2  ;;  %vm439_vm2 = vcmask (!%p292_p2), 654336   ;;  %v730_v34 = vld [vmem:[%s2339_s3] sm:$0xff] (!%p292_p2)  ;;  %v1850_v35 = vmov (!%p292_p2), 0  }
   0x9   : > { %350 = vst.msk [vmem:[#allocation2 + $0x10] sm:$0xff] (!%p292_p2), %vm347_vm0, %v1848_v2  ;;  %351 = vst.msk [vmem:[#allocation2 + $0x18] sm:$0xff] (!%p292_p2), %vm347_vm0, %v1848_v2  ;;  %1556 = vmatprep.mubr.msk.f32.mxu0 (!%p292_p2), %vm439_vm2, %v389_v30  ;;  %1813 = vset.pattern.permute.xlu1 (!%p292_p2), %v1850_v35  ;;  %v731_v36 = vld [vmem:[%s2339_s3 + $0x8] sm:$0xff] (!%p292_p2)  ;;  %v1432_v37 = vld [vmem:[#allocation4] ss:$0 sm:$0xff] (!%p292_p2) }
   0xa   : > { %352 = vst.msk [vmem:[#allocation2 + $0x20] sm:$0xff] (!%p292_p2), %vm347_vm0, %v1848_v2  ;;  %353 = vst.msk [vmem:[#allocation2 + $0x28] sm:$0xff] (!%p292_p2), %vm347_vm0, %v1848_v2  ;;  %1814 = vset.pattern.permute.xlu0 (!%p292_p2), %v1850_v35  ;;  %v733_v38 = vld [vmem:[%s2339_s3 + $0x18] sm:$0xff] (!%p292_p2)  ;;  %v732_v39 = vld [vmem:[%s2339_s3 + $0x10] sm:$0xff] (!%p292_p2) }
   0xb   : > { %354 = vst.msk [vmem:[#allocation2 + $0x30] sm:$0xff] (!%p292_p2), %vm347_vm0, %v1848_v2  ;;  %355 = vst.msk [vmem:[#allocation2 + $0x38] sm:$0xff] (!%p292_p2), %vm347_vm0, %v1848_v2  ;;  %v735_v40 = vld [vmem:[%s2339_s3 + $0x28] sm:$0xff] (!%p292_p2)  ;;  %v734_v41 = vld [vmem:[%s2339_s3 + $0x20] sm:$0xff] (!%p292_p2) }
   0xc   : > { %356 = vst.msk [vmem:[#allocation2 + $0x40] sm:$0xff] (!%p292_p2), %vm347_vm0, %v1848_v2  ;;  %357 = vst.msk [vmem:[#allocation2 + $0x48] sm:$0xff] (!%p292_p2), %vm347_vm0, %v1848_v2  ;;  %v737_v42 = vld [vmem:[%s2339_s3 + $0x38] sm:$0xff] (!%p292_p2)  ;;  %v736_v43 = vld [vmem:[%s2339_s3 + $0x30] sm:$0xff] (!%p292_p2) }
   0xd   : > { %840 = vst.msk [vmem:[#allocation3] sm:$0xff] (!%p292_p2), %vm347_vm0, %v1848_v2  ;;  %841 = vst.msk [vmem:[#allocation3 + $0x8] sm:$0xff] (!%p292_p2), %vm347_vm0, %v1848_v2  ;;  %v739_v44 = vld [vmem:[%s2339_s3 + $0x48] sm:$0xff] (!%p292_p2)  ;;  %v738_v45 = vld [vmem:[%s2339_s3 + $0x40] sm:$0xff] (!%p292_p2) }
   0xe   : > { %842 = vst.msk [vmem:[#allocation3 + $0x10] sm:$0xff] (!%p292_p2), %vm347_vm0, %v1848_v2  ;;  %843 = vst.msk [vmem:[#allocation3 + $0x18] sm:$0xff] (!%p292_p2), %vm347_vm0, %v1848_v2  ;;  %v378_v30 = vld [vmem:[%s2337_s1 + $0x48] sm:$0xff] (!%p292_p2) }
   0xf   : > { %844 = vst.msk [vmem:[#allocation3 + $0x20] sm:$0xff] %vm347_vm0, %v1848_v2  ;;  %845 = vst.msk [vmem:[#allocation3 + $0x28] sm:$0xff] %vm347_vm0, %v1848_v2  ;;  %s2348_s14 = smov (!%p1915_p3, %s1405_s14), 1 }
  0x10   : > { %846 = vst.msk [vmem:[#allocation3 + $0x30] sm:$0xff] %vm347_vm0, %v1848_v2  ;;  %847 = vst.msk [vmem:[#allocation3 + $0x38] sm:$0xff] %vm347_vm0, %v1848_v2  ;;  %s1776_s8 = smul.u32 80, %s2348_s14 }
  0x11   : > { %848 = vst.msk [vmem:[#allocation3 + $0x40] sm:$0xff] %vm347_vm0, %v1848_v2  ;;  %849 = vst.msk [vmem:[#allocation3 + $0x48] sm:$0xff] %vm347_vm0, %v1848_v2  ;;  %v390_v2 = vld [vmem:[%s2338_s2 + $0x8] sm:$0xff] }
  0x12   : > { %s331_s17 = scalar_lea.vmem %s2336_s0, %s1776_s8  ;;  %s2292_s24 = scalar_lea.vmem %s2344_s9, %s1776_s8 }
  0x13   : > { %v1949_v3 = vld [vmem:[%s331_s17] sm:$0xff]  ;;  %v1951_v4 = vld [vmem:[%s331_s17 + $0x8] sm:$0xff]  ;;  %v1953_v5 = vld [vmem:[%s331_s17 + $0x10] sm:$0xff] }
  0x14   : > { %359 = vst.msk [vmem:[#allocation2] sm:$0xff] %vm358_vm1, %v1949_v3  ;;  %360 = vst.msk [vmem:[#allocation2 + $0x8] sm:$0xff] %vm358_vm1, %v1951_v4  ;;  %v1959_v6 = vld [vmem:[%s331_s17 + $0x18] sm:$0xff]  ;;  %v1963_v7 = vld [vmem:[%s331_s17 + $0x20] sm:$0xff] }
  0x15   : > { %361 = vst.msk [vmem:[#allocation2 + $0x10] sm:$0xff] %vm358_vm1, %v1953_v5  ;;  %v1965_v8 = vld [vmem:[%s331_s17 + $0x28] sm:$0xff]  ;;  %362 = vst.msk [vmem:[#allocation2 + $0x18] sm:$0xff] %vm358_vm1, %v1959_v6  ;;  %v1973_v9 = vld [vmem:[%s331_s17 + $0x30] sm:$0xff] }
  0x16   : > { %363 = vst.msk [vmem:[#allocation2 + $0x20] sm:$0xff] %vm358_vm1, %v1963_v7  ;;  %364 = vst.msk [vmem:[#allocation2 + $0x28] sm:$0xff] %vm358_vm1, %v1965_v8  ;;  %v1975_v10 = vld [vmem:[%s331_s17 + $0x38] sm:$0xff]  ;;  %v1977_v11 = vld [vmem:[%s331_s17 + $0x40] sm:$0xff] }
  0x17   : > { %365 = vst.msk [vmem:[#allocation2 + $0x30] sm:$0xff] %vm358_vm1, %v1973_v9  ;;  %366 = vst.msk [vmem:[#allocation2 + $0x38] sm:$0xff] %vm358_vm1, %v1975_v10  ;;  %v1983_v12 = vld [vmem:[%s331_s17 + $0x48] sm:$0xff] }
  0x18   : > { %367 = vst.msk [vmem:[#allocation2 + $0x40] sm:$0xff] %vm358_vm1, %v1977_v11  ;;  %368 = vst.msk [vmem:[#allocation2 + $0x48] sm:$0xff] %vm358_vm1, %v1983_v12 }
  0x1b   : > { %v379_v13 = vld [vmem:[#allocation2] sm:$0xff]  ;;  %v380_v14 = vld [vmem:[#allocation2 + $0x8] sm:$0xff] }
  0x1c   : > { %v381_v15 = vld [vmem:[#allocation2 + $0x10] sm:$0xff]  ;;  %v1788_v16 = vpack.i.bf16 %v380_v14, %v379_v13  ;;  %v1989_v17 = vpack.c.bf16 %v380_v14, %v379_v13  ;;  %v382_v18 = vld [vmem:[#allocation2 + $0x18] sm:$0xff] }
  0x1d   : > { %v383_v19 = vld [vmem:[#allocation2 + $0x20] sm:$0xff]  ;;  %v384_v20 = vld [vmem:[#allocation2 + $0x28] sm:$0xff]  ;;  %v1793_v25 = vpack.i.bf16 %v382_v18, %v381_v15  ;;  %v2002_v31 = vpack.c.bf16 %v382_v18, %v381_v15  ;;  %v391_v13 = vld [vmem:[%s2338_s2 + $0x10] sm:$0xff] }
  0x1e   : > { %v1798_v21 = vpack.i.bf16 %v384_v20, %v383_v19  ;;  %v1991_v22 = vpack.c.bf16 %v384_v20, %v383_v19  ;;  %v385_v23 = vld [vmem:[#allocation2 + $0x30] sm:$0xff]  ;;  %v386_v24 = vld [vmem:[#allocation2 + $0x38] sm:$0xff]  ;;  %1789 = vrot.lane.b32.xlu0 %v1788_v16, %s1849_s18  ;;  %v393_v15 = vld [vmem:[%s2338_s2 + $0x20] sm:$0xff] }
  0x1f   : > { %v1803_v26 = vpack.i.bf16 %v386_v24, %v385_v23  ;;  %v387_v27 = vld [vmem:[#allocation2 + $0x40] sm:$0xff]  ;;  %v388_v28 = vld [vmem:[#allocation2 + $0x48] sm:$0xff]  ;;  %v2004_v32 = vpack.c.bf16 %v386_v24, %v385_v23  ;;  %v392_v14 = vld [vmem:[%s2338_s2 + $0x18] sm:$0xff] }
  0x20   : > { %1799 = vrot.lane.b32.xlu1 %v1798_v21, %s1849_s18  ;;  %v1808_v29 = vpack.i.bf16 %v388_v28, %v387_v27  ;;  %v2006_v33 = vpack.c.bf16 %v388_v28, %v387_v27  ;;  %v394_v16 = vld [vmem:[%s2338_s2 + $0x28] sm:$0xff]  ;;  %v396_v18 = vld [vmem:[%s2338_s2 + $0x38] sm:$0xff]  ;;  %v397_v19 = vld [vmem:[%s2338_s2 + $0x40] sm:$0xff] }
  0x21   : > { %v398_v20 = vld [vmem:[%s2338_s2 + $0x48] sm:$0xff]  ;;  %v369_v21 = vld [vmem:[%s2337_s1] sm:$0xff]  ;;  %v371_v23 = vld [vmem:[%s2337_s1 + $0x10] sm:$0xff] }
  0x22   : > { %1794 = vrot.lane.b32.xlu0 %v1793_v25, %s1849_s18  ;;  %v372_v24 = vld [vmem:[%s2337_s1 + $0x18] sm:$0xff]  ;;  %v373_v25 = vld [vmem:[%s2337_s1 + $0x20] sm:$0xff]  ;;  %v375_v27 = vld [vmem:[%s2337_s1 + $0x30] sm:$0xff] }
  0x23   : > { %v376_v28 = vld [vmem:[%s2337_s1 + $0x38] sm:$0xff] }
  0x24   : > { %1804 = vrot.lane.b32.xlu1 %v1803_v26, %s1849_s18  ;;  %v374_v26 = vld [vmem:[%s2337_s1 + $0x28] sm:$0xff] }
  0x26   : > { %1809 = vrot.lane.b32.xlu0 %v1808_v29, %s1849_s18  ;;  %v377_v29 = vld [vmem:[%s2337_s1 + $0x40] sm:$0xff] }
  0x28   : > { %742 = vperm.xlu1 %1813, %v730_v34  }
  0x2a   : > { %747 = vperm.xlu0 %1814, %v731_v36  }
  0x2c   : > { %817 = vperm.xlu1 %1813, %v1432_v37  }
  0x2e   : > { %757 = vperm.xlu0 %1814, %v733_v38  }
  0x30   : > { %752 = vperm.xlu1 %1813, %v732_v39  }
  0x32   : > { %767 = vperm.xlu0 %1814, %v735_v40  }
  0x34   : > { %762 = vperm.xlu1 %1813, %v734_v41  }
  0x36   : > { %777 = vperm.xlu0 %1814, %v737_v42  }
  0x38   : > { %772 = vperm.xlu1 %1813, %v736_v43  }
  0x3a   : > { %787 = vperm.xlu0 %1814, %v739_v44  }
  0x3c   : > { %782 = vperm.xlu1 %1813, %v738_v45  }
  0x90   : > { %v1790_v46 = vpop.permute.xlu0 %1789 }
  0x91   : > { %v1792_v47 = vunpack.i.h.bf16 %v1790_v46  ;;  %v1791_v48 = vunpack.i.l.bf16 %v1790_v46 }
  0x92   : > { %v1800_v49 = vpop.permute.xlu1 %1799 }
  0x93   : > { %v1676_v50 = vpack.c.bf16 %v1792_v47, %v1791_v48  ;;  %v1802_v51 = vunpack.i.h.bf16 %v1800_v49  ;;  %v1801_v52 = vunpack.i.l.bf16 %v1800_v49 }
  0x94   : > { %v1795_v53 = vpop.permute.xlu0 %1794 }
  0x95   : > { %v1797_v54 = vunpack.i.h.bf16 %v1795_v53  ;;  %v1796_v55 = vunpack.i.l.bf16 %v1795_v53  ;;  %1677 = vmatprep.subr.bf16.mxu0 %v1676_v50  ;;  %v1684_v58 = vpack.c.bf16 %v1802_v51, %v1801_v52 }
  0x96   : > { %v1805_v56 = vpop.permute.xlu1 %1804  ;;  %1679 = vmatpush3.bf16.msra.mxu0 %v1676_v50 }
  0x97   : > { %v1680_v57 = vpack.c.bf16 %v1797_v54, %v1796_v55  ;;  %v1807_v59 = vunpack.i.h.bf16 %v1805_v56  ;;  %v1806_v60 = vunpack.i.l.bf16 %v1805_v56 }
  0x98   : > { %v1810_v61 = vpop.permute.xlu0 %1809 }
  0x99   : > { %1681 = vmatprep.subr.bf16.mxu0 %v1680_v57  ;;  %v1688_v62 = vpack.c.bf16 %v1807_v59, %v1806_v60  ;;  %v1812_v63 = vunpack.i.h.bf16 %v1810_v61  ;;  %v1811_v0 = vunpack.i.l.bf16 %v1810_v61 }
  0x9a   : > { %1683 = vmatpush3.bf16.msra.mxu0 %v1680_v57 }
  0x9b   : > { %1685 = vmatprep.subr.bf16.mxu0 %v1684_v58  ;;  %v1692_v1 = vpack.c.bf16 %v1812_v63, %v1811_v0 }
  0x9e   : > { %1687 = vmatpush3.bf16.msra.mxu0 %v1684_v58 }
  0x9f   : > { %1689 = vmatprep.subr.bf16.mxu0 %v1688_v62 }
  0xa2   : > { %1691 = vmatpush3.bf16.msra.mxu0 %v1688_v62 }
  0xa3   : > { %1693 = vmatprep.subr.bf16.mxu0 %v1692_v1 }
  0xa6   : > { %1695 = vmatpush3.bf16.msra.mxu0 %v1692_v1 }
  0xa7   : > { %1697 = vmatprep.subr.bf16.mxu0 %v1989_v17 }
  0xa9   : > { %1557 = vmatmul.mubr.msk.f32.vlgmr.msra.gmra.mrb[0].mxu0 %vm439_vm2, %v390_v2 }
  0xaa   : > { %1699 = vmatpush3.bf16.msra.mxu0 %v1989_v17  ;;  %1559 = vmatprep.mubr.msk.f32.mxu0 %vm439_vm2, %v391_v13  ;;  %v395_v17 = vld [vmem:[%s2338_s2 + $0x30] sm:$0xff] }
  0xab   : > { %1701 = vmatprep.subr.bf16.mxu0 %v2002_v31 }
  0xad   : > { %1560 = vmatmul.mubr.msk.f32.gmra.mrb[2].mxu0 %vm439_vm2, %v392_v14 }
  0xae   : > { %1703 = vmatpush3.bf16.msra.mxu0 %v2002_v31  ;;  %1562 = vmatprep.mubr.msk.f32.mxu0 %vm439_vm2, %v393_v15  ;;  %v743_v31 = vpop.permute.xlu1 %742 }
  0xaf   : > { %1705 = vmatprep.subr.bf16.mxu0 %v1991_v22 }
  0xb1   : > { %1563 = vmatmul.mubr.msk.f32.gmra.mrb[4].mxu0 %vm439_vm2, %v394_v16 }
  0xb2   : > { %1707 = vmatpush3.bf16.msra.mxu0 %v1991_v22  ;;  %1565 = vmatprep.mubr.msk.f32.mxu0 %vm439_vm2, %v395_v17  ;;  %v370_v22 = vld [vmem:[%s2337_s1 + $0x8] sm:$0xff] }
  0xb3   : > { %1709 = vmatprep.subr.bf16.mxu0 %v2004_v32 }
  0xb5   : > { %1566 = vmatmul.mubr.msk.f32.gmra.mrb[6].mxu0 %vm439_vm2, %v396_v18 }
  0xb6   : > { %1711 = vmatpush3.bf16.msra.mxu0 %v2004_v32  ;;  %1568 = vmatprep.mubr.msk.f32.mxu0 %vm439_vm2, %v397_v19  ;;  %v748_v32 = vpop.permute.xlu0 %747 }
  0xb7   : > { %1713 = vmatprep.subr.bf16.mxu0 %v2006_v33 }
  0xb9   : > { %1569 = vmatmul.mubr.msk.f32.gmra.mrb[8].mxu0 %vm439_vm2, %v398_v20 }
  0xba   : > { %1715 = vmatpush3.bf16.msra.mxu0 %v2006_v33  ;;  %1591 = vmatprep.mubr.msk.f32.mxu0 %vm439_vm2, %v369_v21  ;;  %v2124_v33 = vpop.permute.xlu1 %817  ;;  %v758_v34 = vpop.permute.xlu0 %757 }
  0xbd   : > { %1592 = vmatmul.mubr.msk.f32.vlgmr.msra.gmra.mrb[0].mxu0 %vm439_vm2, %v370_v22 }
  0xbe   : > { %1594 = vmatprep.mubr.msk.f32.mxu0 %vm439_vm2, %v371_v23  ;;  %v753_v35 = vpop.permute.xlu1 %752  ;;  %v768_v41 = vpop.permute.xlu0 %767 }
  0xc1   : > { %1595 = vmatmul.mubr.msk.f32.gmra.mrb[2].mxu0 %vm439_vm2, %v372_v24 }
  0xc2   : > { %1597 = vmatprep.mubr.msk.f32.mxu0 %vm439_vm2, %v373_v25  ;;  %v763_v44 = vpop.permute.xlu1 %762  ;;  %v778_v56 = vpop.permute.xlu0 %777 }
  0xc5   : > { %1598 = vmatmul.mubr.msk.f32.gmra.mrb[4].mxu0 %vm439_vm2, %v374_v26 }
  0xc6   : > { %1600 = vmatprep.mubr.msk.f32.mxu0 %vm439_vm2, %v375_v27  ;;  %v773_v59 = vpop.permute.xlu1 %772  ;;  %v788_v19 = vpop.permute.xlu0 %787 }
  0xc9   : > { %1601 = vmatmul.mubr.msk.f32.gmra.mrb[6].mxu0 %vm439_vm2, %v376_v28 }
  0xca   : > { %1603 = vmatprep.mubr.msk.f32.mxu0 %vm439_vm2, %v377_v29  ;;  %v783_v22 = vpop.permute.xlu1 %782 }
  0xcd   : > { %1604 = vmatmul.mubr.msk.f32.gmra.mrb[8].mxu0 %vm439_vm2, %v378_v30 }
 0x190   : > { %v1593_v36 = vpop.f32.mrb[0].mxu0 }
 0x191   : > { %v791_v37 = vadd.f32 %v1593_v36, %v748_v32  ;;  %v681_v38 = vpop.f32.mrb[1].mxu0 }
 0x192   : > { %v790_v39 = vadd.f32 %v743_v31, %v681_v38 }
 0x193   : > { %vm801_vm3 = vcmp.gt.f32.partialorder %v791_v37, 0.0  ;;  %v821_v40 = vmul.f32 %v2124_v33, %v791_v37 }
 0x194   : > { %vm800_vm4 = vcmp.gt.f32.partialorder %v790_v39, 0.0  ;;  %v820_v42 = vmul.f32 %v2124_v33, %v790_v39  ;;  %v1596_v43 = vpop.f32.mrb[2].mxu0 }
 0x195   : > { %v831_v45 = vsel %vm801_vm3, %v791_v37, %v821_v40  ;;  %v793_v46 = vadd.f32 %v1596_v43, %v758_v34  ;;  %v691_v47 = vpop.f32.mrb[3].mxu0 }
 0x196   : > { %851 = vst.msk [vmem:[#allocation3 + $0x8] sm:$0xff] %vm358_vm1, %v831_v45  ;;  %v830_v48 = vsel %vm800_vm4, %v790_v39, %v820_v42  ;;  %v792_v49 = vadd.f32 %v753_v35, %v691_v47 }
 0x197   : > { %850 = vst.msk [vmem:[#allocation3] sm:$0xff] %vm358_vm1, %v830_v48  ;;  %vm803_vm5 = vcmp.gt.f32.partialorder %v793_v46, 0.0  ;;  %v823_v50 = vmul.f32 %v2124_v33, %v793_v46 }
 0x198   : > { %vm802_vm6 = vcmp.gt.f32.partialorder %v792_v49, 0.0  ;;  %v822_v51 = vmul.f32 %v2124_v33, %v792_v49  ;;  %v1599_v52 = vpop.f32.mrb[4].mxu0 }
 0x199   : > { %v833_v53 = vsel %vm803_vm5, %v793_v46, %v823_v50  ;;  %v795_v54 = vadd.f32 %v1599_v52, %v768_v41  ;;  %v701_v55 = vpop.f32.mrb[5].mxu0  ;;  %v1220_v46 = vld [vmem:[%s2343_s7] sm:$0xff]  ;;  %v1222_v50 = vld [vmem:[%s2343_s7 + $0x10] sm:$0xff] }
 0x19a   : > { %853 = vst.msk [vmem:[#allocation3 + $0x18] sm:$0xff] %vm358_vm1, %v833_v53  ;;  %v832_v57 = vsel %vm802_vm6, %v792_v49, %v822_v51  ;;  %v794_v58 = vadd.f32 %v763_v44, %v701_v55  ;;  %v1221_v51 = vld [vmem:[%s2343_s7 + $0x8] sm:$0xff]  ;;  %v1224_v52 = vld [vmem:[%s2343_s7 + $0x20] sm:$0xff]  ;;  %v1223_v53 = vld [vmem:[%s2343_s7 + $0x18] sm:$0xff] }
 0x19b   : > { %852 = vst.msk [vmem:[#allocation3 + $0x10] sm:$0xff] %vm358_vm1, %v832_v57  ;;  %vm805_vm7 = vcmp.gt.f32.partialorder %v795_v54, 0.0  ;;  %v825_v60 = vmul.f32 %v2124_v33, %v795_v54  ;;  %v1225_v55 = vld [vmem:[%s2343_s7 + $0x28] sm:$0xff]  ;;  %v1227_v57 = vld [vmem:[%s2343_s7 + $0x38] sm:$0xff] }
 0x19c   : > { %vm804_vm8 = vcmp.gt.f32.partialorder %v794_v58, 0.0  ;;  %v824_v61 = vmul.f32 %v2124_v33, %v794_v58  ;;  %v1602_v62 = vpop.f32.mrb[6].mxu0 }
 0x19d   : > { %v835_v63 = vsel %vm805_vm7, %v795_v54, %v825_v60  ;;  %v797_v0 = vadd.f32 %v1602_v62, %v778_v56  ;;  %v711_v1 = vpop.f32.mrb[7].mxu0  ;;  %v871_v2 = vld [vmem:[#allocation3 + $0x8] sm:$0xff]  ;;  %v1226_v54 = vld [vmem:[%s2343_s7 + $0x30] sm:$0xff]  ;;  %v1228_v56 = vld [vmem:[%s2343_s7 + $0x40] sm:$0xff] }
 0x19e   : > { %855 = vst.msk [vmem:[#allocation3 + $0x28] sm:$0xff] %vm358_vm1, %v835_v63  ;;  %v834_v13 = vsel %vm804_vm8, %v794_v58, %v824_v61  ;;  %v796_v14 = vadd.f32 %v773_v59, %v711_v1  ;;  %v870_v15 = vld [vmem:[#allocation3] sm:$0xff]  ;;  %v1453_v58 = vld [vmem:[#allocation5] ss:$0 sm:$0xff]  ;;  %v1229_v59 = vld [vmem:[%s2343_s7 + $0x48] sm:$0xff] }
 0x19f   : > { %854 = vst.msk [vmem:[#allocation3 + $0x20] sm:$0xff] %vm358_vm1, %v834_v13  ;;  %vm807_vm9 = vcmp.gt.f32.partialorder %v797_v0, 0.0  ;;  %v827_v16 = vmul.f32 %v2124_v33, %v797_v0  ;;  %v1815_v17 = vpack.i.bf16 %v871_v2, %v870_v15  ;;  %v2139_v18 = vpack.c.bf16 %v871_v2, %v870_v15 }
 0x1a0   : > { %vm806_vm10 = vcmp.gt.f32.partialorder %v796_v14, 0.0  ;;  %v826_v20 = vmul.f32 %v2124_v33, %v796_v14  ;;  %v1605_v21 = vpop.f32.mrb[8].mxu0 }
 0x1a1   : > { %v837_v23 = vsel %vm807_vm9, %v797_v0, %v827_v16  ;;  %v799_v24 = vadd.f32 %v1605_v21, %v788_v19  ;;  %1816 = vrot.lane.b32.xlu1 %v1815_v17, %s1849_s18  ;;  %v721_v25 = vpop.f32.mrb[9].mxu0  ;;  %v873_v26 = vld [vmem:[#allocation3 + $0x18] sm:$0xff] }
 0x1a2   : > { %857 = vst.msk [vmem:[#allocation3 + $0x38] sm:$0xff] %vm358_vm1, %v837_v23  ;;  %v836_v27 = vsel %vm806_vm10, %v796_v14, %v826_v20  ;;  %v798_v28 = vadd.f32 %v783_v22, %v721_v25  ;;  %v872_v29 = vld [vmem:[#allocation3 + $0x10] sm:$0xff] }
 0x1a3   : > { %856 = vst.msk [vmem:[#allocation3 + $0x30] sm:$0xff] %vm358_vm1, %v836_v27  ;;  %vm809_vm11 = vcmp.gt.f32.partialorder %v799_v24, 0.0  ;;  %v829_v30 = vmul.f32 %v2124_v33, %v799_v24  ;;  %v1820_v31 = vpack.i.bf16 %v873_v26, %v872_v29  ;;  %v2146_v32 = vpack.c.bf16 %v873_v26, %v872_v29  ;;  %v881_v27 = vld [vmem:[%s2342_s6 + $0x8] sm:$0xff]  ;;  %v883_v29 = vld [vmem:[%s2342_s6 + $0x18] sm:$0xff] }
 0x1a4   : > { %vm808_vm12 = vcmp.gt.f32.partialorder %v798_v28, 0.0  ;;  %v828_v34 = vmul.f32 %v2124_v33, %v798_v28  ;;  %v880_v33 = vld [vmem:[%s2342_s6] sm:$0xff] }
 0x1a5   : > { %v839_v35 = vsel %vm809_vm11, %v799_v24, %v829_v30  ;;  %1821 = vrot.lane.b32.xlu0 %v1820_v31, %s1849_s18  ;;  %v875_v36 = vld [vmem:[#allocation3 + $0x28] sm:$0xff]  ;;  %1626 = vmatprep.mubr.msk.f32.mxu1 %vm439_vm2, %v880_v33  ;;  %v884_v30 = vld [vmem:[%s2342_s6 + $0x20] sm:$0xff]  ;;  %v886_v31 = vld [vmem:[%s2342_s6 + $0x30] sm:$0xff] }
 0x1a6   : > { %859 = vst.msk [vmem:[#allocation3 + $0x48] sm:$0xff] %vm358_vm1, %v839_v35  ;;  %v838_v37 = vsel %vm808_vm12, %v798_v28, %v828_v34  ;;  %v874_v38 = vld [vmem:[#allocation3 + $0x20] sm:$0xff]  ;;  %v888_v34 = vld [vmem:[%s2342_s6 + $0x40] sm:$0xff]  ;;  %v889_v35 = vld [vmem:[%s2342_s6 + $0x48] sm:$0xff] }
 0x1a7   : > { %858 = vst.msk [vmem:[#allocation3 + $0x40] sm:$0xff] %vm358_vm1, %v838_v37  ;;  %v1825_v39 = vpack.i.bf16 %v875_v36, %v874_v38  ;;  %v2152_v40 = vpack.c.bf16 %v875_v36, %v874_v38  ;;  %v882_v28 = vld [vmem:[%s2342_s6 + $0x10] sm:$0xff]  ;;  %v860_v36 = vld [vmem:[%s2341_s5] sm:$0xff]  ;;  %v861_v37 = vld [vmem:[%s2341_s5 + $0x8] sm:$0xff] }
 0x1a8   : > { %v862_v38 = vld [vmem:[%s2341_s5 + $0x10] sm:$0xff]  ;;  %v867_v33 = vld [vmem:[%s2341_s5 + $0x38] sm:$0xff] }
 0x1a9   : > { %1826 = vrot.lane.b32.xlu1 %v1825_v39, %s1849_s18  ;;  %v877_v41 = vld [vmem:[#allocation3 + $0x38] sm:$0xff]  ;;  %v863_v39 = vld [vmem:[%s2341_s5 + $0x18] sm:$0xff] }
 0x1aa   : > { %v876_v42 = vld [vmem:[#allocation3 + $0x30] sm:$0xff] }
 0x1ab   : > { %v1830_v43 = vpack.i.bf16 %v877_v41, %v876_v42  ;;  %v2159_v44 = vpack.c.bf16 %v877_v41, %v876_v42  ;;  %v865_v41 = vld [vmem:[%s2341_s5 + $0x28] sm:$0xff]  ;;  %v866_v42 = vld [vmem:[%s2341_s5 + $0x30] sm:$0xff] }
 0x1ad   : > { %1831 = vrot.lane.b32.xlu0 %v1830_v43, %s1849_s18  ;;  %v879_v45 = vld [vmem:[#allocation3 + $0x48] sm:$0xff]  ;;  %v868_v43 = vld [vmem:[%s2341_s5 + $0x40] sm:$0xff] }
 0x1ae   : > { %v878_v47 = vld [vmem:[#allocation3 + $0x40] sm:$0xff] }
 0x1af   : > { %v1835_v48 = vpack.i.bf16 %v879_v45, %v878_v47  ;;  %v2165_v49 = vpack.c.bf16 %v879_v45, %v878_v47 }
 0x1b1   : > { %1232 = vperm.xlu0 %1814, %v1220_v46   ;;  %1836 = vrot.lane.b32.xlu1 %v1835_v48, %s1849_s18 }
 0x1b5   : > { %1242 = vperm.xlu0 %1814, %v1222_v50   ;;  %1237 = vperm.xlu1 %1813, %v1221_v51  }
 0x1b9   : > { %1252 = vperm.xlu0 %1814, %v1224_v52   ;;  %1247 = vperm.xlu1 %1813, %v1223_v53  }
 0x1bd   : > { %1262 = vperm.xlu0 %1814, %v1226_v54   ;;  %1257 = vperm.xlu1 %1813, %v1225_v55  }
 0x1c1   : > { %1272 = vperm.xlu0 %1814, %v1228_v56   ;;  %1267 = vperm.xlu1 %1813, %v1227_v57  }
 0x1c5   : > { %1307 = vperm.xlu0 %1814, %v1453_v58   ;;  %1277 = vperm.xlu1 %1813, %v1229_v59  }
 0x213   : > { %v1817_v60 = vpop.permute.xlu1 %1816 }
 0x214   : > { %v1819_v61 = vunpack.i.h.bf16 %v1817_v60  ;;  %v1818_v62 = vunpack.i.l.bf16 %v1817_v60 }
 0x216   : > { %v1716_v63 = vpack.c.bf16 %v1819_v61, %v1818_v62 }
 0x217   : > { %v1822_v0 = vpop.permute.xlu0 %1821 }
 0x218   : > { %v1824_v1 = vunpack.i.h.bf16 %v1822_v0  ;;  %v1823_v2 = vunpack.i.l.bf16 %v1822_v0  ;;  %1717 = vmatprep.subr.bf16.mxu1 %v1716_v63 }
 0x219   : > { %1719 = vmatpush3.bf16.msra.mxu1 %v1716_v63 }
 0x21a   : > { %v1720_v13 = vpack.c.bf16 %v1824_v1, %v1823_v2 }
 0x21b   : > { %v1827_v14 = vpop.permute.xlu1 %1826 }
 0x21c   : > { %v1829_v15 = vunpack.i.h.bf16 %v1827_v14  ;;  %v1828_v16 = vunpack.i.l.bf16 %v1827_v14  ;;  %1721 = vmatprep.subr.bf16.mxu1 %v1720_v13 }
 0x21d   : > { %1723 = vmatpush3.bf16.msra.mxu1 %v1720_v13 }
 0x21e   : > { %v1724_v17 = vpack.c.bf16 %v1829_v15, %v1828_v16 }
 0x21f   : > { %v1832_v19 = vpop.permute.xlu0 %1831 }
 0x220   : > { %v1834_v20 = vunpack.i.h.bf16 %v1832_v19  ;;  %v1833_v21 = vunpack.i.l.bf16 %v1832_v19  ;;  %1725 = vmatprep.subr.bf16.mxu1 %v1724_v17 }
 0x221   : > { %1727 = vmatpush3.bf16.msra.mxu1 %v1724_v17 }
 0x222   : > { %v1728_v22 = vpack.c.bf16 %v1834_v20, %v1833_v21 }
 0x223   : > { %v1837_v23 = vpop.permute.xlu1 %1836 }
 0x224   : > { %v1839_v24 = vunpack.i.h.bf16 %v1837_v23  ;;  %v1838_v25 = vunpack.i.l.bf16 %v1837_v23  ;;  %1729 = vmatprep.subr.bf16.mxu1 %v1728_v22 }
 0x225   : > { %1731 = vmatpush3.bf16.msra.mxu1 %v1728_v22 }
 0x226   : > { %v1732_v26 = vpack.c.bf16 %v1839_v24, %v1838_v25 }
 0x228   : > { %1733 = vmatprep.subr.bf16.mxu1 %v1732_v26 }
 0x229   : > { %1735 = vmatpush3.bf16.msra.mxu1 %v1732_v26 }
 0x22a   : > { %1737 = vmatprep.subr.bf16.mxu1 %v2139_v18 }
 0x22c   : > { %1627 = vmatmul.mubr.msk.f32.vlgmr.msra.gmra.mrb[0].mxu1 %vm439_vm2, %v881_v27 }
 0x22d   : > { %1739 = vmatpush3.bf16.msra.mxu1 %v2139_v18  ;;  %1629 = vmatprep.mubr.msk.f32.mxu1 %vm439_vm2, %v882_v28  ;;  %v885_v18 = vld [vmem:[%s2342_s6 + $0x28] sm:$0xff] }
 0x22e   : > { %1741 = vmatprep.subr.bf16.mxu1 %v2146_v32 }
 0x230   : > { %1630 = vmatmul.mubr.msk.f32.gmra.mrb[2].mxu1 %vm439_vm2, %v883_v29  ;;  %v1233_v45 = vpop.permute.xlu0 %1232 }
 0x231   : > { %1743 = vmatpush3.bf16.msra.mxu1 %v2146_v32  ;;  %1632 = vmatprep.mubr.msk.f32.mxu1 %vm439_vm2, %v884_v30  ;;  %v887_v32 = vld [vmem:[%s2342_s6 + $0x38] sm:$0xff] }
 0x232   : > { %1745 = vmatprep.subr.bf16.mxu1 %v2152_v40 }
 0x234   : > { %1633 = vmatmul.mubr.msk.f32.gmra.mrb[4].mxu1 %vm439_vm2, %v885_v18  ;;  %v1243_v46 = vpop.permute.xlu0 %1242 }
 0x235   : > { %1747 = vmatpush3.bf16.msra.mxu1 %v2152_v40  ;;  %1635 = vmatprep.mubr.msk.f32.mxu1 %vm439_vm2, %v886_v31  ;;  %v864_v40 = vld [vmem:[%s2341_s5 + $0x20] sm:$0xff] }
 0x236   : > { %1749 = vmatprep.subr.bf16.mxu1 %v2159_v44 }
 0x238   : > { %1636 = vmatmul.mubr.msk.f32.gmra.mrb[6].mxu1 %vm439_vm2, %v887_v32  ;;  %v1253_v47 = vpop.permute.xlu0 %1252 }
 0x239   : > { %1751 = vmatpush3.bf16.msra.mxu1 %v2159_v44  ;;  %1638 = vmatprep.mubr.msk.f32.mxu1 %vm439_vm2, %v888_v34  ;;  %v869_v44 = vld [vmem:[%s2341_s5 + $0x48] sm:$0xff] }
 0x23a   : > { %1753 = vmatprep.subr.bf16.mxu1 %v2165_v49 }
 0x23c   : > { %1639 = vmatmul.mubr.msk.f32.gmra.mrb[8].mxu1 %vm439_vm2, %v889_v35  ;;  %v1263_v48 = vpop.permute.xlu0 %1262 }
 0x23d   : > { %1755 = vmatpush3.bf16.msra.mxu1 %v2165_v49  ;;  %1661 = vmatprep.mubr.msk.f32.mxu1 %vm439_vm2, %v860_v36  ;;  %v1238_v49 = vpop.permute.xlu1 %1237 }
 0x240   : > { %1662 = vmatmul.mubr.msk.f32.vlgmr.msra.gmra.mrb[0].mxu1 %vm439_vm2, %v861_v37  ;;  %v2281_v50 = vpop.permute.xlu0 %1272 }
 0x241   : > { %1664 = vmatprep.mubr.msk.f32.mxu1 %vm439_vm2, %v862_v38  ;;  %v1248_v51 = vpop.permute.xlu1 %1247 }
 0x244   : > { %1665 = vmatmul.mubr.msk.f32.gmra.mrb[2].mxu1 %vm439_vm2, %v863_v39  ;;  %v2283_v55 = vpop.permute.xlu0 %1307 }
 0x245   : > { %1667 = vmatprep.mubr.msk.f32.mxu1 %vm439_vm2, %v864_v40  ;;  %v1258_v58 = vpop.permute.xlu1 %1257 }
 0x248   : > { %1668 = vmatmul.mubr.msk.f32.gmra.mrb[4].mxu1 %vm439_vm2, %v865_v41 }
 0x249   : > { %1670 = vmatprep.mubr.msk.f32.mxu1 %vm439_vm2, %v866_v42  ;;  %v1268_v20 = vpop.permute.xlu1 %1267 }
 0x24c   : > { %1671 = vmatmul.mubr.msk.f32.gmra.mrb[6].mxu1 %vm439_vm2, %v867_v33 }
 0x24d   : > { %1673 = vmatprep.mubr.msk.f32.mxu1 %vm439_vm2, %v868_v43  ;;  %v1278_v32 = vpop.permute.xlu1 %1277 }
 0x250   : > { %1674 = vmatmul.mubr.msk.f32.gmra.mrb[8].mxu1 %vm439_vm2, %v869_v44 }
 0x313   : > { %v1663_v52 = vpop.f32.mrb[0].mxu1 }
 0x314   : > { %v1281_v53 = vadd.f32 %v1663_v52, %v1238_v49  ;;  %v1171_v54 = vpop.f32.mrb[1].mxu1 }
 0x315   : > { %v1280_v56 = vadd.f32 %v1233_v45, %v1171_v54 }
 0x316   : > { %vm1291_vm13 = vcmp.gt.f32.partialorder %v1281_v53, 0.0  ;;  %v1311_v57 = vmul.f32 %v2283_v55, %v1281_v53 }
 0x317   : > { %vm1290_vm14 = vcmp.gt.f32.partialorder %v1280_v56, 0.0  ;;  %v1310_v59 = vmul.f32 %v2283_v55, %v1280_v56  ;;  %v1666_v60 = vpop.f32.mrb[2].mxu1 }
 0x318   : > { %v1321_v61 = vsel %vm1291_vm13, %v1281_v53, %v1311_v57  ;;  %v1283_v62 = vadd.f32 %v1666_v60, %v1248_v51  ;;  %v1181_v63 = vpop.f32.mrb[3].mxu1 }
 0x319   : > { %v1331_v0 = vadd.f32 %v1321_v61, %v1951_v4  ;;  %v1320_v1 = vsel %vm1290_vm14, %v1280_v56, %v1310_v59  ;;  %v1282_v2 = vadd.f32 %v1243_v46, %v1181_v63 }
 0x31a   : > { %v1330_v13 = vadd.f32 %v1320_v1, %v1949_v3  ;;  %vm1293_vm15 = vcmp.gt.f32.partialorder %v1283_v62, 0.0  ;;  %v1313_v14 = vmul.f32 %v2283_v55, %v1283_v62 }
 0x31b   : > { %1341 = vst.msk [vmem:[%s2292_s24 + $0x8] sm:$0xff] %vm358_vm1, %v1331_v0  ;;  %vm1292_vm0 = vcmp.gt.f32.partialorder %v1282_v2, 0.0  ;;  %v1312_v15 = vmul.f32 %v2283_v55, %v1282_v2  ;;  %v1669_v16 = vpop.f32.mrb[4].mxu1 }
 0x31c   : > { %1340 = vst.msk [vmem:[%s2292_s24] sm:$0xff] %vm358_vm1, %v1330_v13  ;;  %v1323_v17 = vsel %vm1293_vm15, %v1283_v62, %v1313_v14  ;;  %v1285_v19 = vadd.f32 %v1669_v16, %v1258_v58  ;;  %v1191_v4 = vpop.f32.mrb[5].mxu1 }
 0x31d   : > { %v1333_v21 = vadd.f32 %v1323_v17, %v1959_v6  ;;  %v1322_v3 = vsel %vm1292_vm0, %v1282_v2, %v1312_v15  ;;  %v1284_v22 = vadd.f32 %v1253_v47, %v1191_v4 }
 0x31e   : > { %v1332_v23 = vadd.f32 %v1322_v3, %v1953_v5  ;;  %vm1295_vm2 = vcmp.gt.f32.partialorder %v1285_v19, 0.0  ;;  %v1315_v24 = vmul.f32 %v2283_v55, %v1285_v19 }
 0x31f   : > { %1343 = vst.msk [vmem:[%s2292_s24 + $0x18] sm:$0xff] %vm358_vm1, %v1333_v21  ;;  %vm1294_vm3 = vcmp.gt.f32.partialorder %v1284_v22, 0.0  ;;  %v1314_v25 = vmul.f32 %v2283_v55, %v1284_v22  ;;  %v1672_v26 = vpop.f32.mrb[6].mxu1 }
 0x320   : > { %1342 = vst.msk [vmem:[%s2292_s24 + $0x10] sm:$0xff] %vm358_vm1, %v1332_v23  ;;  %v1325_v27 = vsel %vm1295_vm2, %v1285_v19, %v1315_v24  ;;  %v1287_v28 = vadd.f32 %v1672_v26, %v1268_v20  ;;  %v1201_v6 = vpop.f32.mrb[7].mxu1 }
 0x321   : > { %v1335_v29 = vadd.f32 %v1325_v27, %v1965_v8  ;;  %v1324_v30 = vsel %vm1294_vm3, %v1284_v22, %v1314_v25  ;;  %v1286_v5 = vadd.f32 %v1263_v48, %v1201_v6 }
 0x322   : > { %v1334_v18 = vadd.f32 %v1324_v30, %v1963_v7  ;;  %vm1297_vm4 = vcmp.gt.f32.partialorder %v1287_v28, 0.0  ;;  %v1317_v31 = vmul.f32 %v2283_v55, %v1287_v28 }
 0x323   : > { %1345 = vst.msk [vmem:[%s2292_s24 + $0x28] sm:$0xff] %vm358_vm1, %v1335_v29  ;;  %vm1296_vm5 = vcmp.gt.f32.partialorder %v1286_v5, 0.0  ;;  %v1316_v34 = vmul.f32 %v2283_v55, %v1286_v5  ;;  %v1675_v35 = vpop.f32.mrb[8].mxu1 }
 0x324   : > { %1344 = vst.msk [vmem:[%s2292_s24 + $0x20] sm:$0xff] %vm358_vm1, %v1334_v18  ;;  %v1327_v36 = vsel %vm1297_vm4, %v1287_v28, %v1317_v31  ;;  %v1289_v8 = vadd.f32 %v1675_v35, %v1278_v32  ;;  %v1211_v37 = vpop.f32.mrb[9].mxu1 }
 0x325   : > { %v1337_v7 = vadd.f32 %v1327_v36, %v1975_v10  ;;  %v1326_v38 = vsel %vm1296_vm5, %v1286_v5, %v1316_v34  ;;  %v1288_v39 = vadd.f32 %v2281_v50, %v1211_v37 }
 0x326   : > { %v1336_v40 = vadd.f32 %v1326_v38, %v1973_v9  ;;  %vm1299_vm6 = vcmp.gt.f32.partialorder %v1289_v8, 0.0  ;;  %v1319_v41 = vmul.f32 %v2283_v55, %v1289_v8 }
 0x327   : > { %1347 = vst.msk [vmem:[%s2292_s24 + $0x38] sm:$0xff] %vm358_vm1, %v1337_v7  ;;  %vm1298_vm7 = vcmp.gt.f32.partialorder %v1288_v39, 0.0  ;;  %v1318_v42 = vmul.f32 %v2283_v55, %v1288_v39 }
 0x328   : > { %1346 = vst.msk [vmem:[%s2292_s24 + $0x30] sm:$0xff] %vm358_vm1, %v1336_v40  ;;  %v1329_v33 = vsel %vm1299_vm6, %v1289_v8, %v1319_v41 }
 0x329   : > { %v1339_v43 = vadd.f32 %v1329_v33, %v1983_v12  ;;  %v1328_v44 = vsel %vm1298_vm7, %v1288_v39, %v1318_v42 }
 0x32a   : > { %v1338_v10 = vadd.f32 %v1328_v44, %v1977_v11 }
 0x32b   : > { %1349 = vst.msk [vmem:[%s2292_s24 + $0x48] sm:$0xff] %vm358_vm1, %v1339_v43 }
 0x32c   : > { %1348 = vst.msk [vmem:[%s2292_s24 + $0x40] sm:$0xff] %vm358_vm1, %v1338_v10 }
 0x32d PF: > { %s23_s13 = sadd.s32 1, %s1846_s13  }
 0x32e   : > { %p20_p4 = scmp.ge.s32.totalorder %s23_s13, 4  }
 0x330   :  { %22 = sbr.rel (!%p20_p4) target bundleno = 3 (0x3), region = 86 }

// kernel: discriminator_forward.11
= control target key start
LH: loop header
LB: loop body
LE: loop exit
PB: predicated region body
PF: predicated region fallthrough
CT: control target
= control target key end

     0   :  { %s1990_s13 = smov 0   ;;  %s2439_s0 = inlined_call_operand.vmem [shape: f32[2,80,16], index: 0, kind: input, shape index: {}]   ;;  %s2440_s1 = inlined_call_operand.vmem [shape: f32[80,80], index: 1, kind: input, shape index: {}]   ;;  %s2441_s2 = inlined_call_operand.vmem [shape: f32[80,80], index: 2, kind: input, shape index: {}]   ;;  %s2442_s3 = inlined_call_operand.vmem [shape: f32[80,1], index: 3, kind: input, shape index: {}]   ;;  %s2443_s4 = inlined_call_operand.<no memory space> [shape: f32[1,1], index: 4, kind: input, shape index: {}]   ;;  %s2444_s5 = inlined_call_operand.vmem [shape: f32[80,80], index: 5, kind: input, shape index: {}]   ;;  %s2445_s6 = inlined_call_operand.vmem [shape: f32[80,80], index: 6, kind: input, shape index: {}]   ;;  %s2446_s7 = inlined_call_operand.vmem [shape: f32[80,1], index: 7, kind: input, shape index: {}]   ;;  %s2447_s9 = inlined_call_operand.vmem [shape: f32[2,80,16], index: 9, kind: output, shape index: {}]   ;;  %s2448_s8 = inlined_call_operand.<no memory space> [shape: f32[1,1], index: 8, kind: input, shape index: {}]  }
   0x1   :  { %v14_v0 = vstv %s2443_s4  ;;  %v16_v1 = vstv %s2448_s8 }
   0x2   :  { %15 = vst [vmem:[#allocation4] sm:$0x1] %v14_v0  ;;  %17 = vst [vmem:[#allocation5] sm:$0x1] %v16_v1 }
   0x3 LB: > { %s1486_s14 = sadd.s32 4294967295, %s1928_s13   ;;  %p1490_p0 = scmp.ge.s32.totalorder %s1928_s13, 1  ;;  %s1928_s13 = sphi %s1990_s13, %s23_s13  }
   0x4   : > { %p291_p1 = scmp.lt.s32.totalorder %s1928_s13, 3 }
   0x6   : > { %p292_p2 = pnand %p1490_p0, %p291_p1 }
   0x7   : > { %p1998_p3 = scmp.lt.s32.totalorder (!%p292_p2), %s1486_s14, 1  ;;  %vm347_vm0 = vcmask (!%p292_p2), 146432   ;;  %v1930_v2 = vmov (!%p292_p2), 0.0   ;;  %s1931_s18 = smov (!%p292_p2), 1   ;;  %vm398_vm1 = vcmask (!%p292_p2), 138248   ;;  %v429_v41 = vld [vmem:[%s2441_s2] sm:$0xff] (!%p292_p2) }
   0x8   : > { %295 = sbr.rel (%p292_p2) target bundleno = 1047 (0x417), region = 56  ;;  %350 = vst.msk [vmem:[#allocation2 + $0x10] sm:$0xff] (!%p292_p2), %vm347_vm0, %v1930_v2  ;;  %348 = vst.msk [vmem:[#allocation2] sm:$0xff] (!%p292_p2), %vm347_vm0, %v1930_v2  ;;  %s1932_s19 = smov (!%p292_p2), 126   ;;  %vm479_vm2 = vcmask (!%p292_p2), 654336   ;;  %v770_v44 = vld [vmem:[%s2442_s3] sm:$0xff] (!%p292_p2) }
   0x9   : > { %349 = vst.msk [vmem:[#allocation2 + $0x8] sm:$0xff] (!%p292_p2), %vm347_vm0, %v1930_v2  ;;  %351 = vst.msk [vmem:[#allocation2 + $0x18] sm:$0xff] (!%p292_p2), %vm347_vm0, %v1930_v2  ;;  %1637 = vmatprep.mubr.msk.f32.mxu0 (!%p292_p2), %vm479_vm2, %v429_v41  ;;  %v1933_v45 = vmov (!%p292_p2), 0   ;;  %v771_v46 = vld [vmem:[%s2442_s3 + $0x8] sm:$0xff] (!%p292_p2)  ;;  %v1513_v47 = vld [vmem:[#allocation4] ss:$0 sm:$0xff] (!%p292_p2) }
   0xa   : > { %352 = vst.msk [vmem:[#allocation2 + $0x20] sm:$0xff] (!%p292_p2), %vm347_vm0, %v1930_v2  ;;  %353 = vst.msk [vmem:[#allocation2 + $0x28] sm:$0xff] (!%p292_p2), %vm347_vm0, %v1930_v2  ;;  %1895 = vset.pattern.permute.xlu1 (!%p292_p2), %v1933_v45  ;;  %1896 = vset.pattern.permute.xlu0 (!%p292_p2), %v1933_v45  ;;  %v773_v48 = vld [vmem:[%s2442_s3 + $0x18] sm:$0xff] (!%p292_p2)  ;;  %v772_v49 = vld [vmem:[%s2442_s3 + $0x10] sm:$0xff] (!%p292_p2)  ;;  %vm1420_vm15 = vcmask (!%p292_p2), 130048  }
   0xb   : > { %354 = vst.msk [vmem:[#allocation2 + $0x30] sm:$0xff] (!%p292_p2), %vm347_vm0, %v1930_v2  ;;  %355 = vst.msk [vmem:[#allocation2 + $0x38] sm:$0xff] (!%p292_p2), %vm347_vm0, %v1930_v2  ;;  %v775_v50 = vld [vmem:[%s2442_s3 + $0x28] sm:$0xff] (!%p292_p2)  ;;  %v774_v51 = vld [vmem:[%s2442_s3 + $0x20] sm:$0xff] (!%p292_p2) }
   0xc   : > { %356 = vst.msk [vmem:[#allocation2 + $0x40] sm:$0xff] (!%p292_p2), %vm347_vm0, %v1930_v2  ;;  %357 = vst.msk [vmem:[#allocation2 + $0x48] sm:$0xff] (!%p292_p2), %vm347_vm0, %v1930_v2  ;;  %v777_v52 = vld [vmem:[%s2442_s3 + $0x38] sm:$0xff] (!%p292_p2)  ;;  %v776_v53 = vld [vmem:[%s2442_s3 + $0x30] sm:$0xff] (!%p292_p2) }
   0xd   : > { %880 = vst.msk [vmem:[#allocation3] sm:$0xff] (!%p292_p2), %vm347_vm0, %v1930_v2  ;;  %881 = vst.msk [vmem:[#allocation3 + $0x8] sm:$0xff] (!%p292_p2), %vm347_vm0, %v1930_v2  ;;  %v779_v54 = vld [vmem:[%s2442_s3 + $0x48] sm:$0xff] (!%p292_p2)  ;;  %v778_v55 = vld [vmem:[%s2442_s3 + $0x40] sm:$0xff] (!%p292_p2) }
   0xe   : > { %882 = vst.msk [vmem:[#allocation3 + $0x10] sm:$0xff] (!%p292_p2), %vm347_vm0, %v1930_v2  ;;  %883 = vst.msk [vmem:[#allocation3 + $0x18] sm:$0xff] (!%p292_p2), %vm347_vm0, %v1930_v2 }
   0xf   : > { %884 = vst.msk [vmem:[#allocation3 + $0x20] sm:$0xff] %vm347_vm0, %v1930_v2  ;;  %885 = vst.msk [vmem:[#allocation3 + $0x28] sm:$0xff] %vm347_vm0, %v1930_v2  ;;  %s2451_s14 = smov (!%p1998_p3, %s1486_s14), 1 }
  0x10   : > { %886 = vst.msk [vmem:[#allocation3 + $0x30] sm:$0xff] %vm347_vm0, %v1930_v2  ;;  %887 = vst.msk [vmem:[#allocation3 + $0x38] sm:$0xff] %vm347_vm0, %v1930_v2  ;;  %s1857_s8 = smul.u32 80, %s2451_s14 }
  0x11   : > { %888 = vst.msk [vmem:[#allocation3 + $0x40] sm:$0xff] %vm347_vm0, %v1930_v2  ;;  %889 = vst.msk [vmem:[#allocation3 + $0x48] sm:$0xff] %vm347_vm0, %v1930_v2 }
  0x12   : > { %s331_s17 = scalar_lea.vmem %s2439_s0, %s1857_s8  ;;  %s2395_s27 = scalar_lea.vmem %s2447_s9, %s1857_s8 }
  0x13   : > { %v2032_v3 = vld [vmem:[%s331_s17 + $0x10] sm:$0xff]  ;;  %v2034_v4 = vld [vmem:[%s331_s17] sm:$0xff]  ;;  %v2040_v5 = vld [vmem:[%s331_s17 + $0x18] sm:$0xff] }
  0x14   : > { %372 = vrot.lane.b32.xlu1 %v2032_v3, %s1931_s18  ;;  %368 = vrot.lane.b32.xlu0 %v2034_v4, %s1931_s18  ;;  %v2042_v6 = vld [vmem:[%s331_s17 + $0x8] sm:$0xff]  ;;  %v2050_v8 = vld [vmem:[%s331_s17 + $0x20] sm:$0xff] }
  0x15   : > { %v2048_v7 = vld [vmem:[%s331_s17 + $0x28] sm:$0xff]  ;;  %v2056_v9 = vld [vmem:[%s331_s17 + $0x38] sm:$0xff]  ;;  %v2058_v10 = vld [vmem:[%s331_s17 + $0x30] sm:$0xff] }
  0x16   : > { %v2064_v11 = vld [vmem:[%s331_s17 + $0x48] sm:$0xff]  ;;  %v2066_v12 = vld [vmem:[%s331_s17 + $0x40] sm:$0xff] }
  0x18   : > { %374 = vrot.lane.b32.xlu1 %v2040_v5, %s1931_s18  ;;  %370 = vrot.lane.b32.xlu0 %v2042_v6, %s1931_s18 }
  0x1c   : > { %378 = vrot.lane.b32.xlu1 %v2048_v7, %s1931_s18  ;;  %376 = vrot.lane.b32.xlu0 %v2050_v8, %s1931_s18 }
  0x20   : > { %382 = vrot.lane.b32.xlu1 %v2056_v9, %s1931_s18  ;;  %380 = vrot.lane.b32.xlu0 %v2058_v10, %s1931_s18 }
  0x24   : > { %386 = vrot.lane.b32.xlu1 %v2064_v11, %s1931_s18  ;;  %384 = vrot.lane.b32.xlu0 %v2066_v12, %s1931_s18 }
  0x86   : > { %v373_v13 = vpop.permute.xlu1 %372  ;;  %v369_v14 = vpop.permute.xlu0 %368 }
  0x87   : > { %401 = vst.msk [vmem:[#allocation2 + $0x10] sm:$0xff] %vm398_vm1, %v373_v13  ;;  %399 = vst.msk [vmem:[#allocation2] sm:$0xff] %vm398_vm1, %v369_v14 }
  0x8a   : > { %v375_v15 = vpop.permute.xlu1 %374  ;;  %v371_v16 = vpop.permute.xlu0 %370 }
  0x8b   : > { %402 = vst.msk [vmem:[#allocation2 + $0x18] sm:$0xff] %vm398_vm1, %v375_v15  ;;  %400 = vst.msk [vmem:[#allocation2 + $0x8] sm:$0xff] %vm398_vm1, %v371_v16 }
  0x8e   : > { %v379_v17 = vpop.permute.xlu1 %378  ;;  %v377_v18 = vpop.permute.xlu0 %376  ;;  %v421_v19 = vld [vmem:[#allocation2 + $0x10] sm:$0xff]  ;;  %v419_v21 = vld [vmem:[#allocation2] sm:$0xff] }
  0x8f   : > { %404 = vst.msk [vmem:[#allocation2 + $0x28] sm:$0xff] %vm398_vm1, %v379_v17  ;;  %403 = vst.msk [vmem:[#allocation2 + $0x20] sm:$0xff] %vm398_vm1, %v377_v18 }
  0x92   : > { %v422_v20 = vld [vmem:[#allocation2 + $0x18] sm:$0xff]  ;;  %v420_v22 = vld [vmem:[#allocation2 + $0x8] sm:$0xff]  ;;  %v383_v23 = vpop.permute.xlu1 %382  ;;  %v381_v24 = vpop.permute.xlu0 %380 }
  0x93   : > { %v1875_v25 = vpack.i.bf16 %v422_v20, %v421_v19  ;;  %v1870_v26 = vpack.i.bf16 %v420_v22, %v419_v21  ;;  %406 = vst.msk [vmem:[#allocation2 + $0x38] sm:$0xff] %vm398_vm1, %v383_v23  ;;  %405 = vst.msk [vmem:[#allocation2 + $0x30] sm:$0xff] %vm398_vm1, %v381_v24  ;;  %v2080_v27 = vpack.c.bf16 %v420_v22, %v419_v21  ;;  %v430_v22 = vld [vmem:[%s2441_s2 + $0x8] sm:$0xff]  ;;  %v431_v23 = vld [vmem:[%s2441_s2 + $0x10] sm:$0xff] }
  0x94   : > { %v2082_v28 = vpack.c.bf16 %v422_v20, %v421_v19  ;;  %v432_v24 = vld [vmem:[%s2441_s2 + $0x18] sm:$0xff] }
  0x95   : > { %1876 = vrot.lane.b32.xlu1 %v1875_v25, %s1932_s19  ;;  %1871 = vrot.lane.b32.xlu0 %v1870_v26, %s1932_s19  ;;  %v433_v25 = vld [vmem:[%s2441_s2 + $0x20] sm:$0xff]  ;;  %v434_v26 = vld [vmem:[%s2441_s2 + $0x28] sm:$0xff] }
  0x96   : > { %v387_v29 = vpop.permute.xlu1 %386  ;;  %v385_v30 = vpop.permute.xlu0 %384  ;;  %v423_v31 = vld [vmem:[#allocation2 + $0x20] sm:$0xff]  ;;  %v424_v32 = vld [vmem:[#allocation2 + $0x28] sm:$0xff] }
  0x97   : > { %408 = vst.msk [vmem:[#allocation2 + $0x48] sm:$0xff] %vm398_vm1, %v387_v29  ;;  %407 = vst.msk [vmem:[#allocation2 + $0x40] sm:$0xff] %vm398_vm1, %v385_v30  ;;  %v1880_v33 = vpack.i.bf16 %v424_v32, %v423_v31  ;;  %v2088_v34 = vpack.c.bf16 %v424_v32, %v423_v31  ;;  %v437_v29 = vld [vmem:[%s2441_s2 + $0x40] sm:$0xff]  ;;  %v438_v30 = vld [vmem:[%s2441_s2 + $0x48] sm:$0xff] }
  0x98   : > { %v409_v31 = vld [vmem:[%s2440_s1] sm:$0xff]  ;;  %v410_v32 = vld [vmem:[%s2440_s1 + $0x8] sm:$0xff] }
  0x99   : > { %1881 = vrot.lane.b32.xlu0 %v1880_v33, %s1932_s19  ;;  %v411_v33 = vld [vmem:[%s2440_s1 + $0x10] sm:$0xff] }
  0x9a   : > { %v425_v35 = vld [vmem:[#allocation2 + $0x30] sm:$0xff]  ;;  %v426_v36 = vld [vmem:[#allocation2 + $0x38] sm:$0xff] }
  0x9b   : > { %v1885_v37 = vpack.i.bf16 %v426_v36, %v425_v35  ;;  %v2091_v38 = vpack.c.bf16 %v426_v36, %v425_v35  ;;  %v413_v35 = vld [vmem:[%s2440_s1 + $0x20] sm:$0xff]  ;;  %v414_v36 = vld [vmem:[%s2440_s1 + $0x28] sm:$0xff] }
  0x9d   : > { %1886 = vrot.lane.b32.xlu1 %v1885_v37, %s1932_s19  ;;  %v415_v37 = vld [vmem:[%s2440_s1 + $0x30] sm:$0xff] }
  0x9e   : > { %v427_v39 = vld [vmem:[#allocation2 + $0x40] sm:$0xff]  ;;  %v428_v40 = vld [vmem:[#allocation2 + $0x48] sm:$0xff] }
  0x9f   : > { %v1890_v42 = vpack.i.bf16 %v428_v40, %v427_v39  ;;  %v2098_v43 = vpack.c.bf16 %v428_v40, %v427_v39  ;;  %v417_v39 = vld [vmem:[%s2440_s1 + $0x40] sm:$0xff]  ;;  %v418_v40 = vld [vmem:[%s2440_s1 + $0x48] sm:$0xff] }
  0xa1   : > { %1891 = vrot.lane.b32.xlu0 %v1890_v42, %s1932_s19  ;;  %782 = vperm.xlu1 %1895, %v770_v44  }
  0xa5   : > { %787 = vperm.xlu0 %1896, %v771_v46   ;;  %857 = vperm.xlu1 %1895, %v1513_v47  }
  0xa9   : > { %797 = vperm.xlu0 %1896, %v773_v48   ;;  %792 = vperm.xlu1 %1895, %v772_v49  }
  0xad   : > { %807 = vperm.xlu0 %1896, %v775_v50   ;;  %802 = vperm.xlu1 %1895, %v774_v51  }
  0xb1   : > { %817 = vperm.xlu0 %1896, %v777_v52   ;;  %812 = vperm.xlu1 %1895, %v776_v53  }
  0xb5   : > { %827 = vperm.xlu0 %1896, %v779_v54   ;;  %822 = vperm.xlu1 %1895, %v778_v55  }
 0x107   : > { %v1877_v56 = vpop.permute.xlu1 %1876  ;;  %v1872_v57 = vpop.permute.xlu0 %1871 }
 0x108   : > { %v1879_v58 = vunpack.i.h.bf16 %v1877_v56  ;;  %v1878_v59 = vunpack.i.l.bf16 %v1877_v56  ;;  %v1874_v60 = vunpack.i.h.bf16 %v1872_v57  ;;  %v1873_v61 = vunpack.i.l.bf16 %v1872_v57 }
 0x10a   : > { %v1757_v62 = vpack.c.bf16 %v1874_v60, %v1873_v61  ;;  %v1761_v0 = vpack.c.bf16 %v1879_v58, %v1878_v59 }
 0x10b   : > { %v1882_v63 = vpop.permute.xlu0 %1881 }
 0x10c   : > { %1758 = vmatprep.subr.bf16.mxu0 %v1757_v62  ;;  %v1884_v1 = vunpack.i.h.bf16 %v1882_v63  ;;  %v1883_v2 = vunpack.i.l.bf16 %v1882_v63 }
 0x10d   : > { %1760 = vmatpush3.bf16.msra.mxu0 %v1757_v62 }
 0x10e   : > { %1762 = vmatprep.subr.bf16.mxu0 %v1761_v0  ;;  %v1765_v13 = vpack.c.bf16 %v1884_v1, %v1883_v2 }
 0x10f   : > { %v1887_v14 = vpop.permute.xlu1 %1886 }
 0x110   : > { %v1889_v15 = vunpack.i.h.bf16 %v1887_v14  ;;  %v1888_v16 = vunpack.i.l.bf16 %v1887_v14 }
 0x111   : > { %1764 = vmatpush3.bf16.msra.mxu0 %v1761_v0 }
 0x112   : > { %v1769_v17 = vpack.c.bf16 %v1889_v15, %v1888_v16  ;;  %1766 = vmatprep.subr.bf16.mxu0 %v1765_v13 }
 0x113   : > { %v1892_v18 = vpop.permute.xlu0 %1891 }
 0x114   : > { %v1894_v19 = vunpack.i.h.bf16 %v1892_v18  ;;  %v1893_v20 = vunpack.i.l.bf16 %v1892_v18 }
 0x115   : > { %1768 = vmatpush3.bf16.msra.mxu0 %v1765_v13 }
 0x116   : > { %v1773_v21 = vpack.c.bf16 %v1894_v19, %v1893_v20  ;;  %1770 = vmatprep.subr.bf16.mxu0 %v1769_v17 }
 0x119   : > { %1772 = vmatpush3.bf16.msra.mxu0 %v1769_v17 }
 0x11a   : > { %1774 = vmatprep.subr.bf16.mxu0 %v1773_v21 }
 0x11d   : > { %1776 = vmatpush3.bf16.msra.mxu0 %v1773_v21 }
 0x11e   : > { %1778 = vmatprep.subr.bf16.mxu0 %v2080_v27 }
 0x120   : > { %1638 = vmatmul.mubr.msk.f32.vlgmr.msra.gmra.mrb[0].mxu0 %vm479_vm2, %v430_v22  ;;  %v783_v41 = vpop.permute.xlu1 %782 }
 0x121   : > { %1780 = vmatpush3.bf16.msra.mxu0 %v2080_v27  ;;  %1640 = vmatprep.mubr.msk.f32.mxu0 %vm479_vm2, %v431_v23  ;;  %v435_v27 = vld [vmem:[%s2441_s2 + $0x30] sm:$0xff] }
 0x122   : > { %1782 = vmatprep.subr.bf16.mxu0 %v2082_v28 }
 0x124   : > { %1641 = vmatmul.mubr.msk.f32.gmra.mrb[2].mxu0 %vm479_vm2, %v432_v24  ;;  %v788_v42 = vpop.permute.xlu0 %787 }
 0x125   : > { %1784 = vmatpush3.bf16.msra.mxu0 %v2082_v28  ;;  %1643 = vmatprep.mubr.msk.f32.mxu0 %vm479_vm2, %v433_v25  ;;  %v436_v28 = vld [vmem:[%s2441_s2 + $0x38] sm:$0xff] }
 0x126   : > { %1786 = vmatprep.subr.bf16.mxu0 %v2088_v34 }
 0x128   : > { %1644 = vmatmul.mubr.msk.f32.gmra.mrb[4].mxu0 %vm479_vm2, %v434_v26  ;;  %v798_v44 = vpop.permute.xlu0 %797 }
 0x129   : > { %1788 = vmatpush3.bf16.msra.mxu0 %v2088_v34  ;;  %1646 = vmatprep.mubr.msk.f32.mxu0 %vm479_vm2, %v435_v27  ;;  %v412_v34 = vld [vmem:[%s2440_s1 + $0x18] sm:$0xff] }
 0x12a   : > { %1790 = vmatprep.subr.bf16.mxu0 %v2091_v38 }
 0x12c   : > { %1647 = vmatmul.mubr.msk.f32.gmra.mrb[6].mxu0 %vm479_vm2, %v436_v28  ;;  %v808_v51 = vpop.permute.xlu0 %807 }
 0x12d   : > { %1792 = vmatpush3.bf16.msra.mxu0 %v2091_v38  ;;  %1649 = vmatprep.mubr.msk.f32.mxu0 %vm479_vm2, %v437_v29  ;;  %v416_v38 = vld [vmem:[%s2440_s1 + $0x38] sm:$0xff] }
 0x12e   : > { %1794 = vmatprep.subr.bf16.mxu0 %v2098_v43 }
 0x130   : > { %1650 = vmatmul.mubr.msk.f32.gmra.mrb[8].mxu0 %vm479_vm2, %v438_v30  ;;  %v818_v2 = vpop.permute.xlu0 %817 }
 0x131   : > { %1796 = vmatpush3.bf16.msra.mxu0 %v2098_v43  ;;  %1672 = vmatprep.mubr.msk.f32.mxu0 %vm479_vm2, %v409_v31  ;;  %v2217_v43 = vpop.permute.xlu1 %857 }
 0x134   : > { %1673 = vmatmul.mubr.msk.f32.vlgmr.msra.gmra.mrb[0].mxu0 %vm479_vm2, %v410_v32  ;;  %v828_v25 = vpop.permute.xlu0 %827 }
 0x135   : > { %1675 = vmatprep.mubr.msk.f32.mxu0 %vm479_vm2, %v411_v33  ;;  %v793_v45 = vpop.permute.xlu1 %792 }
 0x138   : > { %1676 = vmatmul.mubr.msk.f32.gmra.mrb[2].mxu0 %vm479_vm2, %v412_v34 }
 0x139   : > { %1678 = vmatprep.mubr.msk.f32.mxu0 %vm479_vm2, %v413_v35  ;;  %v803_v54 = vpop.permute.xlu1 %802 }
 0x13c   : > { %1679 = vmatmul.mubr.msk.f32.gmra.mrb[4].mxu0 %vm479_vm2, %v414_v36 }
 0x13d   : > { %1681 = vmatprep.mubr.msk.f32.mxu0 %vm479_vm2, %v415_v37  ;;  %v813_v15 = vpop.permute.xlu1 %812 }
 0x140   : > { %1682 = vmatmul.mubr.msk.f32.gmra.mrb[6].mxu0 %vm479_vm2, %v416_v38 }
 0x141   : > { %1684 = vmatprep.mubr.msk.f32.mxu0 %vm479_vm2, %v417_v39  ;;  %v823_v28 = vpop.permute.xlu1 %822 }
 0x144   : > { %1685 = vmatmul.mubr.msk.f32.gmra.mrb[8].mxu0 %vm479_vm2, %v418_v40 }
 0x207   : > { %v1674_v46 = vpop.f32.mrb[0].mxu0 }
 0x208   : > { %v831_v47 = vadd.f32 %v1674_v46, %v788_v42  ;;  %v721_v48 = vpop.f32.mrb[1].mxu0 }
 0x209   : > { %v830_v49 = vadd.f32 %v783_v41, %v721_v48 }
 0x20a   : > { %v861_v50 = vmul.f32 %v2217_v43, %v831_v47  ;;  %vm841_vm3 = vcmp.gt.f32.partialorder %v831_v47, 0.0 }
 0x20b   : > { %v860_v52 = vmul.f32 %v2217_v43, %v830_v49  ;;  %v1677_v53 = vpop.f32.mrb[2].mxu0  ;;  %vm840_vm4 = vcmp.gt.f32.partialorder %v830_v49, 0.0 }
 0x20c   : > { %v833_v55 = vadd.f32 %v1677_v53, %v798_v44  ;;  %v731_v56 = vpop.f32.mrb[3].mxu0  ;;  %v871_v57 = vsel %vm841_vm3, %v831_v47, %v861_v50 }
 0x20d   : > { %v832_v58 = vadd.f32 %v793_v45, %v731_v56  ;;  %902 = vrot.lane.b32.xlu0 %v871_v57, %s1931_s18  ;;  %v870_v59 = vsel %vm840_vm4, %v830_v49, %v860_v52 }
 0x20e   : > { %v863_v60 = vmul.f32 %v2217_v43, %v833_v55  ;;  %900 = vrot.lane.b32.xlu1 %v870_v59, %s1931_s18  ;;  %vm843_vm5 = vcmp.gt.f32.partialorder %v833_v55, 0.0 }
 0x20f   : > { %v862_v61 = vmul.f32 %v2217_v43, %v832_v58  ;;  %v1680_v62 = vpop.f32.mrb[4].mxu0  ;;  %vm842_vm6 = vcmp.gt.f32.partialorder %v832_v58, 0.0 }
 0x210   : > { %v835_v63 = vadd.f32 %v1680_v62, %v808_v51  ;;  %v741_v0 = vpop.f32.mrb[5].mxu0  ;;  %v873_v1 = vsel %vm843_vm5, %v833_v55, %v863_v60  ;;  %v960_v62 = vld [vmem:[%s2445_s6] sm:$0xff] }
 0x211   : > { %v834_v13 = vadd.f32 %v803_v54, %v741_v0  ;;  %906 = vrot.lane.b32.xlu0 %v873_v1, %s1931_s18  ;;  %v872_v14 = vsel %vm842_vm6, %v832_v58, %v862_v61  ;;  %1707 = vmatprep.mubr.msk.f32.mxu1 %vm479_vm2, %v960_v62  ;;  %v947_v62 = vld [vmem:[%s2444_s5 + $0x38] sm:$0xff] }
 0x212   : > { %v865_v16 = vmul.f32 %v2217_v43, %v835_v63  ;;  %904 = vrot.lane.b32.xlu1 %v872_v14, %s1931_s18  ;;  %vm845_vm7 = vcmp.gt.f32.partialorder %v835_v63, 0.0 }
 0x213   : > { %v864_v17 = vmul.f32 %v2217_v43, %v834_v13  ;;  %v1683_v18 = vpop.f32.mrb[6].mxu0  ;;  %vm844_vm8 = vcmp.gt.f32.partialorder %v834_v13, 0.0 }
 0x214   : > { %v837_v19 = vadd.f32 %v1683_v18, %v818_v2  ;;  %v751_v20 = vpop.f32.mrb[7].mxu0  ;;  %v875_v21 = vsel %vm845_vm7, %v835_v63, %v865_v16  ;;  %v1300_v2 = vld [vmem:[%s2446_s7] sm:$0xff]  ;;  %v1302_v16 = vld [vmem:[%s2446_s7 + $0x10] sm:$0xff] }
 0x215   : > { %v836_v22 = vadd.f32 %v813_v15, %v751_v20  ;;  %910 = vrot.lane.b32.xlu0 %v875_v21, %s1931_s18  ;;  %v874_v23 = vsel %vm844_vm8, %v834_v13, %v864_v17  ;;  %v1301_v17 = vld [vmem:[%s2446_s7 + $0x8] sm:$0xff]  ;;  %v1304_v18 = vld [vmem:[%s2446_s7 + $0x20] sm:$0xff]  ;;  %v1306_v20 = vld [vmem:[%s2446_s7 + $0x30] sm:$0xff] }
 0x216   : > { %v867_v24 = vmul.f32 %v2217_v43, %v837_v19  ;;  %908 = vrot.lane.b32.xlu1 %v874_v23, %s1931_s18  ;;  %vm847_vm9 = vcmp.gt.f32.partialorder %v837_v19, 0.0  ;;  %v1305_v21 = vld [vmem:[%s2446_s7 + $0x28] sm:$0xff]  ;;  %v1307_v23 = vld [vmem:[%s2446_s7 + $0x38] sm:$0xff] }
 0x217   : > { %v866_v26 = vmul.f32 %v2217_v43, %v836_v22  ;;  %v1686_v27 = vpop.f32.mrb[8].mxu0  ;;  %vm846_vm10 = vcmp.gt.f32.partialorder %v836_v22, 0.0 }
 0x218   : > { %v839_v29 = vadd.f32 %v1686_v27, %v828_v25  ;;  %v761_v30 = vpop.f32.mrb[9].mxu0  ;;  %v877_v31 = vsel %vm847_vm9, %v837_v19, %v867_v24  ;;  %v1303_v19 = vld [vmem:[%s2446_s7 + $0x18] sm:$0xff]  ;;  %v1534_v24 = vld [vmem:[#allocation5] ss:$0 sm:$0xff]  ;;  %v1309_v25 = vld [vmem:[%s2446_s7 + $0x48] sm:$0xff] }
 0x219   : > { %v838_v32 = vadd.f32 %v823_v28, %v761_v30  ;;  %914 = vrot.lane.b32.xlu0 %v877_v31, %s1931_s18  ;;  %v876_v33 = vsel %vm846_vm10, %v836_v22, %v866_v26  ;;  %v1308_v22 = vld [vmem:[%s2446_s7 + $0x40] sm:$0xff] }
 0x21a   : > { %v869_v34 = vmul.f32 %v2217_v43, %v839_v29  ;;  %912 = vrot.lane.b32.xlu1 %v876_v33, %s1931_s18  ;;  %vm849_vm11 = vcmp.gt.f32.partialorder %v839_v29, 0.0 }
 0x21b   : > { %v868_v35 = vmul.f32 %v2217_v43, %v838_v32  ;;  %vm848_vm12 = vcmp.gt.f32.partialorder %v838_v32, 0.0 }
 0x21c   : > { %v879_v36 = vsel %vm849_vm11, %v839_v29, %v869_v34 }
 0x21d   : > { %918 = vrot.lane.b32.xlu0 %v879_v36, %s1931_s18  ;;  %v878_v37 = vsel %vm848_vm12, %v838_v32, %v868_v35 }
 0x21e   : > { %916 = vrot.lane.b32.xlu1 %v878_v37, %s1931_s18 }
 0x27f   : > { %v903_v38 = vpop.permute.xlu0 %902 }
 0x280   : > { %931 = vst.msk [vmem:[#allocation3 + $0x8] sm:$0xff] %vm398_vm1, %v903_v38  ;;  %v901_v39 = vpop.permute.xlu1 %900 }
 0x281   : > { %930 = vst.msk [vmem:[#allocation3] sm:$0xff] %vm398_vm1, %v901_v39 }
 0x283   : > { %v907_v40 = vpop.permute.xlu0 %906 }
 0x284   : > { %933 = vst.msk [vmem:[#allocation3 + $0x18] sm:$0xff] %vm398_vm1, %v907_v40  ;;  %v905_v41 = vpop.permute.xlu1 %904 }
 0x285   : > { %932 = vst.msk [vmem:[#allocation3 + $0x10] sm:$0xff] %vm398_vm1, %v905_v41 }
 0x287   : > { %v911_v42 = vpop.permute.xlu0 %910  ;;  %v951_v43 = vld [vmem:[#allocation3 + $0x8] sm:$0xff] }
 0x288   : > { %935 = vst.msk [vmem:[#allocation3 + $0x28] sm:$0xff] %vm398_vm1, %v911_v42  ;;  %v909_v44 = vpop.permute.xlu1 %908  ;;  %v950_v45 = vld [vmem:[#allocation3] sm:$0xff] }
 0x289   : > { %934 = vst.msk [vmem:[#allocation3 + $0x20] sm:$0xff] %vm398_vm1, %v909_v44  ;;  %v1897_v46 = vpack.i.bf16 %v951_v43, %v950_v45  ;;  %v2245_v47 = vpack.c.bf16 %v951_v43, %v950_v45 }
 0x28b   : > { %v915_v48 = vpop.permute.xlu0 %914  ;;  %1898 = vrot.lane.b32.xlu1 %v1897_v46, %s1932_s19  ;;  %v953_v49 = vld [vmem:[#allocation3 + $0x18] sm:$0xff] }
 0x28c   : > { %937 = vst.msk [vmem:[#allocation3 + $0x38] sm:$0xff] %vm398_vm1, %v915_v48  ;;  %v913_v50 = vpop.permute.xlu1 %912  ;;  %v952_v51 = vld [vmem:[#allocation3 + $0x10] sm:$0xff]  ;;  %v961_v46 = vld [vmem:[%s2445_s6 + $0x8] sm:$0xff]  ;;  %v962_v48 = vld [vmem:[%s2445_s6 + $0x10] sm:$0xff] }
 0x28d   : > { %936 = vst.msk [vmem:[#allocation3 + $0x30] sm:$0xff] %vm398_vm1, %v913_v50  ;;  %v1902_v52 = vpack.i.bf16 %v953_v49, %v952_v51  ;;  %v2250_v53 = vpack.c.bf16 %v953_v49, %v952_v51  ;;  %v963_v49 = vld [vmem:[%s2445_s6 + $0x18] sm:$0xff]  ;;  %v964_v50 = vld [vmem:[%s2445_s6 + $0x20] sm:$0xff]  ;;  %v966_v51 = vld [vmem:[%s2445_s6 + $0x30] sm:$0xff] }
 0x28f   : > { %1903 = vrot.lane.b32.xlu0 %v1902_v52, %s1932_s19  ;;  %v919_v54 = vpop.permute.xlu0 %918  ;;  %v955_v55 = vld [vmem:[#allocation3 + $0x28] sm:$0xff] }
 0x290   : > { %939 = vst.msk [vmem:[#allocation3 + $0x48] sm:$0xff] %vm398_vm1, %v919_v54  ;;  %v917_v56 = vpop.permute.xlu1 %916  ;;  %v954_v57 = vld [vmem:[#allocation3 + $0x20] sm:$0xff]  ;;  %v967_v52 = vld [vmem:[%s2445_s6 + $0x38] sm:$0xff]  ;;  %v969_v54 = vld [vmem:[%s2445_s6 + $0x48] sm:$0xff] }
 0x291   : > { %938 = vst.msk [vmem:[#allocation3 + $0x40] sm:$0xff] %vm398_vm1, %v917_v56  ;;  %v1907_v58 = vpack.i.bf16 %v955_v55, %v954_v57  ;;  %v2255_v59 = vpack.c.bf16 %v955_v55, %v954_v57  ;;  %v940_v55 = vld [vmem:[%s2444_s5] sm:$0xff]  ;;  %v941_v56 = vld [vmem:[%s2444_s5 + $0x8] sm:$0xff]  ;;  %v942_v57 = vld [vmem:[%s2444_s5 + $0x10] sm:$0xff] }
 0x293   : > { %1908 = vrot.lane.b32.xlu1 %v1907_v58, %s1932_s19  ;;  %v957_v60 = vld [vmem:[#allocation3 + $0x38] sm:$0xff]  ;;  %v943_v58 = vld [vmem:[%s2444_s5 + $0x18] sm:$0xff] }
 0x294   : > { %v956_v61 = vld [vmem:[#allocation3 + $0x30] sm:$0xff] }
 0x295   : > { %v1912_v63 = vpack.i.bf16 %v957_v60, %v956_v61  ;;  %v2262_v0 = vpack.c.bf16 %v957_v60, %v956_v61  ;;  %v945_v60 = vld [vmem:[%s2444_s5 + $0x28] sm:$0xff]  ;;  %v946_v61 = vld [vmem:[%s2444_s5 + $0x30] sm:$0xff] }
 0x297   : > { %1913 = vrot.lane.b32.xlu0 %v1912_v63, %s1932_s19  ;;  %v959_v1 = vld [vmem:[#allocation3 + $0x48] sm:$0xff]  ;;  %v948_v63 = vld [vmem:[%s2444_s5 + $0x40] sm:$0xff] }
 0x298   : > { %v958_v13 = vld [vmem:[#allocation3 + $0x40] sm:$0xff] }
 0x299   : > { %v1917_v14 = vpack.i.bf16 %v959_v1, %v958_v13  ;;  %v2268_v15 = vpack.c.bf16 %v959_v1, %v958_v13 }
 0x29b   : > { %1312 = vperm.xlu0 %1896, %v1300_v2   ;;  %1918 = vrot.lane.b32.xlu1 %v1917_v14, %s1932_s19 }
 0x29f   : > { %1322 = vperm.xlu0 %1896, %v1302_v16   ;;  %1317 = vperm.xlu1 %1895, %v1301_v17  }
 0x2a3   : > { %1332 = vperm.xlu0 %1896, %v1304_v18   ;;  %1327 = vperm.xlu1 %1895, %v1303_v19  }
 0x2a7   : > { %1342 = vperm.xlu0 %1896, %v1306_v20   ;;  %1337 = vperm.xlu1 %1895, %v1305_v21  }
 0x2ab   : > { %1352 = vperm.xlu0 %1896, %v1308_v22   ;;  %1347 = vperm.xlu1 %1895, %v1307_v23  }
 0x2af   : > { %1387 = vperm.xlu0 %1896, %v1534_v24   ;;  %1357 = vperm.xlu1 %1895, %v1309_v25  }
 0x2fd   : > { %v1899_v26 = vpop.permute.xlu1 %1898 }
 0x2fe   : > { %v1901_v27 = vunpack.i.h.bf16 %v1899_v26  ;;  %v1900_v28 = vunpack.i.l.bf16 %v1899_v26 }
 0x300   : > { %v1797_v29 = vpack.c.bf16 %v1901_v27, %v1900_v28 }
 0x301   : > { %v1904_v30 = vpop.permute.xlu0 %1903 }
 0x302   : > { %v1906_v31 = vunpack.i.h.bf16 %v1904_v30  ;;  %v1905_v32 = vunpack.i.l.bf16 %v1904_v30  ;;  %1798 = vmatprep.subr.bf16.mxu1 %v1797_v29 }
 0x303   : > { %1800 = vmatpush3.bf16.msra.mxu1 %v1797_v29 }
 0x304   : > { %v1801_v33 = vpack.c.bf16 %v1906_v31, %v1905_v32 }
 0x305   : > { %v1909_v34 = vpop.permute.xlu1 %1908 }
 0x306   : > { %v1911_v35 = vunpack.i.h.bf16 %v1909_v34  ;;  %v1910_v36 = vunpack.i.l.bf16 %v1909_v34  ;;  %1802 = vmatprep.subr.bf16.mxu1 %v1801_v33 }
 0x307   : > { %1804 = vmatpush3.bf16.msra.mxu1 %v1801_v33 }
 0x308   : > { %v1805_v37 = vpack.c.bf16 %v1911_v35, %v1910_v36 }
 0x309   : > { %v1914_v38 = vpop.permute.xlu0 %1913 }
 0x30a   : > { %v1916_v39 = vunpack.i.h.bf16 %v1914_v38  ;;  %v1915_v40 = vunpack.i.l.bf16 %v1914_v38  ;;  %1806 = vmatprep.subr.bf16.mxu1 %v1805_v37 }
 0x30b   : > { %1808 = vmatpush3.bf16.msra.mxu1 %v1805_v37 }
 0x30c   : > { %v1809_v41 = vpack.c.bf16 %v1916_v39, %v1915_v40 }
 0x30d   : > { %v1919_v42 = vpop.permute.xlu1 %1918 }
 0x30e   : > { %v1921_v43 = vunpack.i.h.bf16 %v1919_v42  ;;  %v1920_v44 = vunpack.i.l.bf16 %v1919_v42  ;;  %1810 = vmatprep.subr.bf16.mxu1 %v1809_v41 }
 0x30f   : > { %1812 = vmatpush3.bf16.msra.mxu1 %v1809_v41 }
 0x310   : > { %v1813_v45 = vpack.c.bf16 %v1921_v43, %v1920_v44 }
 0x312   : > { %1814 = vmatprep.subr.bf16.mxu1 %v1813_v45 }
 0x313   : > { %1816 = vmatpush3.bf16.msra.mxu1 %v1813_v45 }
 0x314   : > { %1818 = vmatprep.subr.bf16.mxu1 %v2245_v47 }
 0x316   : > { %1708 = vmatmul.mubr.msk.f32.vlgmr.msra.gmra.mrb[0].mxu1 %vm479_vm2, %v961_v46 }
 0x317   : > { %1820 = vmatpush3.bf16.msra.mxu1 %v2245_v47  ;;  %1710 = vmatprep.mubr.msk.f32.mxu1 %vm479_vm2, %v962_v48  ;;  %v965_v47 = vld [vmem:[%s2445_s6 + $0x28] sm:$0xff] }
 0x318   : > { %1822 = vmatprep.subr.bf16.mxu1 %v2250_v53 }
 0x31a   : > { %1711 = vmatmul.mubr.msk.f32.gmra.mrb[2].mxu1 %vm479_vm2, %v963_v49  ;;  %v1313_v1 = vpop.permute.xlu0 %1312 }
 0x31b   : > { %1824 = vmatpush3.bf16.msra.mxu1 %v2250_v53  ;;  %1713 = vmatprep.mubr.msk.f32.mxu1 %vm479_vm2, %v964_v50  ;;  %v968_v53 = vld [vmem:[%s2445_s6 + $0x40] sm:$0xff] }
 0x31c   : > { %1826 = vmatprep.subr.bf16.mxu1 %v2255_v59 }
 0x31e   : > { %1714 = vmatmul.mubr.msk.f32.gmra.mrb[4].mxu1 %vm479_vm2, %v965_v47  ;;  %v1323_v2 = vpop.permute.xlu0 %1322 }
 0x31f   : > { %1828 = vmatpush3.bf16.msra.mxu1 %v2255_v59  ;;  %1716 = vmatprep.mubr.msk.f32.mxu1 %vm479_vm2, %v966_v51  ;;  %v944_v59 = vld [vmem:[%s2444_s5 + $0x20] sm:$0xff] }
 0x320   : > { %1830 = vmatprep.subr.bf16.mxu1 %v2262_v0 }
 0x322   : > { %1717 = vmatmul.mubr.msk.f32.gmra.mrb[6].mxu1 %vm479_vm2, %v967_v52  ;;  %v1333_v13 = vpop.permute.xlu0 %1332 }
 0x323   : > { %1832 = vmatpush3.bf16.msra.mxu1 %v2262_v0  ;;  %1719 = vmatprep.mubr.msk.f32.mxu1 %vm479_vm2, %v968_v53  ;;  %v949_v0 = vld [vmem:[%s2444_s5 + $0x48] sm:$0xff] }
 0x324   : > { %1834 = vmatprep.subr.bf16.mxu1 %v2268_v15 }
 0x326   : > { %1720 = vmatmul.mubr.msk.f32.gmra.mrb[8].mxu1 %vm479_vm2, %v969_v54  ;;  %v1343_v14 = vpop.permute.xlu0 %1342 }
 0x327   : > { %1836 = vmatpush3.bf16.msra.mxu1 %v2268_v15  ;;  %1742 = vmatprep.mubr.msk.f32.mxu1 %vm479_vm2, %v940_v55  ;;  %v1318_v15 = vpop.permute.xlu1 %1317 }
 0x32a   : > { %1743 = vmatmul.mubr.msk.f32.vlgmr.msra.gmra.mrb[0].mxu1 %vm479_vm2, %v941_v56  ;;  %v2384_v16 = vpop.permute.xlu0 %1352 }
 0x32b   : > { %1745 = vmatprep.mubr.msk.f32.mxu1 %vm479_vm2, %v942_v57  ;;  %v1328_v17 = vpop.permute.xlu1 %1327 }
 0x32e   : > { %1746 = vmatmul.mubr.msk.f32.gmra.mrb[2].mxu1 %vm479_vm2, %v943_v58  ;;  %v2386_v21 = vpop.permute.xlu0 %1387 }
 0x32f   : > { %1748 = vmatprep.mubr.msk.f32.mxu1 %vm479_vm2, %v944_v59  ;;  %v1338_v24 = vpop.permute.xlu1 %1337 }
 0x332   : > { %1749 = vmatmul.mubr.msk.f32.gmra.mrb[4].mxu1 %vm479_vm2, %v945_v60 }
 0x333   : > { %1751 = vmatprep.mubr.msk.f32.mxu1 %vm479_vm2, %v946_v61  ;;  %v1348_v39 = vpop.permute.xlu1 %1347 }
 0x336   : > { %1752 = vmatmul.mubr.msk.f32.gmra.mrb[6].mxu1 %vm479_vm2, %v947_v62 }
 0x337   : > { %1754 = vmatprep.mubr.msk.f32.mxu1 %vm479_vm2, %v948_v63  ;;  %v1358_v52 = vpop.permute.xlu1 %1357 }
 0x33a   : > { %1755 = vmatmul.mubr.msk.f32.gmra.mrb[8].mxu1 %vm479_vm2, %v949_v0 }
 0x3fd   : > { %v1744_v18 = vpop.f32.mrb[0].mxu1 }
 0x3fe   : > { %v1361_v19 = vadd.f32 %v1744_v18, %v1318_v15  ;;  %v1251_v20 = vpop.f32.mrb[1].mxu1 }
 0x3ff   : > { %v1360_v22 = vadd.f32 %v1313_v1, %v1251_v20 }
 0x400   : > { %vm1371_vm13 = vcmp.gt.f32.partialorder %v1361_v19, 0.0  ;;  %v1391_v23 = vmul.f32 %v2386_v21, %v1361_v19 }
 0x401   : > { %vm1370_vm14 = vcmp.gt.f32.partialorder %v1360_v22, 0.0  ;;  %v1390_v25 = vmul.f32 %v2386_v21, %v1360_v22  ;;  %v1747_v26 = vpop.f32.mrb[2].mxu1 }
 0x402   : > { %v1401_v27 = vsel %vm1371_vm13, %v1361_v19, %v1391_v23  ;;  %v1363_v28 = vadd.f32 %v1747_v26, %v1328_v17  ;;  %v1261_v29 = vpop.f32.mrb[3].mxu1 }
 0x403   : > { %v1411_v30 = vadd.f32 %v1401_v27, %v2042_v6  ;;  %v1400_v31 = vsel %vm1370_vm14, %v1360_v22, %v1390_v25  ;;  %v1362_v32 = vadd.f32 %v1323_v2, %v1261_v29 }
 0x404   : > { %v1410_v33 = vadd.f32 %v1400_v31, %v2034_v4  ;;  %vm1373_vm0 = vcmp.gt.f32.partialorder %v1363_v28, 0.0  ;;  %v1393_v34 = vmul.f32 %v2386_v21, %v1363_v28 }
 0x405   : > { %1422 = vst.msk [vmem:[%s2395_s27 + $0x8] sm:$0xff] %vm1420_vm15, %v1411_v30  ;;  %vm1372_vm1 = vcmp.gt.f32.partialorder %v1362_v32, 0.0  ;;  %v1392_v35 = vmul.f32 %v2386_v21, %v1362_v32  ;;  %v1750_v36 = vpop.f32.mrb[4].mxu1 }
 0x406   : > { %1421 = vst.msk [vmem:[%s2395_s27] sm:$0xff] %vm1420_vm15, %v1410_v33  ;;  %v1403_v37 = vsel %vm1373_vm0, %v1363_v28, %v1393_v34  ;;  %v1365_v38 = vadd.f32 %v1750_v36, %v1338_v24  ;;  %v1271_v6 = vpop.f32.mrb[5].mxu1 }
 0x407   : > { %v1413_v40 = vadd.f32 %v1403_v37, %v2040_v5  ;;  %v1402_v4 = vsel %vm1372_vm1, %v1362_v32, %v1392_v35  ;;  %v1364_v41 = vadd.f32 %v1333_v13, %v1271_v6 }
 0x408   : > { %v1412_v42 = vadd.f32 %v1402_v4, %v2032_v3  ;;  %vm1375_vm2 = vcmp.gt.f32.partialorder %v1365_v38, 0.0  ;;  %v1395_v43 = vmul.f32 %v2386_v21, %v1365_v38 }
 0x409   : > { %1424 = vst.msk [vmem:[%s2395_s27 + $0x18] sm:$0xff] %vm1420_vm15, %v1413_v40  ;;  %vm1374_vm3 = vcmp.gt.f32.partialorder %v1364_v41, 0.0  ;;  %v1394_v44 = vmul.f32 %v2386_v21, %v1364_v41  ;;  %v1753_v45 = vpop.f32.mrb[6].mxu1 }
 0x40a   : > { %1423 = vst.msk [vmem:[%s2395_s27 + $0x10] sm:$0xff] %vm1420_vm15, %v1412_v42  ;;  %v1405_v46 = vsel %vm1375_vm2, %v1365_v38, %v1395_v43  ;;  %v1367_v48 = vadd.f32 %v1753_v45, %v1348_v39  ;;  %v1281_v5 = vpop.f32.mrb[7].mxu1 }
 0x40b   : > { %v1415_v49 = vadd.f32 %v1405_v46, %v2048_v7  ;;  %v1404_v50 = vsel %vm1374_vm3, %v1364_v41, %v1394_v44  ;;  %v1366_v3 = vadd.f32 %v1343_v14, %v1281_v5 }
 0x40c   : > { %v1414_v47 = vadd.f32 %v1404_v50, %v2050_v8  ;;  %vm1377_vm4 = vcmp.gt.f32.partialorder %v1367_v48, 0.0  ;;  %v1397_v51 = vmul.f32 %v2386_v21, %v1367_v48 }
 0x40d   : > { %1426 = vst.msk [vmem:[%s2395_s27 + $0x28] sm:$0xff] %vm1420_vm15, %v1415_v49  ;;  %vm1376_vm5 = vcmp.gt.f32.partialorder %v1366_v3, 0.0  ;;  %v1396_v53 = vmul.f32 %v2386_v21, %v1366_v3  ;;  %v1756_v54 = vpop.f32.mrb[8].mxu1 }
 0x40e   : > { %1425 = vst.msk [vmem:[%s2395_s27 + $0x20] sm:$0xff] %vm1420_vm15, %v1414_v47  ;;  %v1407_v55 = vsel %vm1377_vm4, %v1367_v48, %v1397_v51  ;;  %v1369_v7 = vadd.f32 %v1756_v54, %v1358_v52  ;;  %v1291_v56 = vpop.f32.mrb[9].mxu1 }
 0x40f   : > { %v1417_v8 = vadd.f32 %v1407_v55, %v2056_v9  ;;  %v1406_v57 = vsel %vm1376_vm5, %v1366_v3, %v1396_v53  ;;  %v1368_v58 = vadd.f32 %v2384_v16, %v1291_v56 }
 0x410   : > { %v1416_v59 = vadd.f32 %v1406_v57, %v2058_v10  ;;  %vm1379_vm6 = vcmp.gt.f32.partialorder %v1369_v7, 0.0  ;;  %v1399_v60 = vmul.f32 %v2386_v21, %v1369_v7 }
 0x411   : > { %1428 = vst.msk [vmem:[%s2395_s27 + $0x38] sm:$0xff] %vm1420_vm15, %v1417_v8  ;;  %vm1378_vm7 = vcmp.gt.f32.partialorder %v1368_v58, 0.0  ;;  %v1398_v61 = vmul.f32 %v2386_v21, %v1368_v58 }
 0x412   : > { %1427 = vst.msk [vmem:[%s2395_s27 + $0x30] sm:$0xff] %vm1420_vm15, %v1416_v59  ;;  %v1409_v62 = vsel %vm1379_vm6, %v1369_v7, %v1399_v60 }
 0x413   : > { %v1419_v63 = vadd.f32 %v1409_v62, %v2064_v11  ;;  %v1408_v0 = vsel %vm1378_vm7, %v1368_v58, %v1398_v61 }
 0x414   : > { %v1418_v9 = vadd.f32 %v1408_v0, %v2066_v12 }
 0x415   : > { %1430 = vst.msk [vmem:[%s2395_s27 + $0x48] sm:$0xff] %vm1420_vm15, %v1419_v63 }
 0x416   : > { %1429 = vst.msk [vmem:[%s2395_s27 + $0x40] sm:$0xff] %vm1420_vm15, %v1418_v9 }
 0x417 PF: > { %s23_s13 = sadd.s32 1, %s1928_s13  }
 0x418   : > { %p20_p4 = scmp.ge.s32.totalorder %s23_s13, 4  }
 0x41a   :  { %22 = sbr.rel (!%p20_p4) target bundleno = 3 (0x3), region = 86 }

// kernel: discriminator_forward.16
= control target key start
LH: loop header
LB: loop body
LE: loop exit
PB: predicated region body
PF: predicated region fallthrough
CT: control target
= control target key end

     0   :  { %s420_s12 = smov 0   ;;  %s447_s0 = inlined_call_operand.vmem [shape: f32[2,80,16], index: 0, kind: input, shape index: {}]   ;;  %s448_s1 = inlined_call_operand.vmem [shape: f32[4,80], index: 1, kind: input, shape index: {}]   ;;  %s449_s2 = inlined_call_operand.vmem [shape: f32[4,1], index: 2, kind: input, shape index: {}]   ;;  %s450_s3 = inlined_call_operand.vmem [shape: f32[2,4,16], index: 3, kind: output, shape index: {}]  }
   0x1 LB: > { %s315_s13 = sadd.s32 4294967295, %s394_s12   ;;  %p319_p0 = scmp.ge.s32.totalorder %s394_s12, 1  ;;  %s394_s12 = sphi %s420_s12, %s13_s12  }
   0x2   : > { %p137_p1 = scmp.lt.s32.totalorder %s394_s12, 3 }
   0x4   : > { %p138_p2 = pnand %p319_p0, %p137_p1 }
   0x5   : > { %p160_p3 = scmp.lt.s32.totalorder (!%p138_p2), %s315_s13, 1  ;;  %v396_v0 = vmov (!%p138_p2), 0.0|0.0   ;;  %vm397_vm0 = vmmov (!%p138_p2), 0   ;;  %v398_v1 = vmov (!%p138_p2), 0.0   ;;  %v180_v2 = vld [vmem:[%s449_s2] sm:$0xf] (!%p138_p2) }
   0x6   : > { %141 = sbr.rel (%p138_p2) target bundleno = 254 (0xfe), region = 32  ;;  %359 = vmatprep.subr.bf16.mxu0 (!%p138_p2), %v396_v0  ;;  %356 = vmatprep.mubr.msk.f32.mxu0 (!%p138_p2), %vm397_vm0, %v398_v1  ;;  %v399_v3 = vmov (!%p138_p2), 0   ;;  %v169_v19 = vld [vmem:[%s448_s1] sm:$0xf] (!%p138_p2)  ;;  %vm186_vm1 = vcmask (!%p138_p2), 654336   ;;  %vm260_vm2 = vcmask (!%p138_p2), 125952  }
   0x7   : > { %387 = vset.pattern.permute.xlu0 (!%p138_p2), %v399_v3 }
   0x8   : > { %183 = vperm.xlu0 (!%p138_p2), %387, %v180_v2  }
   0xd   : > { %s452_s13 = smov (!%p160_p3, %s315_s13), 1 }
   0xe   : > { %s374_s16 = smul.u32 80, %s452_s13  ;;  %s321_s22 = sshll.u32 %s452_s13, 2 }
   0xf   : > { %s168_s25 = scalar_lea.vmem %s450_s3, %s321_s22 }
  0x10   : > { %s164_s19 = scalar_lea.vmem %s447_s0, %s374_s16 }
  0x11   : > { %v170_v4 = vld [vmem:[%s164_s19] sm:$0xff]  ;;  %v171_v5 = vld [vmem:[%s164_s19 + $0x8] sm:$0xff]  ;;  %v172_v6 = vld [vmem:[%s164_s19 + $0x10] sm:$0xff] }
  0x12   : > { %v360_v7 = vpack.c.bf16 %v171_v5, %v170_v4  ;;  %v173_v8 = vld [vmem:[%s164_s19 + $0x18] sm:$0xff]  ;;  %v174_v10 = vld [vmem:[%s164_s19 + $0x20] sm:$0xff]  ;;  %v175_v11 = vld [vmem:[%s164_s19 + $0x28] sm:$0xff] }
  0x13   : > { %v363_v9 = vpack.c.bf16 %v173_v8, %v172_v6  ;;  %v366_v12 = vpack.c.bf16 %v175_v11, %v174_v10  ;;  %v176_v13 = vld [vmem:[%s164_s19 + $0x30] sm:$0xff]  ;;  %v177_v14 = vld [vmem:[%s164_s19 + $0x38] sm:$0xff]  ;;  %v178_v16 = vld [vmem:[%s164_s19 + $0x40] sm:$0xff] }
  0x14   : > { %361 = vmatpush3.bf16.msra.mxu0 %v360_v7  ;;  %v369_v15 = vpack.c.bf16 %v177_v14, %v176_v13  ;;  %v179_v17 = vld [vmem:[%s164_s19 + $0x48] sm:$0xff] }
  0x15   : > { %362 = vmatprep.subr.bf16.mxu0 %v396_v0  ;;  %v372_v18 = vpack.c.bf16 %v179_v17, %v178_v16 }
  0x18   : > { %364 = vmatpush3.bf16.msra.mxu0 %v363_v9 }
  0x19   : > { %365 = vmatprep.subr.bf16.mxu0 %v396_v0 }
  0x1c   : > { %367 = vmatpush3.bf16.msra.mxu0 %v366_v12 }
  0x1d   : > { %368 = vmatprep.subr.bf16.mxu0 %v396_v0 }
  0x20   : > { %370 = vmatpush3.bf16.msra.mxu0 %v369_v15 }
  0x21   : > { %371 = vmatprep.subr.bf16.mxu0 %v396_v0 }
  0x24   : > { %373 = vmatpush3.bf16.msra.mxu0 %v372_v18 }
  0x27   : > { %357 = vmatmul.mubr.msk.f32.vlgmr.msra.gmra.mrb[0].mxu0 %vm186_vm1, %v169_v19 }
  0x87   : > { %v184_v20 = vpop.permute.xlu0 %183 }
  0xfa   : > { %v256_v21 = vpop.f32.mrb[0].mxu0 }
  0xfb   : > { %v257_v22 = vadd.f32 %v256_v21, %v184_v20  ;;  %v358_v23 = vpop.f32.mrb[1].mxu0 }
  0xfd   : > { %261 = vst.msk [vmem:[%s168_s25] sm:$0xf] %vm260_vm2, %v257_v22 }
  0xfe PF: > { %s13_s12 = sadd.s32 1, %s394_s12  }
  0xff   : > { %p10_p4 = scmp.ge.s32.totalorder %s13_s12, 4  }
 0x101   :  { %12 = sbr.rel (!%p10_p4) target bundleno = 1 (0x1), region = 62 }

// kernel: discriminator_forward.13
= control target key start
LH: loop header
LB: loop body
LE: loop exit
PB: predicated region body
PF: predicated region fallthrough
CT: control target
= control target key end

     0   :  { %s1990_s13 = smov 0   ;;  %s2439_s0 = inlined_call_operand.vmem [shape: f32[2,80,16], index: 0, kind: input, shape index: {}]   ;;  %s2440_s1 = inlined_call_operand.vmem [shape: f32[80,80], index: 1, kind: input, shape index: {}]   ;;  %s2441_s2 = inlined_call_operand.vmem [shape: f32[80,80], index: 2, kind: input, shape index: {}]   ;;  %s2442_s3 = inlined_call_operand.vmem [shape: f32[80,1], index: 3, kind: input, shape index: {}]   ;;  %s2443_s4 = inlined_call_operand.<no memory space> [shape: f32[1,1], index: 4, kind: input, shape index: {}]   ;;  %s2444_s5 = inlined_call_operand.vmem [shape: f32[80,80], index: 5, kind: input, shape index: {}]   ;;  %s2445_s6 = inlined_call_operand.vmem [shape: f32[80,80], index: 6, kind: input, shape index: {}]   ;;  %s2446_s7 = inlined_call_operand.vmem [shape: f32[80,1], index: 7, kind: input, shape index: {}]   ;;  %s2447_s9 = inlined_call_operand.vmem [shape: f32[2,80,16], index: 9, kind: output, shape index: {}]   ;;  %s2448_s8 = inlined_call_operand.<no memory space> [shape: f32[1,1], index: 8, kind: input, shape index: {}]  }
   0x1   :  { %v14_v0 = vstv %s2443_s4  ;;  %v16_v1 = vstv %s2448_s8 }
   0x2   :  { %15 = vst [vmem:[#allocation4] sm:$0x1] %v14_v0  ;;  %17 = vst [vmem:[#allocation5] sm:$0x1] %v16_v1 }
   0x3 LB: > { %s1486_s14 = sadd.s32 4294967295, %s1928_s13   ;;  %p1490_p0 = scmp.ge.s32.totalorder %s1928_s13, 1  ;;  %s1928_s13 = sphi %s1990_s13, %s23_s13  }
   0x4   : > { %p291_p1 = scmp.lt.s32.totalorder %s1928_s13, 3 }
   0x6   : > { %p292_p2 = pnand %p1490_p0, %p291_p1 }
   0x7   : > { %p1998_p3 = scmp.lt.s32.totalorder (!%p292_p2), %s1486_s14, 1  ;;  %vm347_vm0 = vcmask (!%p292_p2), 195584   ;;  %v1930_v2 = vmov (!%p292_p2), 0.0   ;;  %s1931_s18 = smov (!%p292_p2), 4   ;;  %vm398_vm1 = vcmask (!%p292_p2), 162848   ;;  %v429_v41 = vld [vmem:[%s2441_s2] sm:$0xff] (!%p292_p2) }
   0x8   : > { %295 = sbr.rel (%p292_p2) target bundleno = 1047 (0x417), region = 56  ;;  %350 = vst.msk [vmem:[#allocation2 + $0x10] sm:$0xff] (!%p292_p2), %vm347_vm0, %v1930_v2  ;;  %348 = vst.msk [vmem:[#allocation2] sm:$0xff] (!%p292_p2), %vm347_vm0, %v1930_v2  ;;  %s1932_s19 = smov (!%p292_p2), 120   ;;  %vm479_vm2 = vcmask (!%p292_p2), 654336   ;;  %v770_v44 = vld [vmem:[%s2442_s3] sm:$0xff] (!%p292_p2) }
   0x9   : > { %349 = vst.msk [vmem:[#allocation2 + $0x8] sm:$0xff] (!%p292_p2), %vm347_vm0, %v1930_v2  ;;  %351 = vst.msk [vmem:[#allocation2 + $0x18] sm:$0xff] (!%p292_p2), %vm347_vm0, %v1930_v2  ;;  %1637 = vmatprep.mubr.msk.f32.mxu0 (!%p292_p2), %vm479_vm2, %v429_v41  ;;  %v1933_v45 = vmov (!%p292_p2), 0   ;;  %v771_v46 = vld [vmem:[%s2442_s3 + $0x8] sm:$0xff] (!%p292_p2)  ;;  %v1513_v47 = vld [vmem:[#allocation4] ss:$0 sm:$0xff] (!%p292_p2) }
   0xa   : > { %352 = vst.msk [vmem:[#allocation2 + $0x20] sm:$0xff] (!%p292_p2), %vm347_vm0, %v1930_v2  ;;  %353 = vst.msk [vmem:[#allocation2 + $0x28] sm:$0xff] (!%p292_p2), %vm347_vm0, %v1930_v2  ;;  %1895 = vset.pattern.permute.xlu1 (!%p292_p2), %v1933_v45  ;;  %1896 = vset.pattern.permute.xlu0 (!%p292_p2), %v1933_v45  ;;  %v773_v48 = vld [vmem:[%s2442_s3 + $0x18] sm:$0xff] (!%p292_p2)  ;;  %v772_v49 = vld [vmem:[%s2442_s3 + $0x10] sm:$0xff] (!%p292_p2)  ;;  %vm1420_vm15 = vcmask (!%p292_p2), 130048  }
   0xb   : > { %354 = vst.msk [vmem:[#allocation2 + $0x30] sm:$0xff] (!%p292_p2), %vm347_vm0, %v1930_v2  ;;  %355 = vst.msk [vmem:[#allocation2 + $0x38] sm:$0xff] (!%p292_p2), %vm347_vm0, %v1930_v2  ;;  %v775_v50 = vld [vmem:[%s2442_s3 + $0x28] sm:$0xff] (!%p292_p2)  ;;  %v774_v51 = vld [vmem:[%s2442_s3 + $0x20] sm:$0xff] (!%p292_p2) }
   0xc   : > { %356 = vst.msk [vmem:[#allocation2 + $0x40] sm:$0xff] (!%p292_p2), %vm347_vm0, %v1930_v2  ;;  %357 = vst.msk [vmem:[#allocation2 + $0x48] sm:$0xff] (!%p292_p2), %vm347_vm0, %v1930_v2  ;;  %v777_v52 = vld [vmem:[%s2442_s3 + $0x38] sm:$0xff] (!%p292_p2)  ;;  %v776_v53 = vld [vmem:[%s2442_s3 + $0x30] sm:$0xff] (!%p292_p2) }
   0xd   : > { %880 = vst.msk [vmem:[#allocation3] sm:$0xff] (!%p292_p2), %vm347_vm0, %v1930_v2  ;;  %881 = vst.msk [vmem:[#allocation3 + $0x8] sm:$0xff] (!%p292_p2), %vm347_vm0, %v1930_v2  ;;  %v779_v54 = vld [vmem:[%s2442_s3 + $0x48] sm:$0xff] (!%p292_p2)  ;;  %v778_v55 = vld [vmem:[%s2442_s3 + $0x40] sm:$0xff] (!%p292_p2) }
   0xe   : > { %882 = vst.msk [vmem:[#allocation3 + $0x10] sm:$0xff] (!%p292_p2), %vm347_vm0, %v1930_v2  ;;  %883 = vst.msk [vmem:[#allocation3 + $0x18] sm:$0xff] (!%p292_p2), %vm347_vm0, %v1930_v2 }
   0xf   : > { %884 = vst.msk [vmem:[#allocation3 + $0x20] sm:$0xff] %vm347_vm0, %v1930_v2  ;;  %885 = vst.msk [vmem:[#allocation3 + $0x28] sm:$0xff] %vm347_vm0, %v1930_v2  ;;  %s2451_s14 = smov (!%p1998_p3, %s1486_s14), 1 }
  0x10   : > { %886 = vst.msk [vmem:[#allocation3 + $0x30] sm:$0xff] %vm347_vm0, %v1930_v2  ;;  %887 = vst.msk [vmem:[#allocation3 + $0x38] sm:$0xff] %vm347_vm0, %v1930_v2  ;;  %s1857_s8 = smul.u32 80, %s2451_s14 }
  0x11   : > { %888 = vst.msk [vmem:[#allocation3 + $0x40] sm:$0xff] %vm347_vm0, %v1930_v2  ;;  %889 = vst.msk [vmem:[#allocation3 + $0x48] sm:$0xff] %vm347_vm0, %v1930_v2 }
  0x12   : > { %s331_s17 = scalar_lea.vmem %s2439_s0, %s1857_s8  ;;  %s2395_s27 = scalar_lea.vmem %s2447_s9, %s1857_s8 }
  0x13   : > { %v2032_v3 = vld [vmem:[%s331_s17 + $0x10] sm:$0xff]  ;;  %v2034_v4 = vld [vmem:[%s331_s17] sm:$0xff]  ;;  %v2040_v5 = vld [vmem:[%s331_s17 + $0x18] sm:$0xff] }
  0x14   : > { %372 = vrot.lane.b32.xlu1 %v2032_v3, %s1931_s18  ;;  %368 = vrot.lane.b32.xlu0 %v2034_v4, %s1931_s18  ;;  %v2042_v6 = vld [vmem:[%s331_s17 + $0x8] sm:$0xff]  ;;  %v2050_v8 = vld [vmem:[%s331_s17 + $0x20] sm:$0xff] }
  0x15   : > { %v2048_v7 = vld [vmem:[%s331_s17 + $0x28] sm:$0xff]  ;;  %v2056_v9 = vld [vmem:[%s331_s17 + $0x38] sm:$0xff]  ;;  %v2058_v10 = vld [vmem:[%s331_s17 + $0x30] sm:$0xff] }
  0x16   : > { %v2064_v11 = vld [vmem:[%s331_s17 + $0x48] sm:$0xff]  ;;  %v2066_v12 = vld [vmem:[%s331_s17 + $0x40] sm:$0xff] }
  0x18   : > { %374 = vrot.lane.b32.xlu1 %v2040_v5, %s1931_s18  ;;  %370 = vrot.lane.b32.xlu0 %v2042_v6, %s1931_s18 }
  0x1c   : > { %378 = vrot.lane.b32.xlu1 %v2048_v7, %s1931_s18  ;;  %376 = vrot.lane.b32.xlu0 %v2050_v8, %s1931_s18 }
  0x20   : > { %382 = vrot.lane.b32.xlu1 %v2056_v9, %s1931_s18  ;;  %380 = vrot.lane.b32.xlu0 %v2058_v10, %s1931_s18 }
  0x24   : > { %386 = vrot.lane.b32.xlu1 %v2064_v11, %s1931_s18  ;;  %384 = vrot.lane.b32.xlu0 %v2066_v12, %s1931_s18 }
  0x86   : > { %v373_v13 = vpop.permute.xlu1 %372  ;;  %v369_v14 = vpop.permute.xlu0 %368 }
  0x87   : > { %401 = vst.msk [vmem:[#allocation2 + $0x10] sm:$0xff] %vm398_vm1, %v373_v13  ;;  %399 = vst.msk [vmem:[#allocation2] sm:$0xff] %vm398_vm1, %v369_v14 }
  0x8a   : > { %v375_v15 = vpop.permute.xlu1 %374  ;;  %v371_v16 = vpop.permute.xlu0 %370 }
  0x8b   : > { %402 = vst.msk [vmem:[#allocation2 + $0x18] sm:$0xff] %vm398_vm1, %v375_v15  ;;  %400 = vst.msk [vmem:[#allocation2 + $0x8] sm:$0xff] %vm398_vm1, %v371_v16 }
  0x8e   : > { %v379_v17 = vpop.permute.xlu1 %378  ;;  %v377_v18 = vpop.permute.xlu0 %376  ;;  %v421_v19 = vld [vmem:[#allocation2 + $0x10] sm:$0xff]  ;;  %v419_v21 = vld [vmem:[#allocation2] sm:$0xff] }
  0x8f   : > { %404 = vst.msk [vmem:[#allocation2 + $0x28] sm:$0xff] %vm398_vm1, %v379_v17  ;;  %403 = vst.msk [vmem:[#allocation2 + $0x20] sm:$0xff] %vm398_vm1, %v377_v18 }
  0x92   : > { %v422_v20 = vld [vmem:[#allocation2 + $0x18] sm:$0xff]  ;;  %v420_v22 = vld [vmem:[#allocation2 + $0x8] sm:$0xff]  ;;  %v383_v23 = vpop.permute.xlu1 %382  ;;  %v381_v24 = vpop.permute.xlu0 %380 }
  0x93   : > { %v1875_v25 = vpack.i.bf16 %v422_v20, %v421_v19  ;;  %v1870_v26 = vpack.i.bf16 %v420_v22, %v419_v21  ;;  %406 = vst.msk [vmem:[#allocation2 + $0x38] sm:$0xff] %vm398_vm1, %v383_v23  ;;  %405 = vst.msk [vmem:[#allocation2 + $0x30] sm:$0xff] %vm398_vm1, %v381_v24  ;;  %v2080_v27 = vpack.c.bf16 %v420_v22, %v419_v21  ;;  %v430_v22 = vld [vmem:[%s2441_s2 + $0x8] sm:$0xff]  ;;  %v431_v23 = vld [vmem:[%s2441_s2 + $0x10] sm:$0xff] }
  0x94   : > { %v2082_v28 = vpack.c.bf16 %v422_v20, %v421_v19  ;;  %v432_v24 = vld [vmem:[%s2441_s2 + $0x18] sm:$0xff] }
  0x95   : > { %1876 = vrot.lane.b32.xlu1 %v1875_v25, %s1932_s19  ;;  %1871 = vrot.lane.b32.xlu0 %v1870_v26, %s1932_s19  ;;  %v433_v25 = vld [vmem:[%s2441_s2 + $0x20] sm:$0xff]  ;;  %v434_v26 = vld [vmem:[%s2441_s2 + $0x28] sm:$0xff] }
  0x96   : > { %v387_v29 = vpop.permute.xlu1 %386  ;;  %v385_v30 = vpop.permute.xlu0 %384  ;;  %v423_v31 = vld [vmem:[#allocation2 + $0x20] sm:$0xff]  ;;  %v424_v32 = vld [vmem:[#allocation2 + $0x28] sm:$0xff] }
  0x97   : > { %408 = vst.msk [vmem:[#allocation2 + $0x48] sm:$0xff] %vm398_vm1, %v387_v29  ;;  %407 = vst.msk [vmem:[#allocation2 + $0x40] sm:$0xff] %vm398_vm1, %v385_v30  ;;  %v1880_v33 = vpack.i.bf16 %v424_v32, %v423_v31  ;;  %v2088_v34 = vpack.c.bf16 %v424_v32, %v423_v31  ;;  %v437_v29 = vld [vmem:[%s2441_s2 + $0x40] sm:$0xff]  ;;  %v438_v30 = vld [vmem:[%s2441_s2 + $0x48] sm:$0xff] }
  0x98   : > { %v409_v31 = vld [vmem:[%s2440_s1] sm:$0xff]  ;;  %v410_v32 = vld [vmem:[%s2440_s1 + $0x8] sm:$0xff] }
  0x99   : > { %1881 = vrot.lane.b32.xlu0 %v1880_v33, %s1932_s19  ;;  %v411_v33 = vld [vmem:[%s2440_s1 + $0x10] sm:$0xff] }
  0x9a   : > { %v425_v35 = vld [vmem:[#allocation2 + $0x30] sm:$0xff]  ;;  %v426_v36 = vld [vmem:[#allocation2 + $0x38] sm:$0xff] }
  0x9b   : > { %v1885_v37 = vpack.i.bf16 %v426_v36, %v425_v35  ;;  %v2091_v38 = vpack.c.bf16 %v426_v36, %v425_v35  ;;  %v413_v35 = vld [vmem:[%s2440_s1 + $0x20] sm:$0xff]  ;;  %v414_v36 = vld [vmem:[%s2440_s1 + $0x28] sm:$0xff] }
  0x9d   : > { %1886 = vrot.lane.b32.xlu1 %v1885_v37, %s1932_s19  ;;  %v415_v37 = vld [vmem:[%s2440_s1 + $0x30] sm:$0xff] }
  0x9e   : > { %v427_v39 = vld [vmem:[#allocation2 + $0x40] sm:$0xff]  ;;  %v428_v40 = vld [vmem:[#allocation2 + $0x48] sm:$0xff] }
  0x9f   : > { %v1890_v42 = vpack.i.bf16 %v428_v40, %v427_v39  ;;  %v2098_v43 = vpack.c.bf16 %v428_v40, %v427_v39  ;;  %v417_v39 = vld [vmem:[%s2440_s1 + $0x40] sm:$0xff]  ;;  %v418_v40 = vld [vmem:[%s2440_s1 + $0x48] sm:$0xff] }
  0xa1   : > { %1891 = vrot.lane.b32.xlu0 %v1890_v42, %s1932_s19  ;;  %782 = vperm.xlu1 %1895, %v770_v44  }
  0xa5   : > { %787 = vperm.xlu0 %1896, %v771_v46   ;;  %857 = vperm.xlu1 %1895, %v1513_v47  }
  0xa9   : > { %797 = vperm.xlu0 %1896, %v773_v48   ;;  %792 = vperm.xlu1 %1895, %v772_v49  }
  0xad   : > { %807 = vperm.xlu0 %1896, %v775_v50   ;;  %802 = vperm.xlu1 %1895, %v774_v51  }
  0xb1   : > { %817 = vperm.xlu0 %1896, %v777_v52   ;;  %812 = vperm.xlu1 %1895, %v776_v53  }
  0xb5   : > { %827 = vperm.xlu0 %1896, %v779_v54   ;;  %822 = vperm.xlu1 %1895, %v778_v55  }
 0x107   : > { %v1877_v56 = vpop.permute.xlu1 %1876  ;;  %v1872_v57 = vpop.permute.xlu0 %1871 }
 0x108   : > { %v1879_v58 = vunpack.i.h.bf16 %v1877_v56  ;;  %v1878_v59 = vunpack.i.l.bf16 %v1877_v56  ;;  %v1874_v60 = vunpack.i.h.bf16 %v1872_v57  ;;  %v1873_v61 = vunpack.i.l.bf16 %v1872_v57 }
 0x10a   : > { %v1757_v62 = vpack.c.bf16 %v1874_v60, %v1873_v61  ;;  %v1761_v0 = vpack.c.bf16 %v1879_v58, %v1878_v59 }
 0x10b   : > { %v1882_v63 = vpop.permute.xlu0 %1881 }
 0x10c   : > { %1758 = vmatprep.subr.bf16.mxu0 %v1757_v62  ;;  %v1884_v1 = vunpack.i.h.bf16 %v1882_v63  ;;  %v1883_v2 = vunpack.i.l.bf16 %v1882_v63 }
 0x10d   : > { %1760 = vmatpush3.bf16.msra.mxu0 %v1757_v62 }
 0x10e   : > { %1762 = vmatprep.subr.bf16.mxu0 %v1761_v0  ;;  %v1765_v13 = vpack.c.bf16 %v1884_v1, %v1883_v2 }
 0x10f   : > { %v1887_v14 = vpop.permute.xlu1 %1886 }
 0x110   : > { %v1889_v15 = vunpack.i.h.bf16 %v1887_v14  ;;  %v1888_v16 = vunpack.i.l.bf16 %v1887_v14 }
 0x111   : > { %1764 = vmatpush3.bf16.msra.mxu0 %v1761_v0 }
 0x112   : > { %v1769_v17 = vpack.c.bf16 %v1889_v15, %v1888_v16  ;;  %1766 = vmatprep.subr.bf16.mxu0 %v1765_v13 }
 0x113   : > { %v1892_v18 = vpop.permute.xlu0 %1891 }
 0x114   : > { %v1894_v19 = vunpack.i.h.bf16 %v1892_v18  ;;  %v1893_v20 = vunpack.i.l.bf16 %v1892_v18 }
 0x115   : > { %1768 = vmatpush3.bf16.msra.mxu0 %v1765_v13 }
 0x116   : > { %v1773_v21 = vpack.c.bf16 %v1894_v19, %v1893_v20  ;;  %1770 = vmatprep.subr.bf16.mxu0 %v1769_v17 }
 0x119   : > { %1772 = vmatpush3.bf16.msra.mxu0 %v1769_v17 }
 0x11a   : > { %1774 = vmatprep.subr.bf16.mxu0 %v1773_v21 }
 0x11d   : > { %1776 = vmatpush3.bf16.msra.mxu0 %v1773_v21 }
 0x11e   : > { %1778 = vmatprep.subr.bf16.mxu0 %v2080_v27 }
 0x120   : > { %1638 = vmatmul.mubr.msk.f32.vlgmr.msra.gmra.mrb[0].mxu0 %vm479_vm2, %v430_v22  ;;  %v783_v41 = vpop.permute.xlu1 %782 }
 0x121   : > { %1780 = vmatpush3.bf16.msra.mxu0 %v2080_v27  ;;  %1640 = vmatprep.mubr.msk.f32.mxu0 %vm479_vm2, %v431_v23  ;;  %v435_v27 = vld [vmem:[%s2441_s2 + $0x30] sm:$0xff] }
 0x122   : > { %1782 = vmatprep.subr.bf16.mxu0 %v2082_v28 }
 0x124   : > { %1641 = vmatmul.mubr.msk.f32.gmra.mrb[2].mxu0 %vm479_vm2, %v432_v24  ;;  %v788_v42 = vpop.permute.xlu0 %787 }
 0x125   : > { %1784 = vmatpush3.bf16.msra.mxu0 %v2082_v28  ;;  %1643 = vmatprep.mubr.msk.f32.mxu0 %vm479_vm2, %v433_v25  ;;  %v436_v28 = vld [vmem:[%s2441_s2 + $0x38] sm:$0xff] }
 0x126   : > { %1786 = vmatprep.subr.bf16.mxu0 %v2088_v34 }
 0x128   : > { %1644 = vmatmul.mubr.msk.f32.gmra.mrb[4].mxu0 %vm479_vm2, %v434_v26  ;;  %v798_v44 = vpop.permute.xlu0 %797 }
 0x129   : > { %1788 = vmatpush3.bf16.msra.mxu0 %v2088_v34  ;;  %1646 = vmatprep.mubr.msk.f32.mxu0 %vm479_vm2, %v435_v27  ;;  %v412_v34 = vld [vmem:[%s2440_s1 + $0x18] sm:$0xff] }
 0x12a   : > { %1790 = vmatprep.subr.bf16.mxu0 %v2091_v38 }
 0x12c   : > { %1647 = vmatmul.mubr.msk.f32.gmra.mrb[6].mxu0 %vm479_vm2, %v436_v28  ;;  %v808_v51 = vpop.permute.xlu0 %807 }
 0x12d   : > { %1792 = vmatpush3.bf16.msra.mxu0 %v2091_v38  ;;  %1649 = vmatprep.mubr.msk.f32.mxu0 %vm479_vm2, %v437_v29  ;;  %v416_v38 = vld [vmem:[%s2440_s1 + $0x38] sm:$0xff] }
 0x12e   : > { %1794 = vmatprep.subr.bf16.mxu0 %v2098_v43 }
 0x130   : > { %1650 = vmatmul.mubr.msk.f32.gmra.mrb[8].mxu0 %vm479_vm2, %v438_v30  ;;  %v818_v2 = vpop.permute.xlu0 %817 }
 0x131   : > { %1796 = vmatpush3.bf16.msra.mxu0 %v2098_v43  ;;  %1672 = vmatprep.mubr.msk.f32.mxu0 %vm479_vm2, %v409_v31  ;;  %v2217_v43 = vpop.permute.xlu1 %857 }
 0x134   : > { %1673 = vmatmul.mubr.msk.f32.vlgmr.msra.gmra.mrb[0].mxu0 %vm479_vm2, %v410_v32  ;;  %v828_v25 = vpop.permute.xlu0 %827 }
 0x135   : > { %1675 = vmatprep.mubr.msk.f32.mxu0 %vm479_vm2, %v411_v33  ;;  %v793_v45 = vpop.permute.xlu1 %792 }
 0x138   : > { %1676 = vmatmul.mubr.msk.f32.gmra.mrb[2].mxu0 %vm479_vm2, %v412_v34 }
 0x139   : > { %1678 = vmatprep.mubr.msk.f32.mxu0 %vm479_vm2, %v413_v35  ;;  %v803_v54 = vpop.permute.xlu1 %802 }
 0x13c   : > { %1679 = vmatmul.mubr.msk.f32.gmra.mrb[4].mxu0 %vm479_vm2, %v414_v36 }
 0x13d   : > { %1681 = vmatprep.mubr.msk.f32.mxu0 %vm479_vm2, %v415_v37  ;;  %v813_v15 = vpop.permute.xlu1 %812 }
 0x140   : > { %1682 = vmatmul.mubr.msk.f32.gmra.mrb[6].mxu0 %vm479_vm2, %v416_v38 }
 0x141   : > { %1684 = vmatprep.mubr.msk.f32.mxu0 %vm479_vm2, %v417_v39  ;;  %v823_v28 = vpop.permute.xlu1 %822 }
 0x144   : > { %1685 = vmatmul.mubr.msk.f32.gmra.mrb[8].mxu0 %vm479_vm2, %v418_v40 }
 0x207   : > { %v1674_v46 = vpop.f32.mrb[0].mxu0 }
 0x208   : > { %v831_v47 = vadd.f32 %v1674_v46, %v788_v42  ;;  %v721_v48 = vpop.f32.mrb[1].mxu0 }
 0x209   : > { %v830_v49 = vadd.f32 %v783_v41, %v721_v48 }
 0x20a   : > { %v861_v50 = vmul.f32 %v2217_v43, %v831_v47  ;;  %vm841_vm3 = vcmp.gt.f32.partialorder %v831_v47, 0.0 }
 0x20b   : > { %v860_v52 = vmul.f32 %v2217_v43, %v830_v49  ;;  %v1677_v53 = vpop.f32.mrb[2].mxu0  ;;  %vm840_vm4 = vcmp.gt.f32.partialorder %v830_v49, 0.0 }
 0x20c   : > { %v833_v55 = vadd.f32 %v1677_v53, %v798_v44  ;;  %v731_v56 = vpop.f32.mrb[3].mxu0  ;;  %v871_v57 = vsel %vm841_vm3, %v831_v47, %v861_v50 }
 0x20d   : > { %v832_v58 = vadd.f32 %v793_v45, %v731_v56  ;;  %902 = vrot.lane.b32.xlu0 %v871_v57, %s1931_s18  ;;  %v870_v59 = vsel %vm840_vm4, %v830_v49, %v860_v52 }
 0x20e   : > { %v863_v60 = vmul.f32 %v2217_v43, %v833_v55  ;;  %900 = vrot.lane.b32.xlu1 %v870_v59, %s1931_s18  ;;  %vm843_vm5 = vcmp.gt.f32.partialorder %v833_v55, 0.0 }
 0x20f   : > { %v862_v61 = vmul.f32 %v2217_v43, %v832_v58  ;;  %v1680_v62 = vpop.f32.mrb[4].mxu0  ;;  %vm842_vm6 = vcmp.gt.f32.partialorder %v832_v58, 0.0 }
 0x210   : > { %v835_v63 = vadd.f32 %v1680_v62, %v808_v51  ;;  %v741_v0 = vpop.f32.mrb[5].mxu0  ;;  %v873_v1 = vsel %vm843_vm5, %v833_v55, %v863_v60  ;;  %v960_v62 = vld [vmem:[%s2445_s6] sm:$0xff] }
 0x211   : > { %v834_v13 = vadd.f32 %v803_v54, %v741_v0  ;;  %906 = vrot.lane.b32.xlu0 %v873_v1, %s1931_s18  ;;  %v872_v14 = vsel %vm842_vm6, %v832_v58, %v862_v61  ;;  %1707 = vmatprep.mubr.msk.f32.mxu1 %vm479_vm2, %v960_v62  ;;  %v947_v62 = vld [vmem:[%s2444_s5 + $0x38] sm:$0xff] }
 0x212   : > { %v865_v16 = vmul.f32 %v2217_v43, %v835_v63  ;;  %904 = vrot.lane.b32.xlu1 %v872_v14, %s1931_s18  ;;  %vm845_vm7 = vcmp.gt.f32.partialorder %v835_v63, 0.0 }
 0x213   : > { %v864_v17 = vmul.f32 %v2217_v43, %v834_v13  ;;  %v1683_v18 = vpop.f32.mrb[6].mxu0  ;;  %vm844_vm8 = vcmp.gt.f32.partialorder %v834_v13, 0.0 }
 0x214   : > { %v837_v19 = vadd.f32 %v1683_v18, %v818_v2  ;;  %v751_v20 = vpop.f32.mrb[7].mxu0  ;;  %v875_v21 = vsel %vm845_vm7, %v835_v63, %v865_v16  ;;  %v1300_v2 = vld [vmem:[%s2446_s7] sm:$0xff]  ;;  %v1302_v16 = vld [vmem:[%s2446_s7 + $0x10] sm:$0xff] }
 0x215   : > { %v836_v22 = vadd.f32 %v813_v15, %v751_v20  ;;  %910 = vrot.lane.b32.xlu0 %v875_v21, %s1931_s18  ;;  %v874_v23 = vsel %vm844_vm8, %v834_v13, %v864_v17  ;;  %v1301_v17 = vld [vmem:[%s2446_s7 + $0x8] sm:$0xff]  ;;  %v1304_v18 = vld [vmem:[%s2446_s7 + $0x20] sm:$0xff]  ;;  %v1306_v20 = vld [vmem:[%s2446_s7 + $0x30] sm:$0xff] }
 0x216   : > { %v867_v24 = vmul.f32 %v2217_v43, %v837_v19  ;;  %908 = vrot.lane.b32.xlu1 %v874_v23, %s1931_s18  ;;  %vm847_vm9 = vcmp.gt.f32.partialorder %v837_v19, 0.0  ;;  %v1305_v21 = vld [vmem:[%s2446_s7 + $0x28] sm:$0xff]  ;;  %v1307_v23 = vld [vmem:[%s2446_s7 + $0x38] sm:$0xff] }
 0x217   : > { %v866_v26 = vmul.f32 %v2217_v43, %v836_v22  ;;  %v1686_v27 = vpop.f32.mrb[8].mxu0  ;;  %vm846_vm10 = vcmp.gt.f32.partialorder %v836_v22, 0.0 }
 0x218   : > { %v839_v29 = vadd.f32 %v1686_v27, %v828_v25  ;;  %v761_v30 = vpop.f32.mrb[9].mxu0  ;;  %v877_v31 = vsel %vm847_vm9, %v837_v19, %v867_v24  ;;  %v1303_v19 = vld [vmem:[%s2446_s7 + $0x18] sm:$0xff]  ;;  %v1534_v24 = vld [vmem:[#allocation5] ss:$0 sm:$0xff]  ;;  %v1309_v25 = vld [vmem:[%s2446_s7 + $0x48] sm:$0xff] }
 0x219   : > { %v838_v32 = vadd.f32 %v823_v28, %v761_v30  ;;  %914 = vrot.lane.b32.xlu0 %v877_v31, %s1931_s18  ;;  %v876_v33 = vsel %vm846_vm10, %v836_v22, %v866_v26  ;;  %v1308_v22 = vld [vmem:[%s2446_s7 + $0x40] sm:$0xff] }
 0x21a   : > { %v869_v34 = vmul.f32 %v2217_v43, %v839_v29  ;;  %912 = vrot.lane.b32.xlu1 %v876_v33, %s1931_s18  ;;  %vm849_vm11 = vcmp.gt.f32.partialorder %v839_v29, 0.0 }
 0x21b   : > { %v868_v35 = vmul.f32 %v2217_v43, %v838_v32  ;;  %vm848_vm12 = vcmp.gt.f32.partialorder %v838_v32, 0.0 }
 0x21c   : > { %v879_v36 = vsel %vm849_vm11, %v839_v29, %v869_v34 }
 0x21d   : > { %918 = vrot.lane.b32.xlu0 %v879_v36, %s1931_s18  ;;  %v878_v37 = vsel %vm848_vm12, %v838_v32, %v868_v35 }
 0x21e   : > { %916 = vrot.lane.b32.xlu1 %v878_v37, %s1931_s18 }
 0x27f   : > { %v903_v38 = vpop.permute.xlu0 %902 }
 0x280   : > { %931 = vst.msk [vmem:[#allocation3 + $0x8] sm:$0xff] %vm398_vm1, %v903_v38  ;;  %v901_v39 = vpop.permute.xlu1 %900 }
 0x281   : > { %930 = vst.msk [vmem:[#allocation3] sm:$0xff] %vm398_vm1, %v901_v39 }
 0x283   : > { %v907_v40 = vpop.permute.xlu0 %906 }
 0x284   : > { %933 = vst.msk [vmem:[#allocation3 + $0x18] sm:$0xff] %vm398_vm1, %v907_v40  ;;  %v905_v41 = vpop.permute.xlu1 %904 }
 0x285   : > { %932 = vst.msk [vmem:[#allocation3 + $0x10] sm:$0xff] %vm398_vm1, %v905_v41 }
 0x287   : > { %v911_v42 = vpop.permute.xlu0 %910  ;;  %v951_v43 = vld [vmem:[#allocation3 + $0x8] sm:$0xff] }
 0x288   : > { %935 = vst.msk [vmem:[#allocation3 + $0x28] sm:$0xff] %vm398_vm1, %v911_v42  ;;  %v909_v44 = vpop.permute.xlu1 %908  ;;  %v950_v45 = vld [vmem:[#allocation3] sm:$0xff] }
 0x289   : > { %934 = vst.msk [vmem:[#allocation3 + $0x20] sm:$0xff] %vm398_vm1, %v909_v44  ;;  %v1897_v46 = vpack.i.bf16 %v951_v43, %v950_v45  ;;  %v2245_v47 = vpack.c.bf16 %v951_v43, %v950_v45 }
 0x28b   : > { %v915_v48 = vpop.permute.xlu0 %914  ;;  %1898 = vrot.lane.b32.xlu1 %v1897_v46, %s1932_s19  ;;  %v953_v49 = vld [vmem:[#allocation3 + $0x18] sm:$0xff] }
 0x28c   : > { %937 = vst.msk [vmem:[#allocation3 + $0x38] sm:$0xff] %vm398_vm1, %v915_v48  ;;  %v913_v50 = vpop.permute.xlu1 %912  ;;  %v952_v51 = vld [vmem:[#allocation3 + $0x10] sm:$0xff]  ;;  %v961_v46 = vld [vmem:[%s2445_s6 + $0x8] sm:$0xff]  ;;  %v962_v48 = vld [vmem:[%s2445_s6 + $0x10] sm:$0xff] }
 0x28d   : > { %936 = vst.msk [vmem:[#allocation3 + $0x30] sm:$0xff] %vm398_vm1, %v913_v50  ;;  %v1902_v52 = vpack.i.bf16 %v953_v49, %v952_v51  ;;  %v2250_v53 = vpack.c.bf16 %v953_v49, %v952_v51  ;;  %v963_v49 = vld [vmem:[%s2445_s6 + $0x18] sm:$0xff]  ;;  %v964_v50 = vld [vmem:[%s2445_s6 + $0x20] sm:$0xff]  ;;  %v966_v51 = vld [vmem:[%s2445_s6 + $0x30] sm:$0xff] }
 0x28f   : > { %1903 = vrot.lane.b32.xlu0 %v1902_v52, %s1932_s19  ;;  %v919_v54 = vpop.permute.xlu0 %918  ;;  %v955_v55 = vld [vmem:[#allocation3 + $0x28] sm:$0xff] }
 0x290   : > { %939 = vst.msk [vmem:[#allocation3 + $0x48] sm:$0xff] %vm398_vm1, %v919_v54  ;;  %v917_v56 = vpop.permute.xlu1 %916  ;;  %v954_v57 = vld [vmem:[#allocation3 + $0x20] sm:$0xff]  ;;  %v967_v52 = vld [vmem:[%s2445_s6 + $0x38] sm:$0xff]  ;;  %v969_v54 = vld [vmem:[%s2445_s6 + $0x48] sm:$0xff] }
 0x291   : > { %938 = vst.msk [vmem:[#allocation3 + $0x40] sm:$0xff] %vm398_vm1, %v917_v56  ;;  %v1907_v58 = vpack.i.bf16 %v955_v55, %v954_v57  ;;  %v2255_v59 = vpack.c.bf16 %v955_v55, %v954_v57  ;;  %v940_v55 = vld [vmem:[%s2444_s5] sm:$0xff]  ;;  %v941_v56 = vld [vmem:[%s2444_s5 + $0x8] sm:$0xff]  ;;  %v942_v57 = vld [vmem:[%s2444_s5 + $0x10] sm:$0xff] }
 0x293   : > { %1908 = vrot.lane.b32.xlu1 %v1907_v58, %s1932_s19  ;;  %v957_v60 = vld [vmem:[#allocation3 + $0x38] sm:$0xff]  ;;  %v943_v58 = vld [vmem:[%s2444_s5 + $0x18] sm:$0xff] }
 0x294   : > { %v956_v61 = vld [vmem:[#allocation3 + $0x30] sm:$0xff] }
 0x295   : > { %v1912_v63 = vpack.i.bf16 %v957_v60, %v956_v61  ;;  %v2262_v0 = vpack.c.bf16 %v957_v60, %v956_v61  ;;  %v945_v60 = vld [vmem:[%s2444_s5 + $0x28] sm:$0xff]  ;;  %v946_v61 = vld [vmem:[%s2444_s5 + $0x30] sm:$0xff] }
 0x297   : > { %1913 = vrot.lane.b32.xlu0 %v1912_v63, %s1932_s19  ;;  %v959_v1 = vld [vmem:[#allocation3 + $0x48] sm:$0xff]  ;;  %v948_v63 = vld [vmem:[%s2444_s5 + $0x40] sm:$0xff] }
 0x298   : > { %v958_v13 = vld [vmem:[#allocation3 + $0x40] sm:$0xff] }
 0x299   : > { %v1917_v14 = vpack.i.bf16 %v959_v1, %v958_v13  ;;  %v2268_v15 = vpack.c.bf16 %v959_v1, %v958_v13 }
 0x29b   : > { %1312 = vperm.xlu0 %1896, %v1300_v2   ;;  %1918 = vrot.lane.b32.xlu1 %v1917_v14, %s1932_s19 }
 0x29f   : > { %1322 = vperm.xlu0 %1896, %v1302_v16   ;;  %1317 = vperm.xlu1 %1895, %v1301_v17  }
 0x2a3   : > { %1332 = vperm.xlu0 %1896, %v1304_v18   ;;  %1327 = vperm.xlu1 %1895, %v1303_v19  }
 0x2a7   : > { %1342 = vperm.xlu0 %1896, %v1306_v20   ;;  %1337 = vperm.xlu1 %1895, %v1305_v21  }
 0x2ab   : > { %1352 = vperm.xlu0 %1896, %v1308_v22   ;;  %1347 = vperm.xlu1 %1895, %v1307_v23  }
 0x2af   : > { %1387 = vperm.xlu0 %1896, %v1534_v24   ;;  %1357 = vperm.xlu1 %1895, %v1309_v25  }
 0x2fd   : > { %v1899_v26 = vpop.permute.xlu1 %1898 }
 0x2fe   : > { %v1901_v27 = vunpack.i.h.bf16 %v1899_v26  ;;  %v1900_v28 = vunpack.i.l.bf16 %v1899_v26 }
 0x300   : > { %v1797_v29 = vpack.c.bf16 %v1901_v27, %v1900_v28 }
 0x301   : > { %v1904_v30 = vpop.permute.xlu0 %1903 }
 0x302   : > { %v1906_v31 = vunpack.i.h.bf16 %v1904_v30  ;;  %v1905_v32 = vunpack.i.l.bf16 %v1904_v30  ;;  %1798 = vmatprep.subr.bf16.mxu1 %v1797_v29 }
 0x303   : > { %1800 = vmatpush3.bf16.msra.mxu1 %v1797_v29 }
 0x304   : > { %v1801_v33 = vpack.c.bf16 %v1906_v31, %v1905_v32 }
 0x305   : > { %v1909_v34 = vpop.permute.xlu1 %1908 }
 0x306   : > { %v1911_v35 = vunpack.i.h.bf16 %v1909_v34  ;;  %v1910_v36 = vunpack.i.l.bf16 %v1909_v34  ;;  %1802 = vmatprep.subr.bf16.mxu1 %v1801_v33 }
 0x307   : > { %1804 = vmatpush3.bf16.msra.mxu1 %v1801_v33 }
 0x308   : > { %v1805_v37 = vpack.c.bf16 %v1911_v35, %v1910_v36 }
 0x309   : > { %v1914_v38 = vpop.permute.xlu0 %1913 }
 0x30a   : > { %v1916_v39 = vunpack.i.h.bf16 %v1914_v38  ;;  %v1915_v40 = vunpack.i.l.bf16 %v1914_v38  ;;  %1806 = vmatprep.subr.bf16.mxu1 %v1805_v37 }
 0x30b   : > { %1808 = vmatpush3.bf16.msra.mxu1 %v1805_v37 }
 0x30c   : > { %v1809_v41 = vpack.c.bf16 %v1916_v39, %v1915_v40 }
 0x30d   : > { %v1919_v42 = vpop.permute.xlu1 %1918 }
 0x30e   : > { %v1921_v43 = vunpack.i.h.bf16 %v1919_v42  ;;  %v1920_v44 = vunpack.i.l.bf16 %v1919_v42  ;;  %1810 = vmatprep.subr.bf16.mxu1 %v1809_v41 }
 0x30f   : > { %1812 = vmatpush3.bf16.msra.mxu1 %v1809_v41 }
 0x310   : > { %v1813_v45 = vpack.c.bf16 %v1921_v43, %v1920_v44 }
 0x312   : > { %1814 = vmatprep.subr.bf16.mxu1 %v1813_v45 }
 0x313   : > { %1816 = vmatpush3.bf16.msra.mxu1 %v1813_v45 }
 0x314   : > { %1818 = vmatprep.subr.bf16.mxu1 %v2245_v47 }
 0x316   : > { %1708 = vmatmul.mubr.msk.f32.vlgmr.msra.gmra.mrb[0].mxu1 %vm479_vm2, %v961_v46 }
 0x317   : > { %1820 = vmatpush3.bf16.msra.mxu1 %v2245_v47  ;;  %1710 = vmatprep.mubr.msk.f32.mxu1 %vm479_vm2, %v962_v48  ;;  %v965_v47 = vld [vmem:[%s2445_s6 + $0x28] sm:$0xff] }
 0x318   : > { %1822 = vmatprep.subr.bf16.mxu1 %v2250_v53 }
 0x31a   : > { %1711 = vmatmul.mubr.msk.f32.gmra.mrb[2].mxu1 %vm479_vm2, %v963_v49  ;;  %v1313_v1 = vpop.permute.xlu0 %1312 }
 0x31b   : > { %1824 = vmatpush3.bf16.msra.mxu1 %v2250_v53  ;;  %1713 = vmatprep.mubr.msk.f32.mxu1 %vm479_vm2, %v964_v50  ;;  %v968_v53 = vld [vmem:[%s2445_s6 + $0x40] sm:$0xff] }
 0x31c   : > { %1826 = vmatprep.subr.bf16.mxu1 %v2255_v59 }
 0x31e   : > { %1714 = vmatmul.mubr.msk.f32.gmra.mrb[4].mxu1 %vm479_vm2, %v965_v47  ;;  %v1323_v2 = vpop.permute.xlu0 %1322 }
 0x31f   : > { %1828 = vmatpush3.bf16.msra.mxu1 %v2255_v59  ;;  %1716 = vmatprep.mubr.msk.f32.mxu1 %vm479_vm2, %v966_v51  ;;  %v944_v59 = vld [vmem:[%s2444_s5 + $0x20] sm:$0xff] }
 0x320   : > { %1830 = vmatprep.subr.bf16.mxu1 %v2262_v0 }
 0x322   : > { %1717 = vmatmul.mubr.msk.f32.gmra.mrb[6].mxu1 %vm479_vm2, %v967_v52  ;;  %v1333_v13 = vpop.permute.xlu0 %1332 }
 0x323   : > { %1832 = vmatpush3.bf16.msra.mxu1 %v2262_v0  ;;  %1719 = vmatprep.mubr.msk.f32.mxu1 %vm479_vm2, %v968_v53  ;;  %v949_v0 = vld [vmem:[%s2444_s5 + $0x48] sm:$0xff] }
 0x324   : > { %1834 = vmatprep.subr.bf16.mxu1 %v2268_v15 }
 0x326   : > { %1720 = vmatmul.mubr.msk.f32.gmra.mrb[8].mxu1 %vm479_vm2, %v969_v54  ;;  %v1343_v14 = vpop.permute.xlu0 %1342 }
 0x327   : > { %1836 = vmatpush3.bf16.msra.mxu1 %v2268_v15  ;;  %1742 = vmatprep.mubr.msk.f32.mxu1 %vm479_vm2, %v940_v55  ;;  %v1318_v15 = vpop.permute.xlu1 %1317 }
 0x32a   : > { %1743 = vmatmul.mubr.msk.f32.vlgmr.msra.gmra.mrb[0].mxu1 %vm479_vm2, %v941_v56  ;;  %v2384_v16 = vpop.permute.xlu0 %1352 }
 0x32b   : > { %1745 = vmatprep.mubr.msk.f32.mxu1 %vm479_vm2, %v942_v57  ;;  %v1328_v17 = vpop.permute.xlu1 %1327 }
 0x32e   : > { %1746 = vmatmul.mubr.msk.f32.gmra.mrb[2].mxu1 %vm479_vm2, %v943_v58  ;;  %v2386_v21 = vpop.permute.xlu0 %1387 }
 0x32f   : > { %1748 = vmatprep.mubr.msk.f32.mxu1 %vm479_vm2, %v944_v59  ;;  %v1338_v24 = vpop.permute.xlu1 %1337 }
 0x332   : > { %1749 = vmatmul.mubr.msk.f32.gmra.mrb[4].mxu1 %vm479_vm2, %v945_v60 }
 0x333   : > { %1751 = vmatprep.mubr.msk.f32.mxu1 %vm479_vm2, %v946_v61  ;;  %v1348_v39 = vpop.permute.xlu1 %1347 }
 0x336   : > { %1752 = vmatmul.mubr.msk.f32.gmra.mrb[6].mxu1 %vm479_vm2, %v947_v62 }
 0x337   : > { %1754 = vmatprep.mubr.msk.f32.mxu1 %vm479_vm2, %v948_v63  ;;  %v1358_v52 = vpop.permute.xlu1 %1357 }
 0x33a   : > { %1755 = vmatmul.mubr.msk.f32.gmra.mrb[8].mxu1 %vm479_vm2, %v949_v0 }
 0x3fd   : > { %v1744_v18 = vpop.f32.mrb[0].mxu1 }
 0x3fe   : > { %v1361_v19 = vadd.f32 %v1744_v18, %v1318_v15  ;;  %v1251_v20 = vpop.f32.mrb[1].mxu1 }
 0x3ff   : > { %v1360_v22 = vadd.f32 %v1313_v1, %v1251_v20 }
 0x400   : > { %vm1371_vm13 = vcmp.gt.f32.partialorder %v1361_v19, 0.0  ;;  %v1391_v23 = vmul.f32 %v2386_v21, %v1361_v19 }
 0x401   : > { %vm1370_vm14 = vcmp.gt.f32.partialorder %v1360_v22, 0.0  ;;  %v1390_v25 = vmul.f32 %v2386_v21, %v1360_v22  ;;  %v1747_v26 = vpop.f32.mrb[2].mxu1 }
 0x402   : > { %v1401_v27 = vsel %vm1371_vm13, %v1361_v19, %v1391_v23  ;;  %v1363_v28 = vadd.f32 %v1747_v26, %v1328_v17  ;;  %v1261_v29 = vpop.f32.mrb[3].mxu1 }
 0x403   : > { %v1411_v30 = vadd.f32 %v1401_v27, %v2042_v6  ;;  %v1400_v31 = vsel %vm1370_vm14, %v1360_v22, %v1390_v25  ;;  %v1362_v32 = vadd.f32 %v1323_v2, %v1261_v29 }
 0x404   : > { %v1410_v33 = vadd.f32 %v1400_v31, %v2034_v4  ;;  %vm1373_vm0 = vcmp.gt.f32.partialorder %v1363_v28, 0.0  ;;  %v1393_v34 = vmul.f32 %v2386_v21, %v1363_v28 }
 0x405   : > { %1422 = vst.msk [vmem:[%s2395_s27 + $0x8] sm:$0xff] %vm1420_vm15, %v1411_v30  ;;  %vm1372_vm1 = vcmp.gt.f32.partialorder %v1362_v32, 0.0  ;;  %v1392_v35 = vmul.f32 %v2386_v21, %v1362_v32  ;;  %v1750_v36 = vpop.f32.mrb[4].mxu1 }
 0x406   : > { %1421 = vst.msk [vmem:[%s2395_s27] sm:$0xff] %vm1420_vm15, %v1410_v33  ;;  %v1403_v37 = vsel %vm1373_vm0, %v1363_v28, %v1393_v34  ;;  %v1365_v38 = vadd.f32 %v1750_v36, %v1338_v24  ;;  %v1271_v6 = vpop.f32.mrb[5].mxu1 }
 0x407   : > { %v1413_v40 = vadd.f32 %v1403_v37, %v2040_v5  ;;  %v1402_v4 = vsel %vm1372_vm1, %v1362_v32, %v1392_v35  ;;  %v1364_v41 = vadd.f32 %v1333_v13, %v1271_v6 }
 0x408   : > { %v1412_v42 = vadd.f32 %v1402_v4, %v2032_v3  ;;  %vm1375_vm2 = vcmp.gt.f32.partialorder %v1365_v38, 0.0  ;;  %v1395_v43 = vmul.f32 %v2386_v21, %v1365_v38 }
 0x409   : > { %1424 = vst.msk [vmem:[%s2395_s27 + $0x18] sm:$0xff] %vm1420_vm15, %v1413_v40  ;;  %vm1374_vm3 = vcmp.gt.f32.partialorder %v1364_v41, 0.0  ;;  %v1394_v44 = vmul.f32 %v2386_v21, %v1364_v41  ;;  %v1753_v45 = vpop.f32.mrb[6].mxu1 }
 0x40a   : > { %1423 = vst.msk [vmem:[%s2395_s27 + $0x10] sm:$0xff] %vm1420_vm15, %v1412_v42  ;;  %v1405_v46 = vsel %vm1375_vm2, %v1365_v38, %v1395_v43  ;;  %v1367_v48 = vadd.f32 %v1753_v45, %v1348_v39  ;;  %v1281_v5 = vpop.f32.mrb[7].mxu1 }
 0x40b   : > { %v1415_v49 = vadd.f32 %v1405_v46, %v2048_v7  ;;  %v1404_v50 = vsel %vm1374_vm3, %v1364_v41, %v1394_v44  ;;  %v1366_v3 = vadd.f32 %v1343_v14, %v1281_v5 }
 0x40c   : > { %v1414_v47 = vadd.f32 %v1404_v50, %v2050_v8  ;;  %vm1377_vm4 = vcmp.gt.f32.partialorder %v1367_v48, 0.0  ;;  %v1397_v51 = vmul.f32 %v2386_v21, %v1367_v48 }
 0x40d   : > { %1426 = vst.msk [vmem:[%s2395_s27 + $0x28] sm:$0xff] %vm1420_vm15, %v1415_v49  ;;  %vm1376_vm5 = vcmp.gt.f32.partialorder %v1366_v3, 0.0  ;;  %v1396_v53 = vmul.f32 %v2386_v21, %v1366_v3  ;;  %v1756_v54 = vpop.f32.mrb[8].mxu1 }
 0x40e   : > { %1425 = vst.msk [vmem:[%s2395_s27 + $0x20] sm:$0xff] %vm1420_vm15, %v1414_v47  ;;  %v1407_v55 = vsel %vm1377_vm4, %v1367_v48, %v1397_v51  ;;  %v1369_v7 = vadd.f32 %v1756_v54, %v1358_v52  ;;  %v1291_v56 = vpop.f32.mrb[9].mxu1 }
 0x40f   : > { %v1417_v8 = vadd.f32 %v1407_v55, %v2056_v9  ;;  %v1406_v57 = vsel %vm1376_vm5, %v1366_v3, %v1396_v53  ;;  %v1368_v58 = vadd.f32 %v2384_v16, %v1291_v56 }
 0x410   : > { %v1416_v59 = vadd.f32 %v1406_v57, %v2058_v10  ;;  %vm1379_vm6 = vcmp.gt.f32.partialorder %v1369_v7, 0.0  ;;  %v1399_v60 = vmul.f32 %v2386_v21, %v1369_v7 }
 0x411   : > { %1428 = vst.msk [vmem:[%s2395_s27 + $0x38] sm:$0xff] %vm1420_vm15, %v1417_v8  ;;  %vm1378_vm7 = vcmp.gt.f32.partialorder %v1368_v58, 0.0  ;;  %v1398_v61 = vmul.f32 %v2386_v21, %v1368_v58 }
 0x412   : > { %1427 = vst.msk [vmem:[%s2395_s27 + $0x30] sm:$0xff] %vm1420_vm15, %v1416_v59  ;;  %v1409_v62 = vsel %vm1379_vm6, %v1369_v7, %v1399_v60 }
 0x413   : > { %v1419_v63 = vadd.f32 %v1409_v62, %v2064_v11  ;;  %v1408_v0 = vsel %vm1378_vm7, %v1368_v58, %v1398_v61 }
 0x414   : > { %v1418_v9 = vadd.f32 %v1408_v0, %v2066_v12 }
 0x415   : > { %1430 = vst.msk [vmem:[%s2395_s27 + $0x48] sm:$0xff] %vm1420_vm15, %v1419_v63 }
 0x416   : > { %1429 = vst.msk [vmem:[%s2395_s27 + $0x40] sm:$0xff] %vm1420_vm15, %v1418_v9 }
 0x417 PF: > { %s23_s13 = sadd.s32 1, %s1928_s13  }
 0x418   : > { %p20_p4 = scmp.ge.s32.totalorder %s23_s13, 4  }
 0x41a   :  { %22 = sbr.rel (!%p20_p4) target bundleno = 3 (0x3), region = 86 }

// kernel: discriminator_forward.15
= control target key start
LH: loop header
LB: loop body
LE: loop exit
PB: predicated region body
PF: predicated region fallthrough
CT: control target
= control target key end

     0   :  { %s1990_s13 = smov 0   ;;  %s2439_s0 = inlined_call_operand.vmem [shape: f32[2,80,16], index: 0, kind: input, shape index: {}]   ;;  %s2440_s1 = inlined_call_operand.vmem [shape: f32[80,80], index: 1, kind: input, shape index: {}]   ;;  %s2441_s2 = inlined_call_operand.vmem [shape: f32[80,80], index: 2, kind: input, shape index: {}]   ;;  %s2442_s3 = inlined_call_operand.vmem [shape: f32[80,1], index: 3, kind: input, shape index: {}]   ;;  %s2443_s4 = inlined_call_operand.<no memory space> [shape: f32[1,1], index: 4, kind: input, shape index: {}]   ;;  %s2444_s5 = inlined_call_operand.vmem [shape: f32[80,80], index: 5, kind: input, shape index: {}]   ;;  %s2445_s6 = inlined_call_operand.vmem [shape: f32[80,80], index: 6, kind: input, shape index: {}]   ;;  %s2446_s7 = inlined_call_operand.vmem [shape: f32[80,1], index: 7, kind: input, shape index: {}]   ;;  %s2447_s9 = inlined_call_operand.vmem [shape: f32[2,80,16], index: 9, kind: output, shape index: {}]   ;;  %s2448_s8 = inlined_call_operand.<no memory space> [shape: f32[1,1], index: 8, kind: input, shape index: {}]  }
   0x1   :  { %v14_v0 = vstv %s2443_s4  ;;  %v16_v1 = vstv %s2448_s8 }
   0x2   :  { %15 = vst [vmem:[#allocation4] sm:$0x1] %v14_v0  ;;  %17 = vst [vmem:[#allocation5] sm:$0x1] %v16_v1 }
   0x3 LB: > { %s1486_s14 = sadd.s32 4294967295, %s1928_s13   ;;  %p1490_p0 = scmp.ge.s32.totalorder %s1928_s13, 1  ;;  %s1928_s13 = sphi %s1990_s13, %s23_s13  }
   0x4   : > { %p291_p1 = scmp.lt.s32.totalorder %s1928_s13, 3 }
   0x6   : > { %p292_p2 = pnand %p1490_p0, %p291_p1 }
   0x7   : > { %p1998_p3 = scmp.lt.s32.totalorder (!%p292_p2), %s1486_s14, 1  ;;  %vm347_vm0 = vcmask (!%p292_p2), 392192   ;;  %v1930_v2 = vmov (!%p292_p2), 0.0   ;;  %s1931_s18 = smov (!%p292_p2), 16   ;;  %vm398_vm1 = vcmask (!%p292_p2), 261248   ;;  %v429_v41 = vld [vmem:[%s2441_s2] sm:$0xff] (!%p292_p2) }
   0x8   : > { %295 = sbr.rel (%p292_p2) target bundleno = 1047 (0x417), region = 56  ;;  %350 = vst.msk [vmem:[#allocation2 + $0x10] sm:$0xff] (!%p292_p2), %vm347_vm0, %v1930_v2  ;;  %348 = vst.msk [vmem:[#allocation2] sm:$0xff] (!%p292_p2), %vm347_vm0, %v1930_v2  ;;  %s1932_s19 = smov (!%p292_p2), 96   ;;  %vm479_vm2 = vcmask (!%p292_p2), 654336   ;;  %v770_v44 = vld [vmem:[%s2442_s3] sm:$0xff] (!%p292_p2) }
   0x9   : > { %349 = vst.msk [vmem:[#allocation2 + $0x8] sm:$0xff] (!%p292_p2), %vm347_vm0, %v1930_v2  ;;  %351 = vst.msk [vmem:[#allocation2 + $0x18] sm:$0xff] (!%p292_p2), %vm347_vm0, %v1930_v2  ;;  %1637 = vmatprep.mubr.msk.f32.mxu0 (!%p292_p2), %vm479_vm2, %v429_v41  ;;  %v1933_v45 = vmov (!%p292_p2), 0   ;;  %v771_v46 = vld [vmem:[%s2442_s3 + $0x8] sm:$0xff] (!%p292_p2)  ;;  %v1513_v47 = vld [vmem:[#allocation4] ss:$0 sm:$0xff] (!%p292_p2) }
   0xa   : > { %352 = vst.msk [vmem:[#allocation2 + $0x20] sm:$0xff] (!%p292_p2), %vm347_vm0, %v1930_v2  ;;  %353 = vst.msk [vmem:[#allocation2 + $0x28] sm:$0xff] (!%p292_p2), %vm347_vm0, %v1930_v2  ;;  %1895 = vset.pattern.permute.xlu1 (!%p292_p2), %v1933_v45  ;;  %1896 = vset.pattern.permute.xlu0 (!%p292_p2), %v1933_v45  ;;  %v773_v48 = vld [vmem:[%s2442_s3 + $0x18] sm:$0xff] (!%p292_p2)  ;;  %v772_v49 = vld [vmem:[%s2442_s3 + $0x10] sm:$0xff] (!%p292_p2)  ;;  %vm1420_vm15 = vcmask (!%p292_p2), 130048  }
   0xb   : > { %354 = vst.msk [vmem:[#allocation2 + $0x30] sm:$0xff] (!%p292_p2), %vm347_vm0, %v1930_v2  ;;  %355 = vst.msk [vmem:[#allocation2 + $0x38] sm:$0xff] (!%p292_p2), %vm347_vm0, %v1930_v2  ;;  %v775_v50 = vld [vmem:[%s2442_s3 + $0x28] sm:$0xff] (!%p292_p2)  ;;  %v774_v51 = vld [vmem:[%s2442_s3 + $0x20] sm:$0xff] (!%p292_p2) }
   0xc   : > { %356 = vst.msk [vmem:[#allocation2 + $0x40] sm:$0xff] (!%p292_p2), %vm347_vm0, %v1930_v2  ;;  %357 = vst.msk [vmem:[#allocation2 + $0x48] sm:$0xff] (!%p292_p2), %vm347_vm0, %v1930_v2  ;;  %v777_v52 = vld [vmem:[%s2442_s3 + $0x38] sm:$0xff] (!%p292_p2)  ;;  %v776_v53 = vld [vmem:[%s2442_s3 + $0x30] sm:$0xff] (!%p292_p2) }
   0xd   : > { %880 = vst.msk [vmem:[#allocation3] sm:$0xff] (!%p292_p2), %vm347_vm0, %v1930_v2  ;;  %881 = vst.msk [vmem:[#allocation3 + $0x8] sm:$0xff] (!%p292_p2), %vm347_vm0, %v1930_v2  ;;  %v779_v54 = vld [vmem:[%s2442_s3 + $0x48] sm:$0xff] (!%p292_p2)  ;;  %v778_v55 = vld [vmem:[%s2442_s3 + $0x40] sm:$0xff] (!%p292_p2) }
   0xe   : > { %882 = vst.msk [vmem:[#allocation3 + $0x10] sm:$0xff] (!%p292_p2), %vm347_vm0, %v1930_v2  ;;  %883 = vst.msk [vmem:[#allocation3 + $0x18] sm:$0xff] (!%p292_p2), %vm347_vm0, %v1930_v2 }
   0xf   : > { %884 = vst.msk [vmem:[#allocation3 + $0x20] sm:$0xff] %vm347_vm0, %v1930_v2  ;;  %885 = vst.msk [vmem:[#allocation3 + $0x28] sm:$0xff] %vm347_vm0, %v1930_v2  ;;  %s2451_s14 = smov (!%p1998_p3, %s1486_s14), 1 }
  0x10   : > { %886 = vst.msk [vmem:[#allocation3 + $0x30] sm:$0xff] %vm347_vm0, %v1930_v2  ;;  %887 = vst.msk [vmem:[#allocation3 + $0x38] sm:$0xff] %vm347_vm0, %v1930_v2  ;;  %s1857_s8 = smul.u32 80, %s2451_s14 }
  0x11   : > { %888 = vst.msk [vmem:[#allocation3 + $0x40] sm:$0xff] %vm347_vm0, %v1930_v2  ;;  %889 = vst.msk [vmem:[#allocation3 + $0x48] sm:$0xff] %vm347_vm0, %v1930_v2 }
  0x12   : > { %s331_s17 = scalar_lea.vmem %s2439_s0, %s1857_s8  ;;  %s2395_s27 = scalar_lea.vmem %s2447_s9, %s1857_s8 }
  0x13   : > { %v2032_v3 = vld [vmem:[%s331_s17 + $0x10] sm:$0xff]  ;;  %v2034_v4 = vld [vmem:[%s331_s17] sm:$0xff]  ;;  %v2040_v5 = vld [vmem:[%s331_s17 + $0x18] sm:$0xff] }
  0x14   : > { %372 = vrot.lane.b32.xlu1 %v2032_v3, %s1931_s18  ;;  %368 = vrot.lane.b32.xlu0 %v2034_v4, %s1931_s18  ;;  %v2042_v6 = vld [vmem:[%s331_s17 + $0x8] sm:$0xff]  ;;  %v2050_v8 = vld [vmem:[%s331_s17 + $0x20] sm:$0xff] }
  0x15   : > { %v2048_v7 = vld [vmem:[%s331_s17 + $0x28] sm:$0xff]  ;;  %v2056_v9 = vld [vmem:[%s331_s17 + $0x38] sm:$0xff]  ;;  %v2058_v10 = vld [vmem:[%s331_s17 + $0x30] sm:$0xff] }
  0x16   : > { %v2064_v11 = vld [vmem:[%s331_s17 + $0x48] sm:$0xff]  ;;  %v2066_v12 = vld [vmem:[%s331_s17 + $0x40] sm:$0xff] }
  0x18   : > { %374 = vrot.lane.b32.xlu1 %v2040_v5, %s1931_s18  ;;  %370 = vrot.lane.b32.xlu0 %v2042_v6, %s1931_s18 }
  0x1c   : > { %378 = vrot.lane.b32.xlu1 %v2048_v7, %s1931_s18  ;;  %376 = vrot.lane.b32.xlu0 %v2050_v8, %s1931_s18 }
  0x20   : > { %382 = vrot.lane.b32.xlu1 %v2056_v9, %s1931_s18  ;;  %380 = vrot.lane.b32.xlu0 %v2058_v10, %s1931_s18 }
  0x24   : > { %386 = vrot.lane.b32.xlu1 %v2064_v11, %s1931_s18  ;;  %384 = vrot.lane.b32.xlu0 %v2066_v12, %s1931_s18 }
  0x86   : > { %v373_v13 = vpop.permute.xlu1 %372  ;;  %v369_v14 = vpop.permute.xlu0 %368 }
  0x87   : > { %401 = vst.msk [vmem:[#allocation2 + $0x10] sm:$0xff] %vm398_vm1, %v373_v13  ;;  %399 = vst.msk [vmem:[#allocation2] sm:$0xff] %vm398_vm1, %v369_v14 }
  0x8a   : > { %v375_v15 = vpop.permute.xlu1 %374  ;;  %v371_v16 = vpop.permute.xlu0 %370 }
  0x8b   : > { %402 = vst.msk [vmem:[#allocation2 + $0x18] sm:$0xff] %vm398_vm1, %v375_v15  ;;  %400 = vst.msk [vmem:[#allocation2 + $0x8] sm:$0xff] %vm398_vm1, %v371_v16 }
  0x8e   : > { %v379_v17 = vpop.permute.xlu1 %378  ;;  %v377_v18 = vpop.permute.xlu0 %376  ;;  %v421_v19 = vld [vmem:[#allocation2 + $0x10] sm:$0xff]  ;;  %v419_v21 = vld [vmem:[#allocation2] sm:$0xff] }
  0x8f   : > { %404 = vst.msk [vmem:[#allocation2 + $0x28] sm:$0xff] %vm398_vm1, %v379_v17  ;;  %403 = vst.msk [vmem:[#allocation2 + $0x20] sm:$0xff] %vm398_vm1, %v377_v18 }
  0x92   : > { %v422_v20 = vld [vmem:[#allocation2 + $0x18] sm:$0xff]  ;;  %v420_v22 = vld [vmem:[#allocation2 + $0x8] sm:$0xff]  ;;  %v383_v23 = vpop.permute.xlu1 %382  ;;  %v381_v24 = vpop.permute.xlu0 %380 }
  0x93   : > { %v1875_v25 = vpack.i.bf16 %v422_v20, %v421_v19  ;;  %v1870_v26 = vpack.i.bf16 %v420_v22, %v419_v21  ;;  %406 = vst.msk [vmem:[#allocation2 + $0x38] sm:$0xff] %vm398_vm1, %v383_v23  ;;  %405 = vst.msk [vmem:[#allocation2 + $0x30] sm:$0xff] %vm398_vm1, %v381_v24  ;;  %v2080_v27 = vpack.c.bf16 %v420_v22, %v419_v21  ;;  %v430_v22 = vld [vmem:[%s2441_s2 + $0x8] sm:$0xff]  ;;  %v431_v23 = vld [vmem:[%s2441_s2 + $0x10] sm:$0xff] }
  0x94   : > { %v2082_v28 = vpack.c.bf16 %v422_v20, %v421_v19  ;;  %v432_v24 = vld [vmem:[%s2441_s2 + $0x18] sm:$0xff] }
  0x95   : > { %1876 = vrot.lane.b32.xlu1 %v1875_v25, %s1932_s19  ;;  %1871 = vrot.lane.b32.xlu0 %v1870_v26, %s1932_s19  ;;  %v433_v25 = vld [vmem:[%s2441_s2 + $0x20] sm:$0xff]  ;;  %v434_v26 = vld [vmem:[%s2441_s2 + $0x28] sm:$0xff] }
  0x96   : > { %v387_v29 = vpop.permute.xlu1 %386  ;;  %v385_v30 = vpop.permute.xlu0 %384  ;;  %v423_v31 = vld [vmem:[#allocation2 + $0x20] sm:$0xff]  ;;  %v424_v32 = vld [vmem:[#allocation2 + $0x28] sm:$0xff] }
  0x97   : > { %408 = vst.msk [vmem:[#allocation2 + $0x48] sm:$0xff] %vm398_vm1, %v387_v29  ;;  %407 = vst.msk [vmem:[#allocation2 + $0x40] sm:$0xff] %vm398_vm1, %v385_v30  ;;  %v1880_v33 = vpack.i.bf16 %v424_v32, %v423_v31  ;;  %v2088_v34 = vpack.c.bf16 %v424_v32, %v423_v31  ;;  %v437_v29 = vld [vmem:[%s2441_s2 + $0x40] sm:$0xff]  ;;  %v438_v30 = vld [vmem:[%s2441_s2 + $0x48] sm:$0xff] }
  0x98   : > { %v409_v31 = vld [vmem:[%s2440_s1] sm:$0xff]  ;;  %v410_v32 = vld [vmem:[%s2440_s1 + $0x8] sm:$0xff] }
  0x99   : > { %1881 = vrot.lane.b32.xlu0 %v1880_v33, %s1932_s19  ;;  %v411_v33 = vld [vmem:[%s2440_s1 + $0x10] sm:$0xff] }
  0x9a   : > { %v425_v35 = vld [vmem:[#allocation2 + $0x30] sm:$0xff]  ;;  %v426_v36 = vld [vmem:[#allocation2 + $0x38] sm:$0xff] }
  0x9b   : > { %v1885_v37 = vpack.i.bf16 %v426_v36, %v425_v35  ;;  %v2091_v38 = vpack.c.bf16 %v426_v36, %v425_v35  ;;  %v413_v35 = vld [vmem:[%s2440_s1 + $0x20] sm:$0xff]  ;;  %v414_v36 = vld [vmem:[%s2440_s1 + $0x28] sm:$0xff] }
  0x9d   : > { %1886 = vrot.lane.b32.xlu1 %v1885_v37, %s1932_s19  ;;  %v415_v37 = vld [vmem:[%s2440_s1 + $0x30] sm:$0xff] }
  0x9e   : > { %v427_v39 = vld [vmem:[#allocation2 + $0x40] sm:$0xff]  ;;  %v428_v40 = vld [vmem:[#allocation2 + $0x48] sm:$0xff] }
  0x9f   : > { %v1890_v42 = vpack.i.bf16 %v428_v40, %v427_v39  ;;  %v2098_v43 = vpack.c.bf16 %v428_v40, %v427_v39  ;;  %v417_v39 = vld [vmem:[%s2440_s1 + $0x40] sm:$0xff]  ;;  %v418_v40 = vld [vmem:[%s2440_s1 + $0x48] sm:$0xff] }
  0xa1   : > { %1891 = vrot.lane.b32.xlu0 %v1890_v42, %s1932_s19  ;;  %782 = vperm.xlu1 %1895, %v770_v44  }
  0xa5   : > { %787 = vperm.xlu0 %1896, %v771_v46   ;;  %857 = vperm.xlu1 %1895, %v1513_v47  }
  0xa9   : > { %797 = vperm.xlu0 %1896, %v773_v48   ;;  %792 = vperm.xlu1 %1895, %v772_v49  }
  0xad   : > { %807 = vperm.xlu0 %1896, %v775_v50   ;;  %802 = vperm.xlu1 %1895, %v774_v51  }
  0xb1   : > { %817 = vperm.xlu0 %1896, %v777_v52   ;;  %812 = vperm.xlu1 %1895, %v776_v53  }
  0xb5   : > { %827 = vperm.xlu0 %1896, %v779_v54   ;;  %822 = vperm.xlu1 %1895, %v778_v55  }
 0x107   : > { %v1877_v56 = vpop.permute.xlu1 %1876  ;;  %v1872_v57 = vpop.permute.xlu0 %1871 }
 0x108   : > { %v1879_v58 = vunpack.i.h.bf16 %v1877_v56  ;;  %v1878_v59 = vunpack.i.l.bf16 %v1877_v56  ;;  %v1874_v60 = vunpack.i.h.bf16 %v1872_v57  ;;  %v1873_v61 = vunpack.i.l.bf16 %v1872_v57 }
 0x10a   : > { %v1757_v62 = vpack.c.bf16 %v1874_v60, %v1873_v61  ;;  %v1761_v0 = vpack.c.bf16 %v1879_v58, %v1878_v59 }
 0x10b   : > { %v1882_v63 = vpop.permute.xlu0 %1881 }
 0x10c   : > { %1758 = vmatprep.subr.bf16.mxu0 %v1757_v62  ;;  %v1884_v1 = vunpack.i.h.bf16 %v1882_v63  ;;  %v1883_v2 = vunpack.i.l.bf16 %v1882_v63 }
 0x10d   : > { %1760 = vmatpush3.bf16.msra.mxu0 %v1757_v62 }
 0x10e   : > { %1762 = vmatprep.subr.bf16.mxu0 %v1761_v0  ;;  %v1765_v13 = vpack.c.bf16 %v1884_v1, %v1883_v2 }
 0x10f   : > { %v1887_v14 = vpop.permute.xlu1 %1886 }
 0x110   : > { %v1889_v15 = vunpack.i.h.bf16 %v1887_v14  ;;  %v1888_v16 = vunpack.i.l.bf16 %v1887_v14 }
 0x111   : > { %1764 = vmatpush3.bf16.msra.mxu0 %v1761_v0 }
 0x112   : > { %v1769_v17 = vpack.c.bf16 %v1889_v15, %v1888_v16  ;;  %1766 = vmatprep.subr.bf16.mxu0 %v1765_v13 }
 0x113   : > { %v1892_v18 = vpop.permute.xlu0 %1891 }
 0x114   : > { %v1894_v19 = vunpack.i.h.bf16 %v1892_v18  ;;  %v1893_v20 = vunpack.i.l.bf16 %v1892_v18 }
 0x115   : > { %1768 = vmatpush3.bf16.msra.mxu0 %v1765_v13 }
 0x116   : > { %v1773_v21 = vpack.c.bf16 %v1894_v19, %v1893_v20  ;;  %1770 = vmatprep.subr.bf16.mxu0 %v1769_v17 }
 0x119   : > { %1772 = vmatpush3.bf16.msra.mxu0 %v1769_v17 }
 0x11a   : > { %1774 = vmatprep.subr.bf16.mxu0 %v1773_v21 }
 0x11d   : > { %1776 = vmatpush3.bf16.msra.mxu0 %v1773_v21 }
 0x11e   : > { %1778 = vmatprep.subr.bf16.mxu0 %v2080_v27 }
 0x120   : > { %1638 = vmatmul.mubr.msk.f32.vlgmr.msra.gmra.mrb[0].mxu0 %vm479_vm2, %v430_v22  ;;  %v783_v41 = vpop.permute.xlu1 %782 }
 0x121   : > { %1780 = vmatpush3.bf16.msra.mxu0 %v2080_v27  ;;  %1640 = vmatprep.mubr.msk.f32.mxu0 %vm479_vm2, %v431_v23  ;;  %v435_v27 = vld [vmem:[%s2441_s2 + $0x30] sm:$0xff] }
 0x122   : > { %1782 = vmatprep.subr.bf16.mxu0 %v2082_v28 }
 0x124   : > { %1641 = vmatmul.mubr.msk.f32.gmra.mrb[2].mxu0 %vm479_vm2, %v432_v24  ;;  %v788_v42 = vpop.permute.xlu0 %787 }
 0x125   : > { %1784 = vmatpush3.bf16.msra.mxu0 %v2082_v28  ;;  %1643 = vmatprep.mubr.msk.f32.mxu0 %vm479_vm2, %v433_v25  ;;  %v436_v28 = vld [vmem:[%s2441_s2 + $0x38] sm:$0xff] }
 0x126   : > { %1786 = vmatprep.subr.bf16.mxu0 %v2088_v34 }
 0x128   : > { %1644 = vmatmul.mubr.msk.f32.gmra.mrb[4].mxu0 %vm479_vm2, %v434_v26  ;;  %v798_v44 = vpop.permute.xlu0 %797 }
 0x129   : > { %1788 = vmatpush3.bf16.msra.mxu0 %v2088_v34  ;;  %1646 = vmatprep.mubr.msk.f32.mxu0 %vm479_vm2, %v435_v27  ;;  %v412_v34 = vld [vmem:[%s2440_s1 + $0x18] sm:$0xff] }
 0x12a   : > { %1790 = vmatprep.subr.bf16.mxu0 %v2091_v38 }
 0x12c   : > { %1647 = vmatmul.mubr.msk.f32.gmra.mrb[6].mxu0 %vm479_vm2, %v436_v28  ;;  %v808_v51 = vpop.permute.xlu0 %807 }
 0x12d   : > { %1792 = vmatpush3.bf16.msra.mxu0 %v2091_v38  ;;  %1649 = vmatprep.mubr.msk.f32.mxu0 %vm479_vm2, %v437_v29  ;;  %v416_v38 = vld [vmem:[%s2440_s1 + $0x38] sm:$0xff] }
 0x12e   : > { %1794 = vmatprep.subr.bf16.mxu0 %v2098_v43 }
 0x130   : > { %1650 = vmatmul.mubr.msk.f32.gmra.mrb[8].mxu0 %vm479_vm2, %v438_v30  ;;  %v818_v2 = vpop.permute.xlu0 %817 }
 0x131   : > { %1796 = vmatpush3.bf16.msra.mxu0 %v2098_v43  ;;  %1672 = vmatprep.mubr.msk.f32.mxu0 %vm479_vm2, %v409_v31  ;;  %v2217_v43 = vpop.permute.xlu1 %857 }
 0x134   : > { %1673 = vmatmul.mubr.msk.f32.vlgmr.msra.gmra.mrb[0].mxu0 %vm479_vm2, %v410_v32  ;;  %v828_v25 = vpop.permute.xlu0 %827 }
 0x135   : > { %1675 = vmatprep.mubr.msk.f32.mxu0 %vm479_vm2, %v411_v33  ;;  %v793_v45 = vpop.permute.xlu1 %792 }
 0x138   : > { %1676 = vmatmul.mubr.msk.f32.gmra.mrb[2].mxu0 %vm479_vm2, %v412_v34 }
 0x139   : > { %1678 = vmatprep.mubr.msk.f32.mxu0 %vm479_vm2, %v413_v35  ;;  %v803_v54 = vpop.permute.xlu1 %802 }
 0x13c   : > { %1679 = vmatmul.mubr.msk.f32.gmra.mrb[4].mxu0 %vm479_vm2, %v414_v36 }
 0x13d   : > { %1681 = vmatprep.mubr.msk.f32.mxu0 %vm479_vm2, %v415_v37  ;;  %v813_v15 = vpop.permute.xlu1 %812 }
 0x140   : > { %1682 = vmatmul.mubr.msk.f32.gmra.mrb[6].mxu0 %vm479_vm2, %v416_v38 }
 0x141   : > { %1684 = vmatprep.mubr.msk.f32.mxu0 %vm479_vm2, %v417_v39  ;;  %v823_v28 = vpop.permute.xlu1 %822 }
 0x144   : > { %1685 = vmatmul.mubr.msk.f32.gmra.mrb[8].mxu0 %vm479_vm2, %v418_v40 }
 0x207   : > { %v1674_v46 = vpop.f32.mrb[0].mxu0 }
 0x208   : > { %v831_v47 = vadd.f32 %v1674_v46, %v788_v42  ;;  %v721_v48 = vpop.f32.mrb[1].mxu0 }
 0x209   : > { %v830_v49 = vadd.f32 %v783_v41, %v721_v48 }
 0x20a   : > { %v861_v50 = vmul.f32 %v2217_v43, %v831_v47  ;;  %vm841_vm3 = vcmp.gt.f32.partialorder %v831_v47, 0.0 }
 0x20b   : > { %v860_v52 = vmul.f32 %v2217_v43, %v830_v49  ;;  %v1677_v53 = vpop.f32.mrb[2].mxu0  ;;  %vm840_vm4 = vcmp.gt.f32.partialorder %v830_v49, 0.0 }
 0x20c   : > { %v833_v55 = vadd.f32 %v1677_v53, %v798_v44  ;;  %v731_v56 = vpop.f32.mrb[3].mxu0  ;;  %v871_v57 = vsel %vm841_vm3, %v831_v47, %v861_v50 }
 0x20d   : > { %v832_v58 = vadd.f32 %v793_v45, %v731_v56  ;;  %902 = vrot.lane.b32.xlu0 %v871_v57, %s1931_s18  ;;  %v870_v59 = vsel %vm840_vm4, %v830_v49, %v860_v52 }
 0x20e   : > { %v863_v60 = vmul.f32 %v2217_v43, %v833_v55  ;;  %900 = vrot.lane.b32.xlu1 %v870_v59, %s1931_s18  ;;  %vm843_vm5 = vcmp.gt.f32.partialorder %v833_v55, 0.0 }
 0x20f   : > { %v862_v61 = vmul.f32 %v2217_v43, %v832_v58  ;;  %v1680_v62 = vpop.f32.mrb[4].mxu0  ;;  %vm842_vm6 = vcmp.gt.f32.partialorder %v832_v58, 0.0 }
 0x210   : > { %v835_v63 = vadd.f32 %v1680_v62, %v808_v51  ;;  %v741_v0 = vpop.f32.mrb[5].mxu0  ;;  %v873_v1 = vsel %vm843_vm5, %v833_v55, %v863_v60  ;;  %v960_v62 = vld [vmem:[%s2445_s6] sm:$0xff] }
 0x211   : > { %v834_v13 = vadd.f32 %v803_v54, %v741_v0  ;;  %906 = vrot.lane.b32.xlu0 %v873_v1, %s1931_s18  ;;  %v872_v14 = vsel %vm842_vm6, %v832_v58, %v862_v61  ;;  %1707 = vmatprep.mubr.msk.f32.mxu1 %vm479_vm2, %v960_v62  ;;  %v947_v62 = vld [vmem:[%s2444_s5 + $0x38] sm:$0xff] }
 0x212   : > { %v865_v16 = vmul.f32 %v2217_v43, %v835_v63  ;;  %904 = vrot.lane.b32.xlu1 %v872_v14, %s1931_s18  ;;  %vm845_vm7 = vcmp.gt.f32.partialorder %v835_v63, 0.0 }
 0x213   : > { %v864_v17 = vmul.f32 %v2217_v43, %v834_v13  ;;  %v1683_v18 = vpop.f32.mrb[6].mxu0  ;;  %vm844_vm8 = vcmp.gt.f32.partialorder %v834_v13, 0.0 }
 0x214   : > { %v837_v19 = vadd.f32 %v1683_v18, %v818_v2  ;;  %v751_v20 = vpop.f32.mrb[7].mxu0  ;;  %v875_v21 = vsel %vm845_vm7, %v835_v63, %v865_v16  ;;  %v1300_v2 = vld [vmem:[%s2446_s7] sm:$0xff]  ;;  %v1302_v16 = vld [vmem:[%s2446_s7 + $0x10] sm:$0xff] }
 0x215   : > { %v836_v22 = vadd.f32 %v813_v15, %v751_v20  ;;  %910 = vrot.lane.b32.xlu0 %v875_v21, %s1931_s18  ;;  %v874_v23 = vsel %vm844_vm8, %v834_v13, %v864_v17  ;;  %v1301_v17 = vld [vmem:[%s2446_s7 + $0x8] sm:$0xff]  ;;  %v1304_v18 = vld [vmem:[%s2446_s7 + $0x20] sm:$0xff]  ;;  %v1306_v20 = vld [vmem:[%s2446_s7 + $0x30] sm:$0xff] }
 0x216   : > { %v867_v24 = vmul.f32 %v2217_v43, %v837_v19  ;;  %908 = vrot.lane.b32.xlu1 %v874_v23, %s1931_s18  ;;  %vm847_vm9 = vcmp.gt.f32.partialorder %v837_v19, 0.0  ;;  %v1305_v21 = vld [vmem:[%s2446_s7 + $0x28] sm:$0xff]  ;;  %v1307_v23 = vld [vmem:[%s2446_s7 + $0x38] sm:$0xff] }
 0x217   : > { %v866_v26 = vmul.f32 %v2217_v43, %v836_v22  ;;  %v1686_v27 = vpop.f32.mrb[8].mxu0  ;;  %vm846_vm10 = vcmp.gt.f32.partialorder %v836_v22, 0.0 }
 0x218   : > { %v839_v29 = vadd.f32 %v1686_v27, %v828_v25  ;;  %v761_v30 = vpop.f32.mrb[9].mxu0  ;;  %v877_v31 = vsel %vm847_vm9, %v837_v19, %v867_v24  ;;  %v1303_v19 = vld [vmem:[%s2446_s7 + $0x18] sm:$0xff]  ;;  %v1534_v24 = vld [vmem:[#allocation5] ss:$0 sm:$0xff]  ;;  %v1309_v25 = vld [vmem:[%s2446_s7 + $0x48] sm:$0xff] }
 0x219   : > { %v838_v32 = vadd.f32 %v823_v28, %v761_v30  ;;  %914 = vrot.lane.b32.xlu0 %v877_v31, %s1931_s18  ;;  %v876_v33 = vsel %vm846_vm10, %v836_v22, %v866_v26  ;;  %v1308_v22 = vld [vmem:[%s2446_s7 + $0x40] sm:$0xff] }
 0x21a   : > { %v869_v34 = vmul.f32 %v2217_v43, %v839_v29  ;;  %912 = vrot.lane.b32.xlu1 %v876_v33, %s1931_s18  ;;  %vm849_vm11 = vcmp.gt.f32.partialorder %v839_v29, 0.0 }
 0x21b   : > { %v868_v35 = vmul.f32 %v2217_v43, %v838_v32  ;;  %vm848_vm12 = vcmp.gt.f32.partialorder %v838_v32, 0.0 }
 0x21c   : > { %v879_v36 = vsel %vm849_vm11, %v839_v29, %v869_v34 }
 0x21d   : > { %918 = vrot.lane.b32.xlu0 %v879_v36, %s1931_s18  ;;  %v878_v37 = vsel %vm848_vm12, %v838_v32, %v868_v35 }
 0x21e   : > { %916 = vrot.lane.b32.xlu1 %v878_v37, %s1931_s18 }
 0x27f   : > { %v903_v38 = vpop.permute.xlu0 %902 }
 0x280   : > { %931 = vst.msk [vmem:[#allocation3 + $0x8] sm:$0xff] %vm398_vm1, %v903_v38  ;;  %v901_v39 = vpop.permute.xlu1 %900 }
 0x281   : > { %930 = vst.msk [vmem:[#allocation3] sm:$0xff] %vm398_vm1, %v901_v39 }
 0x283   : > { %v907_v40 = vpop.permute.xlu0 %906 }
 0x284   : > { %933 = vst.msk [vmem:[#allocation3 + $0x18] sm:$0xff] %vm398_vm1, %v907_v40  ;;  %v905_v41 = vpop.permute.xlu1 %904 }
 0x285   : > { %932 = vst.msk [vmem:[#allocation3 + $0x10] sm:$0xff] %vm398_vm1, %v905_v41 }
 0x287   : > { %v911_v42 = vpop.permute.xlu0 %910  ;;  %v951_v43 = vld [vmem:[#allocation3 + $0x8] sm:$0xff] }
 0x288   : > { %935 = vst.msk [vmem:[#allocation3 + $0x28] sm:$0xff] %vm398_vm1, %v911_v42  ;;  %v909_v44 = vpop.permute.xlu1 %908  ;;  %v950_v45 = vld [vmem:[#allocation3] sm:$0xff] }
 0x289   : > { %934 = vst.msk [vmem:[#allocation3 + $0x20] sm:$0xff] %vm398_vm1, %v909_v44  ;;  %v1897_v46 = vpack.i.bf16 %v951_v43, %v950_v45  ;;  %v2245_v47 = vpack.c.bf16 %v951_v43, %v950_v45 }
 0x28b   : > { %v915_v48 = vpop.permute.xlu0 %914  ;;  %1898 = vrot.lane.b32.xlu1 %v1897_v46, %s1932_s19  ;;  %v953_v49 = vld [vmem:[#allocation3 + $0x18] sm:$0xff] }
 0x28c   : > { %937 = vst.msk [vmem:[#allocation3 + $0x38] sm:$0xff] %vm398_vm1, %v915_v48  ;;  %v913_v50 = vpop.permute.xlu1 %912  ;;  %v952_v51 = vld [vmem:[#allocation3 + $0x10] sm:$0xff]  ;;  %v961_v46 = vld [vmem:[%s2445_s6 + $0x8] sm:$0xff]  ;;  %v962_v48 = vld [vmem:[%s2445_s6 + $0x10] sm:$0xff] }
 0x28d   : > { %936 = vst.msk [vmem:[#allocation3 + $0x30] sm:$0xff] %vm398_vm1, %v913_v50  ;;  %v1902_v52 = vpack.i.bf16 %v953_v49, %v952_v51  ;;  %v2250_v53 = vpack.c.bf16 %v953_v49, %v952_v51  ;;  %v963_v49 = vld [vmem:[%s2445_s6 + $0x18] sm:$0xff]  ;;  %v964_v50 = vld [vmem:[%s2445_s6 + $0x20] sm:$0xff]  ;;  %v966_v51 = vld [vmem:[%s2445_s6 + $0x30] sm:$0xff] }
 0x28f   : > { %1903 = vrot.lane.b32.xlu0 %v1902_v52, %s1932_s19  ;;  %v919_v54 = vpop.permute.xlu0 %918  ;;  %v955_v55 = vld [vmem:[#allocation3 + $0x28] sm:$0xff] }
 0x290   : > { %939 = vst.msk [vmem:[#allocation3 + $0x48] sm:$0xff] %vm398_vm1, %v919_v54  ;;  %v917_v56 = vpop.permute.xlu1 %916  ;;  %v954_v57 = vld [vmem:[#allocation3 + $0x20] sm:$0xff]  ;;  %v967_v52 = vld [vmem:[%s2445_s6 + $0x38] sm:$0xff]  ;;  %v969_v54 = vld [vmem:[%s2445_s6 + $0x48] sm:$0xff] }
 0x291   : > { %938 = vst.msk [vmem:[#allocation3 + $0x40] sm:$0xff] %vm398_vm1, %v917_v56  ;;  %v1907_v58 = vpack.i.bf16 %v955_v55, %v954_v57  ;;  %v2255_v59 = vpack.c.bf16 %v955_v55, %v954_v57  ;;  %v940_v55 = vld [vmem:[%s2444_s5] sm:$0xff]  ;;  %v941_v56 = vld [vmem:[%s2444_s5 + $0x8] sm:$0xff]  ;;  %v942_v57 = vld [vmem:[%s2444_s5 + $0x10] sm:$0xff] }
 0x293   : > { %1908 = vrot.lane.b32.xlu1 %v1907_v58, %s1932_s19  ;;  %v957_v60 = vld [vmem:[#allocation3 + $0x38] sm:$0xff]  ;;  %v943_v58 = vld [vmem:[%s2444_s5 + $0x18] sm:$0xff] }
 0x294   : > { %v956_v61 = vld [vmem:[#allocation3 + $0x30] sm:$0xff] }
 0x295   : > { %v1912_v63 = vpack.i.bf16 %v957_v60, %v956_v61  ;;  %v2262_v0 = vpack.c.bf16 %v957_v60, %v956_v61  ;;  %v945_v60 = vld [vmem:[%s2444_s5 + $0x28] sm:$0xff]  ;;  %v946_v61 = vld [vmem:[%s2444_s5 + $0x30] sm:$0xff] }
 0x297   : > { %1913 = vrot.lane.b32.xlu0 %v1912_v63, %s1932_s19  ;;  %v959_v1 = vld [vmem:[#allocation3 + $0x48] sm:$0xff]  ;;  %v948_v63 = vld [vmem:[%s2444_s5 + $0x40] sm:$0xff] }
 0x298   : > { %v958_v13 = vld [vmem:[#allocation3 + $0x40] sm:$0xff] }
 0x299   : > { %v1917_v14 = vpack.i.bf16 %v959_v1, %v958_v13  ;;  %v2268_v15 = vpack.c.bf16 %v959_v1, %v958_v13 }
 0x29b   : > { %1312 = vperm.xlu0 %1896, %v1300_v2   ;;  %1918 = vrot.lane.b32.xlu1 %v1917_v14, %s1932_s19 }
 0x29f   : > { %1322 = vperm.xlu0 %1896, %v1302_v16   ;;  %1317 = vperm.xlu1 %1895, %v1301_v17  }
 0x2a3   : > { %1332 = vperm.xlu0 %1896, %v1304_v18   ;;  %1327 = vperm.xlu1 %1895, %v1303_v19  }
 0x2a7   : > { %1342 = vperm.xlu0 %1896, %v1306_v20   ;;  %1337 = vperm.xlu1 %1895, %v1305_v21  }
 0x2ab   : > { %1352 = vperm.xlu0 %1896, %v1308_v22   ;;  %1347 = vperm.xlu1 %1895, %v1307_v23  }
 0x2af   : > { %1387 = vperm.xlu0 %1896, %v1534_v24   ;;  %1357 = vperm.xlu1 %1895, %v1309_v25  }
 0x2fd   : > { %v1899_v26 = vpop.permute.xlu1 %1898 }
 0x2fe   : > { %v1901_v27 = vunpack.i.h.bf16 %v1899_v26  ;;  %v1900_v28 = vunpack.i.l.bf16 %v1899_v26 }
 0x300   : > { %v1797_v29 = vpack.c.bf16 %v1901_v27, %v1900_v28 }
 0x301   : > { %v1904_v30 = vpop.permute.xlu0 %1903 }
 0x302   : > { %v1906_v31 = vunpack.i.h.bf16 %v1904_v30  ;;  %v1905_v32 = vunpack.i.l.bf16 %v1904_v30  ;;  %1798 = vmatprep.subr.bf16.mxu1 %v1797_v29 }
 0x303   : > { %1800 = vmatpush3.bf16.msra.mxu1 %v1797_v29 }
 0x304   : > { %v1801_v33 = vpack.c.bf16 %v1906_v31, %v1905_v32 }
 0x305   : > { %v1909_v34 = vpop.permute.xlu1 %1908 }
 0x306   : > { %v1911_v35 = vunpack.i.h.bf16 %v1909_v34  ;;  %v1910_v36 = vunpack.i.l.bf16 %v1909_v34  ;;  %1802 = vmatprep.subr.bf16.mxu1 %v1801_v33 }
 0x307   : > { %1804 = vmatpush3.bf16.msra.mxu1 %v1801_v33 }
 0x308   : > { %v1805_v37 = vpack.c.bf16 %v1911_v35, %v1910_v36 }
 0x309   : > { %v1914_v38 = vpop.permute.xlu0 %1913 }
 0x30a   : > { %v1916_v39 = vunpack.i.h.bf16 %v1914_v38  ;;  %v1915_v40 = vunpack.i.l.bf16 %v1914_v38  ;;  %1806 = vmatprep.subr.bf16.mxu1 %v1805_v37 }
 0x30b   : > { %1808 = vmatpush3.bf16.msra.mxu1 %v1805_v37 }
 0x30c   : > { %v1809_v41 = vpack.c.bf16 %v1916_v39, %v1915_v40 }
 0x30d   : > { %v1919_v42 = vpop.permute.xlu1 %1918 }
 0x30e   : > { %v1921_v43 = vunpack.i.h.bf16 %v1919_v42  ;;  %v1920_v44 = vunpack.i.l.bf16 %v1919_v42  ;;  %1810 = vmatprep.subr.bf16.mxu1 %v1809_v41 }
 0x30f   : > { %1812 = vmatpush3.bf16.msra.mxu1 %v1809_v41 }
 0x310   : > { %v1813_v45 = vpack.c.bf16 %v1921_v43, %v1920_v44 }
 0x312   : > { %1814 = vmatprep.subr.bf16.mxu1 %v1813_v45 }
 0x313   : > { %1816 = vmatpush3.bf16.msra.mxu1 %v1813_v45 }
 0x314   : > { %1818 = vmatprep.subr.bf16.mxu1 %v2245_v47 }
 0x316   : > { %1708 = vmatmul.mubr.msk.f32.vlgmr.msra.gmra.mrb[0].mxu1 %vm479_vm2, %v961_v46 }
 0x317   : > { %1820 = vmatpush3.bf16.msra.mxu1 %v2245_v47  ;;  %1710 = vmatprep.mubr.msk.f32.mxu1 %vm479_vm2, %v962_v48  ;;  %v965_v47 = vld [vmem:[%s2445_s6 + $0x28] sm:$0xff] }
 0x318   : > { %1822 = vmatprep.subr.bf16.mxu1 %v2250_v53 }
 0x31a   : > { %1711 = vmatmul.mubr.msk.f32.gmra.mrb[2].mxu1 %vm479_vm2, %v963_v49  ;;  %v1313_v1 = vpop.permute.xlu0 %1312 }
 0x31b   : > { %1824 = vmatpush3.bf16.msra.mxu1 %v2250_v53  ;;  %1713 = vmatprep.mubr.msk.f32.mxu1 %vm479_vm2, %v964_v50  ;;  %v968_v53 = vld [vmem:[%s2445_s6 + $0x40] sm:$0xff] }
 0x31c   : > { %1826 = vmatprep.subr.bf16.mxu1 %v2255_v59 }
 0x31e   : > { %1714 = vmatmul.mubr.msk.f32.gmra.mrb[4].mxu1 %vm479_vm2, %v965_v47  ;;  %v1323_v2 = vpop.permute.xlu0 %1322 }
 0x31f   : > { %1828 = vmatpush3.bf16.msra.mxu1 %v2255_v59  ;;  %1716 = vmatprep.mubr.msk.f32.mxu1 %vm479_vm2, %v966_v51  ;;  %v944_v59 = vld [vmem:[%s2444_s5 + $0x20] sm:$0xff] }
 0x320   : > { %1830 = vmatprep.subr.bf16.mxu1 %v2262_v0 }
 0x322   : > { %1717 = vmatmul.mubr.msk.f32.gmra.mrb[6].mxu1 %vm479_vm2, %v967_v52  ;;  %v1333_v13 = vpop.permute.xlu0 %1332 }
 0x323   : > { %1832 = vmatpush3.bf16.msra.mxu1 %v2262_v0  ;;  %1719 = vmatprep.mubr.msk.f32.mxu1 %vm479_vm2, %v968_v53  ;;  %v949_v0 = vld [vmem:[%s2444_s5 + $0x48] sm:$0xff] }
 0x324   : > { %1834 = vmatprep.subr.bf16.mxu1 %v2268_v15 }
 0x326   : > { %1720 = vmatmul.mubr.msk.f32.gmra.mrb[8].mxu1 %vm479_vm2, %v969_v54  ;;  %v1343_v14 = vpop.permute.xlu0 %1342 }
 0x327   : > { %1836 = vmatpush3.bf16.msra.mxu1 %v2268_v15  ;;  %1742 = vmatprep.mubr.msk.f32.mxu1 %vm479_vm2, %v940_v55  ;;  %v1318_v15 = vpop.permute.xlu1 %1317 }
 0x32a   : > { %1743 = vmatmul.mubr.msk.f32.vlgmr.msra.gmra.mrb[0].mxu1 %vm479_vm2, %v941_v56  ;;  %v2384_v16 = vpop.permute.xlu0 %1352 }
 0x32b   : > { %1745 = vmatprep.mubr.msk.f32.mxu1 %vm479_vm2, %v942_v57  ;;  %v1328_v17 = vpop.permute.xlu1 %1327 }
 0x32e   : > { %1746 = vmatmul.mubr.msk.f32.gmra.mrb[2].mxu1 %vm479_vm2, %v943_v58  ;;  %v2386_v21 = vpop.permute.xlu0 %1387 }
 0x32f   : > { %1748 = vmatprep.mubr.msk.f32.mxu1 %vm479_vm2, %v944_v59  ;;  %v1338_v24 = vpop.permute.xlu1 %1337 }
 0x332   : > { %1749 = vmatmul.mubr.msk.f32.gmra.mrb[4].mxu1 %vm479_vm2, %v945_v60 }
 0x333   : > { %1751 = vmatprep.mubr.msk.f32.mxu1 %vm479_vm2, %v946_v61  ;;  %v1348_v39 = vpop.permute.xlu1 %1347 }
 0x336   : > { %1752 = vmatmul.mubr.msk.f32.gmra.mrb[6].mxu1 %vm479_vm2, %v947_v62 }
 0x337   : > { %1754 = vmatprep.mubr.msk.f32.mxu1 %vm479_vm2, %v948_v63  ;;  %v1358_v52 = vpop.permute.xlu1 %1357 }
 0x33a   : > { %1755 = vmatmul.mubr.msk.f32.gmra.mrb[8].mxu1 %vm479_vm2, %v949_v0 }
 0x3fd   : > { %v1744_v18 = vpop.f32.mrb[0].mxu1 }
 0x3fe   : > { %v1361_v19 = vadd.f32 %v1744_v18, %v1318_v15  ;;  %v1251_v20 = vpop.f32.mrb[1].mxu1 }
 0x3ff   : > { %v1360_v22 = vadd.f32 %v1313_v1, %v1251_v20 }
 0x400   : > { %vm1371_vm13 = vcmp.gt.f32.partialorder %v1361_v19, 0.0  ;;  %v1391_v23 = vmul.f32 %v2386_v21, %v1361_v19 }
 0x401   : > { %vm1370_vm14 = vcmp.gt.f32.partialorder %v1360_v22, 0.0  ;;  %v1390_v25 = vmul.f32 %v2386_v21, %v1360_v22  ;;  %v1747_v26 = vpop.f32.mrb[2].mxu1 }
 0x402   : > { %v1401_v27 = vsel %vm1371_vm13, %v1361_v19, %v1391_v23  ;;  %v1363_v28 = vadd.f32 %v1747_v26, %v1328_v17  ;;  %v1261_v29 = vpop.f32.mrb[3].mxu1 }
 0x403   : > { %v1411_v30 = vadd.f32 %v1401_v27, %v2042_v6  ;;  %v1400_v31 = vsel %vm1370_vm14, %v1360_v22, %v1390_v25  ;;  %v1362_v32 = vadd.f32 %v1323_v2, %v1261_v29 }
 0x404   : > { %v1410_v33 = vadd.f32 %v1400_v31, %v2034_v4  ;;  %vm1373_vm0 = vcmp.gt.f32.partialorder %v1363_v28, 0.0  ;;  %v1393_v34 = vmul.f32 %v2386_v21, %v1363_v28 }
 0x405   : > { %1422 = vst.msk [vmem:[%s2395_s27 + $0x8] sm:$0xff] %vm1420_vm15, %v1411_v30  ;;  %vm1372_vm1 = vcmp.gt.f32.partialorder %v1362_v32, 0.0  ;;  %v1392_v35 = vmul.f32 %v2386_v21, %v1362_v32  ;;  %v1750_v36 = vpop.f32.mrb[4].mxu1 }
 0x406   : > { %1421 = vst.msk [vmem:[%s2395_s27] sm:$0xff] %vm1420_vm15, %v1410_v33  ;;  %v1403_v37 = vsel %vm1373_vm0, %v1363_v28, %v1393_v34  ;;  %v1365_v38 = vadd.f32 %v1750_v36, %v1338_v24  ;;  %v1271_v6 = vpop.f32.mrb[5].mxu1 }
 0x407   : > { %v1413_v40 = vadd.f32 %v1403_v37, %v2040_v5  ;;  %v1402_v4 = vsel %vm1372_vm1, %v1362_v32, %v1392_v35  ;;  %v1364_v41 = vadd.f32 %v1333_v13, %v1271_v6 }
 0x408   : > { %v1412_v42 = vadd.f32 %v1402_v4, %v2032_v3  ;;  %vm1375_vm2 = vcmp.gt.f32.partialorder %v1365_v38, 0.0  ;;  %v1395_v43 = vmul.f32 %v2386_v21, %v1365_v38 }
 0x409   : > { %1424 = vst.msk [vmem:[%s2395_s27 + $0x18] sm:$0xff] %vm1420_vm15, %v1413_v40  ;;  %vm1374_vm3 = vcmp.gt.f32.partialorder %v1364_v41, 0.0  ;;  %v1394_v44 = vmul.f32 %v2386_v21, %v1364_v41  ;;  %v1753_v45 = vpop.f32.mrb[6].mxu1 }
 0x40a   : > { %1423 = vst.msk [vmem:[%s2395_s27 + $0x10] sm:$0xff] %vm1420_vm15, %v1412_v42  ;;  %v1405_v46 = vsel %vm1375_vm2, %v1365_v38, %v1395_v43  ;;  %v1367_v48 = vadd.f32 %v1753_v45, %v1348_v39  ;;  %v1281_v5 = vpop.f32.mrb[7].mxu1 }
 0x40b   : > { %v1415_v49 = vadd.f32 %v1405_v46, %v2048_v7  ;;  %v1404_v50 = vsel %vm1374_vm3, %v1364_v41, %v1394_v44  ;;  %v1366_v3 = vadd.f32 %v1343_v14, %v1281_v5 }
 0x40c   : > { %v1414_v47 = vadd.f32 %v1404_v50, %v2050_v8  ;;  %vm1377_vm4 = vcmp.gt.f32.partialorder %v1367_v48, 0.0  ;;  %v1397_v51 = vmul.f32 %v2386_v21, %v1367_v48 }
 0x40d   : > { %1426 = vst.msk [vmem:[%s2395_s27 + $0x28] sm:$0xff] %vm1420_vm15, %v1415_v49  ;;  %vm1376_vm5 = vcmp.gt.f32.partialorder %v1366_v3, 0.0  ;;  %v1396_v53 = vmul.f32 %v2386_v21, %v1366_v3  ;;  %v1756_v54 = vpop.f32.mrb[8].mxu1 }
 0x40e   : > { %1425 = vst.msk [vmem:[%s2395_s27 + $0x20] sm:$0xff] %vm1420_vm15, %v1414_v47  ;;  %v1407_v55 = vsel %vm1377_vm4, %v1367_v48, %v1397_v51  ;;  %v1369_v7 = vadd.f32 %v1756_v54, %v1358_v52  ;;  %v1291_v56 = vpop.f32.mrb[9].mxu1 }
 0x40f   : > { %v1417_v8 = vadd.f32 %v1407_v55, %v2056_v9  ;;  %v1406_v57 = vsel %vm1376_vm5, %v1366_v3, %v1396_v53  ;;  %v1368_v58 = vadd.f32 %v2384_v16, %v1291_v56 }
 0x410   : > { %v1416_v59 = vadd.f32 %v1406_v57, %v2058_v10  ;;  %vm1379_vm6 = vcmp.gt.f32.partialorder %v1369_v7, 0.0  ;;  %v1399_v60 = vmul.f32 %v2386_v21, %v1369_v7 }
 0x411   : > { %1428 = vst.msk [vmem:[%s2395_s27 + $0x38] sm:$0xff] %vm1420_vm15, %v1417_v8  ;;  %vm1378_vm7 = vcmp.gt.f32.partialorder %v1368_v58, 0.0  ;;  %v1398_v61 = vmul.f32 %v2386_v21, %v1368_v58 }
 0x412   : > { %1427 = vst.msk [vmem:[%s2395_s27 + $0x30] sm:$0xff] %vm1420_vm15, %v1416_v59  ;;  %v1409_v62 = vsel %vm1379_vm6, %v1369_v7, %v1399_v60 }
 0x413   : > { %v1419_v63 = vadd.f32 %v1409_v62, %v2064_v11  ;;  %v1408_v0 = vsel %vm1378_vm7, %v1368_v58, %v1398_v61 }
 0x414   : > { %v1418_v9 = vadd.f32 %v1408_v0, %v2066_v12 }
 0x415   : > { %1430 = vst.msk [vmem:[%s2395_s27 + $0x48] sm:$0xff] %vm1420_vm15, %v1419_v63 }
 0x416   : > { %1429 = vst.msk [vmem:[%s2395_s27 + $0x40] sm:$0xff] %vm1420_vm15, %v1418_v9 }
 0x417 PF: > { %s23_s13 = sadd.s32 1, %s1928_s13  }
 0x418   : > { %p20_p4 = scmp.ge.s32.totalorder %s23_s13, 4  }
 0x41a   :  { %22 = sbr.rel (!%p20_p4) target bundleno = 3 (0x3), region = 86 }

// kernel: discriminator_forward.14
= control target key start
LH: loop header
LB: loop body
LE: loop exit
PB: predicated region body
PF: predicated region fallthrough
CT: control target
= control target key end

     0   :  { %s1990_s13 = smov 0   ;;  %s2439_s0 = inlined_call_operand.vmem [shape: f32[2,80,16], index: 0, kind: input, shape index: {}]   ;;  %s2440_s1 = inlined_call_operand.vmem [shape: f32[80,80], index: 1, kind: input, shape index: {}]   ;;  %s2441_s2 = inlined_call_operand.vmem [shape: f32[80,80], index: 2, kind: input, shape index: {}]   ;;  %s2442_s3 = inlined_call_operand.vmem [shape: f32[80,1], index: 3, kind: input, shape index: {}]   ;;  %s2443_s4 = inlined_call_operand.<no memory space> [shape: f32[1,1], index: 4, kind: input, shape index: {}]   ;;  %s2444_s5 = inlined_call_operand.vmem [shape: f32[80,80], index: 5, kind: input, shape index: {}]   ;;  %s2445_s6 = inlined_call_operand.vmem [shape: f32[80,80], index: 6, kind: input, shape index: {}]   ;;  %s2446_s7 = inlined_call_operand.vmem [shape: f32[80,1], index: 7, kind: input, shape index: {}]   ;;  %s2447_s9 = inlined_call_operand.vmem [shape: f32[2,80,16], index: 9, kind: output, shape index: {}]   ;;  %s2448_s8 = inlined_call_operand.<no memory space> [shape: f32[1,1], index: 8, kind: input, shape index: {}]  }
   0x1   :  { %v14_v0 = vstv %s2443_s4  ;;  %v16_v1 = vstv %s2448_s8 }
   0x2   :  { %15 = vst [vmem:[#allocation4] sm:$0x1] %v14_v0  ;;  %17 = vst [vmem:[#allocation5] sm:$0x1] %v16_v1 }
   0x3 LB: > { %s1486_s14 = sadd.s32 4294967295, %s1928_s13   ;;  %p1490_p0 = scmp.ge.s32.totalorder %s1928_s13, 1  ;;  %s1928_s13 = sphi %s1990_s13, %s23_s13  }
   0x4   : > { %p291_p1 = scmp.lt.s32.totalorder %s1928_s13, 3 }
   0x6   : > { %p292_p2 = pnand %p1490_p0, %p291_p1 }
   0x7   : > { %p1998_p3 = scmp.lt.s32.totalorder (!%p292_p2), %s1486_s14, 1  ;;  %vm347_vm0 = vcmask (!%p292_p2), 261120   ;;  %v1930_v2 = vmov (!%p292_p2), 0.0   ;;  %s1931_s18 = smov (!%p292_p2), 8   ;;  %vm398_vm1 = vcmask (!%p292_p2), 195648   ;;  %v429_v41 = vld [vmem:[%s2441_s2] sm:$0xff] (!%p292_p2) }
   0x8   : > { %295 = sbr.rel (%p292_p2) target bundleno = 1047 (0x417), region = 56  ;;  %350 = vst.msk [vmem:[#allocation2 + $0x10] sm:$0xff] (!%p292_p2), %vm347_vm0, %v1930_v2  ;;  %348 = vst.msk [vmem:[#allocation2] sm:$0xff] (!%p292_p2), %vm347_vm0, %v1930_v2  ;;  %s1932_s19 = smov (!%p292_p2), 112   ;;  %vm479_vm2 = vcmask (!%p292_p2), 654336   ;;  %v770_v44 = vld [vmem:[%s2442_s3] sm:$0xff] (!%p292_p2) }
   0x9   : > { %349 = vst.msk [vmem:[#allocation2 + $0x8] sm:$0xff] (!%p292_p2), %vm347_vm0, %v1930_v2  ;;  %351 = vst.msk [vmem:[#allocation2 + $0x18] sm:$0xff] (!%p292_p2), %vm347_vm0, %v1930_v2  ;;  %1637 = vmatprep.mubr.msk.f32.mxu0 (!%p292_p2), %vm479_vm2, %v429_v41  ;;  %v1933_v45 = vmov (!%p292_p2), 0   ;;  %v771_v46 = vld [vmem:[%s2442_s3 + $0x8] sm:$0xff] (!%p292_p2)  ;;  %v1513_v47 = vld [vmem:[#allocation4] ss:$0 sm:$0xff] (!%p292_p2) }
   0xa   : > { %352 = vst.msk [vmem:[#allocation2 + $0x20] sm:$0xff] (!%p292_p2), %vm347_vm0, %v1930_v2  ;;  %353 = vst.msk [vmem:[#allocation2 + $0x28] sm:$0xff] (!%p292_p2), %vm347_vm0, %v1930_v2  ;;  %1895 = vset.pattern.permute.xlu1 (!%p292_p2), %v1933_v45  ;;  %1896 = vset.pattern.permute.xlu0 (!%p292_p2), %v1933_v45  ;;  %v773_v48 = vld [vmem:[%s2442_s3 + $0x18] sm:$0xff] (!%p292_p2)  ;;  %v772_v49 = vld [vmem:[%s2442_s3 + $0x10] sm:$0xff] (!%p292_p2)  ;;  %vm1420_vm15 = vcmask (!%p292_p2), 130048  }
   0xb   : > { %354 = vst.msk [vmem:[#allocation2 + $0x30] sm:$0xff] (!%p292_p2), %vm347_vm0, %v1930_v2  ;;  %355 = vst.msk [vmem:[#allocation2 + $0x38] sm:$0xff] (!%p292_p2), %vm347_vm0, %v1930_v2  ;;  %v775_v50 = vld [vmem:[%s2442_s3 + $0x28] sm:$0xff] (!%p292_p2)  ;;  %v774_v51 = vld [vmem:[%s2442_s3 + $0x20] sm:$0xff] (!%p292_p2) }
   0xc   : > { %356 = vst.msk [vmem:[#allocation2 + $0x40] sm:$0xff] (!%p292_p2), %vm347_vm0, %v1930_v2  ;;  %357 = vst.msk [vmem:[#allocation2 + $0x48] sm:$0xff] (!%p292_p2), %vm347_vm0, %v1930_v2  ;;  %v777_v52 = vld [vmem:[%s2442_s3 + $0x38] sm:$0xff] (!%p292_p2)  ;;  %v776_v53 = vld [vmem:[%s2442_s3 + $0x30] sm:$0xff] (!%p292_p2) }
   0xd   : > { %880 = vst.msk [vmem:[#allocation3] sm:$0xff] (!%p292_p2), %vm347_vm0, %v1930_v2  ;;  %881 = vst.msk [vmem:[#allocation3 + $0x8] sm:$0xff] (!%p292_p2), %vm347_vm0, %v1930_v2  ;;  %v779_v54 = vld [vmem:[%s2442_s3 + $0x48] sm:$0xff] (!%p292_p2)  ;;  %v778_v55 = vld [vmem:[%s2442_s3 + $0x40] sm:$0xff] (!%p292_p2) }
   0xe   : > { %882 = vst.msk [vmem:[#allocation3 + $0x10] sm:$0xff] (!%p292_p2), %vm347_vm0, %v1930_v2  ;;  %883 = vst.msk [vmem:[#allocation3 + $0x18] sm:$0xff] (!%p292_p2), %vm347_vm0, %v1930_v2 }
   0xf   : > { %884 = vst.msk [vmem:[#allocation3 + $0x20] sm:$0xff] %vm347_vm0, %v1930_v2  ;;  %885 = vst.msk [vmem:[#allocation3 + $0x28] sm:$0xff] %vm347_vm0, %v1930_v2  ;;  %s2451_s14 = smov (!%p1998_p3, %s1486_s14), 1 }
  0x10   : > { %886 = vst.msk [vmem:[#allocation3 + $0x30] sm:$0xff] %vm347_vm0, %v1930_v2  ;;  %887 = vst.msk [vmem:[#allocation3 + $0x38] sm:$0xff] %vm347_vm0, %v1930_v2  ;;  %s1857_s8 = smul.u32 80, %s2451_s14 }
  0x11   : > { %888 = vst.msk [vmem:[#allocation3 + $0x40] sm:$0xff] %vm347_vm0, %v1930_v2  ;;  %889 = vst.msk [vmem:[#allocation3 + $0x48] sm:$0xff] %vm347_vm0, %v1930_v2 }
  0x12   : > { %s331_s17 = scalar_lea.vmem %s2439_s0, %s1857_s8  ;;  %s2395_s27 = scalar_lea.vmem %s2447_s9, %s1857_s8 }
  0x13   : > { %v2032_v3 = vld [vmem:[%s331_s17 + $0x10] sm:$0xff]  ;;  %v2034_v4 = vld [vmem:[%s331_s17] sm:$0xff]  ;;  %v2040_v5 = vld [vmem:[%s331_s17 + $0x18] sm:$0xff] }
  0x14   : > { %372 = vrot.lane.b32.xlu1 %v2032_v3, %s1931_s18  ;;  %368 = vrot.lane.b32.xlu0 %v2034_v4, %s1931_s18  ;;  %v2042_v6 = vld [vmem:[%s331_s17 + $0x8] sm:$0xff]  ;;  %v2050_v8 = vld [vmem:[%s331_s17 + $0x20] sm:$0xff] }
  0x15   : > { %v2048_v7 = vld [vmem:[%s331_s17 + $0x28] sm:$0xff]  ;;  %v2056_v9 = vld [vmem:[%s331_s17 + $0x38] sm:$0xff]  ;;  %v2058_v10 = vld [vmem:[%s331_s17 + $0x30] sm:$0xff] }
  0x16   : > { %v2064_v11 = vld [vmem:[%s331_s17 + $0x48] sm:$0xff]  ;;  %v2066_v12 = vld [vmem:[%s331_s17 + $0x40] sm:$0xff] }
  0x18   : > { %374 = vrot.lane.b32.xlu1 %v2040_v5, %s1931_s18  ;;  %370 = vrot.lane.b32.xlu0 %v2042_v6, %s1931_s18 }
  0x1c   : > { %378 = vrot.lane.b32.xlu1 %v2048_v7, %s1931_s18  ;;  %376 = vrot.lane.b32.xlu0 %v2050_v8, %s1931_s18 }
  0x20   : > { %382 = vrot.lane.b32.xlu1 %v2056_v9, %s1931_s18  ;;  %380 = vrot.lane.b32.xlu0 %v2058_v10, %s1931_s18 }
  0x24   : > { %386 = vrot.lane.b32.xlu1 %v2064_v11, %s1931_s18  ;;  %384 = vrot.lane.b32.xlu0 %v2066_v12, %s1931_s18 }
  0x86   : > { %v373_v13 = vpop.permute.xlu1 %372  ;;  %v369_v14 = vpop.permute.xlu0 %368 }
  0x87   : > { %401 = vst.msk [vmem:[#allocation2 + $0x10] sm:$0xff] %vm398_vm1, %v373_v13  ;;  %399 = vst.msk [vmem:[#allocation2] sm:$0xff] %vm398_vm1, %v369_v14 }
  0x8a   : > { %v375_v15 = vpop.permute.xlu1 %374  ;;  %v371_v16 = vpop.permute.xlu0 %370 }
  0x8b   : > { %402 = vst.msk [vmem:[#allocation2 + $0x18] sm:$0xff] %vm398_vm1, %v375_v15  ;;  %400 = vst.msk [vmem:[#allocation2 + $0x8] sm:$0xff] %vm398_vm1, %v371_v16 }
  0x8e   : > { %v379_v17 = vpop.permute.xlu1 %378  ;;  %v377_v18 = vpop.permute.xlu0 %376  ;;  %v421_v19 = vld [vmem:[#allocation2 + $0x10] sm:$0xff]  ;;  %v419_v21 = vld [vmem:[#allocation2] sm:$0xff] }
  0x8f   : > { %404 = vst.msk [vmem:[#allocation2 + $0x28] sm:$0xff] %vm398_vm1, %v379_v17  ;;  %403 = vst.msk [vmem:[#allocation2 + $0x20] sm:$0xff] %vm398_vm1, %v377_v18 }
  0x92   : > { %v422_v20 = vld [vmem:[#allocation2 + $0x18] sm:$0xff]  ;;  %v420_v22 = vld [vmem:[#allocation2 + $0x8] sm:$0xff]  ;;  %v383_v23 = vpop.permute.xlu1 %382  ;;  %v381_v24 = vpop.permute.xlu0 %380 }
  0x93   : > { %v1875_v25 = vpack.i.bf16 %v422_v20, %v421_v19  ;;  %v1870_v26 = vpack.i.bf16 %v420_v22, %v419_v21  ;;  %406 = vst.msk [vmem:[#allocation2 + $0x38] sm:$0xff] %vm398_vm1, %v383_v23  ;;  %405 = vst.msk [vmem:[#allocation2 + $0x30] sm:$0xff] %vm398_vm1, %v381_v24  ;;  %v2080_v27 = vpack.c.bf16 %v420_v22, %v419_v21  ;;  %v430_v22 = vld [vmem:[%s2441_s2 + $0x8] sm:$0xff]  ;;  %v431_v23 = vld [vmem:[%s2441_s2 + $0x10] sm:$0xff] }
  0x94   : > { %v2082_v28 = vpack.c.bf16 %v422_v20, %v421_v19  ;;  %v432_v24 = vld [vmem:[%s2441_s2 + $0x18] sm:$0xff] }
  0x95   : > { %1876 = vrot.lane.b32.xlu1 %v1875_v25, %s1932_s19  ;;  %1871 = vrot.lane.b32.xlu0 %v1870_v26, %s1932_s19  ;;  %v433_v25 = vld [vmem:[%s2441_s2 + $0x20] sm:$0xff]  ;;  %v434_v26 = vld [vmem:[%s2441_s2 + $0x28] sm:$0xff] }
  0x96   : > { %v387_v29 = vpop.permute.xlu1 %386  ;;  %v385_v30 = vpop.permute.xlu0 %384  ;;  %v423_v31 = vld [vmem:[#allocation2 + $0x20] sm:$0xff]  ;;  %v424_v32 = vld [vmem:[#allocation2 + $0x28] sm:$0xff] }
  0x97   : > { %408 = vst.msk [vmem:[#allocation2 + $0x48] sm:$0xff] %vm398_vm1, %v387_v29  ;;  %407 = vst.msk [vmem:[#allocation2 + $0x40] sm:$0xff] %vm398_vm1, %v385_v30  ;;  %v1880_v33 = vpack.i.bf16 %v424_v32, %v423_v31  ;;  %v2088_v34 = vpack.c.bf16 %v424_v32, %v423_v31  ;;  %v437_v29 = vld [vmem:[%s2441_s2 + $0x40] sm:$0xff]  ;;  %v438_v30 = vld [vmem:[%s2441_s2 + $0x48] sm:$0xff] }
  0x98   : > { %v409_v31 = vld [vmem:[%s2440_s1] sm:$0xff]  ;;  %v410_v32 = vld [vmem:[%s2440_s1 + $0x8] sm:$0xff] }
  0x99   : > { %1881 = vrot.lane.b32.xlu0 %v1880_v33, %s1932_s19  ;;  %v411_v33 = vld [vmem:[%s2440_s1 + $0x10] sm:$0xff] }
  0x9a   : > { %v425_v35 = vld [vmem:[#allocation2 + $0x30] sm:$0xff]  ;;  %v426_v36 = vld [vmem:[#allocation2 + $0x38] sm:$0xff] }
  0x9b   : > { %v1885_v37 = vpack.i.bf16 %v426_v36, %v425_v35  ;;  %v2091_v38 = vpack.c.bf16 %v426_v36, %v425_v35  ;;  %v413_v35 = vld [vmem:[%s2440_s1 + $0x20] sm:$0xff]  ;;  %v414_v36 = vld [vmem:[%s2440_s1 + $0x28] sm:$0xff] }
  0x9d   : > { %1886 = vrot.lane.b32.xlu1 %v1885_v37, %s1932_s19  ;;  %v415_v37 = vld [vmem:[%s2440_s1 + $0x30] sm:$0xff] }
  0x9e   : > { %v427_v39 = vld [vmem:[#allocation2 + $0x40] sm:$0xff]  ;;  %v428_v40 = vld [vmem:[#allocation2 + $0x48] sm:$0xff] }
  0x9f   : > { %v1890_v42 = vpack.i.bf16 %v428_v40, %v427_v39  ;;  %v2098_v43 = vpack.c.bf16 %v428_v40, %v427_v39  ;;  %v417_v39 = vld [vmem:[%s2440_s1 + $0x40] sm:$0xff]  ;;  %v418_v40 = vld [vmem:[%s2440_s1 + $0x48] sm:$0xff] }
  0xa1   : > { %1891 = vrot.lane.b32.xlu0 %v1890_v42, %s1932_s19  ;;  %782 = vperm.xlu1 %1895, %v770_v44  }
  0xa5   : > { %787 = vperm.xlu0 %1896, %v771_v46   ;;  %857 = vperm.xlu1 %1895, %v1513_v47  }
  0xa9   : > { %797 = vperm.xlu0 %1896, %v773_v48   ;;  %792 = vperm.xlu1 %1895, %v772_v49  }
  0xad   : > { %807 = vperm.xlu0 %1896, %v775_v50   ;;  %802 = vperm.xlu1 %1895, %v774_v51  }
  0xb1   : > { %817 = vperm.xlu0 %1896, %v777_v52   ;;  %812 = vperm.xlu1 %1895, %v776_v53  }
  0xb5   : > { %827 = vperm.xlu0 %1896, %v779_v54   ;;  %822 = vperm.xlu1 %1895, %v778_v55  }
 0x107   : > { %v1877_v56 = vpop.permute.xlu1 %1876  ;;  %v1872_v57 = vpop.permute.xlu0 %1871 }
 0x108   : > { %v1879_v58 = vunpack.i.h.bf16 %v1877_v56  ;;  %v1878_v59 = vunpack.i.l.bf16 %v1877_v56  ;;  %v1874_v60 = vunpack.i.h.bf16 %v1872_v57  ;;  %v1873_v61 = vunpack.i.l.bf16 %v1872_v57 }
 0x10a   : > { %v1757_v62 = vpack.c.bf16 %v1874_v60, %v1873_v61  ;;  %v1761_v0 = vpack.c.bf16 %v1879_v58, %v1878_v59 }
 0x10b   : > { %v1882_v63 = vpop.permute.xlu0 %1881 }
 0x10c   : > { %1758 = vmatprep.subr.bf16.mxu0 %v1757_v62  ;;  %v1884_v1 = vunpack.i.h.bf16 %v1882_v63  ;;  %v1883_v2 = vunpack.i.l.bf16 %v1882_v63 }
 0x10d   : > { %1760 = vmatpush3.bf16.msra.mxu0 %v1757_v62 }
 0x10e   : > { %1762 = vmatprep.subr.bf16.mxu0 %v1761_v0  ;;  %v1765_v13 = vpack.c.bf16 %v1884_v1, %v1883_v2 }
 0x10f   : > { %v1887_v14 = vpop.permute.xlu1 %1886 }
 0x110   : > { %v1889_v15 = vunpack.i.h.bf16 %v1887_v14  ;;  %v1888_v16 = vunpack.i.l.bf16 %v1887_v14 }
 0x111   : > { %1764 = vmatpush3.bf16.msra.mxu0 %v1761_v0 }
 0x112   : > { %v1769_v17 = vpack.c.bf16 %v1889_v15, %v1888_v16  ;;  %1766 = vmatprep.subr.bf16.mxu0 %v1765_v13 }
 0x113   : > { %v1892_v18 = vpop.permute.xlu0 %1891 }
 0x114   : > { %v1894_v19 = vunpack.i.h.bf16 %v1892_v18  ;;  %v1893_v20 = vunpack.i.l.bf16 %v1892_v18 }
 0x115   : > { %1768 = vmatpush3.bf16.msra.mxu0 %v1765_v13 }
 0x116   : > { %v1773_v21 = vpack.c.bf16 %v1894_v19, %v1893_v20  ;;  %1770 = vmatprep.subr.bf16.mxu0 %v1769_v17 }
 0x119   : > { %1772 = vmatpush3.bf16.msra.mxu0 %v1769_v17 }
 0x11a   : > { %1774 = vmatprep.subr.bf16.mxu0 %v1773_v21 }
 0x11d   : > { %1776 = vmatpush3.bf16.msra.mxu0 %v1773_v21 }
 0x11e   : > { %1778 = vmatprep.subr.bf16.mxu0 %v2080_v27 }
 0x120   : > { %1638 = vmatmul.mubr.msk.f32.vlgmr.msra.gmra.mrb[0].mxu0 %vm479_vm2, %v430_v22  ;;  %v783_v41 = vpop.permute.xlu1 %782 }
 0x121   : > { %1780 = vmatpush3.bf16.msra.mxu0 %v2080_v27  ;;  %1640 = vmatprep.mubr.msk.f32.mxu0 %vm479_vm2, %v431_v23  ;;  %v435_v27 = vld [vmem:[%s2441_s2 + $0x30] sm:$0xff] }
 0x122   : > { %1782 = vmatprep.subr.bf16.mxu0 %v2082_v28 }
 0x124   : > { %1641 = vmatmul.mubr.msk.f32.gmra.mrb[2].mxu0 %vm479_vm2, %v432_v24  ;;  %v788_v42 = vpop.permute.xlu0 %787 }
 0x125   : > { %1784 = vmatpush3.bf16.msra.mxu0 %v2082_v28  ;;  %1643 = vmatprep.mubr.msk.f32.mxu0 %vm479_vm2, %v433_v25  ;;  %v436_v28 = vld [vmem:[%s2441_s2 + $0x38] sm:$0xff] }
 0x126   : > { %1786 = vmatprep.subr.bf16.mxu0 %v2088_v34 }
 0x128   : > { %1644 = vmatmul.mubr.msk.f32.gmra.mrb[4].mxu0 %vm479_vm2, %v434_v26  ;;  %v798_v44 = vpop.permute.xlu0 %797 }
 0x129   : > { %1788 = vmatpush3.bf16.msra.mxu0 %v2088_v34  ;;  %1646 = vmatprep.mubr.msk.f32.mxu0 %vm479_vm2, %v435_v27  ;;  %v412_v34 = vld [vmem:[%s2440_s1 + $0x18] sm:$0xff] }
 0x12a   : > { %1790 = vmatprep.subr.bf16.mxu0 %v2091_v38 }
 0x12c   : > { %1647 = vmatmul.mubr.msk.f32.gmra.mrb[6].mxu0 %vm479_vm2, %v436_v28  ;;  %v808_v51 = vpop.permute.xlu0 %807 }
 0x12d   : > { %1792 = vmatpush3.bf16.msra.mxu0 %v2091_v38  ;;  %1649 = vmatprep.mubr.msk.f32.mxu0 %vm479_vm2, %v437_v29  ;;  %v416_v38 = vld [vmem:[%s2440_s1 + $0x38] sm:$0xff] }
 0x12e   : > { %1794 = vmatprep.subr.bf16.mxu0 %v2098_v43 }
 0x130   : > { %1650 = vmatmul.mubr.msk.f32.gmra.mrb[8].mxu0 %vm479_vm2, %v438_v30  ;;  %v818_v2 = vpop.permute.xlu0 %817 }
 0x131   : > { %1796 = vmatpush3.bf16.msra.mxu0 %v2098_v43  ;;  %1672 = vmatprep.mubr.msk.f32.mxu0 %vm479_vm2, %v409_v31  ;;  %v2217_v43 = vpop.permute.xlu1 %857 }
 0x134   : > { %1673 = vmatmul.mubr.msk.f32.vlgmr.msra.gmra.mrb[0].mxu0 %vm479_vm2, %v410_v32  ;;  %v828_v25 = vpop.permute.xlu0 %827 }
 0x135   : > { %1675 = vmatprep.mubr.msk.f32.mxu0 %vm479_vm2, %v411_v33  ;;  %v793_v45 = vpop.permute.xlu1 %792 }
 0x138   : > { %1676 = vmatmul.mubr.msk.f32.gmra.mrb[2].mxu0 %vm479_vm2, %v412_v34 }
 0x139   : > { %1678 = vmatprep.mubr.msk.f32.mxu0 %vm479_vm2, %v413_v35  ;;  %v803_v54 = vpop.permute.xlu1 %802 }
 0x13c   : > { %1679 = vmatmul.mubr.msk.f32.gmra.mrb[4].mxu0 %vm479_vm2, %v414_v36 }
 0x13d   : > { %1681 = vmatprep.mubr.msk.f32.mxu0 %vm479_vm2, %v415_v37  ;;  %v813_v15 = vpop.permute.xlu1 %812 }
 0x140   : > { %1682 = vmatmul.mubr.msk.f32.gmra.mrb[6].mxu0 %vm479_vm2, %v416_v38 }
 0x141   : > { %1684 = vmatprep.mubr.msk.f32.mxu0 %vm479_vm2, %v417_v39  ;;  %v823_v28 = vpop.permute.xlu1 %822 }
 0x144   : > { %1685 = vmatmul.mubr.msk.f32.gmra.mrb[8].mxu0 %vm479_vm2, %v418_v40 }
 0x207   : > { %v1674_v46 = vpop.f32.mrb[0].mxu0 }
 0x208   : > { %v831_v47 = vadd.f32 %v1674_v46, %v788_v42  ;;  %v721_v48 = vpop.f32.mrb[1].mxu0 }
 0x209   : > { %v830_v49 = vadd.f32 %v783_v41, %v721_v48 }
 0x20a   : > { %v861_v50 = vmul.f32 %v2217_v43, %v831_v47  ;;  %vm841_vm3 = vcmp.gt.f32.partialorder %v831_v47, 0.0 }
 0x20b   : > { %v860_v52 = vmul.f32 %v2217_v43, %v830_v49  ;;  %v1677_v53 = vpop.f32.mrb[2].mxu0  ;;  %vm840_vm4 = vcmp.gt.f32.partialorder %v830_v49, 0.0 }
 0x20c   : > { %v833_v55 = vadd.f32 %v1677_v53, %v798_v44  ;;  %v731_v56 = vpop.f32.mrb[3].mxu0  ;;  %v871_v57 = vsel %vm841_vm3, %v831_v47, %v861_v50 }
 0x20d   : > { %v832_v58 = vadd.f32 %v793_v45, %v731_v56  ;;  %902 = vrot.lane.b32.xlu0 %v871_v57, %s1931_s18  ;;  %v870_v59 = vsel %vm840_vm4, %v830_v49, %v860_v52 }
 0x20e   : > { %v863_v60 = vmul.f32 %v2217_v43, %v833_v55  ;;  %900 = vrot.lane.b32.xlu1 %v870_v59, %s1931_s18  ;;  %vm843_vm5 = vcmp.gt.f32.partialorder %v833_v55, 0.0 }
 0x20f   : > { %v862_v61 = vmul.f32 %v2217_v43, %v832_v58  ;;  %v1680_v62 = vpop.f32.mrb[4].mxu0  ;;  %vm842_vm6 = vcmp.gt.f32.partialorder %v832_v58, 0.0 }
 0x210   : > { %v835_v63 = vadd.f32 %v1680_v62, %v808_v51  ;;  %v741_v0 = vpop.f32.mrb[5].mxu0  ;;  %v873_v1 = vsel %vm843_vm5, %v833_v55, %v863_v60  ;;  %v960_v62 = vld [vmem:[%s2445_s6] sm:$0xff] }
 0x211   : > { %v834_v13 = vadd.f32 %v803_v54, %v741_v0  ;;  %906 = vrot.lane.b32.xlu0 %v873_v1, %s1931_s18  ;;  %v872_v14 = vsel %vm842_vm6, %v832_v58, %v862_v61  ;;  %1707 = vmatprep.mubr.msk.f32.mxu1 %vm479_vm2, %v960_v62  ;;  %v947_v62 = vld [vmem:[%s2444_s5 + $0x38] sm:$0xff] }
 0x212   : > { %v865_v16 = vmul.f32 %v2217_v43, %v835_v63  ;;  %904 = vrot.lane.b32.xlu1 %v872_v14, %s1931_s18  ;;  %vm845_vm7 = vcmp.gt.f32.partialorder %v835_v63, 0.0 }
 0x213   : > { %v864_v17 = vmul.f32 %v2217_v43, %v834_v13  ;;  %v1683_v18 = vpop.f32.mrb[6].mxu0  ;;  %vm844_vm8 = vcmp.gt.f32.partialorder %v834_v13, 0.0 }
 0x214   : > { %v837_v19 = vadd.f32 %v1683_v18, %v818_v2  ;;  %v751_v20 = vpop.f32.mrb[7].mxu0  ;;  %v875_v21 = vsel %vm845_vm7, %v835_v63, %v865_v16  ;;  %v1300_v2 = vld [vmem:[%s2446_s7] sm:$0xff]  ;;  %v1302_v16 = vld [vmem:[%s2446_s7 + $0x10] sm:$0xff] }
 0x215   : > { %v836_v22 = vadd.f32 %v813_v15, %v751_v20  ;;  %910 = vrot.lane.b32.xlu0 %v875_v21, %s1931_s18  ;;  %v874_v23 = vsel %vm844_vm8, %v834_v13, %v864_v17  ;;  %v1301_v17 = vld [vmem:[%s2446_s7 + $0x8] sm:$0xff]  ;;  %v1304_v18 = vld [vmem:[%s2446_s7 + $0x20] sm:$0xff]  ;;  %v1306_v20 = vld [vmem:[%s2446_s7 + $0x30] sm:$0xff] }
 0x216   : > { %v867_v24 = vmul.f32 %v2217_v43, %v837_v19  ;;  %908 = vrot.lane.b32.xlu1 %v874_v23, %s1931_s18  ;;  %vm847_vm9 = vcmp.gt.f32.partialorder %v837_v19, 0.0  ;;  %v1305_v21 = vld [vmem:[%s2446_s7 + $0x28] sm:$0xff]  ;;  %v1307_v23 = vld [vmem:[%s2446_s7 + $0x38] sm:$0xff] }
 0x217   : > { %v866_v26 = vmul.f32 %v2217_v43, %v836_v22  ;;  %v1686_v27 = vpop.f32.mrb[8].mxu0  ;;  %vm846_vm10 = vcmp.gt.f32.partialorder %v836_v22, 0.0 }
 0x218   : > { %v839_v29 = vadd.f32 %v1686_v27, %v828_v25  ;;  %v761_v30 = vpop.f32.mrb[9].mxu0  ;;  %v877_v31 = vsel %vm847_vm9, %v837_v19, %v867_v24  ;;  %v1303_v19 = vld [vmem:[%s2446_s7 + $0x18] sm:$0xff]  ;;  %v1534_v24 = vld [vmem:[#allocation5] ss:$0 sm:$0xff]  ;;  %v1309_v25 = vld [vmem:[%s2446_s7 + $0x48] sm:$0xff] }
 0x219   : > { %v838_v32 = vadd.f32 %v823_v28, %v761_v30  ;;  %914 = vrot.lane.b32.xlu0 %v877_v31, %s1931_s18  ;;  %v876_v33 = vsel %vm846_vm10, %v836_v22, %v866_v26  ;;  %v1308_v22 = vld [vmem:[%s2446_s7 + $0x40] sm:$0xff] }
 0x21a   : > { %v869_v34 = vmul.f32 %v2217_v43, %v839_v29  ;;  %912 = vrot.lane.b32.xlu1 %v876_v33, %s1931_s18  ;;  %vm849_vm11 = vcmp.gt.f32.partialorder %v839_v29, 0.0 }
 0x21b   : > { %v868_v35 = vmul.f32 %v2217_v43, %v838_v32  ;;  %vm848_vm12 = vcmp.gt.f32.partialorder %v838_v32, 0.0 }
 0x21c   : > { %v879_v36 = vsel %vm849_vm11, %v839_v29, %v869_v34 }
 0x21d   : > { %918 = vrot.lane.b32.xlu0 %v879_v36, %s1931_s18  ;;  %v878_v37 = vsel %vm848_vm12, %v838_v32, %v868_v35 }
 0x21e   : > { %916 = vrot.lane.b32.xlu1 %v878_v37, %s1931_s18 }
 0x27f   : > { %v903_v38 = vpop.permute.xlu0 %902 }
 0x280   : > { %931 = vst.msk [vmem:[#allocation3 + $0x8] sm:$0xff] %vm398_vm1, %v903_v38  ;;  %v901_v39 = vpop.permute.xlu1 %900 }
 0x281   : > { %930 = vst.msk [vmem:[#allocation3] sm:$0xff] %vm398_vm1, %v901_v39 }
 0x283   : > { %v907_v40 = vpop.permute.xlu0 %906 }
 0x284   : > { %933 = vst.msk [vmem:[#allocation3 + $0x18] sm:$0xff] %vm398_vm1, %v907_v40  ;;  %v905_v41 = vpop.permute.xlu1 %904 }
 0x285   : > { %932 = vst.msk [vmem:[#allocation3 + $0x10] sm:$0xff] %vm398_vm1, %v905_v41 }
 0x287   : > { %v911_v42 = vpop.permute.xlu0 %910  ;;  %v951_v43 = vld [vmem:[#allocation3 + $0x8] sm:$0xff] }
 0x288   : > { %935 = vst.msk [vmem:[#allocation3 + $0x28] sm:$0xff] %vm398_vm1, %v911_v42  ;;  %v909_v44 = vpop.permute.xlu1 %908  ;;  %v950_v45 = vld [vmem:[#allocation3] sm:$0xff] }
 0x289   : > { %934 = vst.msk [vmem:[#allocation3 + $0x20] sm:$0xff] %vm398_vm1, %v909_v44  ;;  %v1897_v46 = vpack.i.bf16 %v951_v43, %v950_v45  ;;  %v2245_v47 = vpack.c.bf16 %v951_v43, %v950_v45 }
 0x28b   : > { %v915_v48 = vpop.permute.xlu0 %914  ;;  %1898 = vrot.lane.b32.xlu1 %v1897_v46, %s1932_s19  ;;  %v953_v49 = vld [vmem:[#allocation3 + $0x18] sm:$0xff] }
 0x28c   : > { %937 = vst.msk [vmem:[#allocation3 + $0x38] sm:$0xff] %vm398_vm1, %v915_v48  ;;  %v913_v50 = vpop.permute.xlu1 %912  ;;  %v952_v51 = vld [vmem:[#allocation3 + $0x10] sm:$0xff]  ;;  %v961_v46 = vld [vmem:[%s2445_s6 + $0x8] sm:$0xff]  ;;  %v962_v48 = vld [vmem:[%s2445_s6 + $0x10] sm:$0xff] }
 0x28d   : > { %936 = vst.msk [vmem:[#allocation3 + $0x30] sm:$0xff] %vm398_vm1, %v913_v50  ;;  %v1902_v52 = vpack.i.bf16 %v953_v49, %v952_v51  ;;  %v2250_v53 = vpack.c.bf16 %v953_v49, %v952_v51  ;;  %v963_v49 = vld [vmem:[%s2445_s6 + $0x18] sm:$0xff]  ;;  %v964_v50 = vld [vmem:[%s2445_s6 + $0x20] sm:$0xff]  ;;  %v966_v51 = vld [vmem:[%s2445_s6 + $0x30] sm:$0xff] }
 0x28f   : > { %1903 = vrot.lane.b32.xlu0 %v1902_v52, %s1932_s19  ;;  %v919_v54 = vpop.permute.xlu0 %918  ;;  %v955_v55 = vld [vmem:[#allocation3 + $0x28] sm:$0xff] }
 0x290   : > { %939 = vst.msk [vmem:[#allocation3 + $0x48] sm:$0xff] %vm398_vm1, %v919_v54  ;;  %v917_v56 = vpop.permute.xlu1 %916  ;;  %v954_v57 = vld [vmem:[#allocation3 + $0x20] sm:$0xff]  ;;  %v967_v52 = vld [vmem:[%s2445_s6 + $0x38] sm:$0xff]  ;;  %v969_v54 = vld [vmem:[%s2445_s6 + $0x48] sm:$0xff] }
 0x291   : > { %938 = vst.msk [vmem:[#allocation3 + $0x40] sm:$0xff] %vm398_vm1, %v917_v56  ;;  %v1907_v58 = vpack.i.bf16 %v955_v55, %v954_v57  ;;  %v2255_v59 = vpack.c.bf16 %v955_v55, %v954_v57  ;;  %v940_v55 = vld [vmem:[%s2444_s5] sm:$0xff]  ;;  %v941_v56 = vld [vmem:[%s2444_s5 + $0x8] sm:$0xff]  ;;  %v942_v57 = vld [vmem:[%s2444_s5 + $0x10] sm:$0xff] }
 0x293   : > { %1908 = vrot.lane.b32.xlu1 %v1907_v58, %s1932_s19  ;;  %v957_v60 = vld [vmem:[#allocation3 + $0x38] sm:$0xff]  ;;  %v943_v58 = vld [vmem:[%s2444_s5 + $0x18] sm:$0xff] }
 0x294   : > { %v956_v61 = vld [vmem:[#allocation3 + $0x30] sm:$0xff] }
 0x295   : > { %v1912_v63 = vpack.i.bf16 %v957_v60, %v956_v61  ;;  %v2262_v0 = vpack.c.bf16 %v957_v60, %v956_v61  ;;  %v945_v60 = vld [vmem:[%s2444_s5 + $0x28] sm:$0xff]  ;;  %v946_v61 = vld [vmem:[%s2444_s5 + $0x30] sm:$0xff] }
 0x297   : > { %1913 = vrot.lane.b32.xlu0 %v1912_v63, %s1932_s19  ;;  %v959_v1 = vld [vmem:[#allocation3 + $0x48] sm:$0xff]  ;;  %v948_v63 = vld [vmem:[%s2444_s5 + $0x40] sm:$0xff] }
 0x298   : > { %v958_v13 = vld [vmem:[#allocation3 + $0x40] sm:$0xff] }
 0x299   : > { %v1917_v14 = vpack.i.bf16 %v959_v1, %v958_v13  ;;  %v2268_v15 = vpack.c.bf16 %v959_v1, %v958_v13 }
 0x29b   : > { %1312 = vperm.xlu0 %1896, %v1300_v2   ;;  %1918 = vrot.lane.b32.xlu1 %v1917_v14, %s1932_s19 }
 0x29f   : > { %1322 = vperm.xlu0 %1896, %v1302_v16   ;;  %1317 = vperm.xlu1 %1895, %v1301_v17  }
 0x2a3   : > { %1332 = vperm.xlu0 %1896, %v1304_v18   ;;  %1327 = vperm.xlu1 %1895, %v1303_v19  }
 0x2a7   : > { %1342 = vperm.xlu0 %1896, %v1306_v20   ;;  %1337 = vperm.xlu1 %1895, %v1305_v21  }
 0x2ab   : > { %1352 = vperm.xlu0 %1896, %v1308_v22   ;;  %1347 = vperm.xlu1 %1895, %v1307_v23  }
 0x2af   : > { %1387 = vperm.xlu0 %1896, %v1534_v24   ;;  %1357 = vperm.xlu1 %1895, %v1309_v25  }
 0x2fd   : > { %v1899_v26 = vpop.permute.xlu1 %1898 }
 0x2fe   : > { %v1901_v27 = vunpack.i.h.bf16 %v1899_v26  ;;  %v1900_v28 = vunpack.i.l.bf16 %v1899_v26 }
 0x300   : > { %v1797_v29 = vpack.c.bf16 %v1901_v27, %v1900_v28 }
 0x301   : > { %v1904_v30 = vpop.permute.xlu0 %1903 }
 0x302   : > { %v1906_v31 = vunpack.i.h.bf16 %v1904_v30  ;;  %v1905_v32 = vunpack.i.l.bf16 %v1904_v30  ;;  %1798 = vmatprep.subr.bf16.mxu1 %v1797_v29 }
 0x303   : > { %1800 = vmatpush3.bf16.msra.mxu1 %v1797_v29 }
 0x304   : > { %v1801_v33 = vpack.c.bf16 %v1906_v31, %v1905_v32 }
 0x305   : > { %v1909_v34 = vpop.permute.xlu1 %1908 }
 0x306   : > { %v1911_v35 = vunpack.i.h.bf16 %v1909_v34  ;;  %v1910_v36 = vunpack.i.l.bf16 %v1909_v34  ;;  %1802 = vmatprep.subr.bf16.mxu1 %v1801_v33 }
 0x307   : > { %1804 = vmatpush3.bf16.msra.mxu1 %v1801_v33 }
 0x308   : > { %v1805_v37 = vpack.c.bf16 %v1911_v35, %v1910_v36 }
 0x309   : > { %v1914_v38 = vpop.permute.xlu0 %1913 }
 0x30a   : > { %v1916_v39 = vunpack.i.h.bf16 %v1914_v38  ;;  %v1915_v40 = vunpack.i.l.bf16 %v1914_v38  ;;  %1806 = vmatprep.subr.bf16.mxu1 %v1805_v37 }
 0x30b   : > { %1808 = vmatpush3.bf16.msra.mxu1 %v1805_v37 }
 0x30c   : > { %v1809_v41 = vpack.c.bf16 %v1916_v39, %v1915_v40 }
 0x30d   : > { %v1919_v42 = vpop.permute.xlu1 %1918 }
 0x30e   : > { %v1921_v43 = vunpack.i.h.bf16 %v1919_v42  ;;  %v1920_v44 = vunpack.i.l.bf16 %v1919_v42  ;;  %1810 = vmatprep.subr.bf16.mxu1 %v1809_v41 }
 0x30f   : > { %1812 = vmatpush3.bf16.msra.mxu1 %v1809_v41 }
 0x310   : > { %v1813_v45 = vpack.c.bf16 %v1921_v43, %v1920_v44 }
 0x312   : > { %1814 = vmatprep.subr.bf16.mxu1 %v1813_v45 }
 0x313   : > { %1816 = vmatpush3.bf16.msra.mxu1 %v1813_v45 }
 0x314   : > { %1818 = vmatprep.subr.bf16.mxu1 %v2245_v47 }
 0x316   : > { %1708 = vmatmul.mubr.msk.f32.vlgmr.msra.gmra.mrb[0].mxu1 %vm479_vm2, %v961_v46 }
 0x317   : > { %1820 = vmatpush3.bf16.msra.mxu1 %v2245_v47  ;;  %1710 = vmatprep.mubr.msk.f32.mxu1 %vm479_vm2, %v962_v48  ;;  %v965_v47 = vld [vmem:[%s2445_s6 + $0x28] sm:$0xff] }
 0x318   : > { %1822 = vmatprep.subr.bf16.mxu1 %v2250_v53 }
 0x31a   : > { %1711 = vmatmul.mubr.msk.f32.gmra.mrb[2].mxu1 %vm479_vm2, %v963_v49  ;;  %v1313_v1 = vpop.permute.xlu0 %1312 }
 0x31b   : > { %1824 = vmatpush3.bf16.msra.mxu1 %v2250_v53  ;;  %1713 = vmatprep.mubr.msk.f32.mxu1 %vm479_vm2, %v964_v50  ;;  %v968_v53 = vld [vmem:[%s2445_s6 + $0x40] sm:$0xff] }
 0x31c   : > { %1826 = vmatprep.subr.bf16.mxu1 %v2255_v59 }
 0x31e   : > { %1714 = vmatmul.mubr.msk.f32.gmra.mrb[4].mxu1 %vm479_vm2, %v965_v47  ;;  %v1323_v2 = vpop.permute.xlu0 %1322 }
 0x31f   : > { %1828 = vmatpush3.bf16.msra.mxu1 %v2255_v59  ;;  %1716 = vmatprep.mubr.msk.f32.mxu1 %vm479_vm2, %v966_v51  ;;  %v944_v59 = vld [vmem:[%s2444_s5 + $0x20] sm:$0xff] }
 0x320   : > { %1830 = vmatprep.subr.bf16.mxu1 %v2262_v0 }
 0x322   : > { %1717 = vmatmul.mubr.msk.f32.gmra.mrb[6].mxu1 %vm479_vm2, %v967_v52  ;;  %v1333_v13 = vpop.permute.xlu0 %1332 }
 0x323   : > { %1832 = vmatpush3.bf16.msra.mxu1 %v2262_v0  ;;  %1719 = vmatprep.mubr.msk.f32.mxu1 %vm479_vm2, %v968_v53  ;;  %v949_v0 = vld [vmem:[%s2444_s5 + $0x48] sm:$0xff] }
 0x324   : > { %1834 = vmatprep.subr.bf16.mxu1 %v2268_v15 }
 0x326   : > { %1720 = vmatmul.mubr.msk.f32.gmra.mrb[8].mxu1 %vm479_vm2, %v969_v54  ;;  %v1343_v14 = vpop.permute.xlu0 %1342 }
 0x327   : > { %1836 = vmatpush3.bf16.msra.mxu1 %v2268_v15  ;;  %1742 = vmatprep.mubr.msk.f32.mxu1 %vm479_vm2, %v940_v55  ;;  %v1318_v15 = vpop.permute.xlu1 %1317 }
 0x32a   : > { %1743 = vmatmul.mubr.msk.f32.vlgmr.msra.gmra.mrb[0].mxu1 %vm479_vm2, %v941_v56  ;;  %v2384_v16 = vpop.permute.xlu0 %1352 }
 0x32b   : > { %1745 = vmatprep.mubr.msk.f32.mxu1 %vm479_vm2, %v942_v57  ;;  %v1328_v17 = vpop.permute.xlu1 %1327 }
 0x32e   : > { %1746 = vmatmul.mubr.msk.f32.gmra.mrb[2].mxu1 %vm479_vm2, %v943_v58  ;;  %v2386_v21 = vpop.permute.xlu0 %1387 }
 0x32f   : > { %1748 = vmatprep.mubr.msk.f32.mxu1 %vm479_vm2, %v944_v59  ;;  %v1338_v24 = vpop.permute.xlu1 %1337 }
 0x332   : > { %1749 = vmatmul.mubr.msk.f32.gmra.mrb[4].mxu1 %vm479_vm2, %v945_v60 }
 0x333   : > { %1751 = vmatprep.mubr.msk.f32.mxu1 %vm479_vm2, %v946_v61  ;;  %v1348_v39 = vpop.permute.xlu1 %1347 }
 0x336   : > { %1752 = vmatmul.mubr.msk.f32.gmra.mrb[6].mxu1 %vm479_vm2, %v947_v62 }
 0x337   : > { %1754 = vmatprep.mubr.msk.f32.mxu1 %vm479_vm2, %v948_v63  ;;  %v1358_v52 = vpop.permute.xlu1 %1357 }
 0x33a   : > { %1755 = vmatmul.mubr.msk.f32.gmra.mrb[8].mxu1 %vm479_vm2, %v949_v0 }
 0x3fd   : > { %v1744_v18 = vpop.f32.mrb[0].mxu1 }
 0x3fe   : > { %v1361_v19 = vadd.f32 %v1744_v18, %v1318_v15  ;;  %v1251_v20 = vpop.f32.mrb[1].mxu1 }
 0x3ff   : > { %v1360_v22 = vadd.f32 %v1313_v1, %v1251_v20 }
 0x400   : > { %vm1371_vm13 = vcmp.gt.f32.partialorder %v1361_v19, 0.0  ;;  %v1391_v23 = vmul.f32 %v2386_v21, %v1361_v19 }
 0x401   : > { %vm1370_vm14 = vcmp.gt.f32.partialorder %v1360_v22, 0.0  ;;  %v1390_v25 = vmul.f32 %v2386_v21, %v1360_v22  ;;  %v1747_v26 = vpop.f32.mrb[2].mxu1 }
 0x402   : > { %v1401_v27 = vsel %vm1371_vm13, %v1361_v19, %v1391_v23  ;;  %v1363_v28 = vadd.f32 %v1747_v26, %v1328_v17  ;;  %v1261_v29 = vpop.f32.mrb[3].mxu1 }
 0x403   : > { %v1411_v30 = vadd.f32 %v1401_v27, %v2042_v6  ;;  %v1400_v31 = vsel %vm1370_vm14, %v1360_v22, %v1390_v25  ;;  %v1362_v32 = vadd.f32 %v1323_v2, %v1261_v29 }
 0x404   : > { %v1410_v33 = vadd.f32 %v1400_v31, %v2034_v4  ;;  %vm1373_vm0 = vcmp.gt.f32.partialorder %v1363_v28, 0.0  ;;  %v1393_v34 = vmul.f32 %v2386_v21, %v1363_v28 }
 0x405   : > { %1422 = vst.msk [vmem:[%s2395_s27 + $0x8] sm:$0xff] %vm1420_vm15, %v1411_v30  ;;  %vm1372_vm1 = vcmp.gt.f32.partialorder %v1362_v32, 0.0  ;;  %v1392_v35 = vmul.f32 %v2386_v21, %v1362_v32  ;;  %v1750_v36 = vpop.f32.mrb[4].mxu1 }
 0x406   : > { %1421 = vst.msk [vmem:[%s2395_s27] sm:$0xff] %vm1420_vm15, %v1410_v33  ;;  %v1403_v37 = vsel %vm1373_vm0, %v1363_v28, %v1393_v34  ;;  %v1365_v38 = vadd.f32 %v1750_v36, %v1338_v24  ;;  %v1271_v6 = vpop.f32.mrb[5].mxu1 }
 0x407   : > { %v1413_v40 = vadd.f32 %v1403_v37, %v2040_v5  ;;  %v1402_v4 = vsel %vm1372_vm1, %v1362_v32, %v1392_v35  ;;  %v1364_v41 = vadd.f32 %v1333_v13, %v1271_v6 }
 0x408   : > { %v1412_v42 = vadd.f32 %v1402_v4, %v2032_v3  ;;  %vm1375_vm2 = vcmp.gt.f32.partialorder %v1365_v38, 0.0  ;;  %v1395_v43 = vmul.f32 %v2386_v21, %v1365_v38 }
 0x409   : > { %1424 = vst.msk [vmem:[%s2395_s27 + $0x18] sm:$0xff] %vm1420_vm15, %v1413_v40  ;;  %vm1374_vm3 = vcmp.gt.f32.partialorder %v1364_v41, 0.0  ;;  %v1394_v44 = vmul.f32 %v2386_v21, %v1364_v41  ;;  %v1753_v45 = vpop.f32.mrb[6].mxu1 }
 0x40a   : > { %1423 = vst.msk [vmem:[%s2395_s27 + $0x10] sm:$0xff] %vm1420_vm15, %v1412_v42  ;;  %v1405_v46 = vsel %vm1375_vm2, %v1365_v38, %v1395_v43  ;;  %v1367_v48 = vadd.f32 %v1753_v45, %v1348_v39  ;;  %v1281_v5 = vpop.f32.mrb[7].mxu1 }
 0x40b   : > { %v1415_v49 = vadd.f32 %v1405_v46, %v2048_v7  ;;  %v1404_v50 = vsel %vm1374_vm3, %v1364_v41, %v1394_v44  ;;  %v1366_v3 = vadd.f32 %v1343_v14, %v1281_v5 }
 0x40c   : > { %v1414_v47 = vadd.f32 %v1404_v50, %v2050_v8  ;;  %vm1377_vm4 = vcmp.gt.f32.partialorder %v1367_v48, 0.0  ;;  %v1397_v51 = vmul.f32 %v2386_v21, %v1367_v48 }
 0x40d   : > { %1426 = vst.msk [vmem:[%s2395_s27 + $0x28] sm:$0xff] %vm1420_vm15, %v1415_v49  ;;  %vm1376_vm5 = vcmp.gt.f32.partialorder %v1366_v3, 0.0  ;;  %v1396_v53 = vmul.f32 %v2386_v21, %v1366_v3  ;;  %v1756_v54 = vpop.f32.mrb[8].mxu1 }
 0x40e   : > { %1425 = vst.msk [vmem:[%s2395_s27 + $0x20] sm:$0xff] %vm1420_vm15, %v1414_v47  ;;  %v1407_v55 = vsel %vm1377_vm4, %v1367_v48, %v1397_v51  ;;  %v1369_v7 = vadd.f32 %v1756_v54, %v1358_v52  ;;  %v1291_v56 = vpop.f32.mrb[9].mxu1 }
 0x40f   : > { %v1417_v8 = vadd.f32 %v1407_v55, %v2056_v9  ;;  %v1406_v57 = vsel %vm1376_vm5, %v1366_v3, %v1396_v53  ;;  %v1368_v58 = vadd.f32 %v2384_v16, %v1291_v56 }
 0x410   : > { %v1416_v59 = vadd.f32 %v1406_v57, %v2058_v10  ;;  %vm1379_vm6 = vcmp.gt.f32.partialorder %v1369_v7, 0.0  ;;  %v1399_v60 = vmul.f32 %v2386_v21, %v1369_v7 }
 0x411   : > { %1428 = vst.msk [vmem:[%s2395_s27 + $0x38] sm:$0xff] %vm1420_vm15, %v1417_v8  ;;  %vm1378_vm7 = vcmp.gt.f32.partialorder %v1368_v58, 0.0  ;;  %v1398_v61 = vmul.f32 %v2386_v21, %v1368_v58 }
 0x412   : > { %1427 = vst.msk [vmem:[%s2395_s27 + $0x30] sm:$0xff] %vm1420_vm15, %v1416_v59  ;;  %v1409_v62 = vsel %vm1379_vm6, %v1369_v7, %v1399_v60 }
 0x413   : > { %v1419_v63 = vadd.f32 %v1409_v62, %v2064_v11  ;;  %v1408_v0 = vsel %vm1378_vm7, %v1368_v58, %v1398_v61 }
 0x414   : > { %v1418_v9 = vadd.f32 %v1408_v0, %v2066_v12 }
 0x415   : > { %1430 = vst.msk [vmem:[%s2395_s27 + $0x48] sm:$0xff] %vm1420_vm15, %v1419_v63 }
 0x416   : > { %1429 = vst.msk [vmem:[%s2395_s27 + $0x40] sm:$0xff] %vm1420_vm15, %v1418_v9 }
 0x417 PF: > { %s23_s13 = sadd.s32 1, %s1928_s13  }
 0x418   : > { %p20_p4 = scmp.ge.s32.totalorder %s23_s13, 4  }
 0x41a   :  { %22 = sbr.rel (!%p20_p4) target bundleno = 3 (0x3), region = 86 }

// kernel: discriminator_forward.17
= control target key start
LH: loop header
LB: loop body
LE: loop exit
PB: predicated region body
PF: predicated region fallthrough
CT: control target
= control target key end

     0   :  { %v167_v0 = vmov 0.0|0.0   ;;  %vm168_vm0 = vmmov 0   ;;  %v169_v4 = vmov 0.0   ;;  %vm32_vm1 = vcmask 523264   ;;  %s223_s1 = inlined_call_operand.vmem [shape: f32[64,1], index: 1, kind: input, shape index: {}]   ;;  %s224_s2 = inlined_call_operand.<no memory space> [shape: f32[1,1], index: 2, kind: input, shape index: {}]   ;;  %s225_s0 = inlined_call_operand.vmem [shape: f32[2,64], index: 0, kind: input, shape index: {}]   ;;  %s226_s3 = inlined_call_operand.vmem [shape: f32[2,1], index: 3, kind: output, shape index: {}]  }
   0x1   :  { %148 = vmatprep.subr.bf16.mxu0 %v167_v0  ;;  %v17_v1 = vld [vmem:[%s223_s1] sm:$0xff]  ;;  %v18_v2 = vld [vmem:[%s223_s1 + $0x8] sm:$0xff]  ;;  %v19_v3 = vld [vmem:[%s223_s1 + $0x10] sm:$0xff]  ;;  %145 = vmatprep.mubr.msk.f32.mxu0 %vm168_vm0, %v169_v4  ;;  %v8_v5 = vstv %s224_s2  ;;  %vm112_vm2 = vcmask 1024  }
   0x2   :  { %v149_v6 = vpack.c.bf16 %v18_v2, %v17_v1  ;;  %v20_v7 = vld [vmem:[%s223_s1 + $0x18] sm:$0xff]  ;;  %9 = vst [vmem:[#allocation2] sm:$0x1] %v8_v5  ;;  %v21_v9 = vld [vmem:[%s223_s1 + $0x20] sm:$0xff]  ;;  %v22_v10 = vld [vmem:[%s223_s1 + $0x28] sm:$0xff] }
   0x3   :  { %v152_v8 = vpack.c.bf16 %v20_v7, %v19_v3  ;;  %v155_v11 = vpack.c.bf16 %v22_v10, %v21_v9  ;;  %v23_v12 = vld [vmem:[%s223_s1 + $0x30] sm:$0xff]  ;;  %v24_v13 = vld [vmem:[%s223_s1 + $0x38] sm:$0xff]  ;;  %v16_v15 = vld [vmem:[%s225_s0] sm:$0x3] }
   0x4   :  { %150 = vmatpush3.bf16.msra.mxu0 %v149_v6  ;;  %v158_v14 = vpack.c.bf16 %v24_v13, %v23_v12 }
   0x5   :  { %151 = vmatprep.subr.bf16.mxu0 %v167_v0 }
   0x8   :  { %153 = vmatpush3.bf16.msra.mxu0 %v152_v8 }
   0x9   :  { %154 = vmatprep.subr.bf16.mxu0 %v167_v0  ;;  %v118_v16 = vld [vmem:[#allocation2] ss:$0 sm:$0xff] }
   0xc   :  { %156 = vmatpush3.bf16.msra.mxu0 %v155_v11 }
   0xd   :  { %157 = vmatprep.subr.bf16.mxu0 %v167_v0 }
  0x10   :  { %159 = vmatpush3.bf16.msra.mxu0 %v158_v14 }
  0x13   :  { %146 = vmatmul.mubr.msk.f32.vlgmr.msra.gmra.mrb[0].mxu0 %vm32_vm1, %v16_v15 }
  0xe6   :  { %v102_v17 = vpop.f32.mrb[0].mxu0 }
  0xe7   :  { %v103_v18 = vadd.f32 %v118_v16, %v102_v17  ;;  %v147_v19 = vpop.f32.mrb[1].mxu0 }
  0xe9   :  { %v106_v20 = vsub.f32 0.0, %v103_v18 }
  0xeb   :  { %v107_v21 = vmul.f32 1.442695, %v106_v20 }
  0xed   :  { %163 = vpow2.f32 %v107_v21 }
  0xf7   :  { %v164_v22 = vpop.eup %163 }
  0xf8   :  { %v109_v23 = vadd.f32 1.0, %v164_v22 }
  0xfa   :  { %165 = vrcp.f32 %v109_v23 }
 0x104   :  { %v166_v24 = vpop.eup %165 }
 0x105   :  { %113 = vst.msk [vmem:[%s226_s3] sm:$0x3] %vm112_vm2, %v166_v24 }

</bundles_post_ra>
